<compile_context>
chip_gen: v7x
topology: tpu7x:2x2x1
jax: 0.10.0
libtpu: 0.0.40
codegen_flags: <defaults>
</compile_context>

<pallas_src>
import jax
import jax.numpy as jnp
from jax.experimental import pallas as pl
from jax.experimental.pallas import tpu as pltpu


_GELU_C = 0.7978845608028654  # sqrt(2/pi)


def _round_up(n, m):
    return ((n + m - 1) // m) * m


def _gelu_tanh(x):
    # 0.5*x*(1 + tanh(sqrt(2/pi)*(x + 0.044715*x^3))), factored to fewer VALU ops:
    #   inner = x*(c + (c*0.044715)*x^2);  out = 0.5x + 0.5x*tanh(inner)
    u = x * x
    inner = x * (_GELU_C + (_GELU_C * 0.044715) * u)
    t = jnp.tanh(inner)                      # EUP slot
    hx = 0.5 * x
    return hx + hx * t


def ffn_kernel(x_ref, w1_ref, b1_ref, w2_ref, b2_ref, o_ref):
    # First GEMM on the MXU: operands in the weight dtype (bf16 fast path),
    # f32 accumulation.
    x = x_ref[...]
    if x.dtype != w1_ref.dtype:
        x = x.astype(w1_ref.dtype)                                      # (tm, E)
    h = jnp.dot(x, w1_ref[...], preferred_element_type=jnp.float32)    # (tm, H) f32
    h = h + b1_ref[...]                                                 # bias bcast (1, H)
    g = _gelu_tanh(h)                                                   # f32 VPU/EUP
    # Second GEMM: cast the activation to the weight dtype so the (tm, H)
    # operand is half-width and stays on the fast MXU path.
    y = jnp.dot(g.astype(w2_ref.dtype), w2_ref[...],
                preferred_element_type=jnp.float32)                     # (tm, E) f32
    o_ref[...] = (y + b2_ref[...]).astype(o_ref.dtype)


def _tpu_defaults():
    """Generation-aware (row tile, vmem_limit_bytes). Safe fallbacks if the
    hardware query is unavailable."""
    vmem = 128 * 1024 * 1024
    try:
        info = pltpu.get_tpu_info()
        vmem = int(getattr(info, "vmem_capacity_bytes", vmem))
    except Exception:
        pass
    if vmem <= 64 * 1024 * 1024:
        # v7x-class: 64 MiB VMEM per TC -> conservative limit, tm <= 512.
        return 512, 48 * 1024 * 1024
    # v5e / v6e: 128 MiB physical VMEM -> bigger tile and scoped limit.
    return 1024, 96 * 1024 * 1024


def feed_forward(x, w1, b1, w2, b2, *, tm=None, vmem_limit_bytes=None):
    """x: (B, S, E).  w1: (E, 4E), b1: (4E,), w2: (4E, E), b2: (E,).

    Weights are used in the dtype they are passed in (store them in bf16 once
    for the fast MXU path; no per-call cast happens here). Accumulation, bias
    add and the GELU stay float32. Output dtype matches x.dtype.
    """
    B, S, E = x.shape
    H = w1.shape[1]
    M = B * S

    tm_default, vmem_default = _tpu_defaults()
    if tm is None:
        tm = tm_default
    if vmem_limit_bytes is None:
        vmem_limit_bytes = vmem_default

    # Minimum sublane tile: 8 for 32-bit x, 16 for sub-32-bit (bf16 packs 16x128).
    min_tm = 8 if jnp.dtype(x.dtype).itemsize >= 4 else 16
    tm = max(min_tm, min(tm, _round_up(M, min_tm)))
    tm = _round_up(tm, min_tm)

    x2d = x.reshape(M, E)
    b1_2d = b1.reshape(1, H).astype(jnp.float32)
    b2_2d = b2.reshape(1, E).astype(jnp.float32)

    grid = (pl.cdiv(M, tm),)   # partial last block is write-masked; rows independent

    in_specs = [
        pl.BlockSpec((tm, E), lambda i: (i, 0)),   # x row tile
        pl.BlockSpec((E, H), lambda i: (0, 0)),    # W1 (constant index -> fetched once)
        pl.BlockSpec((1, H), lambda i: (0, 0)),    # b1
        pl.BlockSpec((H, E), lambda i: (0, 0)),    # W2 (constant index -> fetched once)
        pl.BlockSpec((1, E), lambda i: (0, 0)),    # b2
    ]
    out_specs = pl.BlockSpec((tm, E), lambda i: (i, 0))   # lane-dense (E mult of 128)

    out2d = pl.pallas_call(
        ffn_kernel,
        out_shape=jax.ShapeDtypeStruct((M, E), x.dtype),
        grid_spec=pltpu.PrefetchScalarGridSpec(
            num_scalar_prefetch=0,
            grid=grid,
            in_specs=in_specs,
            out_specs=out_specs,
        ),
        compiler_params=pltpu.CompilerParams(
            dimension_semantics=("parallel",),      # shardable across v7x's 2 TCs
            vmem_limit_bytes=vmem_limit_bytes,
        ),
    )(x2d, w1, b1_2d, w2, b2_2d)

    return out2d.reshape(B, S, E)


def feed_forward_ref(x, w1, b1, w2, b2):
    # Pure-JAX reference with the same operand-dtype / f32-accumulation recipe.
    h = jnp.einsum("bse,eh->bsh", x.astype(w1.dtype), w1,
                   preferred_element_type=jnp.float32) + b1.astype(jnp.float32)
    g = _gelu_tanh(h)
    y = jnp.einsum("bsh,he->bse", g.astype(w2.dtype), w2,
                   preferred_element_type=jnp.float32) + b2.astype(jnp.float32)
    return y.astype(x.dtype)


if __name__ == "__main__":
    # Matches the PyTorch spec: x = torch.rand(2, 3, 768), emb_dim = 768.
    B, S, E = 2, 3, 768
    H = 4 * E

    key = jax.random.PRNGKey(0)
    kx, k1, kb1, k2, kb2 = jax.random.split(key, 5)

    x = jax.random.normal(kx, (B, S, E), dtype=jnp.float32)
    # Deterministic "Linear" parameters, stored as (in, out) == W.T of torch Linear.
    w1 = jax.random.normal(k1, (E, H), dtype=jnp.float32) * 0.02
    b1 = jax.random.normal(kb1, (H,), dtype=jnp.float32) * 0.02
    w2 = jax.random.normal(k2, (H, E), dtype=jnp.float32) * 0.02
    b2 = jax.random.normal(kb2, (E,), dtype=jnp.float32) * 0.02

    # Parameter-storage cast: done ONCE here (off the per-call hot path), so no
    # f32->bf16 convert pass over the weights runs per forward call.
    w1_bf16 = jax.block_until_ready(w1.astype(jnp.bfloat16))
    w2_bf16 = jax.block_until_ready(w2.astype(jnp.bfloat16))

    out = feed_forward(x, w1_bf16, b1, w2_bf16, b2)
    out = jax.block_until_ready(out)

    ref = feed_forward_ref(x, w1_bf16, b1, w2_bf16, b2)
    assert out.shape == (B, S, E)
    err = float(jnp.max(jnp.abs(out - ref)))
    assert jnp.allclose(out, ref, atol=1e-2, rtol=1e-2), f"max abs err = {err}"

    print("KERNEL_OK")
</pallas_src>

<mosaic_0001>
module attributes {stable_mosaic.version = 11 : i64} {
  func.func @ffn_kernel(%arg0: i32, %arg1: memref<8x768xf32, #tpu.memory_space<vmem>>, %arg2: memref<768x3072xbf16, #tpu.memory_space<vmem>>, %arg3: memref<1x3072xf32, #tpu.memory_space<vmem>>, %arg4: memref<3072x768xbf16, #tpu.memory_space<vmem>>, %arg5: memref<1x768xf32, #tpu.memory_space<vmem>>, %arg6: memref<8x768xf32, #tpu.memory_space<vmem>>) attributes {dimension_semantics = [#tpu.dimension_semantics<parallel>], iteration_bounds = array<i64: 1>, scalar_prefetch = 0 : i64, scratch_operands = 0 : i64, tpu.core_type = #tpu.core_type<tc>, window_params = [{transform_indices = @transform_0, window_bounds = array<i64: 8, 768>}, {pipeline_mode = #tpu.pipeline_mode<synchronous>, transform_indices = @transform_1, window_bounds = array<i64: 768, 3072>}, {pipeline_mode = #tpu.pipeline_mode<synchronous>, transform_indices = @transform_2, window_bounds = array<i64: 1, 3072>}, {pipeline_mode = #tpu.pipeline_mode<synchronous>, transform_indices = @transform_3, window_bounds = array<i64: 3072, 768>}, {pipeline_mode = #tpu.pipeline_mode<synchronous>, transform_indices = @transform_4, window_bounds = array<i64: 1, 768>}, {transform_indices = @transform_5, window_bounds = array<i64: 8, 768>}]} {
    %c0 = arith.constant 0 : index
    %c0_0 = arith.constant 0 : index
    %0 = vector.load %arg1[%c0, %c0_0] : memref<8x768xf32, #tpu.memory_space<vmem>>, vector<8x768xf32>
    %1 = arith.truncf %0 : vector<8x768xf32> to vector<8x768xbf16>
    %c0_1 = arith.constant 0 : index
    %c0_2 = arith.constant 0 : index
    %2 = vector.load %arg2[%c0_1, %c0_2] : memref<768x3072xbf16, #tpu.memory_space<vmem>>, vector<768x3072xbf16>
    %cst = arith.constant dense<0.000000e+00> : vector<8x3072xf32>
    %3 = tpu.matmul %1, %2, %cst {dimension_numbers = #tpu.dot_dimension_numbers<[1], [0], [0], [1], [0, 0, 1, 1], [], []>} : vector<8x768xbf16>, vector<768x3072xbf16>, vector<8x3072xf32> -> vector<8x3072xf32>
    %c0_3 = arith.constant 0 : index
    %c0_4 = arith.constant 0 : index
    %4 = vector.load %arg3[%c0_3, %c0_4] : memref<1x3072xf32, #tpu.memory_space<vmem>>, vector<1x3072xf32>
    %5 = vector.broadcast %4 : vector<1x3072xf32> to vector<8x3072xf32>
    %6 = arith.addf %3, %5 : vector<8x3072xf32>
    %7 = arith.mulf %6, %6 : vector<8x3072xf32>
    %cst_5 = arith.constant 0.0356774069 : f32
    %8 = vector.broadcast %cst_5 : f32 to vector<8x3072xf32>
    %9 = arith.mulf %8, %7 : vector<8x3072xf32>
    %cst_6 = arith.constant 0.797884583 : f32
    %10 = vector.broadcast %cst_6 : f32 to vector<8x3072xf32>
    %11 = arith.addf %10, %9 : vector<8x3072xf32>
    %12 = arith.mulf %6, %11 : vector<8x3072xf32>
    %13 = math.tanh %12 : vector<8x3072xf32>
    %cst_7 = arith.constant 5.000000e-01 : f32
    %14 = vector.broadcast %cst_7 : f32 to vector<8x3072xf32>
    %15 = arith.mulf %14, %6 : vector<8x3072xf32>
    %16 = arith.mulf %15, %13 : vector<8x3072xf32>
    %17 = arith.addf %15, %16 : vector<8x3072xf32>
    %18 = arith.truncf %17 : vector<8x3072xf32> to vector<8x3072xbf16>
    %c0_8 = arith.constant 0 : index
    %c0_9 = arith.constant 0 : index
    %19 = vector.load %arg4[%c0_8, %c0_9] : memref<3072x768xbf16, #tpu.memory_space<vmem>>, vector<3072x768xbf16>
    %cst_10 = arith.constant dense<0.000000e+00> : vector<8x768xf32>
    %20 = tpu.matmul %18, %19, %cst_10 {dimension_numbers = #tpu.dot_dimension_numbers<[1], [0], [0], [1], [0, 0, 1, 1], [], []>} : vector<8x3072xbf16>, vector<3072x768xbf16>, vector<8x768xf32> -> vector<8x768xf32>
    %c0_11 = arith.constant 0 : index
    %c0_12 = arith.constant 0 : index
    %21 = vector.load %arg5[%c0_11, %c0_12] : memref<1x768xf32, #tpu.memory_space<vmem>>, vector<1x768xf32>
    %22 = vector.broadcast %21 : vector<1x768xf32> to vector<8x768xf32>
    %23 = arith.addf %20, %22 : vector<8x768xf32>
    %c0_13 = arith.constant 0 : index
    %c0_14 = arith.constant 0 : index
    %24 = vector.load %arg6[%c0_13, %c0_14] : memref<8x768xf32, #tpu.memory_space<vmem>>, vector<8x768xf32>
    tpu.vector_store %arg6[%c0_13, %c0_14], %23 {strides = array<i32>} : memref<8x768xf32, #tpu.memory_space<vmem>>, vector<8x768xf32>,
    return
  }
  func.func @transform_0(%arg0: i32) -> (i32, i32) {
    %c0_i32 = arith.constant 0 : i32
    %c0_i32_0 = arith.constant 0 : i32
    return %arg0, %c0_i32 : i32, i32
  }
  func.func @transform_1(%arg0: i32) -> (i32, i32) {
    %c0_i32 = arith.constant 0 : i32
    %c0_i32_0 = arith.constant 0 : i32
    %c0_i32_1 = arith.constant 0 : i32
    return %c0_i32, %c0_i32_0 : i32, i32
  }
  func.func @transform_2(%arg0: i32) -> (i32, i32) {
    %c0_i32 = arith.constant 0 : i32
    %c0_i32_0 = arith.constant 0 : i32
    %c0_i32_1 = arith.constant 0 : i32
    return %c0_i32, %c0_i32_0 : i32, i32
  }
  func.func @transform_3(%arg0: i32) -> (i32, i32) {
    %c0_i32 = arith.constant 0 : i32
    %c0_i32_0 = arith.constant 0 : i32
    %c0_i32_1 = arith.constant 0 : i32
    return %c0_i32, %c0_i32_0 : i32, i32
  }
  func.func @transform_4(%arg0: i32) -> (i32, i32) {
    %c0_i32 = arith.constant 0 : i32
    %c0_i32_0 = arith.constant 0 : i32
    %c0_i32_1 = arith.constant 0 : i32
    return %c0_i32, %c0_i32_0 : i32, i32
  }
  func.func @transform_5(%arg0: i32) -> (i32, i32) {
    %c0_i32 = arith.constant 0 : i32
    %c0_i32_0 = arith.constant 0 : i32
    return %arg0, %c0_i32 : i32, i32
  }
}

</mosaic_0001>

<bundles_post_ra>
// kernel: tpu_custom_call.1
= control target key start
LH: loop header
LB: loop body
LE: loop exit
PB: predicated region body
PF: predicated region fallthrough
CT: control target
= control target key end

     0   :  { %10 = vsyncpa [#allocation3], 0  ;;  %s22300_s0 = inlined_call_operand.hbm [shape: f32[6,768], index: 0, kind: input, shape index: {}]   ;;  %s22301_s1 = inlined_call_operand.hbm [shape: bf16[768,3072], index: 1, kind: input, shape index: {}]   ;;  %s22302_s2 = inlined_call_operand.hbm [shape: f32[1,3072], index: 2, kind: input, shape index: {}]   ;;  %s22303_s3 = inlined_call_operand.hbm [shape: bf16[3072,768], index: 3, kind: input, shape index: {}]   ;;  %s22304_s4 = inlined_call_operand.hbm [shape: f32[1,768], index: 4, kind: input, shape index: {}]   ;;  %s22305_s5 = inlined_call_operand.hbm [shape: f32[6,768], index: 5, kind: output, shape index: {}]  }
   0x1   :  { %11 = vsyncpa [#allocation6], 0 }
   0x2   :  { %12 = vsyncpa [#allocation9], 0 }
   0x3   :  { %13 = vsyncpa [#allocation4], 0  ;;  %s21760_s18 = smov [#allocation5]   ;;  %s21620_s22 = scalar_lea.hbm %s22301_s1, 147456 }
   0x4   :  { %s29_s19 = sshll.u32 %s21760_s18, 4  ;;  %p21621_p0 = scmp.ne.s32.totalorder %s22301_s1, %s21620_s22  ;;  %s30_s19 = int_to_ptr.vmem [resolvable:$true] %s29_s19 }
   0x5   :  { %p21624_p1 = scmp.lt.u32.totalorder %s21620_s22, %s22301_s1 }
   0x7   :  { %p21626_p2 = pnand %p21624_p1, %p21621_p0 }
   0x9   :  { %21629 = shalt.err (!%p21626_p2)
}
   0xa   :  { %s21630_s27 = scalar_lea.vmem %s30_s19, 147456  ;;  %p21635_p4 = scmp.lt.s32.totalorder %s30_s19, %s30_s19 }
   0xb   :  { %p21631_p3 = scmp.ne.s32.totalorder %s30_s19, %s21630_s27  ;;  %p21636_p5 = scmp.lt.s32.totalorder %s21630_s27, %s21630_s27 }
   0xd   :  { %p21637_p6 = por %p21636_p5, %p21635_p4 }
   0xf   :  { %p21638_p7 = pnand %p21637_p6, %p21631_p3 }
  0x11   :  { %21641 = shalt.err (!%p21638_p7)
}
  0x12   :  { %s21761_s28 = smov 1536   ;;  %s21762_s29 = smov 96  }
  0x13   :  { %35 = dma.hbm_to_vmem [thread:$0]  %s22301_s1, 147456, %s30_s19, [#allocation6], %s21761_s28, %s21761_s28, %s21762_s29  }
  0x14   :  { %s21763_s7 = smov [#allocation8]   ;;  %s21642_s11 = scalar_lea.hbm %s22303_s3, 147456 }
  0x15   :  { %s51_s8 = sshll.u32 %s21763_s7, 4  ;;  %p21643_p8 = scmp.ne.s32.totalorder %s22303_s3, %s21642_s11  ;;  %s52_s8 = int_to_ptr.vmem [resolvable:$true] %s51_s8 }
  0x16   :  { %p21646_p9 = scmp.lt.u32.totalorder %s21642_s11, %s22303_s3 }
  0x18   :  { %p21648_p10 = pnand %p21646_p9, %p21643_p8 }
  0x1a   :  { %21651 = shalt.err (!%p21648_p10)
}
  0x1b   :  { %s21652_s16 = scalar_lea.vmem %s52_s8, 147456  ;;  %p21657_p12 = scmp.lt.s32.totalorder %s52_s8, %s52_s8 }
  0x1c   :  { %p21653_p11 = scmp.ne.s32.totalorder %s52_s8, %s21652_s16  ;;  %p21658_p13 = scmp.lt.s32.totalorder %s21652_s16, %s21652_s16 }
  0x1e   :  { %p21659_p0 = por %p21658_p13, %p21657_p12 }
  0x20   :  { %p21660_p1 = pnand %p21659_p0, %p21653_p11 }
  0x22   :  { %21663 = shalt.err (!%p21660_p1)
}
  0x23   :  { %s21764_s1 = smov 384   ;;  %s21765_s17 = smov 24  }
  0x24   :  { %57 = dma.hbm_to_vmem [thread:$0]  %s22303_s3, 147456, %s52_s8, [#allocation9], %s21764_s1, %s21764_s1, %s21765_s17  }
  0x25   :  { %s21766_s20 = smov [#allocation2]   ;;  %s21767_s22 = smov [#allocation7]  }
  0x26   :  { %s20_s21 = sshll.u32 %s21766_s20, 4  ;;  %s42_s23 = sshll.u32 %s21767_s22, 4  ;;  %s21_s21 = int_to_ptr.vmem [resolvable:$true] %s20_s21  ;;  %s43_s23 = int_to_ptr.vmem [resolvable:$true] %s42_s23 }
  0x27   :  { %s21664_s26 = scalar_lea.hbm %s22300_s0, 768 }
  0x28   :  { %p21665_p2 = scmp.ne.s32.totalorder %s22300_s0, %s21664_s26  ;;  %p21668_p3 = scmp.lt.u32.totalorder %s21664_s26, %s22300_s0 }
  0x2a   :  { %p21670_p4 = pnand %p21668_p3, %p21665_p2 }
  0x2c   :  { %21673 = shalt.err (!%p21670_p4)
}
  0x2d   :  { %s21674_s3 = scalar_lea.vmem %s21_s21, 768  ;;  %p21679_p6 = scmp.lt.s32.totalorder %s21_s21, %s21_s21 }
  0x2e   :  { %p21675_p5 = scmp.ne.s32.totalorder %s21_s21, %s21674_s3  ;;  %p21680_p7 = scmp.lt.s32.totalorder %s21674_s3, %s21674_s3 }
  0x30   :  { %p21681_p8 = por %p21680_p7, %p21679_p6 }
  0x32   :  { %p21682_p9 = pnand %p21681_p8, %p21675_p5 }
  0x34   :  { %21685 = shalt.err (!%p21682_p9)
}
  0x35   :  { %23 = dma.hbm_to_vmem [thread:$0]  %s22300_s0, 768, %s21_s21, [#allocation3]  }
  0x36   :  { %s21686_s10 = scalar_lea.hbm %s22302_s2, 384 }
  0x37   :  { %p21687_p10 = scmp.ne.s32.totalorder %s22302_s2, %s21686_s10  ;;  %p21690_p11 = scmp.lt.u32.totalorder %s21686_s10, %s22302_s2 }
  0x39   :  { %p21692_p12 = pnand %p21690_p11, %p21687_p10 }
  0x3b   :  { %21695 = shalt.err (!%p21692_p12)
}
  0x3c   :  { %s21696_s15 = scalar_lea.vmem %s43_s23, 384  ;;  %p21701_p0 = scmp.lt.s32.totalorder %s43_s23, %s43_s23 }
  0x3d   :  { %p21697_p13 = scmp.ne.s32.totalorder %s43_s23, %s21696_s15  ;;  %p21702_p1 = scmp.lt.s32.totalorder %s21696_s15, %s21696_s15 }
  0x3f   :  { %p21703_p2 = por %p21702_p1, %p21701_p0 }
  0x41   :  { %p21704_p3 = pnand %p21703_p2, %p21697_p13 }
  0x43   :  { %21707 = shalt.err (!%p21704_p3)
}
  0x44   :  { %45 = dma.hbm_to_vmem [thread:$0]  %s22302_s2, 384, %s43_s23, [#allocation6]  }
  0x45   :  { %s21768_s1 = smov [#allocation10]   ;;  %s21708_s20 = scalar_lea.hbm %s22304_s4, 96 }
  0x46   :  { %s64_s17 = sshll.u32 %s21768_s1, 4  ;;  %p21709_p4 = scmp.ne.s32.totalorder %s22304_s4, %s21708_s20  ;;  %s65_s17 = int_to_ptr.vmem [resolvable:$true] %s64_s17 }
  0x47   :  { %p21712_p5 = scmp.lt.u32.totalorder %s21708_s20, %s22304_s4 }
  0x49   :  { %p21714_p6 = pnand %p21712_p5, %p21709_p4 }
  0x4b   :  { %21717 = shalt.err (!%p21714_p6)
}
  0x4c   :  { %s21718_s26 = scalar_lea.vmem %s65_s17, 96  ;;  %p21723_p8 = scmp.lt.s32.totalorder %s65_s17, %s65_s17 }
  0x4d   :  { %p21719_p7 = scmp.ne.s32.totalorder %s65_s17, %s21718_s26  ;;  %p21724_p9 = scmp.lt.s32.totalorder %s21718_s26, %s21718_s26 }
  0x4f   :  { %p21725_p10 = por %p21724_p9, %p21723_p8 }
  0x51   :  { %p21726_p11 = pnand %p21725_p10, %p21719_p7 }
  0x53   :  { %21729 = shalt.err (!%p21726_p11)
}
  0x54   :  { %67 = dma.hbm_to_vmem [thread:$0]  %s22304_s4, 96, %s65_s17, [#allocation9]  }
  0x55   :  { %21752 = dma.done.wait [#allocation3], 768  }
  0x56   :  { %21753 = vsyncadd [#allocation3], 4294966528 }
  0x57   :  { %21754 = dma.done.wait [#allocation6], 147840  }
  0x58   :  { %21755 = vsyncadd [#allocation6], 4294819456 }
  0x59   :  { %21756 = dma.done.wait [#allocation9], 147552  }
  0x5a   :  { %21757 = vsyncadd [#allocation9], 4294819744  ;;  %v95_v0 = vld [vmem:[#allocation5] sm:$0xff]  ;;  %v84_v53 = vld [vmem:[#allocation2 + $0x8] sm:$0xff]  ;;  %s21769_s4 = smov [#allocation11]  }
  0x5b   :  { %v107_v1 = vld [vmem:[#allocation5 + $0x60] sm:$0xff]  ;;  %v21860_v57 = vpack.c.bf16 %v84_v53, %v84_v53  ;;  %s17257_s27 = sshll.u32 %s21769_s4, 4  ;;  %s17258_s27 = int_to_ptr.vmem [resolvable:$true] %s17257_s27 }
  0x5c   :  { %v99_v2 = vld [vmem:[#allocation5 + $0x20] sm:$0xff]  ;;  %v17269_v3 = vcombine.high %v95_v0, %v107_v1  ;;  %v17268_v5 = vcombine.low %v95_v0, %v107_v1  ;;  %s21730_s28 = scalar_lea.vmem %s17258_s27, 768  ;;  %p21735_p13 = scmp.lt.s32.totalorder %s17258_s27, %s17258_s27 }
  0x5d   :  { %v111_v4 = vld [vmem:[#allocation5 + $0x80] sm:$0xff]  ;;  %7165 = vmatprep.mubr.bf16.mxu1 %v21860_v57  ;;  %7657 = vmatprep.mubr.bf16.mxu0 %v21860_v57  ;;  %p21731_p12 = scmp.ne.s32.totalorder %s17258_s27, %s21730_s28  ;;  %p21736_p0 = scmp.lt.s32.totalorder %s21730_s28, %s21730_s28 }
  0x5e   :  { %v119_v6 = vld [vmem:[#allocation5 + $0xc0] sm:$0xff]  ;;  %v17277_v8 = vcombine.high %v99_v2, %v111_v4  ;;  %v17276_v9 = vcombine.low %v99_v2, %v111_v4  ;;  %7133 = vmatprep.subr.bf16.mxu1 %v17269_v3 }
  0x5f   :  { %v131_v7 = vld [vmem:[#allocation5 + $0x120] sm:$0xff]  ;;  %7134 = vmatpush1.bf16.msra.mxu1 %v17268_v5  ;;  %p21737_p1 = por %p21736_p0, %p21735_p13 }
  0x60   :  { %v17293_v10 = vcombine.high %v119_v6, %v131_v7  ;;  %v123_v11 = vld [vmem:[#allocation5 + $0xe0] sm:$0xff]  ;;  %7625 = vmatprep.subr.bf16.mxu0 %v17277_v8  ;;  %v17292_v18 = vcombine.low %v119_v6, %v131_v7 }
  0x61   :  { %v135_v12 = vld [vmem:[#allocation5 + $0x140] sm:$0xff]  ;;  %7626 = vmatpush1.bf16.msra.mxu0 %v17276_v9  ;;  %p21738_p2 = pnand %p21737_p1, %p21731_p12 }
  0x62   :  { %v143_v13 = vld [vmem:[#allocation5 + $0x180] sm:$0xff]  ;;  %v17301_v14 = vcombine.high %v123_v11, %v135_v12  ;;  %7135 = vmatprep.subr.bf16.mxu1 %v17293_v10  ;;  %v17300_v19 = vcombine.low %v123_v11, %v135_v12 }
  0x63   :  { %v155_v15 = vld [vmem:[#allocation5 + $0x1e0] sm:$0xff]  ;;  %7136 = vmatpush1.bf16.msra.mxu1 %v17292_v18 }
  0x64   :  { %v147_v16 = vld [vmem:[#allocation5 + $0x1a0] sm:$0xff]  ;;  %v17317_v20 = vcombine.high %v143_v13, %v155_v15  ;;  %7627 = vmatprep.subr.bf16.mxu0 %v17301_v14  ;;  %v17316_v26 = vcombine.low %v143_v13, %v155_v15 }
  0x65   :  { %v159_v17 = vld [vmem:[#allocation5 + $0x200] sm:$0xff]  ;;  %7628 = vmatpush1.bf16.msra.mxu0 %v17300_v19 }
  0x66   :  { %v17325_v21 = vcombine.high %v147_v16, %v159_v17  ;;  %v167_v22 = vld [vmem:[#allocation5 + $0x240] sm:$0xff]  ;;  %7137 = vmatprep.subr.bf16.mxu1 %v17317_v20  ;;  %v17324_v27 = vcombine.low %v147_v16, %v159_v17 }
  0x67   :  { %v179_v23 = vld [vmem:[#allocation5 + $0x2a0] sm:$0xff]  ;;  %7138 = vmatpush1.bf16.msra.mxu1 %v17316_v26 }
  0x68   :  { %v171_v24 = vld [vmem:[#allocation5 + $0x260] sm:$0xff]  ;;  %v17341_v28 = vcombine.high %v167_v22, %v179_v23  ;;  %7629 = vmatprep.subr.bf16.mxu0 %v17325_v21  ;;  %v17340_v34 = vcombine.low %v167_v22, %v179_v23 }
  0x69   :  { %v183_v25 = vld [vmem:[#allocation5 + $0x2c0] sm:$0xff]  ;;  %7630 = vmatpush1.bf16.msra.mxu0 %v17324_v27 }
  0x6a   :  { %v17349_v29 = vcombine.high %v171_v24, %v183_v25  ;;  %v191_v30 = vld [vmem:[#allocation5 + $0x300] sm:$0xff]  ;;  %7139 = vmatprep.subr.bf16.mxu1 %v17341_v28  ;;  %v17348_v35 = vcombine.low %v171_v24, %v183_v25 }
  0x6b   :  { %v203_v31 = vld [vmem:[#allocation5 + $0x360] sm:$0xff]  ;;  %7140 = vmatpush1.bf16.msra.mxu1 %v17340_v34 }
  0x6c   :  { %v195_v32 = vld [vmem:[#allocation5 + $0x320] sm:$0xff]  ;;  %v17365_v36 = vcombine.high %v191_v30, %v203_v31  ;;  %7631 = vmatprep.subr.bf16.mxu0 %v17349_v29  ;;  %v17364_v42 = vcombine.low %v191_v30, %v203_v31 }
  0x6d   :  { %v207_v33 = vld [vmem:[#allocation5 + $0x380] sm:$0xff]  ;;  %7632 = vmatpush1.bf16.msra.mxu0 %v17348_v35 }
  0x6e   :  { %v17373_v37 = vcombine.high %v195_v32, %v207_v33  ;;  %v215_v38 = vld [vmem:[#allocation5 + $0x3c0] sm:$0xff]  ;;  %7141 = vmatprep.subr.bf16.mxu1 %v17365_v36  ;;  %v17372_v43 = vcombine.low %v195_v32, %v207_v33 }
  0x6f   :  { %v227_v39 = vld [vmem:[#allocation5 + $0x420] sm:$0xff]  ;;  %7142 = vmatpush1.bf16.msra.mxu1 %v17364_v42 }
  0x70   :  { %v219_v40 = vld [vmem:[#allocation5 + $0x3e0] sm:$0xff]  ;;  %v17389_v44 = vcombine.high %v215_v38, %v227_v39  ;;  %7633 = vmatprep.subr.bf16.mxu0 %v17373_v37  ;;  %v17388_v50 = vcombine.low %v215_v38, %v227_v39 }
  0x71   :  { %v231_v41 = vld [vmem:[#allocation5 + $0x440] sm:$0xff]  ;;  %7634 = vmatpush1.bf16.msra.mxu0 %v17372_v43 }
  0x72   :  { %v17397_v45 = vcombine.high %v219_v40, %v231_v41  ;;  %v239_v46 = vld [vmem:[#allocation5 + $0x480] sm:$0xff]  ;;  %7143 = vmatprep.subr.bf16.mxu1 %v17389_v44  ;;  %v17396_v51 = vcombine.low %v219_v40, %v231_v41 }
  0x73   :  { %v251_v47 = vld [vmem:[#allocation5 + $0x4e0] sm:$0xff]  ;;  %7144 = vmatpush1.bf16.msra.mxu1 %v17388_v50 }
  0x74   :  { %v243_v48 = vld [vmem:[#allocation5 + $0x4a0] sm:$0xff]  ;;  %v17413_v52 = vcombine.high %v239_v46, %v251_v47  ;;  %7635 = vmatprep.subr.bf16.mxu0 %v17397_v45  ;;  %v17412_v60 = vcombine.low %v239_v46, %v251_v47 }
  0x75   :  { %v255_v49 = vld [vmem:[#allocation5 + $0x500] sm:$0xff]  ;;  %7636 = vmatpush1.bf16.msra.mxu0 %v17396_v51 }
  0x76   :  { %v17421_v54 = vcombine.high %v243_v48, %v255_v49  ;;  %v263_v55 = vld [vmem:[#allocation5 + $0x540] sm:$0xff]  ;;  %7145 = vmatprep.subr.bf16.mxu1 %v17413_v52  ;;  %v17420_v61 = vcombine.low %v243_v48, %v255_v49 }
  0x77   :  { %v275_v56 = vld [vmem:[#allocation5 + $0x5a0] sm:$0xff]  ;;  %7146 = vmatpush1.bf16.msra.mxu1 %v17412_v60 }
  0x78   :  { %v267_v58 = vld [vmem:[#allocation5 + $0x560] sm:$0xff]  ;;  %v17437_v62 = vcombine.high %v263_v55, %v275_v56  ;;  %7637 = vmatprep.subr.bf16.mxu0 %v17421_v54  ;;  %v17436_v4 = vcombine.low %v263_v55, %v275_v56 }
  0x79   :  { %v279_v59 = vld [vmem:[#allocation5 + $0x5c0] sm:$0xff]  ;;  %7638 = vmatpush1.bf16.msra.mxu0 %v17420_v61 }
  0x7a   :  { %v17445_v63 = vcombine.high %v267_v58, %v279_v59  ;;  %v287_v0 = vld [vmem:[#allocation5 + $0x600] sm:$0xff]  ;;  %7147 = vmatprep.subr.bf16.mxu1 %v17437_v62  ;;  %v17444_v5 = vcombine.low %v267_v58, %v279_v59 }
  0x7b   :  { %v299_v1 = vld [vmem:[#allocation5 + $0x660] sm:$0xff]  ;;  %7148 = vmatpush1.bf16.msra.mxu1 %v17436_v4 }
  0x7c   :  { %v291_v2 = vld [vmem:[#allocation5 + $0x620] sm:$0xff]  ;;  %v17461_v6 = vcombine.high %v287_v0, %v299_v1  ;;  %7639 = vmatprep.subr.bf16.mxu0 %v17445_v63  ;;  %v17460_v12 = vcombine.low %v287_v0, %v299_v1 }
  0x7d   :  { %v303_v3 = vld [vmem:[#allocation5 + $0x680] sm:$0xff]  ;;  %7640 = vmatpush1.bf16.msra.mxu0 %v17444_v5 }
  0x7e   :  { %v17469_v7 = vcombine.high %v291_v2, %v303_v3  ;;  %v311_v8 = vld [vmem:[#allocation5 + $0x6c0] sm:$0xff]  ;;  %7149 = vmatprep.subr.bf16.mxu1 %v17461_v6  ;;  %v17468_v13 = vcombine.low %v291_v2, %v303_v3  ;;  %v83_v6 = vld [vmem:[#allocation2] sm:$0xff] }
  0x7f   :  { %v323_v9 = vld [vmem:[#allocation5 + $0x720] sm:$0xff]  ;;  %7150 = vmatpush1.bf16.msra.mxu1 %v17460_v12  ;;  %v21864_v12 = vpack.c.bf16 %v83_v6, %v83_v6 }
  0x80   :  { %v315_v10 = vld [vmem:[#allocation5 + $0x6e0] sm:$0xff]  ;;  %v17485_v14 = vcombine.high %v311_v8, %v323_v9  ;;  %7641 = vmatprep.subr.bf16.mxu0 %v17469_v7  ;;  %v17484_v20 = vcombine.low %v311_v8, %v323_v9 }
  0x81   :  { %v327_v11 = vld [vmem:[#allocation5 + $0x740] sm:$0xff]  ;;  %7642 = vmatpush1.bf16.msra.mxu0 %v17468_v13 }
  0x82   :  { %v17493_v15 = vcombine.high %v315_v10, %v327_v11  ;;  %v335_v16 = vld [vmem:[#allocation5 + $0x780] sm:$0xff]  ;;  %7151 = vmatprep.subr.bf16.mxu1 %v17485_v14  ;;  %v17492_v21 = vcombine.low %v315_v10, %v327_v11 }
  0x83   :  { %v347_v17 = vld [vmem:[#allocation5 + $0x7e0] sm:$0xff]  ;;  %7152 = vmatpush1.bf16.msra.mxu1 %v17484_v20 }
  0x84   :  { %v339_v18 = vld [vmem:[#allocation5 + $0x7a0] sm:$0xff]  ;;  %v17509_v22 = vcombine.high %v335_v16, %v347_v17  ;;  %7643 = vmatprep.subr.bf16.mxu0 %v17493_v15  ;;  %v17508_v28 = vcombine.low %v335_v16, %v347_v17  ;;  %v86_v15 = vld [vmem:[#allocation2 + $0x18] sm:$0xff] }
  0x85   :  { %v351_v19 = vld [vmem:[#allocation5 + $0x800] sm:$0xff]  ;;  %7644 = vmatpush1.bf16.msra.mxu0 %v17492_v21 }
  0x86   :  { %v17517_v23 = vcombine.high %v339_v18, %v351_v19  ;;  %v359_v24 = vld [vmem:[#allocation5 + $0x840] sm:$0xff]  ;;  %7153 = vmatprep.subr.bf16.mxu1 %v17509_v22  ;;  %v17516_v29 = vcombine.low %v339_v18, %v351_v19 }
  0x87   :  { %v371_v25 = vld [vmem:[#allocation5 + $0x8a0] sm:$0xff]  ;;  %7154 = vmatpush1.bf16.msra.mxu1 %v17508_v28 }
  0x88   :  { %v363_v26 = vld [vmem:[#allocation5 + $0x860] sm:$0xff]  ;;  %v17533_v30 = vcombine.high %v359_v24, %v371_v25  ;;  %7645 = vmatprep.subr.bf16.mxu0 %v17517_v23  ;;  %v17532_v36 = vcombine.low %v359_v24, %v371_v25  ;;  %v21866_v23 = vpack.c.bf16 %v86_v15, %v86_v15 }
  0x89   :  { %v375_v27 = vld [vmem:[#allocation5 + $0x8c0] sm:$0xff]  ;;  %7646 = vmatpush1.bf16.msra.mxu0 %v17516_v29 }
  0x8a   :  { %v17541_v31 = vcombine.high %v363_v26, %v375_v27  ;;  %v383_v32 = vld [vmem:[#allocation5 + $0x900] sm:$0xff]  ;;  %7155 = vmatprep.subr.bf16.mxu1 %v17533_v30  ;;  %v17540_v37 = vcombine.low %v363_v26, %v375_v27 }
  0x8b   :  { %v395_v33 = vld [vmem:[#allocation5 + $0x960] sm:$0xff]  ;;  %7156 = vmatpush1.bf16.msra.mxu1 %v17532_v36 }
  0x8c   :  { %v387_v34 = vld [vmem:[#allocation5 + $0x920] sm:$0xff]  ;;  %v17557_v38 = vcombine.high %v383_v32, %v395_v33  ;;  %7647 = vmatprep.subr.bf16.mxu0 %v17541_v31  ;;  %v17556_v44 = vcombine.low %v383_v32, %v395_v33 }
  0x8d   :  { %v399_v35 = vld [vmem:[#allocation5 + $0x980] sm:$0xff]  ;;  %7648 = vmatpush1.bf16.msra.mxu0 %v17540_v37 }
  0x8e   :  { %v17565_v39 = vcombine.high %v387_v34, %v399_v35  ;;  %v407_v40 = vld [vmem:[#allocation5 + $0x9c0] sm:$0xff]  ;;  %7157 = vmatprep.subr.bf16.mxu1 %v17557_v38  ;;  %v17564_v45 = vcombine.low %v387_v34, %v399_v35 }
  0x8f   :  { %v419_v41 = vld [vmem:[#allocation5 + $0xa20] sm:$0xff]  ;;  %7158 = vmatpush1.bf16.msra.mxu1 %v17556_v44 }
  0x90   :  { %v411_v42 = vld [vmem:[#allocation5 + $0x9e0] sm:$0xff]  ;;  %v17581_v46 = vcombine.high %v407_v40, %v419_v41  ;;  %7649 = vmatprep.subr.bf16.mxu0 %v17565_v39  ;;  %v17580_v52 = vcombine.low %v407_v40, %v419_v41 }
  0x91   :  { %v423_v43 = vld [vmem:[#allocation5 + $0xa40] sm:$0xff]  ;;  %7650 = vmatpush1.bf16.msra.mxu0 %v17564_v45 }
  0x92   :  { %v17589_v47 = vcombine.high %v411_v42, %v423_v43  ;;  %v431_v48 = vld [vmem:[#allocation5 + $0xa80] sm:$0xff]  ;;  %7159 = vmatprep.subr.bf16.mxu1 %v17581_v46  ;;  %v17588_v53 = vcombine.low %v411_v42, %v423_v43 }
  0x93   :  { %v443_v49 = vld [vmem:[#allocation5 + $0xae0] sm:$0xff]  ;;  %7160 = vmatpush1.bf16.msra.mxu1 %v17580_v52 }
  0x94   :  { %v435_v50 = vld [vmem:[#allocation5 + $0xaa0] sm:$0xff]  ;;  %v17605_v54 = vcombine.high %v431_v48, %v443_v49  ;;  %7651 = vmatprep.subr.bf16.mxu0 %v17589_v47  ;;  %v17604_v61 = vcombine.low %v431_v48, %v443_v49 }
  0x95   :  { %v447_v51 = vld [vmem:[#allocation5 + $0xb00] sm:$0xff]  ;;  %7652 = vmatpush1.bf16.msra.mxu0 %v17588_v53 }
  0x96   :  { %v17613_v55 = vcombine.high %v435_v50, %v447_v51  ;;  %v455_v56 = vld [vmem:[#allocation5 + $0xb40] sm:$0xff]  ;;  %7161 = vmatprep.subr.bf16.mxu1 %v17605_v54  ;;  %v17612_v62 = vcombine.low %v435_v50, %v447_v51 }
  0x97   :  { %v467_v58 = vld [vmem:[#allocation5 + $0xba0] sm:$0xff]  ;;  %7162 = vmatpush1.bf16.msra.mxu1 %v17604_v61 }
  0x98   :  { %v459_v59 = vld [vmem:[#allocation5 + $0xb60] sm:$0xff]  ;;  %v17629_v63 = vcombine.high %v455_v56, %v467_v58  ;;  %7653 = vmatprep.subr.bf16.mxu0 %v17613_v55  ;;  %v17628_v5 = vcombine.low %v455_v56, %v467_v58 }
  0x99   :  { %v471_v60 = vld [vmem:[#allocation5 + $0xbc0] sm:$0xff]  ;;  %7654 = vmatpush1.bf16.msra.mxu0 %v17612_v62 }
  0x9a   :  { %v17637_v0 = vcombine.high %v459_v59, %v471_v60  ;;  %v479_v1 = vld [vmem:[#allocation5 + $0xc00] sm:$0xff]  ;;  %7163 = vmatprep.subr.bf16.mxu1 %v17629_v63  ;;  %v17636_v7 = vcombine.low %v459_v59, %v471_v60 }
  0x9b   :  { %v491_v2 = vld [vmem:[#allocation5 + $0xc60] sm:$0xff]  ;;  %7164 = vmatpush1.bf16.msra.mxu1 %v17628_v5 }
  0x9c   :  { %v483_v3 = vld [vmem:[#allocation5 + $0xc20] sm:$0xff]  ;;  %v17653_v8 = vcombine.high %v479_v1, %v491_v2  ;;  %7655 = vmatprep.subr.bf16.mxu0 %v17637_v0  ;;  %v17652_v16 = vcombine.low %v479_v1, %v491_v2 }
  0x9d   :  { %v495_v4 = vld [vmem:[#allocation5 + $0xc80] sm:$0xff]  ;;  %7656 = vmatpush1.bf16.msra.mxu0 %v17636_v7 }
  0x9e   :  { %v17661_v9 = vcombine.high %v483_v3, %v495_v4  ;;  %v503_v10 = vld [vmem:[#allocation5 + $0xcc0] sm:$0xff]  ;;  %7174 = vmatprep.subr.bf16.mxu1 %v17653_v8  ;;  %v17660_v17 = vcombine.low %v483_v3, %v495_v4  ;;  %7166 = vmatmul.mubr.bf16.vlgmr.msra.gmra.mrb[0].mxu1 %v21864_v12 }
  0x9f   :  { %v515_v11 = vld [vmem:[#allocation5 + $0xd20] sm:$0xff]  ;;  %7175 = vmatpush1.bf16.msra.mxu1 %v17652_v16  ;;  %7206 = vmatprep.mubr.bf16.mxu1 %v21866_v23 }
  0xa0   :  { %v507_v13 = vld [vmem:[#allocation5 + $0xce0] sm:$0xff]  ;;  %v17677_v18 = vcombine.high %v503_v10, %v515_v11  ;;  %7666 = vmatprep.subr.bf16.mxu0 %v17661_v9  ;;  %7658 = vmatmul.mubr.bf16.vlgmr.msra.gmra.mrb[0].mxu0 %v21864_v12  ;;  %v17676_v25 = vcombine.low %v503_v10, %v515_v11 }
  0xa1   :  { %v519_v14 = vld [vmem:[#allocation5 + $0xd40] sm:$0xff]  ;;  %7667 = vmatpush1.bf16.msra.mxu0 %v17660_v17  ;;  %7698 = vmatprep.mubr.bf16.mxu0 %v21866_v23 }
  0xa2   :  { %v17685_v19 = vcombine.high %v507_v13, %v519_v14  ;;  %v527_v20 = vld [vmem:[#allocation5 + $0xd80] sm:$0xff]  ;;  %7176 = vmatprep.subr.bf16.mxu1 %v17677_v18  ;;  %v17684_v26 = vcombine.low %v507_v13, %v519_v14 }
  0xa3   :  { %v539_v21 = vld [vmem:[#allocation5 + $0xde0] sm:$0xff]  ;;  %7177 = vmatpush1.bf16.msra.mxu1 %v17676_v25 }
  0xa4   :  { %v531_v22 = vld [vmem:[#allocation5 + $0xda0] sm:$0xff]  ;;  %v17701_v27 = vcombine.high %v527_v20, %v539_v21  ;;  %7668 = vmatprep.subr.bf16.mxu0 %v17685_v19  ;;  %v17700_v33 = vcombine.low %v527_v20, %v539_v21 }
  0xa5   :  { %v543_v24 = vld [vmem:[#allocation5 + $0xe00] sm:$0xff]  ;;  %7669 = vmatpush1.bf16.msra.mxu0 %v17684_v26 }
  0xa6   :  { %v551_v28 = vld [vmem:[#allocation5 + $0xe40] sm:$0xff]  ;;  %v17709_v31 = vcombine.high %v531_v22, %v543_v24  ;;  %7178 = vmatprep.subr.bf16.mxu1 %v17701_v27  ;;  %v17708_v34 = vcombine.low %v531_v22, %v543_v24 }
  0xa7   :  { %v563_v29 = vld [vmem:[#allocation5 + $0xea0] sm:$0xff]  ;;  %7179 = vmatpush1.bf16.msra.mxu1 %v17700_v33 }
  0xa8   :  { %v555_v30 = vld [vmem:[#allocation5 + $0xe60] sm:$0xff]  ;;  %v17725_v35 = vcombine.high %v551_v28, %v563_v29  ;;  %7670 = vmatprep.subr.bf16.mxu0 %v17709_v31  ;;  %v17724_v41 = vcombine.low %v551_v28, %v563_v29 }
  0xa9   :  { %v567_v32 = vld [vmem:[#allocation5 + $0xec0] sm:$0xff]  ;;  %7671 = vmatpush1.bf16.msra.mxu0 %v17708_v34 }
  0xaa   :  { %v575_v36 = vld [vmem:[#allocation5 + $0xf00] sm:$0xff]  ;;  %v17733_v39 = vcombine.high %v555_v30, %v567_v32  ;;  %7180 = vmatprep.subr.bf16.mxu1 %v17725_v35  ;;  %v17732_v42 = vcombine.low %v555_v30, %v567_v32 }
  0xab   :  { %v587_v37 = vld [vmem:[#allocation5 + $0xf60] sm:$0xff]  ;;  %7181 = vmatpush1.bf16.msra.mxu1 %v17724_v41 }
  0xac   :  { %v579_v38 = vld [vmem:[#allocation5 + $0xf20] sm:$0xff]  ;;  %v17749_v43 = vcombine.high %v575_v36, %v587_v37  ;;  %7672 = vmatprep.subr.bf16.mxu0 %v17733_v39  ;;  %v17748_v49 = vcombine.low %v575_v36, %v587_v37 }
  0xad   :  { %v591_v40 = vld [vmem:[#allocation5 + $0xf80] sm:$0xff]  ;;  %7673 = vmatpush1.bf16.msra.mxu0 %v17732_v42 }
  0xae   :  { %v599_v44 = vld [vmem:[#allocation5 + $0xfc0] sm:$0xff]  ;;  %v17757_v47 = vcombine.high %v579_v38, %v591_v40  ;;  %7182 = vmatprep.subr.bf16.mxu1 %v17749_v43  ;;  %v17756_v50 = vcombine.low %v579_v38, %v591_v40 }
  0xaf   :  { %v611_v45 = vld [vmem:[#allocation5 + $0x1020] sm:$0xff]  ;;  %7183 = vmatpush1.bf16.msra.mxu1 %v17748_v49 }
  0xb0   :  { %v603_v46 = vld [vmem:[#allocation5 + $0xfe0] sm:$0xff]  ;;  %v17773_v51 = vcombine.high %v599_v44, %v611_v45  ;;  %7674 = vmatprep.subr.bf16.mxu0 %v17757_v47  ;;  %v17772_v58 = vcombine.low %v599_v44, %v611_v45 }
  0xb1   :  { %v615_v48 = vld [vmem:[#allocation5 + $0x1040] sm:$0xff]  ;;  %7675 = vmatpush1.bf16.msra.mxu0 %v17756_v50 }
  0xb2   :  { %v623_v52 = vld [vmem:[#allocation5 + $0x1080] sm:$0xff]  ;;  %v17781_v55 = vcombine.high %v603_v46, %v615_v48  ;;  %7184 = vmatprep.subr.bf16.mxu1 %v17773_v51  ;;  %v17780_v59 = vcombine.low %v603_v46, %v615_v48 }
  0xb3   :  { %v635_v53 = vld [vmem:[#allocation5 + $0x10e0] sm:$0xff]  ;;  %7185 = vmatpush1.bf16.msra.mxu1 %v17772_v58 }
  0xb4   :  { %v627_v54 = vld [vmem:[#allocation5 + $0x10a0] sm:$0xff]  ;;  %v17797_v60 = vcombine.high %v623_v52, %v635_v53  ;;  %7676 = vmatprep.subr.bf16.mxu0 %v17781_v55  ;;  %v17796_v2 = vcombine.low %v623_v52, %v635_v53 }
  0xb5   :  { %v639_v56 = vld [vmem:[#allocation5 + $0x1100] sm:$0xff]  ;;  %7677 = vmatpush1.bf16.msra.mxu0 %v17780_v59 }
  0xb6   :  { %v647_v61 = vld [vmem:[#allocation5 + $0x1140] sm:$0xff]  ;;  %v17805_v0 = vcombine.high %v627_v54, %v639_v56  ;;  %7186 = vmatprep.subr.bf16.mxu1 %v17797_v60  ;;  %v17804_v3 = vcombine.low %v627_v54, %v639_v56 }
  0xb7   :  { %v659_v62 = vld [vmem:[#allocation5 + $0x11a0] sm:$0xff]  ;;  %7187 = vmatpush1.bf16.msra.mxu1 %v17796_v2 }
  0xb8   :  { %v651_v63 = vld [vmem:[#allocation5 + $0x1160] sm:$0xff]  ;;  %v17821_v4 = vcombine.high %v647_v61, %v659_v62  ;;  %7678 = vmatprep.subr.bf16.mxu0 %v17805_v0  ;;  %v17820_v10 = vcombine.low %v647_v61, %v659_v62 }
  0xb9   :  { %v663_v1 = vld [vmem:[#allocation5 + $0x11c0] sm:$0xff]  ;;  %7679 = vmatpush1.bf16.msra.mxu0 %v17804_v3 }
  0xba   :  { %v671_v5 = vld [vmem:[#allocation5 + $0x1200] sm:$0xff]  ;;  %v17829_v8 = vcombine.high %v651_v63, %v663_v1  ;;  %7188 = vmatprep.subr.bf16.mxu1 %v17821_v4  ;;  %v17828_v11 = vcombine.low %v651_v63, %v663_v1 }
  0xbb   :  { %v683_v6 = vld [vmem:[#allocation5 + $0x1260] sm:$0xff]  ;;  %7189 = vmatpush1.bf16.msra.mxu1 %v17820_v10 }
  0xbc   :  { %v675_v7 = vld [vmem:[#allocation5 + $0x1220] sm:$0xff]  ;;  %v17845_v13 = vcombine.high %v671_v5, %v683_v6  ;;  %7680 = vmatprep.subr.bf16.mxu0 %v17829_v8  ;;  %v17844_v19 = vcombine.low %v671_v5, %v683_v6 }
  0xbd   :  { %v687_v9 = vld [vmem:[#allocation5 + $0x1280] sm:$0xff]  ;;  %7681 = vmatpush1.bf16.msra.mxu0 %v17828_v11 }
  0xbe   :  { %v695_v14 = vld [vmem:[#allocation5 + $0x12c0] sm:$0xff]  ;;  %v17853_v17 = vcombine.high %v675_v7, %v687_v9  ;;  %7190 = vmatprep.subr.bf16.mxu1 %v17845_v13  ;;  %v17852_v20 = vcombine.low %v675_v7, %v687_v9 }
  0xbf   :  { %v707_v15 = vld [vmem:[#allocation5 + $0x1320] sm:$0xff]  ;;  %7191 = vmatpush1.bf16.msra.mxu1 %v17844_v19 }
  0xc0   :  { %v699_v16 = vld [vmem:[#allocation5 + $0x12e0] sm:$0xff]  ;;  %v17869_v21 = vcombine.high %v695_v14, %v707_v15  ;;  %7682 = vmatprep.subr.bf16.mxu0 %v17853_v17  ;;  %v17868_v28 = vcombine.low %v695_v14, %v707_v15 }
  0xc1   :  { %v711_v18 = vld [vmem:[#allocation5 + $0x1340] sm:$0xff]  ;;  %7683 = vmatpush1.bf16.msra.mxu0 %v17852_v20 }
  0xc2   :  { %v719_v22 = vld [vmem:[#allocation5 + $0x1380] sm:$0xff]  ;;  %v17877_v26 = vcombine.high %v699_v16, %v711_v18  ;;  %7192 = vmatprep.subr.bf16.mxu1 %v17869_v21  ;;  %v17876_v29 = vcombine.low %v699_v16, %v711_v18 }
  0xc3   :  { %v731_v24 = vld [vmem:[#allocation5 + $0x13e0] sm:$0xff]  ;;  %7193 = vmatpush1.bf16.msra.mxu1 %v17868_v28 }
  0xc4   :  { %v723_v25 = vld [vmem:[#allocation5 + $0x13a0] sm:$0xff]  ;;  %v17893_v30 = vcombine.high %v719_v22, %v731_v24  ;;  %7684 = vmatprep.subr.bf16.mxu0 %v17877_v26  ;;  %v17892_v36 = vcombine.low %v719_v22, %v731_v24  ;;  %v88_v24 = vld [vmem:[#allocation2 + $0x28] sm:$0xff] }
  0xc5   :  { %v735_v27 = vld [vmem:[#allocation5 + $0x1400] sm:$0xff]  ;;  %7685 = vmatpush1.bf16.msra.mxu0 %v17876_v29 }
  0xc6   :  { %v743_v31 = vld [vmem:[#allocation5 + $0x1440] sm:$0xff]  ;;  %v17901_v34 = vcombine.high %v723_v25, %v735_v27  ;;  %7194 = vmatprep.subr.bf16.mxu1 %v17893_v30  ;;  %v17900_v37 = vcombine.low %v723_v25, %v735_v27 }
  0xc7   :  { %v755_v32 = vld [vmem:[#allocation5 + $0x14a0] sm:$0xff]  ;;  %7195 = vmatpush1.bf16.msra.mxu1 %v17892_v36 }
  0xc8   :  { %v747_v33 = vld [vmem:[#allocation5 + $0x1460] sm:$0xff]  ;;  %v17917_v38 = vcombine.high %v743_v31, %v755_v32  ;;  %7686 = vmatprep.subr.bf16.mxu0 %v17901_v34  ;;  %v17916_v44 = vcombine.low %v743_v31, %v755_v32  ;;  %v21874_v34 = vpack.c.bf16 %v88_v24, %v88_v24 }
  0xc9   :  { %v759_v35 = vld [vmem:[#allocation5 + $0x14c0] sm:$0xff]  ;;  %7687 = vmatpush1.bf16.msra.mxu0 %v17900_v37 }
  0xca   :  { %v767_v39 = vld [vmem:[#allocation5 + $0x1500] sm:$0xff]  ;;  %v17925_v42 = vcombine.high %v747_v33, %v759_v35  ;;  %7196 = vmatprep.subr.bf16.mxu1 %v17917_v38  ;;  %v17924_v45 = vcombine.low %v747_v33, %v759_v35 }
  0xcb   :  { %v779_v40 = vld [vmem:[#allocation5 + $0x1560] sm:$0xff]  ;;  %7197 = vmatpush1.bf16.msra.mxu1 %v17916_v44 }
  0xcc   :  { %v771_v41 = vld [vmem:[#allocation5 + $0x1520] sm:$0xff]  ;;  %v17941_v46 = vcombine.high %v767_v39, %v779_v40  ;;  %7688 = vmatprep.subr.bf16.mxu0 %v17925_v42  ;;  %v17940_v52 = vcombine.low %v767_v39, %v779_v40 }
  0xcd   :  { %v783_v43 = vld [vmem:[#allocation5 + $0x1580] sm:$0xff]  ;;  %7689 = vmatpush1.bf16.msra.mxu0 %v17924_v45 }
  0xce   :  { %v791_v47 = vld [vmem:[#allocation5 + $0x15c0] sm:$0xff]  ;;  %v17949_v50 = vcombine.high %v771_v41, %v783_v43  ;;  %7198 = vmatprep.subr.bf16.mxu1 %v17941_v46  ;;  %v17948_v53 = vcombine.low %v771_v41, %v783_v43 }
  0xcf   :  { %v803_v48 = vld [vmem:[#allocation5 + $0x1620] sm:$0xff]  ;;  %7199 = vmatpush1.bf16.msra.mxu1 %v17940_v52 }
  0xd0   :  { %v795_v49 = vld [vmem:[#allocation5 + $0x15e0] sm:$0xff]  ;;  %v17965_v54 = vcombine.high %v791_v47, %v803_v48  ;;  %7690 = vmatprep.subr.bf16.mxu0 %v17949_v50  ;;  %v17964_v61 = vcombine.low %v791_v47, %v803_v48 }
  0xd1   :  { %v807_v51 = vld [vmem:[#allocation5 + $0x1640] sm:$0xff]  ;;  %7691 = vmatpush1.bf16.msra.mxu0 %v17948_v53 }
  0xd2   :  { %v815_v55 = vld [vmem:[#allocation5 + $0x1680] sm:$0xff]  ;;  %v17973_v59 = vcombine.high %v795_v49, %v807_v51  ;;  %7200 = vmatprep.subr.bf16.mxu1 %v17965_v54  ;;  %v17972_v62 = vcombine.low %v795_v49, %v807_v51 }
  0xd3   :  { %v827_v56 = vld [vmem:[#allocation5 + $0x16e0] sm:$0xff]  ;;  %7201 = vmatpush1.bf16.msra.mxu1 %v17964_v61 }
  0xd4   :  { %v819_v58 = vld [vmem:[#allocation5 + $0x16a0] sm:$0xff]  ;;  %v17989_v63 = vcombine.high %v815_v55, %v827_v56  ;;  %7692 = vmatprep.subr.bf16.mxu0 %v17973_v59  ;;  %v17988_v5 = vcombine.low %v815_v55, %v827_v56 }
  0xd5   :  { %v831_v60 = vld [vmem:[#allocation5 + $0x1700] sm:$0xff]  ;;  %7693 = vmatpush1.bf16.msra.mxu0 %v17972_v62 }
  0xd6   :  { %v839_v0 = vld [vmem:[#allocation5 + $0x1740] sm:$0xff]  ;;  %v17997_v3 = vcombine.high %v819_v58, %v831_v60  ;;  %7202 = vmatprep.subr.bf16.mxu1 %v17989_v63  ;;  %v17996_v7 = vcombine.low %v819_v58, %v831_v60 }
  0xd7   :  { %v851_v1 = vld [vmem:[#allocation5 + $0x17a0] sm:$0xff]  ;;  %7203 = vmatpush1.bf16.msra.mxu1 %v17988_v5 }
  0xd8   :  { %v843_v2 = vld [vmem:[#allocation5 + $0x1760] sm:$0xff]  ;;  %v18013_v8 = vcombine.high %v839_v0, %v851_v1  ;;  %7694 = vmatprep.subr.bf16.mxu0 %v17997_v3  ;;  %v18012_v15 = vcombine.low %v839_v0, %v851_v1 }
  0xd9   :  { %v855_v4 = vld [vmem:[#allocation5 + $0x17c0] sm:$0xff]  ;;  %7695 = vmatpush1.bf16.msra.mxu0 %v17996_v7 }
  0xda   :  { %v863_v6 = vld [vmem:[#allocation5 + $0x1800] sm:$0xff]  ;;  %v18021_v13 = vcombine.high %v843_v2, %v855_v4  ;;  %7204 = vmatprep.subr.bf16.mxu1 %v18013_v8  ;;  %v18020_v17 = vcombine.low %v843_v2, %v855_v4 }
  0xdb   :  { %v875_v9 = vld [vmem:[#allocation5 + $0x1860] sm:$0xff]  ;;  %7205 = vmatpush1.bf16.msra.mxu1 %v18012_v15 }
  0xdc   :  { %v867_v10 = vld [vmem:[#allocation5 + $0x1820] sm:$0xff]  ;;  %v18037_v18 = vcombine.high %v863_v6, %v875_v9  ;;  %7696 = vmatprep.subr.bf16.mxu0 %v18021_v13  ;;  %v18036_v26 = vcombine.low %v863_v6, %v875_v9 }
  0xdd   :  { %v879_v11 = vld [vmem:[#allocation5 + $0x1880] sm:$0xff]  ;;  %7697 = vmatpush1.bf16.msra.mxu0 %v18020_v17 }
  0xde   :  { %v85_v14 = vld [vmem:[#allocation2 + $0x10] sm:$0xff]  ;;  %v18045_v22 = vcombine.high %v867_v10, %v879_v11  ;;  %7215 = vmatprep.subr.bf16.mxu1 %v18037_v18  ;;  %v18044_v27 = vcombine.low %v867_v10, %v879_v11 }
  0xdf   :  { %v887_v16 = vld [vmem:[#allocation5 + $0x18c0] sm:$0xff]  ;;  %v21872_v25 = vpack.c.bf16 %v85_v14, %v85_v14 }
  0xe0   :  { %v899_v19 = vld [vmem:[#allocation5 + $0x1920] sm:$0xff]  ;;  %7707 = vmatprep.subr.bf16.mxu0 %v18045_v22 }
  0xe1   :  { %v891_v20 = vld [vmem:[#allocation5 + $0x18e0] sm:$0xff]  ;;  %v18061_v28 = vcombine.high %v887_v16, %v899_v19  ;;  %7207 = vmatmul.mubr.bf16.vlgmr.msra.gmra.mrb[0].mxu1 %v21872_v25  ;;  %7699 = vmatmul.mubr.bf16.vlgmr.msra.gmra.mrb[0].mxu0 %v21872_v25  ;;  %v18060_v35 = vcombine.low %v887_v16, %v899_v19 }
  0xe2   :  { %v903_v21 = vld [vmem:[#allocation5 + $0x1940] sm:$0xff]  ;;  %7216 = vmatpush1.bf16.msra.mxu1 %v18036_v26  ;;  %7708 = vmatpush1.bf16.msra.mxu0 %v18044_v27 }
  0xe3   :  { %v911_v29 = vld [vmem:[#allocation5 + $0x1980] sm:$0xff]  ;;  %v18069_v32 = vcombine.high %v891_v20, %v903_v21  ;;  %7217 = vmatprep.subr.bf16.mxu1 %v18061_v28  ;;  %v18068_v36 = vcombine.low %v891_v20, %v903_v21  ;;  %7247 = vmatprep.mubr.bf16.mxu1 %v21874_v34 }
  0xe4   :  { %v923_v30 = vld [vmem:[#allocation5 + $0x19e0] sm:$0xff]  ;;  %7739 = vmatprep.mubr.bf16.mxu0 %v21874_v34 }
  0xe5   :  { %v915_v31 = vld [vmem:[#allocation5 + $0x19a0] sm:$0xff]  ;;  %v18085_v37 = vcombine.high %v911_v29, %v923_v30  ;;  %7709 = vmatprep.subr.bf16.mxu0 %v18069_v32  ;;  %v18084_v43 = vcombine.low %v911_v29, %v923_v30 }
  0xe6   :  { %v927_v33 = vld [vmem:[#allocation5 + $0x1a00] sm:$0xff]  ;;  %7218 = vmatpush1.bf16.msra.mxu1 %v18060_v35  ;;  %7710 = vmatpush1.bf16.msra.mxu0 %v18068_v36 }
  0xe7   :  { %v935_v38 = vld [vmem:[#allocation5 + $0x1a40] sm:$0xff]  ;;  %v18093_v41 = vcombine.high %v915_v31, %v927_v33  ;;  %7219 = vmatprep.subr.bf16.mxu1 %v18085_v37  ;;  %v18092_v44 = vcombine.low %v915_v31, %v927_v33 }
  0xe8   :  { %v947_v39 = vld [vmem:[#allocation5 + $0x1aa0] sm:$0xff] }
  0xe9   :  { %v939_v40 = vld [vmem:[#allocation5 + $0x1a60] sm:$0xff]  ;;  %v18109_v45 = vcombine.high %v935_v38, %v947_v39  ;;  %7711 = vmatprep.subr.bf16.mxu0 %v18093_v41  ;;  %v18108_v51 = vcombine.low %v935_v38, %v947_v39 }
  0xea   :  { %v951_v42 = vld [vmem:[#allocation5 + $0x1ac0] sm:$0xff]  ;;  %7220 = vmatpush1.bf16.msra.mxu1 %v18084_v43  ;;  %7712 = vmatpush1.bf16.msra.mxu0 %v18092_v44 }
  0xeb   :  { %v959_v46 = vld [vmem:[#allocation5 + $0x1b00] sm:$0xff]  ;;  %v18117_v49 = vcombine.high %v939_v40, %v951_v42  ;;  %7221 = vmatprep.subr.bf16.mxu1 %v18109_v45  ;;  %v18116_v52 = vcombine.low %v939_v40, %v951_v42 }
  0xec   :  { %v971_v47 = vld [vmem:[#allocation5 + $0x1b60] sm:$0xff] }
  0xed   :  { %v963_v48 = vld [vmem:[#allocation5 + $0x1b20] sm:$0xff]  ;;  %v18133_v53 = vcombine.high %v959_v46, %v971_v47  ;;  %7713 = vmatprep.subr.bf16.mxu0 %v18117_v49  ;;  %v18132_v60 = vcombine.low %v959_v46, %v971_v47 }
  0xee   :  { %v975_v50 = vld [vmem:[#allocation5 + $0x1b80] sm:$0xff]  ;;  %7222 = vmatpush1.bf16.msra.mxu1 %v18108_v51  ;;  %7714 = vmatpush1.bf16.msra.mxu0 %v18116_v52 }
  0xef   :  { %v983_v54 = vld [vmem:[#allocation5 + $0x1bc0] sm:$0xff]  ;;  %v18141_v58 = vcombine.high %v963_v48, %v975_v50  ;;  %7223 = vmatprep.subr.bf16.mxu1 %v18133_v53  ;;  %v18140_v61 = vcombine.low %v963_v48, %v975_v50 }
  0xf0   :  { %v995_v55 = vld [vmem:[#allocation5 + $0x1c20] sm:$0xff] }
  0xf1   :  { %v987_v56 = vld [vmem:[#allocation5 + $0x1be0] sm:$0xff]  ;;  %v18157_v62 = vcombine.high %v983_v54, %v995_v55  ;;  %7715 = vmatprep.subr.bf16.mxu0 %v18141_v58  ;;  %v18156_v4 = vcombine.low %v983_v54, %v995_v55 }
  0xf2   :  { %v999_v59 = vld [vmem:[#allocation5 + $0x1c40] sm:$0xff]  ;;  %7224 = vmatpush1.bf16.msra.mxu1 %v18132_v60  ;;  %7716 = vmatpush1.bf16.msra.mxu0 %v18140_v61 }
  0xf3   :  { %v1007_v63 = vld [vmem:[#allocation5 + $0x1c80] sm:$0xff]  ;;  %v18165_v2 = vcombine.high %v987_v56, %v999_v59  ;;  %7225 = vmatprep.subr.bf16.mxu1 %v18157_v62  ;;  %v18164_v5 = vcombine.low %v987_v56, %v999_v59 }
  0xf4   :  { %v1019_v0 = vld [vmem:[#allocation5 + $0x1ce0] sm:$0xff] }
  0xf5   :  { %v1011_v1 = vld [vmem:[#allocation5 + $0x1ca0] sm:$0xff]  ;;  %v18181_v6 = vcombine.high %v1007_v63, %v1019_v0  ;;  %7717 = vmatprep.subr.bf16.mxu0 %v18165_v2  ;;  %v18180_v13 = vcombine.low %v1007_v63, %v1019_v0 }
  0xf6   :  { %v1023_v3 = vld [vmem:[#allocation5 + $0x1d00] sm:$0xff]  ;;  %7226 = vmatpush1.bf16.msra.mxu1 %v18156_v4  ;;  %7718 = vmatpush1.bf16.msra.mxu0 %v18164_v5 }
  0xf7   :  { %v1031_v7 = vld [vmem:[#allocation5 + $0x1d40] sm:$0xff]  ;;  %v18189_v10 = vcombine.high %v1011_v1, %v1023_v3  ;;  %7227 = vmatprep.subr.bf16.mxu1 %v18181_v6  ;;  %v18188_v14 = vcombine.low %v1011_v1, %v1023_v3 }
  0xf8   :  { %v1043_v8 = vld [vmem:[#allocation5 + $0x1da0] sm:$0xff] }
  0xf9   :  { %v1035_v9 = vld [vmem:[#allocation5 + $0x1d60] sm:$0xff]  ;;  %v18205_v15 = vcombine.high %v1031_v7, %v1043_v8  ;;  %7719 = vmatprep.subr.bf16.mxu0 %v18189_v10  ;;  %v18204_v21 = vcombine.low %v1031_v7, %v1043_v8 }
  0xfa   :  { %v1047_v11 = vld [vmem:[#allocation5 + $0x1dc0] sm:$0xff]  ;;  %7228 = vmatpush1.bf16.msra.mxu1 %v18180_v13  ;;  %7720 = vmatpush1.bf16.msra.mxu0 %v18188_v14 }
  0xfb   :  { %v1055_v16 = vld [vmem:[#allocation5 + $0x1e00] sm:$0xff]  ;;  %v18213_v19 = vcombine.high %v1035_v9, %v1047_v11  ;;  %7229 = vmatprep.subr.bf16.mxu1 %v18205_v15  ;;  %v18212_v22 = vcombine.low %v1035_v9, %v1047_v11 }
  0xfc   :  { %v1067_v17 = vld [vmem:[#allocation5 + $0x1e60] sm:$0xff] }
  0xfd   :  { %v1059_v18 = vld [vmem:[#allocation5 + $0x1e20] sm:$0xff]  ;;  %v18229_v24 = vcombine.high %v1055_v16, %v1067_v17  ;;  %7721 = vmatprep.subr.bf16.mxu0 %v18213_v19  ;;  %v18228_v31 = vcombine.low %v1055_v16, %v1067_v17 }
  0xfe   :  { %v1071_v20 = vld [vmem:[#allocation5 + $0x1e80] sm:$0xff]  ;;  %7230 = vmatpush1.bf16.msra.mxu1 %v18204_v21  ;;  %7722 = vmatpush1.bf16.msra.mxu0 %v18212_v22  ;;  %v96_v21 = vld [vmem:[#allocation5 + $0x8] sm:$0xff] }
  0xff   :  { %v1079_v26 = vld [vmem:[#allocation5 + $0x1ec0] sm:$0xff]  ;;  %v18237_v29 = vcombine.high %v1059_v18, %v1071_v20  ;;  %7231 = vmatprep.subr.bf16.mxu1 %v18229_v24  ;;  %v18236_v32 = vcombine.low %v1059_v18, %v1071_v20  ;;  %v108_v22 = vld [vmem:[#allocation5 + $0x68] sm:$0xff]  ;;  %v101_v24 = vld [vmem:[#allocation5 + $0x30] sm:$0xff] }
 0x100   :  { %v1091_v27 = vld [vmem:[#allocation5 + $0x1f20] sm:$0xff] }
 0x101   :  { %v1083_v28 = vld [vmem:[#allocation5 + $0x1ee0] sm:$0xff]  ;;  %v18253_v33 = vcombine.high %v1079_v26, %v1091_v27  ;;  %7723 = vmatprep.subr.bf16.mxu0 %v18237_v29  ;;  %v18252_v40 = vcombine.low %v1079_v26, %v1091_v27  ;;  %v87_v27 = vld [vmem:[#allocation2 + $0x20] sm:$0xff] }
 0x102   :  { %v1095_v30 = vld [vmem:[#allocation5 + $0x1f40] sm:$0xff]  ;;  %7232 = vmatpush1.bf16.msra.mxu1 %v18228_v31  ;;  %7724 = vmatpush1.bf16.msra.mxu0 %v18236_v32  ;;  %v17271_v31 = vcombine.high %v96_v21, %v108_v22  ;;  %v120_v32 = vld [vmem:[#allocation5 + $0xc8] sm:$0xff] }
 0x103   :  { %v1103_v35 = vld [vmem:[#allocation5 + $0x1f80] sm:$0xff]  ;;  %v18261_v38 = vcombine.high %v1083_v28, %v1095_v30  ;;  %7233 = vmatprep.subr.bf16.mxu1 %v18253_v33  ;;  %v18260_v41 = vcombine.low %v1083_v28, %v1095_v30  ;;  %v113_v28 = vld [vmem:[#allocation5 + $0x90] sm:$0xff]  ;;  %v132_v33 = vld [vmem:[#allocation5 + $0x128] sm:$0xff] }
 0x104   :  { %v1115_v36 = vld [vmem:[#allocation5 + $0x1fe0] sm:$0xff] }
 0x105   :  { %v1107_v37 = vld [vmem:[#allocation5 + $0x1fa0] sm:$0xff]  ;;  %v18277_v42 = vcombine.high %v1103_v35, %v1115_v36  ;;  %7725 = vmatprep.subr.bf16.mxu0 %v18261_v38  ;;  %v18276_v48 = vcombine.low %v1103_v35, %v1115_v36  ;;  %v125_v35 = vld [vmem:[#allocation5 + $0xf0] sm:$0xff]  ;;  %v17281_v36 = vcombine.high %v101_v24, %v113_v28  ;;  %v21880_v38 = vpack.c.bf16 %v87_v27, %v87_v27 }
 0x106   :  { %v1119_v39 = vld [vmem:[#allocation5 + $0x2000] sm:$0xff]  ;;  %7234 = vmatpush1.bf16.msra.mxu1 %v18252_v40  ;;  %7726 = vmatpush1.bf16.msra.mxu0 %v18260_v41  ;;  %v17280_v40 = vcombine.low %v101_v24, %v113_v28  ;;  %v17295_v41 = vcombine.high %v120_v32, %v132_v33 }
 0x107   :  { %v1127_v43 = vld [vmem:[#allocation5 + $0x2040] sm:$0xff]  ;;  %v18285_v46 = vcombine.high %v1107_v37, %v1119_v39  ;;  %7235 = vmatprep.subr.bf16.mxu1 %v18277_v42  ;;  %v18284_v49 = vcombine.low %v1107_v37, %v1119_v39  ;;  %v137_v37 = vld [vmem:[#allocation5 + $0x150] sm:$0xff]  ;;  %v17270_v39 = vcombine.low %v96_v21, %v108_v22  ;;  %v144_v42 = vld [vmem:[#allocation5 + $0x188] sm:$0xff] }
 0x108   :  { %v1139_v44 = vld [vmem:[#allocation5 + $0x20a0] sm:$0xff]  ;;  %v276_v21 = vld [vmem:[#allocation5 + $0x5a8] sm:$0xff]  ;;  %v269_v22 = vld [vmem:[#allocation5 + $0x570] sm:$0xff] }
 0x109   :  { %v1131_v45 = vld [vmem:[#allocation5 + $0x2060] sm:$0xff]  ;;  %v18301_v50 = vcombine.high %v1127_v43, %v1139_v44  ;;  %7727 = vmatprep.subr.bf16.mxu0 %v18285_v46  ;;  %v18300_v56 = vcombine.low %v1127_v43, %v1139_v44  ;;  %v156_v43 = vld [vmem:[#allocation5 + $0x1e8] sm:$0xff]  ;;  %v149_v44 = vld [vmem:[#allocation5 + $0x1b0] sm:$0xff] }
 0x10a   :  { %v1143_v47 = vld [vmem:[#allocation5 + $0x20c0] sm:$0xff]  ;;  %7236 = vmatpush1.bf16.msra.mxu1 %v18276_v48  ;;  %7728 = vmatpush1.bf16.msra.mxu0 %v18284_v49  ;;  %v161_v46 = vld [vmem:[#allocation5 + $0x210] sm:$0xff]  ;;  %v17304_v48 = vcombine.low %v125_v35, %v137_v37  ;;  %v17319_v49 = vcombine.high %v144_v42, %v156_v43 }
 0x10b   :  { %v1151_v51 = vld [vmem:[#allocation5 + $0x2100] sm:$0xff]  ;;  %v18309_v54 = vcombine.high %v1131_v45, %v1143_v47  ;;  %7237 = vmatprep.subr.bf16.mxu1 %v18301_v50  ;;  %v18308_v58 = vcombine.low %v1131_v45, %v1143_v47  ;;  %v17305_v45 = vcombine.high %v125_v35, %v137_v37  ;;  %v17294_v47 = vcombine.low %v120_v32, %v132_v33  ;;  %v168_v50 = vld [vmem:[#allocation5 + $0x248] sm:$0xff]  ;;  %v293_v32 = vld [vmem:[#allocation5 + $0x630] sm:$0xff] }
 0x10c   :  { %v1163_v52 = vld [vmem:[#allocation5 + $0x2160] sm:$0xff]  ;;  %v305_v35 = vld [vmem:[#allocation5 + $0x690] sm:$0xff] }
 0x10d   :  { %v1155_v53 = vld [vmem:[#allocation5 + $0x2120] sm:$0xff]  ;;  %v18325_v59 = vcombine.high %v1151_v51, %v1163_v52  ;;  %7729 = vmatprep.subr.bf16.mxu0 %v18309_v54  ;;  %v18324_v1 = vcombine.low %v1151_v51, %v1163_v52  ;;  %v180_v51 = vld [vmem:[#allocation5 + $0x2a8] sm:$0xff]  ;;  %v173_v52 = vld [vmem:[#allocation5 + $0x270] sm:$0xff] }
 0x10e   :  { %v1167_v55 = vld [vmem:[#allocation5 + $0x2180] sm:$0xff]  ;;  %7238 = vmatpush1.bf16.msra.mxu1 %v18300_v56  ;;  %7730 = vmatpush1.bf16.msra.mxu0 %v18308_v58  ;;  %v185_v54 = vld [vmem:[#allocation5 + $0x2d0] sm:$0xff]  ;;  %v17328_v56 = vcombine.low %v149_v44, %v161_v46  ;;  %v17343_v58 = vcombine.high %v168_v50, %v180_v51 }
 0x10f   :  { %v1175_v60 = vld [vmem:[#allocation5 + $0x21c0] sm:$0xff]  ;;  %v18333_v63 = vcombine.high %v1155_v53, %v1167_v55  ;;  %7239 = vmatprep.subr.bf16.mxu1 %v18325_v59  ;;  %v18332_v2 = vcombine.low %v1155_v53, %v1167_v55  ;;  %v17329_v53 = vcombine.high %v149_v44, %v161_v46  ;;  %v17318_v55 = vcombine.low %v144_v42, %v156_v43  ;;  %v192_v59 = vld [vmem:[#allocation5 + $0x308] sm:$0xff]  ;;  %v317_v42 = vld [vmem:[#allocation5 + $0x6f0] sm:$0xff] }
 0x110   :  { %v1187_v61 = vld [vmem:[#allocation5 + $0x2220] sm:$0xff]  ;;  %v17473_v43 = vcombine.high %v293_v32, %v305_v35  ;;  %v329_v44 = vld [vmem:[#allocation5 + $0x750] sm:$0xff]  ;;  %v17472_v46 = vcombine.low %v293_v32, %v305_v35 }
 0x111   :  { %v1179_v62 = vld [vmem:[#allocation5 + $0x21e0] sm:$0xff]  ;;  %v18349_v3 = vcombine.high %v1175_v60, %v1187_v61  ;;  %7731 = vmatprep.subr.bf16.mxu0 %v18333_v63  ;;  %v18348_v9 = vcombine.low %v1175_v60, %v1187_v61  ;;  %v204_v60 = vld [vmem:[#allocation5 + $0x368] sm:$0xff]  ;;  %v197_v61 = vld [vmem:[#allocation5 + $0x330] sm:$0xff] }
 0x112   :  { %v1191_v0 = vld [vmem:[#allocation5 + $0x2240] sm:$0xff]  ;;  %7240 = vmatpush1.bf16.msra.mxu1 %v18324_v1  ;;  %7732 = vmatpush1.bf16.msra.mxu0 %v18332_v2  ;;  %v209_v63 = vld [vmem:[#allocation5 + $0x390] sm:$0xff]  ;;  %v17352_v1 = vcombine.low %v173_v52, %v185_v54  ;;  %v17367_v2 = vcombine.high %v192_v59, %v204_v60 }
 0x113   :  { %v1199_v4 = vld [vmem:[#allocation5 + $0x2280] sm:$0xff]  ;;  %v18357_v7 = vcombine.high %v1179_v62, %v1191_v0  ;;  %7241 = vmatprep.subr.bf16.mxu1 %v18349_v3  ;;  %v18356_v10 = vcombine.low %v1179_v62, %v1191_v0  ;;  %v17353_v62 = vcombine.high %v173_v52, %v185_v54  ;;  %v17342_v0 = vcombine.low %v168_v50, %v180_v51  ;;  %v216_v3 = vld [vmem:[#allocation5 + $0x3c8] sm:$0xff]  ;;  %v341_v50 = vld [vmem:[#allocation5 + $0x7b0] sm:$0xff] }
 0x114   :  { %v1211_v5 = vld [vmem:[#allocation5 + $0x22e0] sm:$0xff]  ;;  %v17497_v51 = vcombine.high %v317_v42, %v329_v44  ;;  %v353_v52 = vld [vmem:[#allocation5 + $0x810] sm:$0xff]  ;;  %v17496_v54 = vcombine.low %v317_v42, %v329_v44 }
 0x115   :  { %v1203_v6 = vld [vmem:[#allocation5 + $0x22a0] sm:$0xff]  ;;  %v18373_v11 = vcombine.high %v1199_v4, %v1211_v5  ;;  %7733 = vmatprep.subr.bf16.mxu0 %v18357_v7  ;;  %v18372_v18 = vcombine.low %v1199_v4, %v1211_v5  ;;  %v228_v4 = vld [vmem:[#allocation5 + $0x428] sm:$0xff]  ;;  %v221_v5 = vld [vmem:[#allocation5 + $0x3f0] sm:$0xff] }
 0x116   :  { %v1215_v8 = vld [vmem:[#allocation5 + $0x2300] sm:$0xff]  ;;  %7242 = vmatpush1.bf16.msra.mxu1 %v18348_v9  ;;  %7734 = vmatpush1.bf16.msra.mxu0 %v18356_v10  ;;  %v233_v7 = vld [vmem:[#allocation5 + $0x450] sm:$0xff]  ;;  %v17376_v9 = vcombine.low %v197_v61, %v209_v63  ;;  %v17391_v10 = vcombine.high %v216_v3, %v228_v4 }
 0x117   :  { %v1223_v13 = vld [vmem:[#allocation5 + $0x2340] sm:$0xff]  ;;  %v18381_v16 = vcombine.high %v1203_v6, %v1215_v8  ;;  %7243 = vmatprep.subr.bf16.mxu1 %v18373_v11  ;;  %v18380_v19 = vcombine.low %v1203_v6, %v1215_v8  ;;  %v17377_v6 = vcombine.high %v197_v61, %v209_v63  ;;  %v17366_v8 = vcombine.low %v192_v59, %v204_v60  ;;  %v240_v11 = vld [vmem:[#allocation5 + $0x488] sm:$0xff]  ;;  %v365_v59 = vld [vmem:[#allocation5 + $0x870] sm:$0xff] }
 0x118   :  { %v1235_v14 = vld [vmem:[#allocation5 + $0x23a0] sm:$0xff]  ;;  %v17521_v60 = vcombine.high %v341_v50, %v353_v52  ;;  %v377_v61 = vld [vmem:[#allocation5 + $0x8d0] sm:$0xff]  ;;  %v17520_v63 = vcombine.low %v341_v50, %v353_v52 }
 0x119   :  { %v1227_v15 = vld [vmem:[#allocation5 + $0x2360] sm:$0xff]  ;;  %v18397_v20 = vcombine.high %v1223_v13, %v1235_v14  ;;  %7735 = vmatprep.subr.bf16.mxu0 %v18381_v16  ;;  %v18396_v29 = vcombine.low %v1223_v13, %v1235_v14  ;;  %v252_v13 = vld [vmem:[#allocation5 + $0x4e8] sm:$0xff]  ;;  %v245_v14 = vld [vmem:[#allocation5 + $0x4b0] sm:$0xff] }
 0x11a   :  { %v1239_v17 = vld [vmem:[#allocation5 + $0x23c0] sm:$0xff]  ;;  %7244 = vmatpush1.bf16.msra.mxu1 %v18372_v18  ;;  %7736 = vmatpush1.bf16.msra.mxu0 %v18380_v19  ;;  %v257_v16 = vld [vmem:[#allocation5 + $0x510] sm:$0xff]  ;;  %v17400_v18 = vcombine.low %v221_v5, %v233_v7  ;;  %v17415_v19 = vcombine.high %v240_v11, %v252_v13  ;;  %v17414_v27 = vcombine.low %v240_v11, %v252_v13 }
 0x11b   :  { %v18405_v26 = vcombine.high %v1227_v15, %v1239_v17  ;;  %7245 = vmatprep.subr.bf16.mxu1 %v18397_v20  ;;  %v18404_v30 = vcombine.low %v1227_v15, %v1239_v17  ;;  %v17401_v15 = vcombine.high %v221_v5, %v233_v7  ;;  %v17390_v17 = vcombine.low %v216_v3, %v228_v4  ;;  %v264_v20 = vld [vmem:[#allocation5 + $0x548] sm:$0xff]  ;;  %v389_v3 = vld [vmem:[#allocation5 + $0x930] sm:$0xff] }
 0x11c   :  { %v17425_v24 = vcombine.high %v245_v14, %v257_v16  ;;  %v17424_v28 = vcombine.low %v245_v14, %v257_v16  ;;  %v17545_v4 = vcombine.high %v365_v59, %v377_v61  ;;  %v401_v5 = vld [vmem:[#allocation5 + $0x990] sm:$0xff]  ;;  %v17544_v7 = vcombine.low %v365_v59, %v377_v61 }
 0x11d   :  { %7737 = vmatprep.subr.bf16.mxu0 %v18405_v26  ;;  %v281_v26 = vld [vmem:[#allocation5 + $0x5d0] sm:$0xff]  ;;  %v17569_v13 = vcombine.high %v389_v3, %v401_v5  ;;  %v17568_v16 = vcombine.low %v389_v3, %v401_v5 }
 0x11e   :  { %7246 = vmatpush1.bf16.msra.mxu1 %v18396_v29  ;;  %7738 = vmatpush1.bf16.msra.mxu0 %v18404_v30  ;;  %v17439_v29 = vcombine.high %v264_v20, %v276_v21  ;;  %v288_v30 = vld [vmem:[#allocation5 + $0x608] sm:$0xff]  ;;  %v17449_v33 = vcombine.high %v269_v22, %v281_v26  ;;  %v17448_v37 = vcombine.low %v269_v22, %v281_v26  ;;  %v413_v11 = vld [vmem:[#allocation5 + $0x9f0] sm:$0xff] }
 0x11f   :  { %7256 = vmatprep.subr.bf16.mxu1 %v17271_v31  ;;  %7871 = vmatprep.subr.bf16.mxu0 %v17281_v36  ;;  %v300_v31 = vld [vmem:[#allocation5 + $0x668] sm:$0xff]  ;;  %v17438_v36 = vcombine.low %v264_v20, %v276_v21  ;;  %v425_v14 = vld [vmem:[#allocation5 + $0xa50] sm:$0xff] }
 0x120   :  { %v437_v20 = vld [vmem:[#allocation5 + $0xab0] sm:$0xff]  ;;  %v17593_v21 = vcombine.high %v413_v11, %v425_v14  ;;  %v17592_v26 = vcombine.low %v413_v11, %v425_v14 }
 0x121   :  { %7248 = vmatmul.mubr.bf16.vlgmr.msra.gmra.mrb[0].mxu1 %v21880_v38  ;;  %7740 = vmatmul.mubr.bf16.vlgmr.msra.gmra.mrb[0].mxu0 %v21880_v38  ;;  %v449_v22 = vld [vmem:[#allocation5 + $0xb10] sm:$0xff] }
 0x122   :  { %7257 = vmatpush1.bf16.msra.mxu1 %v17270_v39  ;;  %7872 = vmatpush1.bf16.msra.mxu0 %v17280_v40  ;;  %v17463_v39 = vcombine.high %v288_v30, %v300_v31  ;;  %v312_v40 = vld [vmem:[#allocation5 + $0x6c8] sm:$0xff]  ;;  %v473_v32 = vld [vmem:[#allocation5 + $0xbd0] sm:$0xff]  ;;  %v17616_v35 = vcombine.low %v437_v20, %v449_v22 }
 0x123   :  { %7258 = vmatprep.subr.bf16.mxu1 %v17295_v41  ;;  %7873 = vmatprep.subr.bf16.mxu0 %v17305_v45  ;;  %v324_v41 = vld [vmem:[#allocation5 + $0x728] sm:$0xff]  ;;  %v17462_v45 = vcombine.low %v288_v30, %v300_v31  ;;  %v461_v30 = vld [vmem:[#allocation5 + $0xb70] sm:$0xff]  ;;  %v17617_v31 = vcombine.high %v437_v20, %v449_v22 }
 0x124   :  { %7288 = vmatprep.mubr.bf16.mxu1 %v21860_v57  ;;  %7903 = vmatprep.mubr.bf16.mxu0 %v21860_v57  ;;  %v497_v42 = vld [vmem:[#allocation5 + $0xc90] sm:$0xff]  ;;  %v17640_v44 = vcombine.low %v461_v30, %v473_v32 }
 0x125   :  { %v521_v50 = vld [vmem:[#allocation5 + $0xd50] sm:$0xff] }
 0x126   :  { %7259 = vmatpush1.bf16.msra.mxu1 %v17294_v47  ;;  %7874 = vmatpush1.bf16.msra.mxu0 %v17304_v48  ;;  %v17487_v47 = vcombine.high %v312_v40, %v324_v41  ;;  %v336_v48 = vld [vmem:[#allocation5 + $0x788] sm:$0xff]  ;;  %v545_v59 = vld [vmem:[#allocation5 + $0xe10] sm:$0xff] }
 0x127   :  { %7260 = vmatprep.subr.bf16.mxu1 %v17319_v49  ;;  %7875 = vmatprep.subr.bf16.mxu0 %v17329_v53  ;;  %v348_v49 = vld [vmem:[#allocation5 + $0x7e8] sm:$0xff]  ;;  %v17486_v53 = vcombine.low %v312_v40, %v324_v41  ;;  %v485_v40 = vld [vmem:[#allocation5 + $0xc30] sm:$0xff]  ;;  %v17641_v41 = vcombine.high %v461_v30, %v473_v32 }
 0x128   :  { %v17664_v52 = vcombine.low %v485_v40, %v497_v42  ;;  %v569_v3 = vld [vmem:[#allocation5 + $0xed0] sm:$0xff] }
 0x129   :  { %v593_v11 = vld [vmem:[#allocation5 + $0xf90] sm:$0xff] }
 0x12a   :  { %7261 = vmatpush1.bf16.msra.mxu1 %v17318_v55  ;;  %7876 = vmatpush1.bf16.msra.mxu0 %v17328_v56  ;;  %v17511_v55 = vcombine.high %v336_v48, %v348_v49  ;;  %v360_v56 = vld [vmem:[#allocation5 + $0x848] sm:$0xff]  ;;  %v617_v20 = vld [vmem:[#allocation5 + $0x1050] sm:$0xff] }
 0x12b   :  { %7262 = vmatprep.subr.bf16.mxu1 %v17343_v58  ;;  %7877 = vmatprep.subr.bf16.mxu0 %v17353_v62  ;;  %v372_v58 = vld [vmem:[#allocation5 + $0x8a8] sm:$0xff]  ;;  %v17510_v62 = vcombine.low %v336_v48, %v348_v49  ;;  %v509_v48 = vld [vmem:[#allocation5 + $0xcf0] sm:$0xff]  ;;  %v17665_v49 = vcombine.high %v485_v40, %v497_v42 }
 0x12c   :  { %v17688_v61 = vcombine.low %v509_v48, %v521_v50  ;;  %v641_v30 = vld [vmem:[#allocation5 + $0x1110] sm:$0xff] }
 0x12d   :  { %v665_v40 = vld [vmem:[#allocation5 + $0x11d0] sm:$0xff] }
 0x12e   :  { %7263 = vmatpush1.bf16.msra.mxu1 %v17342_v0  ;;  %7878 = vmatpush1.bf16.msra.mxu0 %v17352_v1  ;;  %v17535_v0 = vcombine.high %v360_v56, %v372_v58  ;;  %v384_v1 = vld [vmem:[#allocation5 + $0x908] sm:$0xff] }
 0x12f   :  { %7264 = vmatprep.subr.bf16.mxu1 %v17367_v2  ;;  %7879 = vmatprep.subr.bf16.mxu0 %v17377_v6  ;;  %v396_v2 = vld [vmem:[#allocation5 + $0x968] sm:$0xff]  ;;  %v17534_v6 = vcombine.low %v360_v56, %v372_v58  ;;  %v533_v56 = vld [vmem:[#allocation5 + $0xdb0] sm:$0xff]  ;;  %v17689_v58 = vcombine.high %v509_v48, %v521_v50 }
 0x130   :  { %v17712_v5 = vcombine.low %v533_v56, %v545_v59  ;;  %v689_v48 = vld [vmem:[#allocation5 + $0x1290] sm:$0xff] }
 0x132   :  { %7265 = vmatpush1.bf16.msra.mxu1 %v17366_v8  ;;  %7880 = vmatpush1.bf16.msra.mxu0 %v17376_v9  ;;  %v17559_v8 = vcombine.high %v384_v1, %v396_v2  ;;  %v408_v9 = vld [vmem:[#allocation5 + $0x9c8] sm:$0xff] }
 0x133   :  { %7266 = vmatprep.subr.bf16.mxu1 %v17391_v10  ;;  %7881 = vmatprep.subr.bf16.mxu0 %v17401_v15  ;;  %v420_v10 = vld [vmem:[#allocation5 + $0xa28] sm:$0xff]  ;;  %v17558_v15 = vcombine.low %v384_v1, %v396_v2  ;;  %v557_v1 = vld [vmem:[#allocation5 + $0xe70] sm:$0xff]  ;;  %v17713_v2 = vcombine.high %v533_v56, %v545_v59 }
 0x134   :  { %v17736_v14 = vcombine.low %v557_v1, %v569_v3  ;;  %v713_v56 = vld [vmem:[#allocation5 + $0x1350] sm:$0xff] }
 0x136   :  { %7267 = vmatpush1.bf16.msra.mxu1 %v17390_v17  ;;  %7882 = vmatpush1.bf16.msra.mxu0 %v17400_v18  ;;  %v17583_v17 = vcombine.high %v408_v9, %v420_v10  ;;  %v432_v18 = vld [vmem:[#allocation5 + $0xa88] sm:$0xff] }
 0x137   :  { %7268 = vmatprep.subr.bf16.mxu1 %v17415_v19  ;;  %7883 = vmatprep.subr.bf16.mxu0 %v17425_v24  ;;  %v444_v19 = vld [vmem:[#allocation5 + $0xae8] sm:$0xff]  ;;  %v17582_v24 = vcombine.low %v408_v9, %v420_v10  ;;  %v581_v9 = vld [vmem:[#allocation5 + $0xf30] sm:$0xff]  ;;  %v17737_v10 = vcombine.high %v557_v1, %v569_v3 }
 0x138   :  { %v17760_v22 = vcombine.low %v581_v9, %v593_v11  ;;  %v737_v1 = vld [vmem:[#allocation5 + $0x1410] sm:$0xff] }
 0x13a   :  { %7269 = vmatpush1.bf16.msra.mxu1 %v17414_v27  ;;  %7884 = vmatpush1.bf16.msra.mxu0 %v17424_v28  ;;  %v17607_v27 = vcombine.high %v432_v18, %v444_v19  ;;  %v456_v28 = vld [vmem:[#allocation5 + $0xb48] sm:$0xff] }
 0x13b   :  { %7270 = vmatprep.subr.bf16.mxu1 %v17439_v29  ;;  %7885 = vmatprep.subr.bf16.mxu0 %v17449_v33  ;;  %v468_v29 = vld [vmem:[#allocation5 + $0xba8] sm:$0xff]  ;;  %v17606_v33 = vcombine.low %v432_v18, %v444_v19  ;;  %v605_v18 = vld [vmem:[#allocation5 + $0xff0] sm:$0xff]  ;;  %v17761_v19 = vcombine.high %v581_v9, %v593_v11 }
 0x13c   :  { %v17784_v32 = vcombine.low %v605_v18, %v617_v20  ;;  %v761_v9 = vld [vmem:[#allocation5 + $0x14d0] sm:$0xff] }
 0x13e   :  { %7271 = vmatpush1.bf16.msra.mxu1 %v17438_v36  ;;  %7886 = vmatpush1.bf16.msra.mxu0 %v17448_v37  ;;  %v17631_v36 = vcombine.high %v456_v28, %v468_v29  ;;  %v480_v37 = vld [vmem:[#allocation5 + $0xc08] sm:$0xff] }
 0x13f   :  { %7272 = vmatprep.subr.bf16.mxu1 %v17463_v39  ;;  %7887 = vmatprep.subr.bf16.mxu0 %v17473_v43  ;;  %v492_v39 = vld [vmem:[#allocation5 + $0xc68] sm:$0xff]  ;;  %v17630_v43 = vcombine.low %v456_v28, %v468_v29  ;;  %v629_v28 = vld [vmem:[#allocation5 + $0x10b0] sm:$0xff]  ;;  %v17785_v29 = vcombine.high %v605_v18, %v617_v20 }
 0x140   :  { %v17808_v42 = vcombine.low %v629_v28, %v641_v30  ;;  %v785_v18 = vld [vmem:[#allocation5 + $0x1590] sm:$0xff] }
 0x142   :  { %7273 = vmatpush1.bf16.msra.mxu1 %v17462_v45  ;;  %7888 = vmatpush1.bf16.msra.mxu0 %v17472_v46  ;;  %v17655_v45 = vcombine.high %v480_v37, %v492_v39  ;;  %v504_v46 = vld [vmem:[#allocation5 + $0xcc8] sm:$0xff] }
 0x143   :  { %7274 = vmatprep.subr.bf16.mxu1 %v17487_v47  ;;  %7889 = vmatprep.subr.bf16.mxu0 %v17497_v51  ;;  %v516_v47 = vld [vmem:[#allocation5 + $0xd28] sm:$0xff]  ;;  %v17654_v51 = vcombine.low %v480_v37, %v492_v39  ;;  %v17809_v37 = vcombine.high %v629_v28, %v641_v30  ;;  %v653_v39 = vld [vmem:[#allocation5 + $0x1170] sm:$0xff] }
 0x144   :  { %v17832_v50 = vcombine.low %v653_v39, %v665_v40  ;;  %v809_v28 = vld [vmem:[#allocation5 + $0x1650] sm:$0xff] }
 0x146   :  { %7275 = vmatpush1.bf16.msra.mxu1 %v17486_v53  ;;  %7890 = vmatpush1.bf16.msra.mxu0 %v17496_v54  ;;  %v17679_v53 = vcombine.high %v504_v46, %v516_v47  ;;  %v528_v54 = vld [vmem:[#allocation5 + $0xd88] sm:$0xff] }
 0x147   :  { %7276 = vmatprep.subr.bf16.mxu1 %v17511_v55  ;;  %7891 = vmatprep.subr.bf16.mxu0 %v17521_v60  ;;  %v540_v55 = vld [vmem:[#allocation5 + $0xde8] sm:$0xff]  ;;  %v17678_v60 = vcombine.low %v504_v46, %v516_v47  ;;  %v677_v46 = vld [vmem:[#allocation5 + $0x1230] sm:$0xff]  ;;  %v17833_v47 = vcombine.high %v653_v39, %v665_v40 }
 0x148   :  { %v17856_v59 = vcombine.low %v677_v46, %v689_v48 }
 0x14a   :  { %7277 = vmatpush1.bf16.msra.mxu1 %v17510_v62  ;;  %7892 = vmatpush1.bf16.msra.mxu0 %v17520_v63  ;;  %v17703_v62 = vcombine.high %v528_v54, %v540_v55  ;;  %v552_v63 = vld [vmem:[#allocation5 + $0xe48] sm:$0xff] }
 0x14b   :  { %7278 = vmatprep.subr.bf16.mxu1 %v17535_v0  ;;  %7893 = vmatprep.subr.bf16.mxu0 %v17545_v4  ;;  %v564_v0 = vld [vmem:[#allocation5 + $0xea8] sm:$0xff]  ;;  %v17702_v4 = vcombine.low %v528_v54, %v540_v55  ;;  %v701_v54 = vld [vmem:[#allocation5 + $0x12f0] sm:$0xff]  ;;  %v17857_v55 = vcombine.high %v677_v46, %v689_v48 }
 0x14c   :  { %v17880_v3 = vcombine.low %v701_v54, %v713_v56  ;;  %v857_v46 = vld [vmem:[#allocation5 + $0x17d0] sm:$0xff] }
 0x14e   :  { %7279 = vmatpush1.bf16.msra.mxu1 %v17534_v6  ;;  %7894 = vmatpush1.bf16.msra.mxu0 %v17544_v7  ;;  %v17727_v6 = vcombine.high %v552_v63, %v564_v0  ;;  %v576_v7 = vld [vmem:[#allocation5 + $0xf08] sm:$0xff] }
 0x14f   :  { %7280 = vmatprep.subr.bf16.mxu1 %v17559_v8  ;;  %7895 = vmatprep.subr.bf16.mxu0 %v17569_v13  ;;  %v588_v8 = vld [vmem:[#allocation5 + $0xf68] sm:$0xff]  ;;  %v17726_v13 = vcombine.low %v552_v63, %v564_v0  ;;  %v725_v63 = vld [vmem:[#allocation5 + $0x13b0] sm:$0xff]  ;;  %v17881_v0 = vcombine.high %v701_v54, %v713_v56 }
 0x150   :  { %v17904_v11 = vcombine.low %v725_v63, %v737_v1  ;;  %v881_v54 = vld [vmem:[#allocation5 + $0x1890] sm:$0xff] }
 0x152   :  { %7281 = vmatpush1.bf16.msra.mxu1 %v17558_v15  ;;  %7896 = vmatpush1.bf16.msra.mxu0 %v17568_v16  ;;  %v17751_v15 = vcombine.high %v576_v7, %v588_v8  ;;  %v600_v16 = vld [vmem:[#allocation5 + $0xfc8] sm:$0xff] }
 0x153   :  { %7282 = vmatprep.subr.bf16.mxu1 %v17583_v17  ;;  %7897 = vmatprep.subr.bf16.mxu0 %v17593_v21  ;;  %v612_v17 = vld [vmem:[#allocation5 + $0x1028] sm:$0xff]  ;;  %v17750_v21 = vcombine.low %v576_v7, %v588_v8  ;;  %v749_v7 = vld [vmem:[#allocation5 + $0x1470] sm:$0xff]  ;;  %v17905_v8 = vcombine.high %v725_v63, %v737_v1 }
 0x154   :  { %v17928_v20 = vcombine.low %v749_v7, %v761_v9  ;;  %v905_v63 = vld [vmem:[#allocation5 + $0x1950] sm:$0xff] }
 0x156   :  { %7283 = vmatpush1.bf16.msra.mxu1 %v17582_v24  ;;  %7898 = vmatpush1.bf16.msra.mxu0 %v17592_v26  ;;  %v17775_v24 = vcombine.high %v600_v16, %v612_v17  ;;  %v624_v26 = vld [vmem:[#allocation5 + $0x1088] sm:$0xff] }
 0x157   :  { %7284 = vmatprep.subr.bf16.mxu1 %v17607_v27  ;;  %7899 = vmatprep.subr.bf16.mxu0 %v17617_v31  ;;  %v636_v27 = vld [vmem:[#allocation5 + $0x10e8] sm:$0xff]  ;;  %v17774_v31 = vcombine.low %v600_v16, %v612_v17  ;;  %v773_v16 = vld [vmem:[#allocation5 + $0x1530] sm:$0xff]  ;;  %v17929_v17 = vcombine.high %v749_v7, %v761_v9 }
 0x158   :  { %v17952_v30 = vcombine.low %v773_v16, %v785_v18  ;;  %v929_v7 = vld [vmem:[#allocation5 + $0x1a10] sm:$0xff] }
 0x15a   :  { %7285 = vmatpush1.bf16.msra.mxu1 %v17606_v33  ;;  %7900 = vmatpush1.bf16.msra.mxu0 %v17616_v35  ;;  %v17799_v33 = vcombine.high %v624_v26, %v636_v27  ;;  %v648_v35 = vld [vmem:[#allocation5 + $0x1148] sm:$0xff] }
 0x15b   :  { %7286 = vmatprep.subr.bf16.mxu1 %v17631_v36  ;;  %7901 = vmatprep.subr.bf16.mxu0 %v17641_v41  ;;  %v660_v36 = vld [vmem:[#allocation5 + $0x11a8] sm:$0xff]  ;;  %v17798_v41 = vcombine.low %v624_v26, %v636_v27  ;;  %v797_v26 = vld [vmem:[#allocation5 + $0x15f0] sm:$0xff]  ;;  %v17953_v27 = vcombine.high %v773_v16, %v785_v18 }
 0x15c   :  { %v17976_v40 = vcombine.low %v797_v26, %v809_v28  ;;  %v953_v16 = vld [vmem:[#allocation5 + $0x1ad0] sm:$0xff] }
 0x15e   :  { %7287 = vmatpush1.bf16.msra.mxu1 %v17630_v43  ;;  %7902 = vmatpush1.bf16.msra.mxu0 %v17640_v44  ;;  %v17823_v43 = vcombine.high %v648_v35, %v660_v36  ;;  %v672_v44 = vld [vmem:[#allocation5 + $0x1208] sm:$0xff] }
 0x15f   :  { %7297 = vmatprep.subr.bf16.mxu1 %v17655_v45  ;;  %7912 = vmatprep.subr.bf16.mxu0 %v17665_v49  ;;  %v684_v45 = vld [vmem:[#allocation5 + $0x1268] sm:$0xff]  ;;  %v17822_v49 = vcombine.low %v648_v35, %v660_v36  ;;  %v821_v35 = vld [vmem:[#allocation5 + $0x16b0] sm:$0xff]  ;;  %v17977_v36 = vcombine.high %v797_v26, %v809_v28 }
 0x160   :  { %v977_v26 = vld [vmem:[#allocation5 + $0x1b90] sm:$0xff] }
 0x161   :  { %7289 = vmatmul.mubr.bf16.vlgmr.msra.gmra.mrb[4].mxu1 %v21864_v12  ;;  %7904 = vmatmul.mubr.bf16.vlgmr.msra.gmra.mrb[4].mxu0 %v21864_v12 }
 0x162   :  { %7298 = vmatpush1.bf16.msra.mxu1 %v17654_v51  ;;  %7913 = vmatpush1.bf16.msra.mxu0 %v17664_v52  ;;  %v17847_v51 = vcombine.high %v672_v44, %v684_v45  ;;  %v696_v52 = vld [vmem:[#allocation5 + $0x12c8] sm:$0xff] }
 0x163   :  { %7299 = vmatprep.subr.bf16.mxu1 %v17679_v53  ;;  %7914 = vmatprep.subr.bf16.mxu0 %v17689_v58  ;;  %v708_v53 = vld [vmem:[#allocation5 + $0x1328] sm:$0xff]  ;;  %v17846_v58 = vcombine.low %v672_v44, %v684_v45  ;;  %v845_v44 = vld [vmem:[#allocation5 + $0x1770] sm:$0xff] }
 0x164   :  { %7329 = vmatprep.mubr.bf16.mxu1 %v21866_v23  ;;  %7944 = vmatprep.mubr.bf16.mxu0 %v21866_v23  ;;  %v18024_v56 = vcombine.low %v845_v44, %v857_v46 }
 0x166   :  { %7300 = vmatpush1.bf16.msra.mxu1 %v17678_v60  ;;  %7915 = vmatpush1.bf16.msra.mxu0 %v17688_v61  ;;  %v17871_v60 = vcombine.high %v696_v52, %v708_v53  ;;  %v720_v61 = vld [vmem:[#allocation5 + $0x1388] sm:$0xff] }
 0x167   :  { %7301 = vmatprep.subr.bf16.mxu1 %v17703_v62  ;;  %7916 = vmatprep.subr.bf16.mxu0 %v17713_v2  ;;  %v732_v62 = vld [vmem:[#allocation5 + $0x13e8] sm:$0xff]  ;;  %v17870_v2 = vcombine.low %v696_v52, %v708_v53  ;;  %v869_v52 = vld [vmem:[#allocation5 + $0x1830] sm:$0xff]  ;;  %v18025_v53 = vcombine.high %v845_v44, %v857_v46 }
 0x168   :  { %v18048_v1 = vcombine.low %v869_v52, %v881_v54  ;;  %v1025_v44 = vld [vmem:[#allocation5 + $0x1d10] sm:$0xff] }
 0x16a   :  { %7302 = vmatpush1.bf16.msra.mxu1 %v17702_v4  ;;  %7917 = vmatpush1.bf16.msra.mxu0 %v17712_v5  ;;  %v17895_v4 = vcombine.high %v720_v61, %v732_v62  ;;  %v744_v5 = vld [vmem:[#allocation5 + $0x1448] sm:$0xff] }
 0x16b   :  { %7303 = vmatprep.subr.bf16.mxu1 %v17727_v6  ;;  %7918 = vmatprep.subr.bf16.mxu0 %v17737_v10  ;;  %v756_v6 = vld [vmem:[#allocation5 + $0x14a8] sm:$0xff]  ;;  %v17894_v10 = vcombine.low %v720_v61, %v732_v62  ;;  %v893_v61 = vld [vmem:[#allocation5 + $0x18f0] sm:$0xff]  ;;  %v18049_v62 = vcombine.high %v869_v52, %v881_v54 }
 0x16c   :  { %v18072_v9 = vcombine.low %v893_v61, %v905_v63  ;;  %v1049_v52 = vld [vmem:[#allocation5 + $0x1dd0] sm:$0xff] }
 0x16e   :  { %7304 = vmatpush1.bf16.msra.mxu1 %v17726_v13  ;;  %7919 = vmatpush1.bf16.msra.mxu0 %v17736_v14  ;;  %v17919_v13 = vcombine.high %v744_v5, %v756_v6  ;;  %v768_v14 = vld [vmem:[#allocation5 + $0x1508] sm:$0xff] }
 0x16f   :  { %7305 = vmatprep.subr.bf16.mxu1 %v17751_v15  ;;  %7920 = vmatprep.subr.bf16.mxu0 %v17761_v19  ;;  %v780_v15 = vld [vmem:[#allocation5 + $0x1568] sm:$0xff]  ;;  %v17918_v19 = vcombine.low %v744_v5, %v756_v6  ;;  %v917_v5 = vld [vmem:[#allocation5 + $0x19b0] sm:$0xff]  ;;  %v18073_v6 = vcombine.high %v893_v61, %v905_v63 }
 0x170   :  { %v18096_v18 = vcombine.low %v917_v5, %v929_v7  ;;  %v1073_v61 = vld [vmem:[#allocation5 + $0x1e90] sm:$0xff] }
 0x172   :  { %7306 = vmatpush1.bf16.msra.mxu1 %v17750_v21  ;;  %7921 = vmatpush1.bf16.msra.mxu0 %v17760_v22  ;;  %v17943_v21 = vcombine.high %v768_v14, %v780_v15  ;;  %v792_v22 = vld [vmem:[#allocation5 + $0x15c8] sm:$0xff] }
 0x173   :  { %7307 = vmatprep.subr.bf16.mxu1 %v17775_v24  ;;  %7922 = vmatprep.subr.bf16.mxu0 %v17785_v29  ;;  %v804_v24 = vld [vmem:[#allocation5 + $0x1628] sm:$0xff]  ;;  %v17942_v29 = vcombine.low %v768_v14, %v780_v15  ;;  %v941_v14 = vld [vmem:[#allocation5 + $0x1a70] sm:$0xff]  ;;  %v18097_v15 = vcombine.high %v917_v5, %v929_v7 }
 0x174   :  { %v17966_v39 = vcombine.low %v792_v22, %v804_v24  ;;  %v18120_v28 = vcombine.low %v941_v14, %v953_v16  ;;  %v1097_v5 = vld [vmem:[#allocation5 + $0x1f50] sm:$0xff] }
 0x176   :  { %7308 = vmatpush1.bf16.msra.mxu1 %v17774_v31  ;;  %7923 = vmatpush1.bf16.msra.mxu0 %v17784_v32  ;;  %v17967_v31 = vcombine.high %v792_v22, %v804_v24  ;;  %v816_v32 = vld [vmem:[#allocation5 + $0x1688] sm:$0xff]  ;;  %v965_v22 = vld [vmem:[#allocation5 + $0x1b30] sm:$0xff]  ;;  %v18121_v24 = vcombine.high %v941_v14, %v953_v16 }
 0x177   :  { %7309 = vmatprep.subr.bf16.mxu1 %v17799_v33  ;;  %7924 = vmatprep.subr.bf16.mxu0 %v17809_v37  ;;  %v828_v33 = vld [vmem:[#allocation5 + $0x16e8] sm:$0xff]  ;;  %v833_v37 = vld [vmem:[#allocation5 + $0x1710] sm:$0xff] }
 0x178   :  { %v18001_v45 = vcombine.high %v821_v35, %v833_v37  ;;  %v18000_v48 = vcombine.low %v821_v35, %v833_v37  ;;  %v1001_v35 = vld [vmem:[#allocation5 + $0x1c50] sm:$0xff]  ;;  %v18144_v37 = vcombine.low %v965_v22, %v977_v26 }
 0x179   :  { %v1121_v14 = vld [vmem:[#allocation5 + $0x2010] sm:$0xff] }
 0x17a   :  { %7310 = vmatpush1.bf16.msra.mxu1 %v17798_v41  ;;  %7925 = vmatpush1.bf16.msra.mxu0 %v17808_v42  ;;  %v17991_v41 = vcombine.high %v816_v32, %v828_v33  ;;  %v840_v42 = vld [vmem:[#allocation5 + $0x1748] sm:$0xff] }
 0x17b   :  { %7311 = vmatprep.subr.bf16.mxu1 %v17823_v43  ;;  %7926 = vmatprep.subr.bf16.mxu0 %v17833_v47  ;;  %v852_v43 = vld [vmem:[#allocation5 + $0x17a8] sm:$0xff]  ;;  %v17990_v47 = vcombine.low %v816_v32, %v828_v33  ;;  %v989_v32 = vld [vmem:[#allocation5 + $0x1bf0] sm:$0xff]  ;;  %v18145_v33 = vcombine.high %v965_v22, %v977_v26 }
 0x17c   :  { %v18168_v46 = vcombine.low %v989_v32, %v1001_v35  ;;  %v1145_v22 = vld [vmem:[#allocation5 + $0x20d0] sm:$0xff] }
 0x17e   :  { %7312 = vmatpush1.bf16.msra.mxu1 %v17822_v49  ;;  %7927 = vmatpush1.bf16.msra.mxu0 %v17832_v50  ;;  %v18015_v49 = vcombine.high %v840_v42, %v852_v43  ;;  %v864_v50 = vld [vmem:[#allocation5 + $0x1808] sm:$0xff] }
 0x17f   :  { %7313 = vmatprep.subr.bf16.mxu1 %v17847_v51  ;;  %7928 = vmatprep.subr.bf16.mxu0 %v17857_v55  ;;  %v876_v51 = vld [vmem:[#allocation5 + $0x1868] sm:$0xff]  ;;  %v18014_v55 = vcombine.low %v840_v42, %v852_v43  ;;  %v1013_v42 = vld [vmem:[#allocation5 + $0x1cb0] sm:$0xff]  ;;  %v18169_v43 = vcombine.high %v989_v32, %v1001_v35 }
 0x180   :  { %v18192_v54 = vcombine.low %v1013_v42, %v1025_v44  ;;  %v1169_v32 = vld [vmem:[#allocation5 + $0x2190] sm:$0xff] }
 0x182   :  { %7314 = vmatpush1.bf16.msra.mxu1 %v17846_v58  ;;  %7929 = vmatpush1.bf16.msra.mxu0 %v17856_v59  ;;  %v18039_v58 = vcombine.high %v864_v50, %v876_v51  ;;  %v888_v59 = vld [vmem:[#allocation5 + $0x18c8] sm:$0xff] }
 0x183   :  { %7315 = vmatprep.subr.bf16.mxu1 %v17871_v60  ;;  %7930 = vmatprep.subr.bf16.mxu0 %v17881_v0  ;;  %v900_v60 = vld [vmem:[#allocation5 + $0x1928] sm:$0xff]  ;;  %v18038_v0 = vcombine.low %v864_v50, %v876_v51  ;;  %v1037_v50 = vld [vmem:[#allocation5 + $0x1d70] sm:$0xff]  ;;  %v18193_v51 = vcombine.high %v1013_v42, %v1025_v44 }
 0x184   :  { %v18216_v63 = vcombine.low %v1037_v50, %v1049_v52  ;;  %v1193_v42 = vld [vmem:[#allocation5 + $0x2250] sm:$0xff] }
 0x186   :  { %7316 = vmatpush1.bf16.msra.mxu1 %v17870_v2  ;;  %7931 = vmatpush1.bf16.msra.mxu0 %v17880_v3  ;;  %v18063_v2 = vcombine.high %v888_v59, %v900_v60  ;;  %v912_v3 = vld [vmem:[#allocation5 + $0x1988] sm:$0xff] }
 0x187   :  { %7317 = vmatprep.subr.bf16.mxu1 %v17895_v4  ;;  %7932 = vmatprep.subr.bf16.mxu0 %v17905_v8  ;;  %v924_v4 = vld [vmem:[#allocation5 + $0x19e8] sm:$0xff]  ;;  %v18062_v8 = vcombine.low %v888_v59, %v900_v60  ;;  %v1061_v59 = vld [vmem:[#allocation5 + $0x1e30] sm:$0xff]  ;;  %v18217_v60 = vcombine.high %v1037_v50, %v1049_v52 }
 0x188   :  { %v18240_v7 = vcombine.low %v1061_v59, %v1073_v61  ;;  %v1217_v50 = vld [vmem:[#allocation5 + $0x2310] sm:$0xff] }
 0x18a   :  { %7318 = vmatpush1.bf16.msra.mxu1 %v17894_v10  ;;  %7933 = vmatpush1.bf16.msra.mxu0 %v17904_v11  ;;  %v18087_v10 = vcombine.high %v912_v3, %v924_v4  ;;  %v936_v11 = vld [vmem:[#allocation5 + $0x1a48] sm:$0xff] }
 0x18b   :  { %7319 = vmatprep.subr.bf16.mxu1 %v17919_v13  ;;  %7934 = vmatprep.subr.bf16.mxu0 %v17929_v17  ;;  %v948_v13 = vld [vmem:[#allocation5 + $0x1aa8] sm:$0xff]  ;;  %v18086_v17 = vcombine.low %v912_v3, %v924_v4  ;;  %v1085_v3 = vld [vmem:[#allocation5 + $0x1ef0] sm:$0xff]  ;;  %v18241_v4 = vcombine.high %v1061_v59, %v1073_v61 }
 0x18c   :  { %v18264_v16 = vcombine.low %v1085_v3, %v1097_v5  ;;  %v1241_v59 = vld [vmem:[#allocation5 + $0x23d0] sm:$0xff] }
 0x18e   :  { %7320 = vmatpush1.bf16.msra.mxu1 %v17918_v19  ;;  %7935 = vmatpush1.bf16.msra.mxu0 %v17928_v20  ;;  %v18111_v19 = vcombine.high %v936_v11, %v948_v13  ;;  %v960_v20 = vld [vmem:[#allocation5 + $0x1b08] sm:$0xff] }
 0x18f   :  { %7321 = vmatprep.subr.bf16.mxu1 %v17943_v21  ;;  %7936 = vmatprep.subr.bf16.mxu0 %v17953_v27  ;;  %v972_v21 = vld [vmem:[#allocation5 + $0x1b68] sm:$0xff]  ;;  %v18110_v27 = vcombine.low %v936_v11, %v948_v13  ;;  %v1109_v11 = vld [vmem:[#allocation5 + $0x1fb0] sm:$0xff]  ;;  %v18265_v13 = vcombine.high %v1085_v3, %v1097_v5  ;;  %v115_v3 = vld [vmem:[#allocation5 + $0xa0] sm:$0xff] }
 0x190   :  { %v18288_v26 = vcombine.low %v1109_v11, %v1121_v14 }
 0x192   :  { %7322 = vmatpush1.bf16.msra.mxu1 %v17942_v29  ;;  %7937 = vmatpush1.bf16.msra.mxu0 %v17952_v30  ;;  %v18135_v29 = vcombine.high %v960_v20, %v972_v21  ;;  %v984_v30 = vld [vmem:[#allocation5 + $0x1bc8] sm:$0xff] }
 0x193   :  { %7323 = vmatprep.subr.bf16.mxu1 %v17967_v31  ;;  %7938 = vmatprep.subr.bf16.mxu0 %v17977_v36  ;;  %v996_v31 = vld [vmem:[#allocation5 + $0x1c28] sm:$0xff]  ;;  %v18134_v36 = vcombine.low %v960_v20, %v972_v21  ;;  %v1133_v20 = vld [vmem:[#allocation5 + $0x2070] sm:$0xff]  ;;  %v18289_v21 = vcombine.high %v1109_v11, %v1121_v14  ;;  %v139_v11 = vld [vmem:[#allocation5 + $0x160] sm:$0xff] }
 0x194   :  { %v18312_v35 = vcombine.low %v1133_v20, %v1145_v22 }
 0x196   :  { %7324 = vmatpush1.bf16.msra.mxu1 %v17966_v39  ;;  %7939 = vmatpush1.bf16.msra.mxu0 %v17976_v40  ;;  %v18159_v39 = vcombine.high %v984_v30, %v996_v31  ;;  %v1008_v40 = vld [vmem:[#allocation5 + $0x1c88] sm:$0xff] }
 0x197   :  { %7325 = vmatprep.subr.bf16.mxu1 %v17991_v41  ;;  %7940 = vmatprep.subr.bf16.mxu0 %v18001_v45  ;;  %v1020_v41 = vld [vmem:[#allocation5 + $0x1ce8] sm:$0xff]  ;;  %v18158_v45 = vcombine.low %v984_v30, %v996_v31  ;;  %v1157_v30 = vld [vmem:[#allocation5 + $0x2130] sm:$0xff]  ;;  %v18313_v31 = vcombine.high %v1133_v20, %v1145_v22  ;;  %v163_v20 = vld [vmem:[#allocation5 + $0x220] sm:$0xff] }
 0x198   :  { %v18336_v44 = vcombine.low %v1157_v30, %v1169_v32 }
 0x19a   :  { %7326 = vmatpush1.bf16.msra.mxu1 %v17990_v47  ;;  %7941 = vmatpush1.bf16.msra.mxu0 %v18000_v48  ;;  %v18183_v47 = vcombine.high %v1008_v40, %v1020_v41  ;;  %v1032_v48 = vld [vmem:[#allocation5 + $0x1d48] sm:$0xff] }
 0x19b   :  { %7327 = vmatprep.subr.bf16.mxu1 %v18015_v49  ;;  %7942 = vmatprep.subr.bf16.mxu0 %v18025_v53  ;;  %v1044_v49 = vld [vmem:[#allocation5 + $0x1da8] sm:$0xff]  ;;  %v18182_v53 = vcombine.low %v1008_v40, %v1020_v41  ;;  %v1181_v40 = vld [vmem:[#allocation5 + $0x21f0] sm:$0xff]  ;;  %v18337_v41 = vcombine.high %v1157_v30, %v1169_v32  ;;  %v187_v30 = vld [vmem:[#allocation5 + $0x2e0] sm:$0xff] }
 0x19c   :  { %v18360_v52 = vcombine.low %v1181_v40, %v1193_v42 }
 0x19e   :  { %7328 = vmatpush1.bf16.msra.mxu1 %v18014_v55  ;;  %7943 = vmatpush1.bf16.msra.mxu0 %v18024_v56  ;;  %v18207_v55 = vcombine.high %v1032_v48, %v1044_v49  ;;  %v1056_v56 = vld [vmem:[#allocation5 + $0x1e08] sm:$0xff] }
 0x19f   :  { %7338 = vmatprep.subr.bf16.mxu1 %v18039_v58  ;;  %7953 = vmatprep.subr.bf16.mxu0 %v18049_v62  ;;  %v1068_v58 = vld [vmem:[#allocation5 + $0x1e68] sm:$0xff]  ;;  %v18206_v62 = vcombine.low %v1032_v48, %v1044_v49  ;;  %v18361_v48 = vcombine.high %v1181_v40, %v1193_v42  ;;  %v1205_v49 = vld [vmem:[#allocation5 + $0x22b0] sm:$0xff]  ;;  %v211_v40 = vld [vmem:[#allocation5 + $0x3a0] sm:$0xff] }
 0x1a0   :  { %v18384_v61 = vcombine.low %v1205_v49, %v1217_v50 }
 0x1a1   :  { %7330 = vmatmul.mubr.bf16.vlgmr.msra.gmra.mrb[4].mxu1 %v21872_v25  ;;  %7945 = vmatmul.mubr.bf16.vlgmr.msra.gmra.mrb[4].mxu0 %v21872_v25 }
 0x1a2   :  { %7339 = vmatpush1.bf16.msra.mxu1 %v18038_v0  ;;  %7954 = vmatpush1.bf16.msra.mxu0 %v18048_v1  ;;  %v18231_v0 = vcombine.high %v1056_v56, %v1068_v58  ;;  %v1080_v1 = vld [vmem:[#allocation5 + $0x1ec8] sm:$0xff] }
 0x1a3   :  { %7340 = vmatprep.subr.bf16.mxu1 %v18063_v2  ;;  %7955 = vmatprep.subr.bf16.mxu0 %v18073_v6  ;;  %v1092_v2 = vld [vmem:[#allocation5 + $0x1f28] sm:$0xff]  ;;  %v18230_v6 = vcombine.low %v1056_v56, %v1068_v58  ;;  %v1229_v56 = vld [vmem:[#allocation5 + $0x2370] sm:$0xff]  ;;  %v18385_v58 = vcombine.high %v1205_v49, %v1217_v50 }
 0x1a4   :  { %7370 = vmatprep.mubr.bf16.mxu1 %v21874_v34  ;;  %7985 = vmatprep.mubr.bf16.mxu0 %v21874_v34  ;;  %v18408_v5 = vcombine.low %v1229_v56, %v1241_v59 }
 0x1a6   :  { %7341 = vmatpush1.bf16.msra.mxu1 %v18062_v8  ;;  %7956 = vmatpush1.bf16.msra.mxu0 %v18072_v9  ;;  %v18255_v8 = vcombine.high %v1080_v1, %v1092_v2  ;;  %v1104_v9 = vld [vmem:[#allocation5 + $0x1f88] sm:$0xff] }
 0x1a7   :  { %7342 = vmatprep.subr.bf16.mxu1 %v18087_v10  ;;  %7957 = vmatprep.subr.bf16.mxu0 %v18097_v15  ;;  %v1116_v10 = vld [vmem:[#allocation5 + $0x1fe8] sm:$0xff]  ;;  %v18254_v15 = vcombine.low %v1080_v1, %v1092_v2  ;;  %v103_v1 = vld [vmem:[#allocation5 + $0x40] sm:$0xff]  ;;  %v18409_v2 = vcombine.high %v1229_v56, %v1241_v59 }
 0x1a8   :  { %v17284_v14 = vcombine.low %v103_v1, %v115_v3  ;;  %v259_v56 = vld [vmem:[#allocation5 + $0x520] sm:$0xff] }
 0x1aa   :  { %7343 = vmatpush1.bf16.msra.mxu1 %v18086_v17  ;;  %7958 = vmatpush1.bf16.msra.mxu0 %v18096_v18  ;;  %v18279_v17 = vcombine.high %v1104_v9, %v1116_v10  ;;  %v1128_v18 = vld [vmem:[#allocation5 + $0x2048] sm:$0xff] }
 0x1ab   :  { %7344 = vmatprep.subr.bf16.mxu1 %v18111_v19  ;;  %7959 = vmatprep.subr.bf16.mxu0 %v18121_v24  ;;  %v1140_v19 = vld [vmem:[#allocation5 + $0x20a8] sm:$0xff]  ;;  %v18278_v24 = vcombine.low %v1104_v9, %v1116_v10  ;;  %v127_v9 = vld [vmem:[#allocation5 + $0x100] sm:$0xff]  ;;  %v17285_v10 = vcombine.high %v103_v1, %v115_v3 }
 0x1ac   :  { %v17308_v22 = vcombine.low %v127_v9, %v139_v11 }
 0x1ae   :  { %7345 = vmatpush1.bf16.msra.mxu1 %v18110_v27  ;;  %7960 = vmatpush1.bf16.msra.mxu0 %v18120_v28  ;;  %v18303_v27 = vcombine.high %v1128_v18, %v1140_v19  ;;  %v1152_v28 = vld [vmem:[#allocation5 + $0x2108] sm:$0xff] }
 0x1af   :  { %7346 = vmatprep.subr.bf16.mxu1 %v18135_v29  ;;  %7961 = vmatprep.subr.bf16.mxu0 %v18145_v33  ;;  %v1164_v29 = vld [vmem:[#allocation5 + $0x2168] sm:$0xff]  ;;  %v18302_v33 = vcombine.low %v1128_v18, %v1140_v19  ;;  %v151_v18 = vld [vmem:[#allocation5 + $0x1c0] sm:$0xff]  ;;  %v17309_v19 = vcombine.high %v127_v9, %v139_v11  ;;  %v289_v11 = vld [vmem:[#allocation5 + $0x610] sm:$0xff] }
 0x1b0   :  { %v17332_v32 = vcombine.low %v151_v18, %v163_v20 }
 0x1b2   :  { %7347 = vmatpush1.bf16.msra.mxu1 %v18134_v36  ;;  %7962 = vmatpush1.bf16.msra.mxu0 %v18144_v37  ;;  %v18327_v36 = vcombine.high %v1152_v28, %v1164_v29  ;;  %v1176_v37 = vld [vmem:[#allocation5 + $0x21c8] sm:$0xff] }
 0x1b3   :  { %7348 = vmatprep.subr.bf16.mxu1 %v18159_v39  ;;  %7963 = vmatprep.subr.bf16.mxu0 %v18169_v43  ;;  %v1188_v39 = vld [vmem:[#allocation5 + $0x2228] sm:$0xff]  ;;  %v18326_v43 = vcombine.low %v1152_v28, %v1164_v29  ;;  %v175_v28 = vld [vmem:[#allocation5 + $0x280] sm:$0xff]  ;;  %v17333_v29 = vcombine.high %v151_v18, %v163_v20 }
 0x1b4   :  { %v17356_v42 = vcombine.low %v175_v28, %v187_v30 }
 0x1b6   :  { %7349 = vmatpush1.bf16.msra.mxu1 %v18158_v45  ;;  %7964 = vmatpush1.bf16.msra.mxu0 %v18168_v46  ;;  %v18351_v45 = vcombine.high %v1176_v37, %v1188_v39  ;;  %v1200_v46 = vld [vmem:[#allocation5 + $0x2288] sm:$0xff] }
 0x1b7   :  { %7350 = vmatprep.subr.bf16.mxu1 %v18183_v47  ;;  %7965 = vmatprep.subr.bf16.mxu0 %v18193_v51  ;;  %v1212_v47 = vld [vmem:[#allocation5 + $0x22e8] sm:$0xff]  ;;  %v18350_v51 = vcombine.low %v1176_v37, %v1188_v39  ;;  %v199_v37 = vld [vmem:[#allocation5 + $0x340] sm:$0xff]  ;;  %v17357_v39 = vcombine.high %v175_v28, %v187_v30 }
 0x1b8   :  { %v17380_v50 = vcombine.low %v199_v37, %v211_v40  ;;  %v331_v28 = vld [vmem:[#allocation5 + $0x760] sm:$0xff] }
 0x1ba   :  { %7351 = vmatpush1.bf16.msra.mxu1 %v18182_v53  ;;  %7966 = vmatpush1.bf16.msra.mxu0 %v18192_v54  ;;  %v18375_v53 = vcombine.high %v1200_v46, %v1212_v47  ;;  %v1224_v54 = vld [vmem:[#allocation5 + $0x2348] sm:$0xff] }
 0x1bb   :  { %7352 = vmatprep.subr.bf16.mxu1 %v18207_v55  ;;  %7967 = vmatprep.subr.bf16.mxu0 %v18217_v60  ;;  %v1236_v55 = vld [vmem:[#allocation5 + $0x23a8] sm:$0xff]  ;;  %v18374_v60 = vcombine.low %v1200_v46, %v1212_v47  ;;  %v223_v46 = vld [vmem:[#allocation5 + $0x400] sm:$0xff]  ;;  %v17381_v47 = vcombine.high %v199_v37, %v211_v40 }
 0x1bc   :  { %v355_v37 = vld [vmem:[#allocation5 + $0x820] sm:$0xff] }
 0x1be   :  { %7353 = vmatpush1.bf16.msra.mxu1 %v18206_v62  ;;  %7968 = vmatpush1.bf16.msra.mxu0 %v18216_v63  ;;  %v18399_v62 = vcombine.high %v1224_v54, %v1236_v55  ;;  %v97_v63 = vld [vmem:[#allocation5 + $0x10] sm:$0xff] }
 0x1bf   :  { %7354 = vmatprep.subr.bf16.mxu1 %v18231_v0  ;;  %7969 = vmatprep.subr.bf16.mxu0 %v18241_v4  ;;  %v109_v0 = vld [vmem:[#allocation5 + $0x70] sm:$0xff]  ;;  %v18398_v4 = vcombine.low %v1224_v54, %v1236_v55  ;;  %v247_v54 = vld [vmem:[#allocation5 + $0x4c0] sm:$0xff] }
 0x1c0   :  { %v17429_v1 = vcombine.high %v247_v54, %v259_v56  ;;  %v17428_v9 = vcombine.low %v247_v54, %v259_v56  ;;  %v403_v54 = vld [vmem:[#allocation5 + $0x9a0] sm:$0xff] }
 0x1c2   :  { %7355 = vmatpush1.bf16.msra.mxu1 %v18230_v6  ;;  %7970 = vmatpush1.bf16.msra.mxu0 %v18240_v7  ;;  %v17273_v6 = vcombine.high %v97_v63, %v109_v0  ;;  %v121_v7 = vld [vmem:[#allocation5 + $0xd0] sm:$0xff] }
 0x1c3   :  { %7356 = vmatprep.subr.bf16.mxu1 %v18255_v8  ;;  %7971 = vmatprep.subr.bf16.mxu0 %v18265_v13  ;;  %v133_v8 = vld [vmem:[#allocation5 + $0x130] sm:$0xff]  ;;  %v17272_v13 = vcombine.low %v97_v63, %v109_v0  ;;  %v271_v63 = vld [vmem:[#allocation5 + $0x580] sm:$0xff] }
 0x1c6   :  { %7357 = vmatpush1.bf16.msra.mxu1 %v18254_v15  ;;  %7972 = vmatpush1.bf16.msra.mxu0 %v18264_v16  ;;  %v17297_v15 = vcombine.high %v121_v7, %v133_v8  ;;  %v145_v16 = vld [vmem:[#allocation5 + $0x190] sm:$0xff] }
 0x1c7   :  { %7358 = vmatprep.subr.bf16.mxu1 %v18279_v17  ;;  %7973 = vmatprep.subr.bf16.mxu0 %v18289_v21  ;;  %v157_v17 = vld [vmem:[#allocation5 + $0x1f0] sm:$0xff]  ;;  %v17296_v21 = vcombine.low %v121_v7, %v133_v8 }
 0x1ca   :  { %7359 = vmatpush1.bf16.msra.mxu1 %v18278_v24  ;;  %7974 = vmatpush1.bf16.msra.mxu0 %v18288_v26  ;;  %v17321_v24 = vcombine.high %v145_v16, %v157_v17  ;;  %v169_v26 = vld [vmem:[#allocation5 + $0x250] sm:$0xff] }
 0x1cb   :  { %7360 = vmatprep.subr.bf16.mxu1 %v18303_v27  ;;  %7975 = vmatprep.subr.bf16.mxu0 %v18313_v31  ;;  %v181_v27 = vld [vmem:[#allocation5 + $0x2b0] sm:$0xff]  ;;  %v17320_v31 = vcombine.low %v145_v16, %v157_v17  ;;  %v307_v17 = vld [vmem:[#allocation5 + $0x6a0] sm:$0xff] }
 0x1ce   :  { %7361 = vmatpush1.bf16.msra.mxu1 %v18302_v33  ;;  %7976 = vmatpush1.bf16.msra.mxu0 %v18312_v35  ;;  %v17345_v33 = vcombine.high %v169_v26, %v181_v27  ;;  %v193_v35 = vld [vmem:[#allocation5 + $0x310] sm:$0xff] }
 0x1cf   :  { %7362 = vmatprep.subr.bf16.mxu1 %v18327_v36  ;;  %7977 = vmatprep.subr.bf16.mxu0 %v18337_v41  ;;  %v205_v36 = vld [vmem:[#allocation5 + $0x370] sm:$0xff]  ;;  %v17344_v41 = vcombine.low %v169_v26, %v181_v27  ;;  %v319_v27 = vld [vmem:[#allocation5 + $0x700] sm:$0xff] }
 0x1d0   :  { %v17368_v49 = vcombine.low %v193_v35, %v205_v36  ;;  %v325_v26 = vld [vmem:[#allocation5 + $0x730] sm:$0xff]  ;;  %v17500_v40 = vcombine.low %v319_v27, %v331_v28 }
 0x1d2   :  { %7363 = vmatpush1.bf16.msra.mxu1 %v18326_v43  ;;  %7978 = vmatpush1.bf16.msra.mxu0 %v18336_v44  ;;  %v17369_v43 = vcombine.high %v193_v35, %v205_v36  ;;  %v217_v44 = vld [vmem:[#allocation5 + $0x3d0] sm:$0xff]  ;;  %v343_v35 = vld [vmem:[#allocation5 + $0x7c0] sm:$0xff]  ;;  %v17501_v36 = vcombine.high %v319_v27, %v331_v28 }
 0x1d3   :  { %7364 = vmatprep.subr.bf16.mxu1 %v18351_v45  ;;  %7979 = vmatprep.subr.bf16.mxu0 %v18361_v48  ;;  %v229_v45 = vld [vmem:[#allocation5 + $0x430] sm:$0xff]  ;;  %v235_v48 = vld [vmem:[#allocation5 + $0x460] sm:$0xff] }
 0x1d4   :  { %v17405_v55 = vcombine.high %v223_v46, %v235_v48  ;;  %v17404_v59 = vcombine.low %v223_v46, %v235_v48  ;;  %v379_v46 = vld [vmem:[#allocation5 + $0x8e0] sm:$0xff]  ;;  %v17524_v48 = vcombine.low %v343_v35, %v355_v37  ;;  %v493_v27 = vld [vmem:[#allocation5 + $0xc70] sm:$0xff] }
 0x1d5   :  { %v487_v28 = vld [vmem:[#allocation5 + $0xc40] sm:$0xff] }
 0x1d6   :  { %7365 = vmatpush1.bf16.msra.mxu1 %v18350_v51  ;;  %7980 = vmatpush1.bf16.msra.mxu0 %v18360_v52  ;;  %v17393_v51 = vcombine.high %v217_v44, %v229_v45  ;;  %v241_v52 = vld [vmem:[#allocation5 + $0x490] sm:$0xff] }
 0x1d7   :  { %7366 = vmatprep.subr.bf16.mxu1 %v18375_v53  ;;  %7981 = vmatprep.subr.bf16.mxu0 %v18385_v58  ;;  %v253_v53 = vld [vmem:[#allocation5 + $0x4f0] sm:$0xff]  ;;  %v17392_v58 = vcombine.low %v217_v44, %v229_v45  ;;  %v367_v44 = vld [vmem:[#allocation5 + $0x880] sm:$0xff]  ;;  %v17525_v45 = vcombine.high %v343_v35, %v355_v37 }
 0x1d8   :  { %v17548_v56 = vcombine.low %v367_v44, %v379_v46  ;;  %v505_v35 = vld [vmem:[#allocation5 + $0xcd0] sm:$0xff]  ;;  %v511_v37 = vld [vmem:[#allocation5 + $0xd00] sm:$0xff] }
 0x1da   :  { %7367 = vmatpush1.bf16.msra.mxu1 %v18374_v60  ;;  %7982 = vmatpush1.bf16.msra.mxu0 %v18384_v61  ;;  %v17417_v60 = vcombine.high %v241_v52, %v253_v53  ;;  %v265_v61 = vld [vmem:[#allocation5 + $0x550] sm:$0xff] }
 0x1db   :  { %7368 = vmatprep.subr.bf16.mxu1 %v18399_v62  ;;  %7983 = vmatprep.subr.bf16.mxu0 %v18409_v2  ;;  %v277_v62 = vld [vmem:[#allocation5 + $0x5b0] sm:$0xff]  ;;  %v283_v2 = vld [vmem:[#allocation5 + $0x5e0] sm:$0xff] }
 0x1dc   :  { %v17453_v16 = vcombine.high %v271_v63, %v283_v2  ;;  %v17452_v20 = vcombine.low %v271_v63, %v283_v2  ;;  %v427_v63 = vld [vmem:[#allocation5 + $0xa60] sm:$0xff] }
 0x1de   :  { %7369 = vmatpush1.bf16.msra.mxu1 %v18398_v4  ;;  %7984 = vmatpush1.bf16.msra.mxu0 %v18408_v5 }
 0x1df   :  { %7379 = vmatprep.subr.bf16.mxu1 %v17273_v6  ;;  %8117 = vmatprep.subr.bf16.mxu0 %v17285_v10  ;;  %v17416_v6 = vcombine.low %v241_v52, %v253_v53  ;;  %v17441_v10 = vcombine.high %v265_v61, %v277_v62  ;;  %v391_v52 = vld [vmem:[#allocation5 + $0x940] sm:$0xff]  ;;  %v17549_v53 = vcombine.high %v367_v44, %v379_v46  ;;  %v529_v44 = vld [vmem:[#allocation5 + $0xd90] sm:$0xff] }
 0x1e0   :  { %v17572_v2 = vcombine.low %v391_v52, %v403_v54  ;;  %v535_v46 = vld [vmem:[#allocation5 + $0xdc0] sm:$0xff] }
 0x1e1   :  { %7371 = vmatmul.mubr.bf16.vlgmr.msra.gmra.mrb[4].mxu1 %v21880_v38  ;;  %7986 = vmatmul.mubr.bf16.vlgmr.msra.gmra.mrb[4].mxu0 %v21880_v38 }
 0x1e2   :  { %7380 = vmatpush1.bf16.msra.mxu1 %v17272_v13  ;;  %8118 = vmatpush1.bf16.msra.mxu0 %v17284_v14  ;;  %v301_v13 = vld [vmem:[#allocation5 + $0x670] sm:$0xff]  ;;  %v295_v14 = vld [vmem:[#allocation5 + $0x640] sm:$0xff] }
 0x1e3   :  { %7381 = vmatprep.subr.bf16.mxu1 %v17297_v15  ;;  %8119 = vmatprep.subr.bf16.mxu0 %v17309_v19  ;;  %v17440_v19 = vcombine.low %v265_v61, %v277_v62  ;;  %v17476_v30 = vcombine.low %v295_v14, %v307_v17  ;;  %v415_v61 = vld [vmem:[#allocation5 + $0xa00] sm:$0xff]  ;;  %v17573_v62 = vcombine.high %v391_v52, %v403_v54  ;;  %v553_v52 = vld [vmem:[#allocation5 + $0xe50] sm:$0xff] }
 0x1e4   :  { %7411 = vmatprep.mubr.bf16.mxu1 %v21860_v57  ;;  %8149 = vmatprep.mubr.bf16.mxu0 %v21860_v57  ;;  %v559_v54 = vld [vmem:[#allocation5 + $0xe80] sm:$0xff] }
 0x1e6   :  { %7382 = vmatpush1.bf16.msra.mxu1 %v17296_v21  ;;  %8120 = vmatpush1.bf16.msra.mxu0 %v17308_v22  ;;  %v17465_v21 = vcombine.high %v289_v11, %v301_v13  ;;  %v313_v22 = vld [vmem:[#allocation5 + $0x6d0] sm:$0xff] }
 0x1e7   :  { %7383 = vmatprep.subr.bf16.mxu1 %v17321_v24  ;;  %8121 = vmatprep.subr.bf16.mxu0 %v17333_v29  ;;  %v17477_v24 = vcombine.high %v295_v14, %v307_v17  ;;  %v17464_v29 = vcombine.low %v289_v11, %v301_v13  ;;  %v451_v11 = vld [vmem:[#allocation5 + $0xb20] sm:$0xff]  ;;  %v17596_v14 = vcombine.low %v415_v61, %v427_v63  ;;  %v469_v17 = vld [vmem:[#allocation5 + $0xbb0] sm:$0xff] }
 0x1ea   :  { %7384 = vmatpush1.bf16.msra.mxu1 %v17320_v31  ;;  %8122 = vmatpush1.bf16.msra.mxu0 %v17332_v32  ;;  %v17489_v31 = vcombine.high %v313_v22, %v325_v26  ;;  %v337_v32 = vld [vmem:[#allocation5 + $0x790] sm:$0xff] }
 0x1eb   :  { %7385 = vmatprep.subr.bf16.mxu1 %v17345_v33  ;;  %8123 = vmatprep.subr.bf16.mxu0 %v17357_v39  ;;  %v349_v33 = vld [vmem:[#allocation5 + $0x7f0] sm:$0xff]  ;;  %v17488_v39 = vcombine.low %v313_v22, %v325_v26 }
 0x1ec   :  { %v481_v26 = vld [vmem:[#allocation5 + $0xc10] sm:$0xff] }
 0x1ee   :  { %7386 = vmatpush1.bf16.msra.mxu1 %v17344_v41  ;;  %8124 = vmatpush1.bf16.msra.mxu0 %v17356_v42  ;;  %v17513_v41 = vcombine.high %v337_v32, %v349_v33  ;;  %v361_v42 = vld [vmem:[#allocation5 + $0x850] sm:$0xff] }
 0x1ef   :  { %7387 = vmatprep.subr.bf16.mxu1 %v17369_v43  ;;  %8125 = vmatprep.subr.bf16.mxu0 %v17381_v47  ;;  %v373_v43 = vld [vmem:[#allocation5 + $0x8b0] sm:$0xff]  ;;  %v17512_v47 = vcombine.low %v337_v32, %v349_v33  ;;  %v17657_v33 = vcombine.high %v481_v26, %v493_v27 }
 0x1f2   :  { %7388 = vmatpush1.bf16.msra.mxu1 %v17368_v49  ;;  %8126 = vmatpush1.bf16.msra.mxu0 %v17380_v50  ;;  %v17537_v49 = vcombine.high %v361_v42, %v373_v43  ;;  %v385_v50 = vld [vmem:[#allocation5 + $0x910] sm:$0xff] }
 0x1f3   :  { %7389 = vmatprep.subr.bf16.mxu1 %v17393_v51  ;;  %8127 = vmatprep.subr.bf16.mxu0 %v17405_v55  ;;  %v397_v51 = vld [vmem:[#allocation5 + $0x970] sm:$0xff]  ;;  %v17536_v55 = vcombine.low %v361_v42, %v373_v43 }
 0x1f4   :  { %v21898_v0 = vpop.f32.mrb[0].mxu1  ;;  %v21902_v4 = vpop.f32.mrb[0].mxu0 }
 0x1f5   :  { %v21900_v3 = vpop.f32.mrb[1].mxu1  ;;  %v21904_v7 = vpop.f32.mrb[1].mxu0 }
 0x1f6   :  { %v7253_v5 = vpop.f32.mrb[2].mxu1  ;;  %7390 = vmatpush1.bf16.msra.mxu1 %v17392_v58  ;;  %8128 = vmatpush1.bf16.msra.mxu0 %v17404_v59  ;;  %v7745_v15 = vpop.f32.mrb[2].mxu0  ;;  %v17561_v58 = vcombine.high %v385_v50, %v397_v51  ;;  %v409_v59 = vld [vmem:[#allocation5 + $0x9d0] sm:$0xff] }
 0x1f7   :  { %v7254_v8 = vpop.f32.mrb[3].mxu1  ;;  %7391 = vmatprep.subr.bf16.mxu1 %v17417_v60  ;;  %8129 = vmatprep.subr.bf16.mxu0 %v17429_v1  ;;  %v7746_v18 = vpop.f32.mrb[3].mxu0  ;;  %v421_v60 = vld [vmem:[#allocation5 + $0xa30] sm:$0xff]  ;;  %v17560_v1 = vcombine.low %v385_v50, %v397_v51 }
 0x1f8   :  { %v17585_v5 = vcombine.high %v409_v59, %v421_v60  ;;  %v445_v8 = vld [vmem:[#allocation5 + $0xaf0] sm:$0xff]  ;;  %v17584_v13 = vcombine.low %v409_v59, %v421_v60  ;;  %v463_v18 = vld [vmem:[#allocation5 + $0xb80] sm:$0xff] }
 0x1fa   :  { %7392 = vmatpush1.bf16.msra.mxu1 %v17416_v6  ;;  %8130 = vmatpush1.bf16.msra.mxu0 %v17428_v9  ;;  %v433_v6 = vld [vmem:[#allocation5 + $0xa90] sm:$0xff]  ;;  %v439_v9 = vld [vmem:[#allocation5 + $0xac0] sm:$0xff] }
 0x1fb   :  { %7393 = vmatprep.subr.bf16.mxu1 %v17441_v10  ;;  %8131 = vmatprep.subr.bf16.mxu0 %v17453_v16  ;;  %v17597_v10 = vcombine.high %v415_v61, %v427_v63  ;;  %v17609_v15 = vcombine.high %v433_v6, %v445_v8  ;;  %v457_v16 = vld [vmem:[#allocation5 + $0xb50] sm:$0xff]  ;;  %v17620_v22 = vcombine.low %v439_v9, %v451_v11  ;;  %v583_v63 = vld [vmem:[#allocation5 + $0xf40] sm:$0xff] }
 0x1fc   :  { %v577_v61 = vld [vmem:[#allocation5 + $0xf10] sm:$0xff] }
 0x1fe   :  { %7394 = vmatpush1.bf16.msra.mxu1 %v17440_v19  ;;  %8132 = vmatpush1.bf16.msra.mxu0 %v17452_v20  ;;  %v17621_v19 = vcombine.high %v439_v9, %v451_v11  ;;  %v475_v20 = vld [vmem:[#allocation5 + $0xbe0] sm:$0xff]  ;;  %v601_v9 = vld [vmem:[#allocation5 + $0xfd0] sm:$0xff] }
 0x1ff   :  { %7395 = vmatprep.subr.bf16.mxu1 %v17465_v21  ;;  %8133 = vmatprep.subr.bf16.mxu0 %v17477_v24  ;;  %v17608_v21 = vcombine.low %v433_v6, %v445_v8  ;;  %v17633_v24 = vcombine.high %v457_v16, %v469_v17  ;;  %v17644_v32 = vcombine.low %v463_v18, %v475_v20  ;;  %v607_v11 = vld [vmem:[#allocation5 + $0x1000] sm:$0xff] }
 0x202   :  { %7396 = vmatpush1.bf16.msra.mxu1 %v17464_v29  ;;  %8134 = vmatpush1.bf16.msra.mxu0 %v17476_v30  ;;  %v17645_v29 = vcombine.high %v463_v18, %v475_v20  ;;  %v499_v30 = vld [vmem:[#allocation5 + $0xca0] sm:$0xff]  ;;  %v625_v18 = vld [vmem:[#allocation5 + $0x1090] sm:$0xff] }
 0x203   :  { %7397 = vmatprep.subr.bf16.mxu1 %v17489_v31  ;;  %8135 = vmatprep.subr.bf16.mxu0 %v17501_v36  ;;  %v17632_v31 = vcombine.low %v457_v16, %v469_v17  ;;  %v517_v36 = vld [vmem:[#allocation5 + $0xd30] sm:$0xff]  ;;  %v17668_v42 = vcombine.low %v487_v28, %v499_v30  ;;  %v631_v20 = vld [vmem:[#allocation5 + $0x10c0] sm:$0xff] }
 0x204   :  { %v17681_v43 = vcombine.high %v505_v35, %v517_v36 }
 0x206   :  { %7398 = vmatpush1.bf16.msra.mxu1 %v17488_v39  ;;  %8136 = vmatpush1.bf16.msra.mxu0 %v17500_v40  ;;  %v17669_v39 = vcombine.high %v487_v28, %v499_v30  ;;  %v523_v40 = vld [vmem:[#allocation5 + $0xd60] sm:$0xff]  ;;  %v649_v28 = vld [vmem:[#allocation5 + $0x1150] sm:$0xff] }
 0x207   :  { %7399 = vmatprep.subr.bf16.mxu1 %v17513_v41  ;;  %8137 = vmatprep.subr.bf16.mxu0 %v17525_v45  ;;  %v17656_v41 = vcombine.low %v481_v26, %v493_v27  ;;  %v541_v45 = vld [vmem:[#allocation5 + $0xdf0] sm:$0xff]  ;;  %v17692_v50 = vcombine.low %v511_v37, %v523_v40  ;;  %v655_v30 = vld [vmem:[#allocation5 + $0x1180] sm:$0xff] }
 0x208   :  { %v17705_v51 = vcombine.high %v529_v44, %v541_v45 }
 0x20a   :  { %7400 = vmatpush1.bf16.msra.mxu1 %v17512_v47  ;;  %8138 = vmatpush1.bf16.msra.mxu0 %v17524_v48  ;;  %v17693_v47 = vcombine.high %v511_v37, %v523_v40  ;;  %v547_v48 = vld [vmem:[#allocation5 + $0xe20] sm:$0xff]  ;;  %v673_v37 = vld [vmem:[#allocation5 + $0x1210] sm:$0xff] }
 0x20b   :  { %7401 = vmatprep.subr.bf16.mxu1 %v17537_v49  ;;  %8139 = vmatprep.subr.bf16.mxu0 %v17549_v53  ;;  %v17680_v49 = vcombine.low %v505_v35, %v517_v36  ;;  %v565_v53 = vld [vmem:[#allocation5 + $0xeb0] sm:$0xff]  ;;  %v17716_v59 = vcombine.low %v535_v46, %v547_v48  ;;  %v679_v40 = vld [vmem:[#allocation5 + $0x1240] sm:$0xff] }
 0x20c   :  { %v17729_v60 = vcombine.high %v553_v52, %v565_v53 }
 0x20e   :  { %7402 = vmatpush1.bf16.msra.mxu1 %v17536_v55  ;;  %8140 = vmatpush1.bf16.msra.mxu0 %v17548_v56  ;;  %v17717_v55 = vcombine.high %v535_v46, %v547_v48  ;;  %v571_v56 = vld [vmem:[#allocation5 + $0xee0] sm:$0xff]  ;;  %v697_v46 = vld [vmem:[#allocation5 + $0x12d0] sm:$0xff] }
 0x20f   :  { %7403 = vmatprep.subr.bf16.mxu1 %v17561_v58  ;;  %8141 = vmatprep.subr.bf16.mxu0 %v17573_v62  ;;  %v17704_v58 = vcombine.low %v529_v44, %v541_v45  ;;  %v589_v62 = vld [vmem:[#allocation5 + $0xf70] sm:$0xff]  ;;  %v17740_v6 = vcombine.low %v559_v54, %v571_v56  ;;  %v703_v48 = vld [vmem:[#allocation5 + $0x1300] sm:$0xff] }
 0x210   :  { %v17753_v8 = vcombine.high %v577_v61, %v589_v62 }
 0x212   :  { %7404 = vmatpush1.bf16.msra.mxu1 %v17560_v1  ;;  %8142 = vmatpush1.bf16.msra.mxu0 %v17572_v2  ;;  %v17741_v1 = vcombine.high %v559_v54, %v571_v56  ;;  %v595_v2 = vld [vmem:[#allocation5 + $0xfa0] sm:$0xff]  ;;  %v721_v54 = vld [vmem:[#allocation5 + $0x1390] sm:$0xff] }
 0x213   :  { %7405 = vmatprep.subr.bf16.mxu1 %v17585_v5  ;;  %8143 = vmatprep.subr.bf16.mxu0 %v17597_v10  ;;  %v17728_v5 = vcombine.low %v553_v52, %v565_v53  ;;  %v613_v10 = vld [vmem:[#allocation5 + $0x1030] sm:$0xff]  ;;  %v17764_v16 = vcombine.low %v583_v63, %v595_v2  ;;  %v727_v56 = vld [vmem:[#allocation5 + $0x13c0] sm:$0xff] }
 0x214   :  { %v17777_v17 = vcombine.high %v601_v9, %v613_v10 }
 0x216   :  { %7406 = vmatpush1.bf16.msra.mxu1 %v17584_v13  ;;  %8144 = vmatpush1.bf16.msra.mxu0 %v17596_v14  ;;  %v17765_v13 = vcombine.high %v583_v63, %v595_v2  ;;  %v619_v14 = vld [vmem:[#allocation5 + $0x1060] sm:$0xff]  ;;  %v745_v63 = vld [vmem:[#allocation5 + $0x1450] sm:$0xff] }
 0x217   :  { %7407 = vmatprep.subr.bf16.mxu1 %v17609_v15  ;;  %8145 = vmatprep.subr.bf16.mxu0 %v17621_v19  ;;  %v17752_v15 = vcombine.low %v577_v61, %v589_v62  ;;  %v637_v19 = vld [vmem:[#allocation5 + $0x10f0] sm:$0xff]  ;;  %v17788_v26 = vcombine.low %v607_v11, %v619_v14  ;;  %v751_v2 = vld [vmem:[#allocation5 + $0x1480] sm:$0xff] }
 0x218   :  { %v17801_v27 = vcombine.high %v625_v18, %v637_v19 }
 0x21a   :  { %7408 = vmatpush1.bf16.msra.mxu1 %v17608_v21  ;;  %8146 = vmatpush1.bf16.msra.mxu0 %v17620_v22  ;;  %v17789_v21 = vcombine.high %v607_v11, %v619_v14  ;;  %v643_v22 = vld [vmem:[#allocation5 + $0x1120] sm:$0xff]  ;;  %v769_v11 = vld [vmem:[#allocation5 + $0x1510] sm:$0xff] }
 0x21b   :  { %7409 = vmatprep.subr.bf16.mxu1 %v17633_v24  ;;  %8147 = vmatprep.subr.bf16.mxu0 %v17645_v29  ;;  %v17776_v24 = vcombine.low %v601_v9, %v613_v10  ;;  %v661_v29 = vld [vmem:[#allocation5 + $0x11b0] sm:$0xff]  ;;  %v17812_v35 = vcombine.low %v631_v20, %v643_v22  ;;  %v775_v14 = vld [vmem:[#allocation5 + $0x1540] sm:$0xff] }
 0x21c   :  { %v17825_v36 = vcombine.high %v649_v28, %v661_v29 }
 0x21e   :  { %7410 = vmatpush1.bf16.msra.mxu1 %v17632_v31  ;;  %8148 = vmatpush1.bf16.msra.mxu0 %v17644_v32  ;;  %v17813_v31 = vcombine.high %v631_v20, %v643_v22  ;;  %v667_v32 = vld [vmem:[#allocation5 + $0x11e0] sm:$0xff]  ;;  %v793_v20 = vld [vmem:[#allocation5 + $0x15d0] sm:$0xff] }
 0x21f   :  { %7420 = vmatprep.subr.bf16.mxu1 %v17657_v33  ;;  %8158 = vmatprep.subr.bf16.mxu0 %v17669_v39  ;;  %v17800_v33 = vcombine.low %v625_v18, %v637_v19  ;;  %v685_v39 = vld [vmem:[#allocation5 + $0x1270] sm:$0xff]  ;;  %v17836_v44 = vcombine.low %v655_v30, %v667_v32  ;;  %v799_v22 = vld [vmem:[#allocation5 + $0x1600] sm:$0xff] }
 0x220   :  { %v17849_v45 = vcombine.high %v673_v37, %v685_v39 }
 0x221   :  { %7412 = vmatmul.mubr.bf16.vlgmr.msra.gmra.mrb[8].mxu1 %v21864_v12  ;;  %8150 = vmatmul.mubr.bf16.vlgmr.msra.gmra.mrb[8].mxu0 %v21864_v12 }
 0x222   :  { %7421 = vmatpush1.bf16.msra.mxu1 %v17656_v41  ;;  %8159 = vmatpush1.bf16.msra.mxu0 %v17668_v42  ;;  %v17837_v41 = vcombine.high %v655_v30, %v667_v32  ;;  %v691_v42 = vld [vmem:[#allocation5 + $0x12a0] sm:$0xff]  ;;  %v817_v30 = vld [vmem:[#allocation5 + $0x1690] sm:$0xff] }
 0x223   :  { %7422 = vmatprep.subr.bf16.mxu1 %v17681_v43  ;;  %8160 = vmatprep.subr.bf16.mxu0 %v17693_v47  ;;  %v17824_v43 = vcombine.low %v649_v28, %v661_v29  ;;  %v709_v47 = vld [vmem:[#allocation5 + $0x1330] sm:$0xff]  ;;  %v17860_v52 = vcombine.low %v679_v40, %v691_v42  ;;  %v823_v32 = vld [vmem:[#allocation5 + $0x16c0] sm:$0xff] }
 0x224   :  { %7452 = vmatprep.mubr.bf16.mxu1 %v21866_v23  ;;  %8190 = vmatprep.mubr.bf16.mxu0 %v21866_v23  ;;  %v17873_v53 = vcombine.high %v697_v46, %v709_v47 }
 0x226   :  { %7423 = vmatpush1.bf16.msra.mxu1 %v17680_v49  ;;  %8161 = vmatpush1.bf16.msra.mxu0 %v17692_v50  ;;  %v17861_v49 = vcombine.high %v679_v40, %v691_v42  ;;  %v715_v50 = vld [vmem:[#allocation5 + $0x1360] sm:$0xff]  ;;  %v841_v40 = vld [vmem:[#allocation5 + $0x1750] sm:$0xff] }
 0x227   :  { %7424 = vmatprep.subr.bf16.mxu1 %v17705_v51  ;;  %8162 = vmatprep.subr.bf16.mxu0 %v17717_v55  ;;  %v17848_v51 = vcombine.low %v673_v37, %v685_v39  ;;  %v733_v55 = vld [vmem:[#allocation5 + $0x13f0] sm:$0xff]  ;;  %v17884_v61 = vcombine.low %v703_v48, %v715_v50  ;;  %v847_v42 = vld [vmem:[#allocation5 + $0x1780] sm:$0xff] }
 0x228   :  { %v17897_v62 = vcombine.high %v721_v54, %v733_v55 }
 0x22a   :  { %7425 = vmatpush1.bf16.msra.mxu1 %v17704_v58  ;;  %8163 = vmatpush1.bf16.msra.mxu0 %v17716_v59  ;;  %v17885_v58 = vcombine.high %v703_v48, %v715_v50  ;;  %v739_v59 = vld [vmem:[#allocation5 + $0x1420] sm:$0xff]  ;;  %v865_v48 = vld [vmem:[#allocation5 + $0x1810] sm:$0xff] }
 0x22b   :  { %7426 = vmatprep.subr.bf16.mxu1 %v17729_v60  ;;  %8164 = vmatprep.subr.bf16.mxu0 %v17741_v1  ;;  %v17872_v60 = vcombine.low %v697_v46, %v709_v47  ;;  %v757_v1 = vld [vmem:[#allocation5 + $0x14b0] sm:$0xff]  ;;  %v17908_v9 = vcombine.low %v727_v56, %v739_v59  ;;  %v871_v50 = vld [vmem:[#allocation5 + $0x1840] sm:$0xff] }
 0x22c   :  { %v17921_v10 = vcombine.high %v745_v63, %v757_v1 }
 0x22e   :  { %7427 = vmatpush1.bf16.msra.mxu1 %v17728_v5  ;;  %8165 = vmatpush1.bf16.msra.mxu0 %v17740_v6  ;;  %v17909_v5 = vcombine.high %v727_v56, %v739_v59  ;;  %v763_v6 = vld [vmem:[#allocation5 + $0x14e0] sm:$0xff]  ;;  %v889_v56 = vld [vmem:[#allocation5 + $0x18d0] sm:$0xff] }
 0x22f   :  { %7428 = vmatprep.subr.bf16.mxu1 %v17753_v8  ;;  %8166 = vmatprep.subr.bf16.mxu0 %v17765_v13  ;;  %v17896_v8 = vcombine.low %v721_v54, %v733_v55  ;;  %v781_v13 = vld [vmem:[#allocation5 + $0x1570] sm:$0xff]  ;;  %v17932_v18 = vcombine.low %v751_v2, %v763_v6  ;;  %v895_v59 = vld [vmem:[#allocation5 + $0x1900] sm:$0xff] }
 0x230   :  { %v17945_v19 = vcombine.high %v769_v11, %v781_v13 }
 0x232   :  { %7429 = vmatpush1.bf16.msra.mxu1 %v17752_v15  ;;  %8167 = vmatpush1.bf16.msra.mxu0 %v17764_v16  ;;  %v17933_v15 = vcombine.high %v751_v2, %v763_v6  ;;  %v787_v16 = vld [vmem:[#allocation5 + $0x15a0] sm:$0xff]  ;;  %v913_v2 = vld [vmem:[#allocation5 + $0x1990] sm:$0xff] }
 0x233   :  { %7430 = vmatprep.subr.bf16.mxu1 %v17777_v17  ;;  %8168 = vmatprep.subr.bf16.mxu0 %v17789_v21  ;;  %v17920_v17 = vcombine.low %v745_v63, %v757_v1  ;;  %v805_v21 = vld [vmem:[#allocation5 + $0x1630] sm:$0xff]  ;;  %v17956_v28 = vcombine.low %v775_v14, %v787_v16  ;;  %v919_v6 = vld [vmem:[#allocation5 + $0x19c0] sm:$0xff] }
 0x234   :  { %v17969_v29 = vcombine.high %v793_v20, %v805_v21 }
 0x236   :  { %7431 = vmatpush1.bf16.msra.mxu1 %v17776_v24  ;;  %8169 = vmatpush1.bf16.msra.mxu0 %v17788_v26  ;;  %v17957_v24 = vcombine.high %v775_v14, %v787_v16  ;;  %v811_v26 = vld [vmem:[#allocation5 + $0x1660] sm:$0xff]  ;;  %v937_v14 = vld [vmem:[#allocation5 + $0x1a50] sm:$0xff] }
 0x237   :  { %7432 = vmatprep.subr.bf16.mxu1 %v17801_v27  ;;  %8170 = vmatprep.subr.bf16.mxu0 %v17813_v31  ;;  %v17944_v27 = vcombine.low %v769_v11, %v781_v13  ;;  %v829_v31 = vld [vmem:[#allocation5 + $0x16f0] sm:$0xff]  ;;  %v17980_v37 = vcombine.low %v799_v22, %v811_v26  ;;  %v943_v16 = vld [vmem:[#allocation5 + $0x1a80] sm:$0xff] }
 0x238   :  { %v17993_v39 = vcombine.high %v817_v30, %v829_v31 }
 0x23a   :  { %7433 = vmatpush1.bf16.msra.mxu1 %v17800_v33  ;;  %8171 = vmatpush1.bf16.msra.mxu0 %v17812_v35  ;;  %v17981_v33 = vcombine.high %v799_v22, %v811_v26  ;;  %v835_v35 = vld [vmem:[#allocation5 + $0x1720] sm:$0xff]  ;;  %v961_v22 = vld [vmem:[#allocation5 + $0x1b10] sm:$0xff] }
 0x23b   :  { %7434 = vmatprep.subr.bf16.mxu1 %v17825_v36  ;;  %8172 = vmatprep.subr.bf16.mxu0 %v17837_v41  ;;  %v17968_v36 = vcombine.low %v793_v20, %v805_v21  ;;  %v853_v41 = vld [vmem:[#allocation5 + $0x17b0] sm:$0xff]  ;;  %v18004_v46 = vcombine.low %v823_v32, %v835_v35  ;;  %v967_v26 = vld [vmem:[#allocation5 + $0x1b40] sm:$0xff] }
 0x23c   :  { %v18017_v47 = vcombine.high %v841_v40, %v853_v41 }
 0x23e   :  { %7435 = vmatpush1.bf16.msra.mxu1 %v17824_v43  ;;  %8173 = vmatpush1.bf16.msra.mxu0 %v17836_v44  ;;  %v18005_v43 = vcombine.high %v823_v32, %v835_v35  ;;  %v859_v44 = vld [vmem:[#allocation5 + $0x17e0] sm:$0xff]  ;;  %v985_v32 = vld [vmem:[#allocation5 + $0x1bd0] sm:$0xff] }
 0x23f   :  { %7436 = vmatprep.subr.bf16.mxu1 %v17849_v45  ;;  %8174 = vmatprep.subr.bf16.mxu0 %v17861_v49  ;;  %v17992_v45 = vcombine.low %v817_v30, %v829_v31  ;;  %v877_v49 = vld [vmem:[#allocation5 + $0x1870] sm:$0xff]  ;;  %v18028_v54 = vcombine.low %v847_v42, %v859_v44  ;;  %v991_v35 = vld [vmem:[#allocation5 + $0x1c00] sm:$0xff] }
 0x240   :  { %v18041_v55 = vcombine.high %v865_v48, %v877_v49 }
 0x242   :  { %7437 = vmatpush1.bf16.msra.mxu1 %v17848_v51  ;;  %8175 = vmatpush1.bf16.msra.mxu0 %v17860_v52  ;;  %v18029_v51 = vcombine.high %v847_v42, %v859_v44  ;;  %v883_v52 = vld [vmem:[#allocation5 + $0x18a0] sm:$0xff]  ;;  %v1009_v42 = vld [vmem:[#allocation5 + $0x1c90] sm:$0xff] }
 0x243   :  { %7438 = vmatprep.subr.bf16.mxu1 %v17873_v53  ;;  %8176 = vmatprep.subr.bf16.mxu0 %v17885_v58  ;;  %v18016_v53 = vcombine.low %v841_v40, %v853_v41  ;;  %v901_v58 = vld [vmem:[#allocation5 + $0x1930] sm:$0xff]  ;;  %v18052_v63 = vcombine.low %v871_v50, %v883_v52  ;;  %v1015_v44 = vld [vmem:[#allocation5 + $0x1cc0] sm:$0xff] }
 0x244   :  { %v18065_v1 = vcombine.high %v889_v56, %v901_v58 }
 0x246   :  { %7439 = vmatpush1.bf16.msra.mxu1 %v17872_v60  ;;  %8177 = vmatpush1.bf16.msra.mxu0 %v17884_v61  ;;  %v18053_v60 = vcombine.high %v871_v50, %v883_v52  ;;  %v907_v61 = vld [vmem:[#allocation5 + $0x1960] sm:$0xff]  ;;  %v1033_v50 = vld [vmem:[#allocation5 + $0x1d50] sm:$0xff] }
 0x247   :  { %7440 = vmatprep.subr.bf16.mxu1 %v17897_v62  ;;  %8178 = vmatprep.subr.bf16.mxu0 %v17909_v5  ;;  %v18040_v62 = vcombine.low %v865_v48, %v877_v49  ;;  %v925_v5 = vld [vmem:[#allocation5 + $0x19f0] sm:$0xff]  ;;  %v18076_v11 = vcombine.low %v895_v59, %v907_v61  ;;  %v1039_v52 = vld [vmem:[#allocation5 + $0x1d80] sm:$0xff] }
 0x248   :  { %v18089_v13 = vcombine.high %v913_v2, %v925_v5 }
 0x24a   :  { %7441 = vmatpush1.bf16.msra.mxu1 %v17896_v8  ;;  %8179 = vmatpush1.bf16.msra.mxu0 %v17908_v9  ;;  %v18077_v8 = vcombine.high %v895_v59, %v907_v61  ;;  %v931_v9 = vld [vmem:[#allocation5 + $0x1a20] sm:$0xff]  ;;  %v1057_v59 = vld [vmem:[#allocation5 + $0x1e10] sm:$0xff] }
 0x24b   :  { %7442 = vmatprep.subr.bf16.mxu1 %v17921_v10  ;;  %8180 = vmatprep.subr.bf16.mxu0 %v17933_v15  ;;  %v18064_v10 = vcombine.low %v889_v56, %v901_v58  ;;  %v949_v15 = vld [vmem:[#allocation5 + $0x1ab0] sm:$0xff]  ;;  %v18100_v20 = vcombine.low %v919_v6, %v931_v9  ;;  %v1063_v61 = vld [vmem:[#allocation5 + $0x1e40] sm:$0xff] }
 0x24c   :  { %v18113_v21 = vcombine.high %v937_v14, %v949_v15 }
 0x24e   :  { %7443 = vmatpush1.bf16.msra.mxu1 %v17920_v17  ;;  %8181 = vmatpush1.bf16.msra.mxu0 %v17932_v18  ;;  %v18101_v17 = vcombine.high %v919_v6, %v931_v9  ;;  %v955_v18 = vld [vmem:[#allocation5 + $0x1ae0] sm:$0xff]  ;;  %v1081_v6 = vld [vmem:[#allocation5 + $0x1ed0] sm:$0xff] }
 0x24f   :  { %7444 = vmatprep.subr.bf16.mxu1 %v17945_v19  ;;  %8182 = vmatprep.subr.bf16.mxu0 %v17957_v24  ;;  %v18088_v19 = vcombine.low %v913_v2, %v925_v5  ;;  %v973_v24 = vld [vmem:[#allocation5 + $0x1b70] sm:$0xff]  ;;  %v18124_v30 = vcombine.low %v943_v16, %v955_v18  ;;  %v1087_v9 = vld [vmem:[#allocation5 + $0x1f00] sm:$0xff] }
 0x250   :  { %v18137_v31 = vcombine.high %v961_v22, %v973_v24 }
 0x252   :  { %7445 = vmatpush1.bf16.msra.mxu1 %v17944_v27  ;;  %8183 = vmatpush1.bf16.msra.mxu0 %v17956_v28  ;;  %v18125_v27 = vcombine.high %v943_v16, %v955_v18  ;;  %v979_v28 = vld [vmem:[#allocation5 + $0x1ba0] sm:$0xff]  ;;  %v1105_v16 = vld [vmem:[#allocation5 + $0x1f90] sm:$0xff] }
 0x253   :  { %7446 = vmatprep.subr.bf16.mxu1 %v17969_v29  ;;  %8184 = vmatprep.subr.bf16.mxu0 %v17981_v33  ;;  %v18112_v29 = vcombine.low %v937_v14, %v949_v15  ;;  %v997_v33 = vld [vmem:[#allocation5 + $0x1c30] sm:$0xff]  ;;  %v18148_v40 = vcombine.low %v967_v26, %v979_v28  ;;  %v1111_v18 = vld [vmem:[#allocation5 + $0x1fc0] sm:$0xff] }
 0x254   :  { %v18161_v41 = vcombine.high %v985_v32, %v997_v33 }
 0x256   :  { %7447 = vmatpush1.bf16.msra.mxu1 %v17968_v36  ;;  %8185 = vmatpush1.bf16.msra.mxu0 %v17980_v37  ;;  %v18149_v36 = vcombine.high %v967_v26, %v979_v28  ;;  %v1003_v37 = vld [vmem:[#allocation5 + $0x1c60] sm:$0xff]  ;;  %v1129_v26 = vld [vmem:[#allocation5 + $0x2050] sm:$0xff] }
 0x257   :  { %7448 = vmatprep.subr.bf16.mxu1 %v17993_v39  ;;  %8186 = vmatprep.subr.bf16.mxu0 %v18005_v43  ;;  %v18136_v39 = vcombine.low %v961_v22, %v973_v24  ;;  %v1021_v43 = vld [vmem:[#allocation5 + $0x1cf0] sm:$0xff]  ;;  %v18172_v48 = vcombine.low %v991_v35, %v1003_v37  ;;  %v1135_v28 = vld [vmem:[#allocation5 + $0x2080] sm:$0xff] }
 0x258   :  { %v18185_v49 = vcombine.high %v1009_v42, %v1021_v43 }
 0x25a   :  { %7449 = vmatpush1.bf16.msra.mxu1 %v17992_v45  ;;  %8187 = vmatpush1.bf16.msra.mxu0 %v18004_v46  ;;  %v18173_v45 = vcombine.high %v991_v35, %v1003_v37  ;;  %v1027_v46 = vld [vmem:[#allocation5 + $0x1d20] sm:$0xff]  ;;  %v1153_v35 = vld [vmem:[#allocation5 + $0x2110] sm:$0xff] }
 0x25b   :  { %7450 = vmatprep.subr.bf16.mxu1 %v18017_v47  ;;  %8188 = vmatprep.subr.bf16.mxu0 %v18029_v51  ;;  %v18160_v47 = vcombine.low %v985_v32, %v997_v33  ;;  %v1045_v51 = vld [vmem:[#allocation5 + $0x1db0] sm:$0xff]  ;;  %v18196_v56 = vcombine.low %v1015_v44, %v1027_v46  ;;  %v1159_v37 = vld [vmem:[#allocation5 + $0x2140] sm:$0xff] }
 0x25c   :  { %v18209_v58 = vcombine.high %v1033_v50, %v1045_v51 }
 0x25e   :  { %7451 = vmatpush1.bf16.msra.mxu1 %v18016_v53  ;;  %8189 = vmatpush1.bf16.msra.mxu0 %v18028_v54  ;;  %v18197_v53 = vcombine.high %v1015_v44, %v1027_v46  ;;  %v1051_v54 = vld [vmem:[#allocation5 + $0x1de0] sm:$0xff]  ;;  %v1177_v44 = vld [vmem:[#allocation5 + $0x21d0] sm:$0xff] }
 0x25f   :  { %7461 = vmatprep.subr.bf16.mxu1 %v18041_v55  ;;  %8199 = vmatprep.subr.bf16.mxu0 %v18053_v60  ;;  %v18184_v55 = vcombine.low %v1009_v42, %v1021_v43  ;;  %v1069_v60 = vld [vmem:[#allocation5 + $0x1e70] sm:$0xff]  ;;  %v18220_v2 = vcombine.low %v1039_v52, %v1051_v54  ;;  %v1183_v46 = vld [vmem:[#allocation5 + $0x2200] sm:$0xff] }
 0x260   :  { %v18233_v5 = vcombine.high %v1057_v59, %v1069_v60 }
 0x261   :  { %7453 = vmatmul.mubr.bf16.vlgmr.msra.gmra.mrb[8].mxu1 %v21872_v25  ;;  %8191 = vmatmul.mubr.bf16.vlgmr.msra.gmra.mrb[8].mxu0 %v21872_v25 }
 0x262   :  { %7462 = vmatpush1.bf16.msra.mxu1 %v18040_v62  ;;  %8200 = vmatpush1.bf16.msra.mxu0 %v18052_v63  ;;  %v18221_v62 = vcombine.high %v1039_v52, %v1051_v54  ;;  %v1075_v63 = vld [vmem:[#allocation5 + $0x1ea0] sm:$0xff]  ;;  %v1201_v52 = vld [vmem:[#allocation5 + $0x2290] sm:$0xff] }
 0x263   :  { %7463 = vmatprep.subr.bf16.mxu1 %v18065_v1  ;;  %8201 = vmatprep.subr.bf16.mxu0 %v18077_v8  ;;  %v18208_v1 = vcombine.low %v1033_v50, %v1045_v51  ;;  %v1093_v8 = vld [vmem:[#allocation5 + $0x1f30] sm:$0xff]  ;;  %v18244_v14 = vcombine.low %v1063_v61, %v1075_v63  ;;  %v1207_v54 = vld [vmem:[#allocation5 + $0x22c0] sm:$0xff] }
 0x264   :  { %7493 = vmatprep.mubr.bf16.mxu1 %v21874_v34  ;;  %8231 = vmatprep.mubr.bf16.mxu0 %v21874_v34  ;;  %v18257_v15 = vcombine.high %v1081_v6, %v1093_v8 }
 0x266   :  { %7464 = vmatpush1.bf16.msra.mxu1 %v18064_v10  ;;  %8202 = vmatpush1.bf16.msra.mxu0 %v18076_v11  ;;  %v18245_v10 = vcombine.high %v1063_v61, %v1075_v63  ;;  %v1099_v11 = vld [vmem:[#allocation5 + $0x1f60] sm:$0xff]  ;;  %v1225_v61 = vld [vmem:[#allocation5 + $0x2350] sm:$0xff] }
 0x267   :  { %7465 = vmatprep.subr.bf16.mxu1 %v18089_v13  ;;  %8203 = vmatprep.subr.bf16.mxu0 %v18101_v17  ;;  %v18232_v13 = vcombine.low %v1057_v59, %v1069_v60  ;;  %v1117_v17 = vld [vmem:[#allocation5 + $0x1ff0] sm:$0xff]  ;;  %v18268_v22 = vcombine.low %v1087_v9, %v1099_v11  ;;  %v1231_v63 = vld [vmem:[#allocation5 + $0x2380] sm:$0xff] }
 0x268   :  { %v18281_v24 = vcombine.high %v1105_v16, %v1117_v17 }
 0x26a   :  { %7466 = vmatpush1.bf16.msra.mxu1 %v18088_v19  ;;  %8204 = vmatpush1.bf16.msra.mxu0 %v18100_v20  ;;  %v18269_v19 = vcombine.high %v1087_v9, %v1099_v11  ;;  %v1123_v20 = vld [vmem:[#allocation5 + $0x2020] sm:$0xff]  ;;  %v98_v9 = vld [vmem:[#allocation5 + $0x18] sm:$0xff]  ;;  %v105_v11 = vld [vmem:[#allocation5 + $0x50] sm:$0xff] }
 0x26b   :  { %7467 = vmatprep.subr.bf16.mxu1 %v18113_v21  ;;  %8205 = vmatprep.subr.bf16.mxu0 %v18125_v27  ;;  %v18256_v21 = vcombine.low %v1081_v6, %v1093_v8  ;;  %v1141_v27 = vld [vmem:[#allocation5 + $0x20b0] sm:$0xff]  ;;  %v18292_v32 = vcombine.low %v1111_v18, %v1123_v20 }
 0x26c   :  { %v18305_v33 = vcombine.high %v1129_v26, %v1141_v27 }
 0x26e   :  { %7468 = vmatpush1.bf16.msra.mxu1 %v18112_v29  ;;  %8206 = vmatpush1.bf16.msra.mxu0 %v18124_v30  ;;  %v18293_v29 = vcombine.high %v1111_v18, %v1123_v20  ;;  %v1147_v30 = vld [vmem:[#allocation5 + $0x20e0] sm:$0xff]  ;;  %v122_v18 = vld [vmem:[#allocation5 + $0xd8] sm:$0xff]  ;;  %v129_v20 = vld [vmem:[#allocation5 + $0x110] sm:$0xff] }
 0x26f   :  { %7469 = vmatprep.subr.bf16.mxu1 %v18137_v31  ;;  %8207 = vmatprep.subr.bf16.mxu0 %v18149_v36  ;;  %v18280_v31 = vcombine.low %v1105_v16, %v1117_v17  ;;  %v1165_v36 = vld [vmem:[#allocation5 + $0x2170] sm:$0xff]  ;;  %v18316_v42 = vcombine.low %v1135_v28, %v1147_v30 }
 0x270   :  { %v18329_v43 = vcombine.high %v1153_v35, %v1165_v36 }
 0x272   :  { %7470 = vmatpush1.bf16.msra.mxu1 %v18136_v39  ;;  %8208 = vmatpush1.bf16.msra.mxu0 %v18148_v40  ;;  %v18317_v39 = vcombine.high %v1135_v28, %v1147_v30  ;;  %v1171_v40 = vld [vmem:[#allocation5 + $0x21a0] sm:$0xff]  ;;  %v146_v28 = vld [vmem:[#allocation5 + $0x198] sm:$0xff]  ;;  %v153_v30 = vld [vmem:[#allocation5 + $0x1d0] sm:$0xff] }
 0x273   :  { %7471 = vmatprep.subr.bf16.mxu1 %v18161_v41  ;;  %8209 = vmatprep.subr.bf16.mxu0 %v18173_v45  ;;  %v18304_v41 = vcombine.low %v1129_v26, %v1141_v27  ;;  %v1189_v45 = vld [vmem:[#allocation5 + $0x2230] sm:$0xff]  ;;  %v18340_v50 = vcombine.low %v1159_v37, %v1171_v40 }
 0x274   :  { %v18353_v51 = vcombine.high %v1177_v44, %v1189_v45 }
 0x276   :  { %7472 = vmatpush1.bf16.msra.mxu1 %v18160_v47  ;;  %8210 = vmatpush1.bf16.msra.mxu0 %v18172_v48  ;;  %v18341_v47 = vcombine.high %v1159_v37, %v1171_v40  ;;  %v1195_v48 = vld [vmem:[#allocation5 + $0x2260] sm:$0xff]  ;;  %v170_v37 = vld [vmem:[#allocation5 + $0x258] sm:$0xff]  ;;  %v177_v40 = vld [vmem:[#allocation5 + $0x290] sm:$0xff] }
 0x277   :  { %7473 = vmatprep.subr.bf16.mxu1 %v18185_v49  ;;  %8211 = vmatprep.subr.bf16.mxu0 %v18197_v53  ;;  %v18328_v49 = vcombine.low %v1153_v35, %v1165_v36  ;;  %v1213_v53 = vld [vmem:[#allocation5 + $0x22f0] sm:$0xff]  ;;  %v18364_v59 = vcombine.low %v1183_v46, %v1195_v48 }
 0x278   :  { %v18377_v60 = vcombine.high %v1201_v52, %v1213_v53 }
 0x27a   :  { %7474 = vmatpush1.bf16.msra.mxu1 %v18184_v55  ;;  %8212 = vmatpush1.bf16.msra.mxu0 %v18196_v56  ;;  %v18365_v55 = vcombine.high %v1183_v46, %v1195_v48  ;;  %v1219_v56 = vld [vmem:[#allocation5 + $0x2320] sm:$0xff]  ;;  %v194_v46 = vld [vmem:[#allocation5 + $0x318] sm:$0xff]  ;;  %v201_v48 = vld [vmem:[#allocation5 + $0x350] sm:$0xff] }
 0x27b   :  { %7475 = vmatprep.subr.bf16.mxu1 %v18209_v58  ;;  %8213 = vmatprep.subr.bf16.mxu0 %v18221_v62  ;;  %v18352_v58 = vcombine.low %v1177_v44, %v1189_v45  ;;  %v1237_v62 = vld [vmem:[#allocation5 + $0x23b0] sm:$0xff]  ;;  %v18388_v6 = vcombine.low %v1207_v54, %v1219_v56 }
 0x27c   :  { %v18401_v8 = vcombine.high %v1225_v61, %v1237_v62 }
 0x27e   :  { %7476 = vmatpush1.bf16.msra.mxu1 %v18208_v1  ;;  %8214 = vmatpush1.bf16.msra.mxu0 %v18220_v2  ;;  %v18389_v1 = vcombine.high %v1207_v54, %v1219_v56  ;;  %v1243_v2 = vld [vmem:[#allocation5 + $0x23e0] sm:$0xff]  ;;  %v218_v54 = vld [vmem:[#allocation5 + $0x3d8] sm:$0xff]  ;;  %v225_v56 = vld [vmem:[#allocation5 + $0x410] sm:$0xff] }
 0x27f   :  { %7477 = vmatprep.subr.bf16.mxu1 %v18233_v5  ;;  %8215 = vmatprep.subr.bf16.mxu0 %v18245_v10  ;;  %v18376_v5 = vcombine.low %v1201_v52, %v1213_v53  ;;  %v110_v10 = vld [vmem:[#allocation5 + $0x78] sm:$0xff]  ;;  %v18412_v16 = vcombine.low %v1231_v63, %v1243_v2 }
 0x280   :  { %v17275_v17 = vcombine.high %v98_v9, %v110_v10 }
 0x282   :  { %7478 = vmatpush1.bf16.msra.mxu1 %v18232_v13  ;;  %8216 = vmatpush1.bf16.msra.mxu0 %v18244_v14  ;;  %v18413_v13 = vcombine.high %v1231_v63, %v1243_v2  ;;  %v117_v14 = vld [vmem:[#allocation5 + $0xb0] sm:$0xff]  ;;  %v242_v63 = vld [vmem:[#allocation5 + $0x498] sm:$0xff] }
 0x283   :  { %7479 = vmatprep.subr.bf16.mxu1 %v18257_v15  ;;  %8217 = vmatprep.subr.bf16.mxu0 %v18269_v19  ;;  %v18400_v15 = vcombine.low %v1225_v61, %v1237_v62  ;;  %v134_v19 = vld [vmem:[#allocation5 + $0x138] sm:$0xff]  ;;  %v17288_v26 = vcombine.low %v105_v11, %v117_v14  ;;  %v249_v2 = vld [vmem:[#allocation5 + $0x4d0] sm:$0xff] }
 0x284   :  { %v17299_v27 = vcombine.high %v122_v18, %v134_v19 }
 0x286   :  { %7480 = vmatpush1.bf16.msra.mxu1 %v18256_v21  ;;  %8218 = vmatpush1.bf16.msra.mxu0 %v18268_v22  ;;  %v17289_v21 = vcombine.high %v105_v11, %v117_v14  ;;  %v141_v22 = vld [vmem:[#allocation5 + $0x170] sm:$0xff]  ;;  %v266_v11 = vld [vmem:[#allocation5 + $0x558] sm:$0xff] }
 0x287   :  { %7481 = vmatprep.subr.bf16.mxu1 %v18281_v24  ;;  %8219 = vmatprep.subr.bf16.mxu0 %v18293_v29  ;;  %v17274_v24 = vcombine.low %v98_v9, %v110_v10  ;;  %v158_v29 = vld [vmem:[#allocation5 + $0x1f8] sm:$0xff]  ;;  %v17312_v35 = vcombine.low %v129_v20, %v141_v22  ;;  %v273_v14 = vld [vmem:[#allocation5 + $0x590] sm:$0xff] }
 0x288   :  { %v17323_v36 = vcombine.high %v146_v28, %v158_v29 }
 0x28a   :  { %7482 = vmatpush1.bf16.msra.mxu1 %v18280_v31  ;;  %8220 = vmatpush1.bf16.msra.mxu0 %v18292_v32  ;;  %v17313_v31 = vcombine.high %v129_v20, %v141_v22  ;;  %v165_v32 = vld [vmem:[#allocation5 + $0x230] sm:$0xff] }
 0x28b   :  { %7483 = vmatprep.subr.bf16.mxu1 %v18305_v33  ;;  %8221 = vmatprep.subr.bf16.mxu0 %v18317_v39  ;;  %v17298_v33 = vcombine.low %v122_v18, %v134_v19  ;;  %v182_v39 = vld [vmem:[#allocation5 + $0x2b8] sm:$0xff]  ;;  %v17336_v44 = vcombine.low %v153_v30, %v165_v32 }
 0x28c   :  { %v17347_v45 = vcombine.high %v170_v37, %v182_v39 }
 0x28e   :  { %7484 = vmatpush1.bf16.msra.mxu1 %v18304_v41  ;;  %8222 = vmatpush1.bf16.msra.mxu0 %v18316_v42  ;;  %v17337_v41 = vcombine.high %v153_v30, %v165_v32  ;;  %v189_v42 = vld [vmem:[#allocation5 + $0x2f0] sm:$0xff] }
 0x28f   :  { %7485 = vmatprep.subr.bf16.mxu1 %v18329_v43  ;;  %8223 = vmatprep.subr.bf16.mxu0 %v18341_v47  ;;  %v17322_v43 = vcombine.low %v146_v28, %v158_v29  ;;  %v206_v47 = vld [vmem:[#allocation5 + $0x378] sm:$0xff]  ;;  %v17360_v52 = vcombine.low %v177_v40, %v189_v42  ;;  %v297_v30 = vld [vmem:[#allocation5 + $0x650] sm:$0xff] }
 0x290   :  { %v17371_v53 = vcombine.high %v194_v46, %v206_v47  ;;  %v290_v28 = vld [vmem:[#allocation5 + $0x618] sm:$0xff] }
 0x291   :  { %v302_v29 = vld [vmem:[#allocation5 + $0x678] sm:$0xff] }
 0x292   :  { %7486 = vmatpush1.bf16.msra.mxu1 %v18328_v49  ;;  %8224 = vmatpush1.bf16.msra.mxu0 %v18340_v50  ;;  %v17361_v49 = vcombine.high %v177_v40, %v189_v42  ;;  %v213_v50 = vld [vmem:[#allocation5 + $0x3b0] sm:$0xff]  ;;  %v314_v40 = vld [vmem:[#allocation5 + $0x6d8] sm:$0xff] }
 0x293   :  { %7487 = vmatprep.subr.bf16.mxu1 %v18353_v51  ;;  %8225 = vmatprep.subr.bf16.mxu0 %v18365_v55  ;;  %v17346_v51 = vcombine.low %v170_v37, %v182_v39  ;;  %v230_v55 = vld [vmem:[#allocation5 + $0x438] sm:$0xff]  ;;  %v17384_v61 = vcombine.low %v201_v48, %v213_v50  ;;  %v17467_v39 = vcombine.high %v290_v28, %v302_v29 }
 0x294   :  { %v17395_v62 = vcombine.high %v218_v54, %v230_v55  ;;  %v326_v42 = vld [vmem:[#allocation5 + $0x738] sm:$0xff] }
 0x296   :  { %7488 = vmatpush1.bf16.msra.mxu1 %v18352_v58  ;;  %8226 = vmatpush1.bf16.msra.mxu0 %v18364_v59  ;;  %v17385_v58 = vcombine.high %v201_v48, %v213_v50  ;;  %v237_v59 = vld [vmem:[#allocation5 + $0x470] sm:$0xff]  ;;  %v338_v48 = vld [vmem:[#allocation5 + $0x798] sm:$0xff] }
 0x297   :  { %7489 = vmatprep.subr.bf16.mxu1 %v18377_v60  ;;  %8227 = vmatprep.subr.bf16.mxu0 %v18389_v1  ;;  %v17370_v60 = vcombine.low %v194_v46, %v206_v47  ;;  %v254_v1 = vld [vmem:[#allocation5 + $0x4f8] sm:$0xff]  ;;  %v17408_v9 = vcombine.low %v225_v56, %v237_v59  ;;  %v17491_v47 = vcombine.high %v314_v40, %v326_v42  ;;  %v345_v50 = vld [vmem:[#allocation5 + $0x7d0] sm:$0xff] }
 0x298   :  { %v17419_v10 = vcombine.high %v242_v63, %v254_v1 }
 0x29a   :  { %7490 = vmatpush1.bf16.msra.mxu1 %v18376_v5  ;;  %8228 = vmatpush1.bf16.msra.mxu0 %v18388_v6  ;;  %v17409_v5 = vcombine.high %v225_v56, %v237_v59  ;;  %v261_v6 = vld [vmem:[#allocation5 + $0x530] sm:$0xff]  ;;  %v362_v56 = vld [vmem:[#allocation5 + $0x858] sm:$0xff] }
 0x29b   :  { %7491 = vmatprep.subr.bf16.mxu1 %v18401_v8  ;;  %8229 = vmatprep.subr.bf16.mxu0 %v18413_v13  ;;  %v17394_v8 = vcombine.low %v218_v54, %v230_v55  ;;  %v278_v13 = vld [vmem:[#allocation5 + $0x5b8] sm:$0xff]  ;;  %v369_v59 = vld [vmem:[#allocation5 + $0x890] sm:$0xff] }
 0x29e   :  { %7492 = vmatpush1.bf16.msra.mxu1 %v18400_v15  ;;  %8230 = vmatpush1.bf16.msra.mxu0 %v18412_v16  ;;  %v17433_v16 = vcombine.high %v249_v2, %v261_v6 }
 0x29f   :  { %7502 = vmatprep.subr.bf16.mxu1 %v17275_v17  ;;  %8363 = vmatprep.subr.bf16.mxu0 %v17289_v21  ;;  %v285_v17 = vld [vmem:[#allocation5 + $0x5f0] sm:$0xff]  ;;  %v17418_v21 = vcombine.low %v242_v63, %v254_v1 }
 0x2a0   :  { %v17457_v32 = vcombine.high %v273_v14, %v285_v17  ;;  %v17456_v37 = vcombine.low %v273_v14, %v285_v17  ;;  %v410_v14 = vld [vmem:[#allocation5 + $0x9d8] sm:$0xff]  ;;  %v417_v17 = vld [vmem:[#allocation5 + $0xa10] sm:$0xff] }
 0x2a1   :  { %7494 = vmatmul.mubr.bf16.vlgmr.msra.gmra.mrb[8].mxu1 %v21880_v38  ;;  %8232 = vmatmul.mubr.bf16.vlgmr.msra.gmra.mrb[8].mxu0 %v21880_v38 }
 0x2a2   :  { %7503 = vmatpush1.bf16.msra.mxu1 %v17274_v24  ;;  %8364 = vmatpush1.bf16.msra.mxu0 %v17288_v26  ;;  %v17432_v26 = vcombine.low %v249_v2, %v261_v6  ;;  %v386_v2 = vld [vmem:[#allocation5 + $0x918] sm:$0xff]  ;;  %v393_v6 = vld [vmem:[#allocation5 + $0x950] sm:$0xff] }
 0x2a3   :  { %7504 = vmatprep.subr.bf16.mxu1 %v17299_v27  ;;  %8365 = vmatprep.subr.bf16.mxu0 %v17313_v31  ;;  %v17443_v27 = vcombine.high %v266_v11, %v278_v13 }
 0x2a4   :  { %7534 = vmatprep.mubr.bf16.mxu1 %v21860_v57  ;;  %8395 = vmatprep.mubr.bf16.mxu0 %v21860_v57 }
 0x2a6   :  { %7505 = vmatpush1.bf16.msra.mxu1 %v17298_v33  ;;  %8366 = vmatpush1.bf16.msra.mxu0 %v17312_v35  ;;  %v309_v33 = vld [vmem:[#allocation5 + $0x6b0] sm:$0xff] }
 0x2a7   :  { %7506 = vmatprep.subr.bf16.mxu1 %v17323_v36  ;;  %8367 = vmatprep.subr.bf16.mxu0 %v17337_v41  ;;  %v17442_v36 = vcombine.low %v266_v11, %v278_v13  ;;  %v17481_v41 = vcombine.high %v297_v30, %v309_v33  ;;  %v17480_v46 = vcombine.low %v297_v30, %v309_v33  ;;  %v441_v30 = vld [vmem:[#allocation5 + $0xad0] sm:$0xff] }
 0x2aa   :  { %7507 = vmatpush1.bf16.msra.mxu1 %v17322_v43  ;;  %8368 = vmatpush1.bf16.msra.mxu0 %v17336_v44  ;;  %v321_v43 = vld [vmem:[#allocation5 + $0x710] sm:$0xff] }
 0x2ab   :  { %7508 = vmatprep.subr.bf16.mxu1 %v17347_v45  ;;  %8369 = vmatprep.subr.bf16.mxu0 %v17361_v49  ;;  %v333_v44 = vld [vmem:[#allocation5 + $0x770] sm:$0xff]  ;;  %v17466_v45 = vcombine.low %v290_v28, %v302_v29  ;;  %v350_v49 = vld [vmem:[#allocation5 + $0x7f8] sm:$0xff] }
 0x2ac   :  { %v17504_v54 = vcombine.low %v321_v43, %v333_v44  ;;  %v17515_v55 = vcombine.high %v338_v48, %v350_v49  ;;  %v434_v28 = vld [vmem:[#allocation5 + $0xa98] sm:$0xff] }
 0x2ad   :  { %v446_v29 = vld [vmem:[#allocation5 + $0xaf8] sm:$0xff] }
 0x2ae   :  { %7509 = vmatpush1.bf16.msra.mxu1 %v17346_v51  ;;  %8370 = vmatpush1.bf16.msra.mxu0 %v17360_v52  ;;  %v17505_v51 = vcombine.high %v321_v43, %v333_v44  ;;  %v357_v52 = vld [vmem:[#allocation5 + $0x830] sm:$0xff]  ;;  %v17610_v43 = vcombine.low %v434_v28, %v446_v29 }
 0x2af   :  { %7510 = vmatprep.subr.bf16.mxu1 %v17371_v53  ;;  %8371 = vmatprep.subr.bf16.mxu0 %v17385_v58  ;;  %v17490_v53 = vcombine.low %v314_v40, %v326_v42  ;;  %v374_v58 = vld [vmem:[#allocation5 + $0x8b8] sm:$0xff]  ;;  %v17528_v63 = vcombine.low %v345_v50, %v357_v52  ;;  %v465_v40 = vld [vmem:[#allocation5 + $0xb90] sm:$0xff] }
 0x2b0   :  { %v17539_v1 = vcombine.high %v362_v56, %v374_v58  ;;  %v477_v42 = vld [vmem:[#allocation5 + $0xbf0] sm:$0xff] }
 0x2b2   :  { %7511 = vmatpush1.bf16.msra.mxu1 %v17370_v60  ;;  %8372 = vmatpush1.bf16.msra.mxu0 %v17384_v61  ;;  %v17529_v60 = vcombine.high %v345_v50, %v357_v52  ;;  %v381_v61 = vld [vmem:[#allocation5 + $0x8f0] sm:$0xff]  ;;  %v17648_v52 = vcombine.low %v465_v40, %v477_v42 }
 0x2b3   :  { %7512 = vmatprep.subr.bf16.mxu1 %v17395_v62  ;;  %8373 = vmatprep.subr.bf16.mxu0 %v17409_v5  ;;  %v17514_v62 = vcombine.low %v338_v48, %v350_v49  ;;  %v398_v5 = vld [vmem:[#allocation5 + $0x978] sm:$0xff]  ;;  %v17552_v11 = vcombine.low %v369_v59, %v381_v61  ;;  %v489_v48 = vld [vmem:[#allocation5 + $0xc50] sm:$0xff]  ;;  %v17649_v49 = vcombine.high %v465_v40, %v477_v42 }
 0x2b4   :  { %v21918_v15 = vpop.f32.mrb[4].mxu1  ;;  %v21922_v19 = vpop.f32.mrb[4].mxu0  ;;  %v17563_v13 = vcombine.high %v386_v2, %v398_v5  ;;  %v501_v50 = vld [vmem:[#allocation5 + $0xcb0] sm:$0xff] }
 0x2b5   :  { %v21920_v18 = vpop.f32.mrb[5].mxu1  ;;  %v21924_v22 = vpop.f32.mrb[5].mxu0  ;;  %v621_v40 = vld [vmem:[#allocation5 + $0x1070] sm:$0xff] }
 0x2b6   :  { %v7376_v20 = vpop.f32.mrb[6].mxu1  ;;  %7513 = vmatpush1.bf16.msra.mxu1 %v17394_v8  ;;  %8374 = vmatpush1.bf16.msra.mxu0 %v17408_v9  ;;  %v7991_v31 = vpop.f32.mrb[6].mxu0  ;;  %v17553_v8 = vcombine.high %v369_v59, %v381_v61  ;;  %v405_v9 = vld [vmem:[#allocation5 + $0x9b0] sm:$0xff]  ;;  %v17672_v61 = vcombine.low %v489_v48, %v501_v50 }
 0x2b7   :  { %v7377_v24 = vpop.f32.mrb[7].mxu1  ;;  %7514 = vmatprep.subr.bf16.mxu1 %v17419_v10  ;;  %8375 = vmatprep.subr.bf16.mxu0 %v17433_v16  ;;  %v7992_v35 = vpop.f32.mrb[7].mxu0  ;;  %v17538_v10 = vcombine.low %v362_v56, %v374_v58  ;;  %v422_v16 = vld [vmem:[#allocation5 + $0xa38] sm:$0xff]  ;;  %v17577_v20 = vcombine.high %v393_v6, %v405_v9  ;;  %v513_v56 = vld [vmem:[#allocation5 + $0xd10] sm:$0xff]  ;;  %v17673_v58 = vcombine.high %v489_v48, %v501_v50 }
 0x2b8   :  { %v17562_v24 = vcombine.low %v386_v2, %v398_v5  ;;  %v17586_v33 = vcombine.low %v410_v14, %v422_v16  ;;  %v525_v59 = vld [vmem:[#allocation5 + $0xd70] sm:$0xff] }
 0x2b9   :  { %v17697_v2 = vcombine.high %v513_v56, %v525_v59  ;;  %v537_v5 = vld [vmem:[#allocation5 + $0xdd0] sm:$0xff] }
 0x2ba   :  { %7515 = vmatpush1.bf16.msra.mxu1 %v17418_v21  ;;  %8376 = vmatpush1.bf16.msra.mxu0 %v17432_v26  ;;  %v429_v21 = vld [vmem:[#allocation5 + $0xa70] sm:$0xff]  ;;  %v17576_v26 = vcombine.low %v393_v6, %v405_v9  ;;  %v17696_v9 = vcombine.low %v513_v56, %v525_v59 }
 0x2bb   :  { %7516 = vmatprep.subr.bf16.mxu1 %v17443_v27  ;;  %8377 = vmatprep.subr.bf16.mxu0 %v17457_v32  ;;  %v17587_v27 = vcombine.high %v410_v14, %v422_v16  ;;  %v17601_v31 = vcombine.high %v417_v17, %v429_v21  ;;  %v453_v32 = vld [vmem:[#allocation5 + $0xb30] sm:$0xff]  ;;  %v17600_v35 = vcombine.low %v417_v17, %v429_v21  ;;  %v566_v14 = vld [vmem:[#allocation5 + $0xeb8] sm:$0xff] }
 0x2bc   :  { %v17624_v44 = vcombine.low %v441_v30, %v453_v32  ;;  %v549_v6 = vld [vmem:[#allocation5 + $0xe30] sm:$0xff] }
 0x2bd   :  { %v561_v16 = vld [vmem:[#allocation5 + $0xe90] sm:$0xff]  ;;  %v17720_v21 = vcombine.low %v537_v5, %v549_v6 }
 0x2be   :  { %7517 = vmatpush1.bf16.msra.mxu1 %v17442_v36  ;;  %8378 = vmatpush1.bf16.msra.mxu0 %v17456_v37  ;;  %v17611_v36 = vcombine.high %v434_v28, %v446_v29  ;;  %v458_v37 = vld [vmem:[#allocation5 + $0xb58] sm:$0xff]  ;;  %v573_v17 = vld [vmem:[#allocation5 + $0xef0] sm:$0xff] }
 0x2bf   :  { %7518 = vmatprep.subr.bf16.mxu1 %v17467_v39  ;;  %8379 = vmatprep.subr.bf16.mxu0 %v17481_v41  ;;  %v470_v39 = vld [vmem:[#allocation5 + $0xbb8] sm:$0xff]  ;;  %v17625_v41 = vcombine.high %v441_v30, %v453_v32  ;;  %v585_v29 = vld [vmem:[#allocation5 + $0xf50] sm:$0xff]  ;;  %v17744_v32 = vcombine.low %v561_v16, %v573_v17 }
 0x2c0   :  { %v590_v28 = vld [vmem:[#allocation5 + $0xf78] sm:$0xff]  ;;  %v597_v30 = vld [vmem:[#allocation5 + $0xfb0] sm:$0xff] }
 0x2c1   :  { %v17768_v42 = vcombine.low %v585_v29, %v597_v30  ;;  %v645_v48 = vld [vmem:[#allocation5 + $0x1130] sm:$0xff] }
 0x2c2   :  { %7519 = vmatpush1.bf16.msra.mxu1 %v17466_v45  ;;  %8380 = vmatpush1.bf16.msra.mxu0 %v17480_v46  ;;  %v17635_v45 = vcombine.high %v458_v37, %v470_v39  ;;  %v482_v46 = vld [vmem:[#allocation5 + $0xc18] sm:$0xff]  ;;  %v669_v56 = vld [vmem:[#allocation5 + $0x11f0] sm:$0xff] }
 0x2c3   :  { %7520 = vmatprep.subr.bf16.mxu1 %v17491_v47  ;;  %8381 = vmatprep.subr.bf16.mxu0 %v17505_v51  ;;  %v494_v47 = vld [vmem:[#allocation5 + $0xc78] sm:$0xff]  ;;  %v17634_v51 = vcombine.low %v458_v37, %v470_v39  ;;  %v609_v39 = vld [vmem:[#allocation5 + $0x1010] sm:$0xff] }
 0x2c4   :  { %v614_v37 = vld [vmem:[#allocation5 + $0x1038] sm:$0xff]  ;;  %v17792_v50 = vcombine.low %v609_v39, %v621_v40 }
 0x2c6   :  { %7521 = vmatpush1.bf16.msra.mxu1 %v17490_v53  ;;  %8382 = vmatpush1.bf16.msra.mxu0 %v17504_v54  ;;  %v17659_v53 = vcombine.high %v482_v46, %v494_v47  ;;  %v506_v54 = vld [vmem:[#allocation5 + $0xcd8] sm:$0xff] }
 0x2c7   :  { %7522 = vmatprep.subr.bf16.mxu1 %v17515_v55  ;;  %8383 = vmatprep.subr.bf16.mxu0 %v17529_v60  ;;  %v518_v55 = vld [vmem:[#allocation5 + $0xd38] sm:$0xff]  ;;  %v17658_v60 = vcombine.low %v482_v46, %v494_v47  ;;  %v633_v47 = vld [vmem:[#allocation5 + $0x10d0] sm:$0xff] }
 0x2c8   :  { %v638_v46 = vld [vmem:[#allocation5 + $0x10f8] sm:$0xff]  ;;  %v17816_v59 = vcombine.low %v633_v47, %v645_v48 }
 0x2ca   :  { %7523 = vmatpush1.bf16.msra.mxu1 %v17514_v62  ;;  %8384 = vmatpush1.bf16.msra.mxu0 %v17528_v63  ;;  %v17683_v62 = vcombine.high %v506_v54, %v518_v55  ;;  %v530_v63 = vld [vmem:[#allocation5 + $0xd98] sm:$0xff] }
 0x2cb   :  { %7524 = vmatprep.subr.bf16.mxu1 %v17539_v1  ;;  %8385 = vmatprep.subr.bf16.mxu0 %v17553_v8  ;;  %v542_v1 = vld [vmem:[#allocation5 + $0xdf8] sm:$0xff]  ;;  %v17682_v8 = vcombine.low %v506_v54, %v518_v55  ;;  %v657_v55 = vld [vmem:[#allocation5 + $0x1190] sm:$0xff] }
 0x2cc   :  { %v662_v54 = vld [vmem:[#allocation5 + $0x11b8] sm:$0xff] }
 0x2ce   :  { %7525 = vmatpush1.bf16.msra.mxu1 %v17538_v10  ;;  %8386 = vmatpush1.bf16.msra.mxu0 %v17552_v11  ;;  %v17707_v10 = vcombine.high %v530_v63, %v542_v1  ;;  %v17721_v11 = vcombine.high %v537_v5, %v549_v6  ;;  %v17840_v6 = vcombine.low %v657_v55, %v669_v56 }
 0x2cf   :  { %7526 = vmatprep.subr.bf16.mxu1 %v17563_v13  ;;  %8387 = vmatprep.subr.bf16.mxu0 %v17577_v20  ;;  %v554_v13 = vld [vmem:[#allocation5 + $0xe58] sm:$0xff]  ;;  %v17706_v20 = vcombine.low %v530_v63, %v542_v1  ;;  %v681_v1 = vld [vmem:[#allocation5 + $0x1250] sm:$0xff] }
 0x2d0   :  { %v686_v63 = vld [vmem:[#allocation5 + $0x1278] sm:$0xff] }
 0x2d2   :  { %7527 = vmatpush1.bf16.msra.mxu1 %v17562_v24  ;;  %8388 = vmatpush1.bf16.msra.mxu0 %v17576_v26  ;;  %v17731_v24 = vcombine.high %v554_v13, %v566_v14  ;;  %v17745_v26 = vcombine.high %v561_v16, %v573_v17 }
 0x2d3   :  { %7528 = vmatprep.subr.bf16.mxu1 %v17587_v27  ;;  %8389 = vmatprep.subr.bf16.mxu0 %v17601_v31  ;;  %v578_v27 = vld [vmem:[#allocation5 + $0xf18] sm:$0xff]  ;;  %v17730_v31 = vcombine.low %v554_v13, %v566_v14  ;;  %v705_v13 = vld [vmem:[#allocation5 + $0x1310] sm:$0xff] }
 0x2d4   :  { %v717_v14 = vld [vmem:[#allocation5 + $0x1370] sm:$0xff] }
 0x2d6   :  { %7529 = vmatpush1.bf16.msra.mxu1 %v17586_v33  ;;  %8390 = vmatpush1.bf16.msra.mxu0 %v17600_v35  ;;  %v17755_v33 = vcombine.high %v578_v27, %v590_v28  ;;  %v17769_v35 = vcombine.high %v585_v29, %v597_v30  ;;  %v17888_v30 = vcombine.low %v705_v13, %v717_v14 }
 0x2d7   :  { %7530 = vmatprep.subr.bf16.mxu1 %v17611_v36  ;;  %8391 = vmatprep.subr.bf16.mxu0 %v17625_v41  ;;  %v602_v36 = vld [vmem:[#allocation5 + $0xfd8] sm:$0xff]  ;;  %v17754_v41 = vcombine.low %v578_v27, %v590_v28  ;;  %v729_v27 = vld [vmem:[#allocation5 + $0x13d0] sm:$0xff] }
 0x2d8   :  { %v741_v28 = vld [vmem:[#allocation5 + $0x1430] sm:$0xff] }
 0x2da   :  { %7531 = vmatpush1.bf16.msra.mxu1 %v17610_v43  ;;  %8392 = vmatpush1.bf16.msra.mxu0 %v17624_v44  ;;  %v17779_v43 = vcombine.high %v602_v36, %v614_v37  ;;  %v17793_v44 = vcombine.high %v609_v39, %v621_v40  ;;  %v17912_v40 = vcombine.low %v729_v27, %v741_v28 }
 0x2db   :  { %7532 = vmatprep.subr.bf16.mxu1 %v17635_v45  ;;  %8393 = vmatprep.subr.bf16.mxu0 %v17649_v49  ;;  %v626_v45 = vld [vmem:[#allocation5 + $0x1098] sm:$0xff]  ;;  %v17778_v49 = vcombine.low %v602_v36, %v614_v37  ;;  %v753_v36 = vld [vmem:[#allocation5 + $0x1490] sm:$0xff] }
 0x2dc   :  { %v765_v37 = vld [vmem:[#allocation5 + $0x14f0] sm:$0xff] }
 0x2de   :  { %7533 = vmatpush1.bf16.msra.mxu1 %v17634_v51  ;;  %8394 = vmatpush1.bf16.msra.mxu0 %v17648_v52  ;;  %v17803_v51 = vcombine.high %v626_v45, %v638_v46  ;;  %v17817_v52 = vcombine.high %v633_v47, %v645_v48  ;;  %v17936_v48 = vcombine.low %v753_v36, %v765_v37 }
 0x2df   :  { %7543 = vmatprep.subr.bf16.mxu1 %v17659_v53  ;;  %8404 = vmatprep.subr.bf16.mxu0 %v17673_v58  ;;  %v650_v53 = vld [vmem:[#allocation5 + $0x1158] sm:$0xff]  ;;  %v17802_v58 = vcombine.low %v626_v45, %v638_v46  ;;  %v777_v45 = vld [vmem:[#allocation5 + $0x1550] sm:$0xff] }
 0x2e0   :  { %v17826_v5 = vcombine.low %v650_v53, %v662_v54  ;;  %v789_v46 = vld [vmem:[#allocation5 + $0x15b0] sm:$0xff] }
 0x2e1   :  { %7535 = vmatmul.mubr.bf16.vlgmr.msra.gmra.mrb[12].mxu1 %v21864_v12  ;;  %8396 = vmatmul.mubr.bf16.vlgmr.msra.gmra.mrb[12].mxu0 %v21864_v12 }
 0x2e2   :  { %7544 = vmatpush1.bf16.msra.mxu1 %v17658_v60  ;;  %8405 = vmatpush1.bf16.msra.mxu0 %v17672_v61  ;;  %v17827_v60 = vcombine.high %v650_v53, %v662_v54  ;;  %v17841_v61 = vcombine.high %v657_v55, %v669_v56  ;;  %v801_v53 = vld [vmem:[#allocation5 + $0x1610] sm:$0xff]  ;;  %v17960_v56 = vcombine.low %v777_v45, %v789_v46 }
 0x2e3   :  { %7545 = vmatprep.subr.bf16.mxu1 %v17683_v62  ;;  %8406 = vmatprep.subr.bf16.mxu0 %v17697_v2  ;;  %v674_v62 = vld [vmem:[#allocation5 + $0x1218] sm:$0xff]  ;;  %v693_v2 = vld [vmem:[#allocation5 + $0x12b0] sm:$0xff] }
 0x2e4   :  { %7575 = vmatprep.mubr.bf16.mxu1 %v21866_v23  ;;  %8436 = vmatprep.mubr.bf16.mxu0 %v21866_v23  ;;  %v17850_v16 = vcombine.low %v674_v62, %v686_v63  ;;  %v17864_v17 = vcombine.low %v681_v1, %v693_v2  ;;  %v813_v54 = vld [vmem:[#allocation5 + $0x1670] sm:$0xff] }
 0x2e6   :  { %7546 = vmatpush1.bf16.msra.mxu1 %v17682_v8  ;;  %8407 = vmatpush1.bf16.msra.mxu0 %v17696_v9  ;;  %v17851_v8 = vcombine.high %v674_v62, %v686_v63  ;;  %v17865_v9 = vcombine.high %v681_v1, %v693_v2  ;;  %v825_v62 = vld [vmem:[#allocation5 + $0x16d0] sm:$0xff]  ;;  %v17984_v2 = vcombine.low %v801_v53, %v813_v54 }
 0x2e7   :  { %7547 = vmatprep.subr.bf16.mxu1 %v17707_v10  ;;  %8408 = vmatprep.subr.bf16.mxu0 %v17721_v11  ;;  %v698_v10 = vld [vmem:[#allocation5 + $0x12d8] sm:$0xff]  ;;  %v837_v63 = vld [vmem:[#allocation5 + $0x1730] sm:$0xff] }
 0x2e8   :  { %v710_v11 = vld [vmem:[#allocation5 + $0x1338] sm:$0xff] }
 0x2e9   :  { %v17874_v29 = vcombine.low %v698_v10, %v710_v11 }
 0x2ea   :  { %7548 = vmatpush1.bf16.msra.mxu1 %v17706_v20  ;;  %8409 = vmatpush1.bf16.msra.mxu0 %v17720_v21  ;;  %v17875_v20 = vcombine.high %v698_v10, %v710_v11  ;;  %v17889_v21 = vcombine.high %v705_v13, %v717_v14  ;;  %v849_v10 = vld [vmem:[#allocation5 + $0x1790] sm:$0xff]  ;;  %v18008_v14 = vcombine.low %v825_v62, %v837_v63 }
 0x2eb   :  { %7549 = vmatprep.subr.bf16.mxu1 %v17731_v24  ;;  %8410 = vmatprep.subr.bf16.mxu0 %v17745_v26  ;;  %v722_v24 = vld [vmem:[#allocation5 + $0x1398] sm:$0xff]  ;;  %v861_v11 = vld [vmem:[#allocation5 + $0x17f0] sm:$0xff] }
 0x2ec   :  { %v734_v26 = vld [vmem:[#allocation5 + $0x13f8] sm:$0xff] }
 0x2ed   :  { %v17898_v39 = vcombine.low %v722_v24, %v734_v26 }
 0x2ee   :  { %7550 = vmatpush1.bf16.msra.mxu1 %v17730_v31  ;;  %8411 = vmatpush1.bf16.msra.mxu0 %v17744_v32  ;;  %v17899_v31 = vcombine.high %v722_v24, %v734_v26  ;;  %v17913_v32 = vcombine.high %v729_v27, %v741_v28  ;;  %v873_v24 = vld [vmem:[#allocation5 + $0x1850] sm:$0xff]  ;;  %v18032_v28 = vcombine.low %v849_v10, %v861_v11 }
 0x2ef   :  { %7551 = vmatprep.subr.bf16.mxu1 %v17755_v33  ;;  %8412 = vmatprep.subr.bf16.mxu0 %v17769_v35  ;;  %v746_v33 = vld [vmem:[#allocation5 + $0x1458] sm:$0xff]  ;;  %v885_v26 = vld [vmem:[#allocation5 + $0x18b0] sm:$0xff] }
 0x2f0   :  { %v758_v35 = vld [vmem:[#allocation5 + $0x14b8] sm:$0xff] }
 0x2f1   :  { %v17922_v47 = vcombine.low %v746_v33, %v758_v35 }
 0x2f2   :  { %7552 = vmatpush1.bf16.msra.mxu1 %v17754_v41  ;;  %8413 = vmatpush1.bf16.msra.mxu0 %v17768_v42  ;;  %v17923_v41 = vcombine.high %v746_v33, %v758_v35  ;;  %v17937_v42 = vcombine.high %v753_v36, %v765_v37  ;;  %v897_v33 = vld [vmem:[#allocation5 + $0x1910] sm:$0xff]  ;;  %v18056_v37 = vcombine.low %v873_v24, %v885_v26 }
 0x2f3   :  { %7553 = vmatprep.subr.bf16.mxu1 %v17779_v43  ;;  %8414 = vmatprep.subr.bf16.mxu0 %v17793_v44  ;;  %v770_v43 = vld [vmem:[#allocation5 + $0x1518] sm:$0xff]  ;;  %v909_v35 = vld [vmem:[#allocation5 + $0x1970] sm:$0xff] }
 0x2f4   :  { %v782_v44 = vld [vmem:[#allocation5 + $0x1578] sm:$0xff] }
 0x2f5   :  { %v17946_v55 = vcombine.low %v770_v43, %v782_v44 }
 0x2f6   :  { %7554 = vmatpush1.bf16.msra.mxu1 %v17778_v49  ;;  %8415 = vmatpush1.bf16.msra.mxu0 %v17792_v50  ;;  %v17947_v49 = vcombine.high %v770_v43, %v782_v44  ;;  %v17961_v50 = vcombine.high %v777_v45, %v789_v46  ;;  %v921_v43 = vld [vmem:[#allocation5 + $0x19d0] sm:$0xff]  ;;  %v18080_v46 = vcombine.low %v897_v33, %v909_v35 }
 0x2f7   :  { %7555 = vmatprep.subr.bf16.mxu1 %v17803_v51  ;;  %8416 = vmatprep.subr.bf16.mxu0 %v17817_v52  ;;  %v794_v51 = vld [vmem:[#allocation5 + $0x15d8] sm:$0xff]  ;;  %v933_v44 = vld [vmem:[#allocation5 + $0x1a30] sm:$0xff] }
 0x2f8   :  { %v806_v52 = vld [vmem:[#allocation5 + $0x1638] sm:$0xff] }
 0x2f9   :  { %v17970_v1 = vcombine.low %v794_v51, %v806_v52 }
 0x2fa   :  { %7556 = vmatpush1.bf16.msra.mxu1 %v17802_v58  ;;  %8417 = vmatpush1.bf16.msra.mxu0 %v17816_v59  ;;  %v17971_v58 = vcombine.high %v794_v51, %v806_v52  ;;  %v17985_v59 = vcombine.high %v801_v53, %v813_v54  ;;  %v945_v51 = vld [vmem:[#allocation5 + $0x1a90] sm:$0xff]  ;;  %v18104_v54 = vcombine.low %v921_v43, %v933_v44 }
 0x2fb   :  { %7557 = vmatprep.subr.bf16.mxu1 %v17827_v60  ;;  %8418 = vmatprep.subr.bf16.mxu0 %v17841_v61  ;;  %v818_v60 = vld [vmem:[#allocation5 + $0x1698] sm:$0xff]  ;;  %v957_v52 = vld [vmem:[#allocation5 + $0x1af0] sm:$0xff] }
 0x2fc   :  { %v830_v61 = vld [vmem:[#allocation5 + $0x16f8] sm:$0xff] }
 0x2fd   :  { %v17994_v13 = vcombine.low %v818_v60, %v830_v61 }
 0x2fe   :  { %7558 = vmatpush1.bf16.msra.mxu1 %v17826_v5  ;;  %8419 = vmatpush1.bf16.msra.mxu0 %v17840_v6  ;;  %v17995_v5 = vcombine.high %v818_v60, %v830_v61  ;;  %v18009_v6 = vcombine.high %v825_v62, %v837_v63  ;;  %v974_v60 = vld [vmem:[#allocation5 + $0x1b78] sm:$0xff]  ;;  %v969_v61 = vld [vmem:[#allocation5 + $0x1b50] sm:$0xff] }
 0x2ff   :  { %7559 = vmatprep.subr.bf16.mxu1 %v17851_v8  ;;  %8420 = vmatprep.subr.bf16.mxu0 %v17865_v9  ;;  %v842_v8 = vld [vmem:[#allocation5 + $0x1758] sm:$0xff]  ;;  %v981_v62 = vld [vmem:[#allocation5 + $0x1bb0] sm:$0xff] }
 0x300   :  { %v854_v9 = vld [vmem:[#allocation5 + $0x17b8] sm:$0xff] }
 0x301   :  { %v18018_v27 = vcombine.low %v842_v8, %v854_v9 }
 0x302   :  { %7560 = vmatpush1.bf16.msra.mxu1 %v17850_v16  ;;  %8421 = vmatpush1.bf16.msra.mxu0 %v17864_v17  ;;  %v18019_v16 = vcombine.high %v842_v8, %v854_v9  ;;  %v18033_v17 = vcombine.high %v849_v10, %v861_v11  ;;  %v986_v8 = vld [vmem:[#allocation5 + $0x1bd8] sm:$0xff]  ;;  %v993_v10 = vld [vmem:[#allocation5 + $0x1c10] sm:$0xff] }
 0x303   :  { %7561 = vmatprep.subr.bf16.mxu1 %v17875_v20  ;;  %8422 = vmatprep.subr.bf16.mxu0 %v17889_v21  ;;  %v866_v20 = vld [vmem:[#allocation5 + $0x1818] sm:$0xff]  ;;  %v1005_v11 = vld [vmem:[#allocation5 + $0x1c70] sm:$0xff] }
 0x304   :  { %v878_v21 = vld [vmem:[#allocation5 + $0x1878] sm:$0xff] }
 0x305   :  { %v18042_v36 = vcombine.low %v866_v20, %v878_v21  ;;  %v998_v9 = vld [vmem:[#allocation5 + $0x1c38] sm:$0xff] }
 0x306   :  { %7562 = vmatpush1.bf16.msra.mxu1 %v17874_v29  ;;  %8423 = vmatpush1.bf16.msra.mxu0 %v17888_v30  ;;  %v18043_v29 = vcombine.high %v866_v20, %v878_v21  ;;  %v18057_v30 = vcombine.high %v873_v24, %v885_v26  ;;  %v18177_v20 = vcombine.high %v993_v10, %v1005_v11  ;;  %v1010_v21 = vld [vmem:[#allocation5 + $0x1c98] sm:$0xff]  ;;  %v21939_v26 = vld [vmem:[#allocation7] sm:$0xff] }
 0x307   :  { %7563 = vmatprep.subr.bf16.mxu1 %v17899_v31  ;;  %8424 = vmatprep.subr.bf16.mxu0 %v17913_v32  ;;  %v890_v31 = vld [vmem:[#allocation5 + $0x18d8] sm:$0xff] }
 0x308   :  { %v902_v32 = vld [vmem:[#allocation5 + $0x1938] sm:$0xff] }
 0x309   :  { %v18066_v45 = vcombine.low %v890_v31, %v902_v32  ;;  %v1022_v24 = vld [vmem:[#allocation5 + $0x1cf8] sm:$0xff] }
 0x30a   :  { %7564 = vmatpush1.bf16.msra.mxu1 %v17898_v39  ;;  %8425 = vmatpush1.bf16.msra.mxu0 %v17912_v40  ;;  %v18067_v39 = vcombine.high %v890_v31, %v902_v32  ;;  %v18081_v40 = vcombine.high %v897_v33, %v909_v35  ;;  %v18187_v31 = vcombine.high %v1010_v21, %v1022_v24  ;;  %v1034_v35 = vld [vmem:[#allocation5 + $0x1d58] sm:$0xff] }
 0x30b   :  { %7565 = vmatprep.subr.bf16.mxu1 %v17923_v41  ;;  %8426 = vmatprep.subr.bf16.mxu0 %v17937_v42  ;;  %v914_v41 = vld [vmem:[#allocation5 + $0x1998] sm:$0xff] }
 0x30c   :  { %v926_v42 = vld [vmem:[#allocation5 + $0x19f8] sm:$0xff] }
 0x30d   :  { %v18090_v53 = vcombine.low %v914_v41, %v926_v42 }
 0x30e   :  { %7566 = vmatpush1.bf16.msra.mxu1 %v17922_v47  ;;  %8427 = vmatpush1.bf16.msra.mxu0 %v17936_v48  ;;  %v18091_v47 = vcombine.high %v914_v41, %v926_v42  ;;  %v18105_v48 = vcombine.high %v921_v43, %v933_v44 }
 0x30f   :  { %7567 = vmatprep.subr.bf16.mxu1 %v17947_v49  ;;  %8428 = vmatprep.subr.bf16.mxu0 %v17961_v50  ;;  %v938_v49 = vld [vmem:[#allocation5 + $0x1a58] sm:$0xff] }
 0x310   :  { %v950_v50 = vld [vmem:[#allocation5 + $0x1ab8] sm:$0xff] }
 0x311   :  { %v18114_v63 = vcombine.low %v938_v49, %v950_v50 }
 0x312   :  { %7568 = vmatpush1.bf16.msra.mxu1 %v17946_v55  ;;  %8429 = vmatpush1.bf16.msra.mxu0 %v17960_v56  ;;  %v18115_v55 = vcombine.high %v938_v49, %v950_v50  ;;  %v1253_v56 = vlaneseq }
 0x313   :  { %7569 = vmatprep.subr.bf16.mxu1 %v17971_v58  ;;  %8430 = vmatprep.subr.bf16.mxu0 %v17985_v59  ;;  %v18129_v58 = vcombine.high %v945_v51, %v957_v52  ;;  %v962_v59 = vld [vmem:[#allocation5 + $0x1b18] sm:$0xff] }
 0x316   :  { %7570 = vmatpush1.bf16.msra.mxu1 %v17970_v1  ;;  %8431 = vmatpush1.bf16.msra.mxu0 %v17984_v2  ;;  %v18128_v1 = vcombine.low %v945_v51, %v957_v52  ;;  %v18139_v2 = vcombine.high %v962_v59, %v974_v60 }
 0x317   :  { %7571 = vmatprep.subr.bf16.mxu1 %v17995_v5  ;;  %8432 = vmatprep.subr.bf16.mxu0 %v18009_v6  ;;  %v21934_v5 = vshrl.u32 %v1253_v56, 7  ;;  %v18153_v6 = vcombine.high %v969_v61, %v981_v62  ;;  %v1101_v56 = vld [vmem:[#allocation5 + $0x1f70] sm:$0xff] }
 0x31a   :  { %7572 = vmatpush1.bf16.msra.mxu1 %v17994_v13  ;;  %8433 = vmatpush1.bf16.msra.mxu0 %v18008_v14  ;;  %v18138_v13 = vcombine.low %v962_v59, %v974_v60  ;;  %v18152_v14 = vcombine.low %v969_v61, %v981_v62 }
 0x31b   :  { %7573 = vmatprep.subr.bf16.mxu1 %v18019_v16  ;;  %8434 = vmatprep.subr.bf16.mxu0 %v18033_v17  ;;  %v18163_v16 = vcombine.high %v986_v8, %v998_v9  ;;  %v21937_v17 = vsub.s32 1, %v21934_v5 }
 0x31d   :  { %v1260_v32 = vrot.slane %v21939_v26, %v21937_v17 }
 0x31e   :  { %7574 = vmatpush1.bf16.msra.mxu1 %v18018_v27  ;;  %8435 = vmatpush1.bf16.msra.mxu0 %v18032_v28  ;;  %v1017_v27 = vld [vmem:[#allocation5 + $0x1cd0] sm:$0xff] }
 0x31f   :  { %7584 = vmatprep.subr.bf16.mxu1 %v18043_v29  ;;  %8445 = vmatprep.subr.bf16.mxu0 %v18057_v30  ;;  %v1029_v28 = vld [vmem:[#allocation5 + $0x1d30] sm:$0xff]  ;;  %v18162_v29 = vcombine.low %v986_v8, %v998_v9  ;;  %v18176_v30 = vcombine.low %v993_v10, %v1005_v11  ;;  %v21944_v43 = vadd.f32 %v21900_v3, %v1260_v32  ;;  %v1094_v3 = vld [vmem:[#allocation5 + $0x1f38] sm:$0xff] }
 0x320   :  { %v18201_v33 = vcombine.high %v1017_v27, %v1029_v28  ;;  %v18200_v41 = vcombine.low %v1017_v27, %v1029_v28  ;;  %v1166_v32 = vld [vmem:[#allocation5 + $0x2178] sm:$0xff] }
 0x321   :  { %7576 = vmatmul.mubr.bf16.vlgmr.msra.gmra.mrb[12].mxu1 %v21872_v25  ;;  %8437 = vmatmul.mubr.bf16.vlgmr.msra.gmra.mrb[12].mxu0 %v21872_v25  ;;  %v8610_v52 = vmul.f32 %v21944_v43, %v21944_v43 }
 0x322   :  { %7585 = vmatpush1.bf16.msra.mxu1 %v18042_v36  ;;  %8446 = vmatpush1.bf16.msra.mxu0 %v18056_v37  ;;  %v1046_v36 = vld [vmem:[#allocation5 + $0x1db8] sm:$0xff]  ;;  %v1041_v37 = vld [vmem:[#allocation5 + $0x1d90] sm:$0xff] }
 0x323   :  { %7586 = vmatprep.subr.bf16.mxu1 %v18067_v39  ;;  %8447 = vmatprep.subr.bf16.mxu0 %v18081_v40  ;;  %v1053_v39 = vld [vmem:[#allocation5 + $0x1df0] sm:$0xff]  ;;  %v18186_v40 = vcombine.low %v1010_v21, %v1022_v24  ;;  %v18211_v42 = vcombine.high %v1034_v35, %v1046_v36  ;;  %v18210_v49 = vcombine.low %v1034_v35, %v1046_v36  ;;  %v8634_v61 = vmul.f32 0.035677407, %v8610_v52 }
 0x324   :  { %7616 = vmatprep.mubr.bf16.mxu1 %v21874_v34  ;;  %8477 = vmatprep.mubr.bf16.mxu0 %v21874_v34  ;;  %v18225_v44 = vcombine.high %v1041_v37, %v1053_v39  ;;  %v18224_v50 = vcombine.low %v1041_v37, %v1053_v39  ;;  %v1149_v21 = vld [vmem:[#allocation5 + $0x20f0] sm:$0xff] }
 0x325   :  { %v8658_v11 = vadd.f32 0.7978846, %v8634_v61  ;;  %v1173_v35 = vld [vmem:[#allocation5 + $0x21b0] sm:$0xff] }
 0x326   :  { %7587 = vmatpush1.bf16.msra.mxu1 %v18066_v45  ;;  %8448 = vmatpush1.bf16.msra.mxu0 %v18080_v46  ;;  %v1058_v45 = vld [vmem:[#allocation5 + $0x1e18] sm:$0xff]  ;;  %v1209_v52 = vld [vmem:[#allocation5 + $0x22d0] sm:$0xff] }
 0x327   :  { %7588 = vmatprep.subr.bf16.mxu1 %v18091_v47  ;;  %8449 = vmatprep.subr.bf16.mxu0 %v18105_v48  ;;  %v1070_v46 = vld [vmem:[#allocation5 + $0x1e78] sm:$0xff]  ;;  %v1065_v47 = vld [vmem:[#allocation5 + $0x1e50] sm:$0xff] }
 0x328   :  { %v1077_v48 = vld [vmem:[#allocation5 + $0x1eb0] sm:$0xff]  ;;  %v18235_v51 = vcombine.high %v1058_v45, %v1070_v46 }
 0x329   :  { %v18248_v59 = vcombine.low %v1065_v47, %v1077_v48  ;;  %v1245_v61 = vld [vmem:[#allocation5 + $0x23f0] sm:$0xff] }
 0x32a   :  { %7589 = vmatpush1.bf16.msra.mxu1 %v18090_v53  ;;  %8450 = vmatpush1.bf16.msra.mxu0 %v18104_v54  ;;  %v18249_v53 = vcombine.high %v1065_v47, %v1077_v48  ;;  %v1082_v54 = vld [vmem:[#allocation5 + $0x1ed8] sm:$0xff] }
 0x32b   :  { %7590 = vmatprep.subr.bf16.mxu1 %v18115_v55  ;;  %8451 = vmatprep.subr.bf16.mxu0 %v18129_v58  ;;  %v1089_v55 = vld [vmem:[#allocation5 + $0x1f10] sm:$0xff]  ;;  %v18234_v58 = vcombine.low %v1058_v45, %v1070_v46  ;;  %v18259_v60 = vcombine.high %v1082_v54, %v1094_v3  ;;  %v18258_v8 = vcombine.low %v1082_v54, %v1094_v3 }
 0x32c   :  { %v18273_v62 = vcombine.high %v1089_v55, %v1101_v56  ;;  %v18272_v9 = vcombine.low %v1089_v55, %v1101_v56  ;;  %v1197_v45 = vld [vmem:[#allocation5 + $0x2270] sm:$0xff] }
 0x32e   :  { %7591 = vmatpush1.bf16.msra.mxu1 %v18114_v63  ;;  %8452 = vmatpush1.bf16.msra.mxu0 %v18128_v1  ;;  %v1106_v63 = vld [vmem:[#allocation5 + $0x1f98] sm:$0xff] }
 0x32f   :  { %7592 = vmatprep.subr.bf16.mxu1 %v18139_v2  ;;  %8453 = vmatprep.subr.bf16.mxu0 %v18153_v6  ;;  %v1118_v1 = vld [vmem:[#allocation5 + $0x1ff8] sm:$0xff]  ;;  %v1113_v2 = vld [vmem:[#allocation5 + $0x1fd0] sm:$0xff] }
 0x330   :  { %v1125_v6 = vld [vmem:[#allocation5 + $0x2030] sm:$0xff]  ;;  %v18283_v10 = vcombine.high %v1106_v63, %v1118_v1  ;;  %v18282_v24 = vcombine.low %v1106_v63, %v1118_v1  ;;  %v8730_v1 = vmul.f32 0.5, %v21944_v43 }
 0x331   :  { %v18296_v27 = vcombine.low %v1113_v2, %v1125_v6 }
 0x332   :  { %7593 = vmatpush1.bf16.msra.mxu1 %v18138_v13  ;;  %8454 = vmatpush1.bf16.msra.mxu0 %v18152_v14  ;;  %v18297_v13 = vcombine.high %v1113_v2, %v1125_v6  ;;  %v1130_v14 = vld [vmem:[#allocation5 + $0x2058] sm:$0xff] }
 0x333   :  { %7594 = vmatprep.subr.bf16.mxu1 %v18163_v16  ;;  %8455 = vmatprep.subr.bf16.mxu0 %v18177_v20  ;;  %v1142_v16 = vld [vmem:[#allocation5 + $0x20b8] sm:$0xff]  ;;  %v1137_v20 = vld [vmem:[#allocation5 + $0x2090] sm:$0xff] }
 0x334   :  { %v18307_v28 = vcombine.high %v1130_v14, %v1142_v16  ;;  %v18306_v36 = vcombine.low %v1130_v14, %v1142_v16  ;;  %v18320_v37 = vcombine.low %v1137_v20, %v1149_v21 }
 0x336   :  { %7595 = vmatpush1.bf16.msra.mxu1 %v18162_v29  ;;  %8456 = vmatpush1.bf16.msra.mxu0 %v18176_v30  ;;  %v8682_v29 = vmul.f32 %v21944_v43, %v8658_v11  ;;  %v18321_v30 = vcombine.high %v1137_v20, %v1149_v21  ;;  %v19842_v20 = vld [vmem:[#allocation8 + $0x4] ss:$24 sps:$4 sm:$0xff]   ;;  %v136_v43 = vld [vmem:[#allocation5 + $0x148] sm:$0xff] }
 0x337   :  { %7596 = vmatprep.subr.bf16.mxu1 %v18187_v31  ;;  %8457 = vmatprep.subr.bf16.mxu0 %v18201_v33  ;;  %v1154_v31 = vld [vmem:[#allocation5 + $0x2118] sm:$0xff]  ;;  %v1161_v33 = vld [vmem:[#allocation5 + $0x2150] sm:$0xff] }
 0x338   :  { %v18331_v39 = vcombine.high %v1154_v31, %v1166_v32  ;;  %21568 = vtanh.f32 %v8682_v29  ;;  %v18330_v46 = vcombine.low %v1154_v31, %v1166_v32  ;;  %v18344_v47 = vcombine.low %v1161_v33, %v1173_v35  ;;  %v148_v31 = vld [vmem:[#allocation5 + $0x1a8] sm:$0xff] }
 0x339   :  { %v160_v32 = vld [vmem:[#allocation5 + $0x208] sm:$0xff] }
 0x33a   :  { %7597 = vmatpush1.bf16.msra.mxu1 %v18186_v40  ;;  %8458 = vmatpush1.bf16.msra.mxu0 %v18200_v41  ;;  %v18345_v40 = vcombine.high %v1161_v33, %v1173_v35  ;;  %v1178_v41 = vld [vmem:[#allocation5 + $0x21d8] sm:$0xff] }
 0x33b   :  { %7598 = vmatprep.subr.bf16.mxu1 %v18211_v42  ;;  %8459 = vmatprep.subr.bf16.mxu0 %v18225_v44  ;;  %v1190_v42 = vld [vmem:[#allocation5 + $0x2238] sm:$0xff]  ;;  %v1185_v44 = vld [vmem:[#allocation5 + $0x2210] sm:$0xff] }
 0x33c   :  { %v18355_v48 = vcombine.high %v1178_v41, %v1190_v42  ;;  %v18354_v54 = vcombine.low %v1178_v41, %v1190_v42  ;;  %v18368_v3 = vcombine.low %v1185_v44, %v1197_v45  ;;  %v184_v41 = vld [vmem:[#allocation5 + $0x2c8] sm:$0xff]  ;;  %v17326_v42 = vcombine.low %v148_v31, %v160_v32 }
 0x33e   :  { %7599 = vmatpush1.bf16.msra.mxu1 %v18210_v49  ;;  %8460 = vmatpush1.bf16.msra.mxu0 %v18224_v50  ;;  %v18369_v49 = vcombine.high %v1185_v44, %v1197_v45  ;;  %v1202_v50 = vld [vmem:[#allocation5 + $0x2298] sm:$0xff] }
 0x33f   :  { %7600 = vmatprep.subr.bf16.mxu1 %v18235_v51  ;;  %8461 = vmatprep.subr.bf16.mxu0 %v18249_v53  ;;  %v1214_v51 = vld [vmem:[#allocation5 + $0x22f8] sm:$0xff]  ;;  %v1221_v53 = vld [vmem:[#allocation5 + $0x2330] sm:$0xff] }
 0x340   :  { %v18379_v55 = vcombine.high %v1202_v50, %v1214_v51  ;;  %v18393_v56 = vcombine.high %v1209_v52, %v1221_v53  ;;  %v18378_v63 = vcombine.low %v1202_v50, %v1214_v51  ;;  %v18392_v2 = vcombine.low %v1209_v52, %v1221_v53  ;;  %v19846_v44 = vld [vmem:[#allocation8 + $0x60] ss:$24 sps:$4 sm:$0xff]   ;;  %v19849_v50 = vld [vmem:[#allocation8 + $0x90] ss:$24 sps:$4 sm:$0xff]   ;;  %v19854_v52 = vld [vmem:[#allocation8 + $0xc4] ss:$24 sps:$4 sm:$0xff]  }
 0x341   :  { %v220_v53 = vld [vmem:[#allocation5 + $0x3e8] sm:$0xff] }
 0x342   :  { %7601 = vmatpush1.bf16.msra.mxu1 %v18234_v58  ;;  %8462 = vmatpush1.bf16.msra.mxu0 %v18248_v59  ;;  %v1226_v58 = vld [vmem:[#allocation5 + $0x2358] sm:$0xff] }
 0x343   :  { %7602 = vmatprep.subr.bf16.mxu1 %v18259_v60  ;;  %8463 = vmatprep.subr.bf16.mxu0 %v18273_v62  ;;  %v1238_v59 = vld [vmem:[#allocation5 + $0x23b8] sm:$0xff]  ;;  %v1233_v60 = vld [vmem:[#allocation5 + $0x2390] sm:$0xff]  ;;  %v21569_v62 = vpop.eup %21568 }
 0x344   :  { %v18403_v6 = vcombine.high %v1226_v58, %v1238_v59  ;;  %v8754_v11 = vmul.f32 %v21569_v62, %v8730_v1  ;;  %v18416_v14 = vcombine.low %v1233_v60, %v1245_v61  ;;  %v256_v62 = vld [vmem:[#allocation5 + $0x508] sm:$0xff] }
 0x346   :  { %7603 = vmatpush1.bf16.msra.mxu1 %v18258_v8  ;;  %8464 = vmatpush1.bf16.msra.mxu0 %v18272_v9  ;;  %v18417_v8 = vcombine.high %v1233_v60, %v1245_v61  ;;  %v100_v9 = vld [vmem:[#allocation5 + $0x28] sm:$0xff]  ;;  %v8778_v21 = vadd.f32 %v8754_v11, %v8730_v1 }
 0x347   :  { %7604 = vmatprep.subr.bf16.mxu1 %v18283_v10  ;;  %8465 = vmatprep.subr.bf16.mxu0 %v18297_v13  ;;  %v112_v10 = vld [vmem:[#allocation5 + $0x88] sm:$0xff]  ;;  %v18402_v13 = vcombine.low %v1226_v58, %v1238_v59  ;;  %v21960_v59 = vsub.s32 3, %v21934_v5 }
 0x348   :  { %v17279_v16 = vcombine.high %v100_v9, %v112_v10  ;;  %v21951_v33 = vpack.c.bf16 %v8778_v21, %v8778_v21  ;;  %v19857_v60 = vld [vmem:[#allocation8 + $0xf4] ss:$24 sps:$4 sm:$0xff]  }
 0x349   :  { %v244_v61 = vld [vmem:[#allocation5 + $0x4a8] sm:$0xff] }
 0x34a   :  { %7605 = vmatpush1.bf16.msra.mxu1 %v18282_v24  ;;  %8466 = vmatpush1.bf16.msra.mxu0 %v18296_v27  ;;  %v124_v24 = vld [vmem:[#allocation5 + $0xe8] sm:$0xff]  ;;  %v17278_v27 = vcombine.low %v100_v9, %v112_v10  ;;  %v19860_v10 = vld [vmem:[#allocation8 + $0x124] ss:$24 sps:$4 sm:$0xff]   ;;  %v17422_v21 = vcombine.low %v244_v61, %v256_v62 }
 0x34b   :  { %7606 = vmatprep.subr.bf16.mxu1 %v18307_v28  ;;  %8467 = vmatprep.subr.bf16.mxu0 %v18321_v30  ;;  %v19840_v28 = vld [vmem:[#allocation8] ss:$24 sps:$4 sm:$0xff]   ;;  %v17303_v29 = vcombine.high %v124_v24, %v136_v43  ;;  %v19845_v30 = vld [vmem:[#allocation8 + $0x34] ss:$24 sps:$4 sm:$0xff]   ;;  %v17302_v35 = vcombine.low %v124_v24, %v136_v43 }
 0x34c   :  { %v268_v11 = vld [vmem:[#allocation5 + $0x568] sm:$0xff] }
 0x34e   :  { %7607 = vmatpush1.bf16.msra.mxu1 %v18306_v36  ;;  %8468 = vmatpush1.bf16.msra.mxu0 %v18320_v37  ;;  %v19843_v36 = vld [vmem:[#allocation8 + $0x30] ss:$24 sps:$4 sm:$0xff]   ;;  %v17327_v37 = vcombine.high %v148_v31, %v160_v32  ;;  %v19863_v32 = vld [vmem:[#allocation8 + $0x154] ss:$24 sps:$4 sm:$0xff]  }
 0x34f   :  { %7608 = vmatprep.subr.bf16.mxu1 %v18331_v39  ;;  %8469 = vmatprep.subr.bf16.mxu0 %v18345_v40  ;;  %v19848_v39 = vld [vmem:[#allocation8 + $0x64] ss:$24 sps:$4 sm:$0xff]   ;;  %v172_v40 = vld [vmem:[#allocation5 + $0x268] sm:$0xff] }
 0x350   :  { %v17351_v45 = vcombine.high %v172_v40, %v184_v41 }
 0x352   :  { %7609 = vmatpush1.bf16.msra.mxu1 %v18330_v46  ;;  %8470 = vmatpush1.bf16.msra.mxu0 %v18344_v47  ;;  %v19851_v46 = vld [vmem:[#allocation8 + $0x94] ss:$24 sps:$4 sm:$0xff]  }
 0x353   :  { %7610 = vmatprep.subr.bf16.mxu1 %v18355_v48  ;;  %8471 = vmatprep.subr.bf16.mxu0 %v18369_v49  ;;  %v196_v47 = vld [vmem:[#allocation5 + $0x328] sm:$0xff]  ;;  %v17350_v49 = vcombine.low %v172_v40, %v184_v41 }
 0x354   :  { %v208_v48 = vld [vmem:[#allocation5 + $0x388] sm:$0xff] }
 0x355   :  { %v17375_v51 = vcombine.high %v196_v47, %v208_v48  ;;  %v19861_v40 = vld [vmem:[#allocation8 + $0x150] ss:$24 sps:$4 sm:$0xff]  }
 0x356   :  { %7611 = vmatpush1.bf16.msra.mxu1 %v18354_v54  ;;  %8472 = vmatpush1.bf16.msra.mxu0 %v18368_v3  ;;  %v232_v54 = vld [vmem:[#allocation5 + $0x448] sm:$0xff]  ;;  %v17374_v3 = vcombine.low %v196_v47, %v208_v48  ;;  %v19864_v48 = vld [vmem:[#allocation8 + $0x180] ss:$24 sps:$4 sm:$0xff]  }
 0x357   :  { %7612 = vmatprep.subr.bf16.mxu1 %v18379_v55  ;;  %8473 = vmatprep.subr.bf16.mxu0 %v18393_v56  ;;  %v21957_v55 = vsub.s32 0, %v21934_v5  ;;  %v19852_v56 = vld [vmem:[#allocation8 + $0xc0] ss:$24 sps:$4 sm:$0xff]   ;;  %v17399_v58 = vcombine.high %v220_v53, %v232_v54 }
 0x359   :  { %v1256_v1 = vrot.slane %v21939_v26, %v21957_v55 }
 0x35a   :  { %7613 = vmatpush1.bf16.msra.mxu1 %v18378_v63  ;;  %8474 = vmatpush1.bf16.msra.mxu0 %v18392_v2  ;;  %v17398_v63 = vcombine.low %v220_v53, %v232_v54  ;;  %v19855_v2 = vld [vmem:[#allocation8 + $0xf0] ss:$24 sps:$4 sm:$0xff]  }
 0x35b   :  { %7614 = vmatprep.subr.bf16.mxu1 %v18403_v6  ;;  %8475 = vmatprep.subr.bf16.mxu0 %v18417_v8  ;;  %v17423_v6 = vcombine.high %v244_v61, %v256_v62  ;;  %v1268_v8 = vrot.slane %v21939_v26, %v21960_v59  ;;  %v21975_v43 = vadd.f32 %v21898_v0, %v1256_v1  ;;  %v352_v53 = vld [vmem:[#allocation5 + $0x808] sm:$0xff]  ;;  %v19872_v61 = vld [vmem:[#allocation8 + $0x1e4] ss:$24 sps:$4 sm:$0xff]  }
 0x35c   :  { %v364_v62 = vld [vmem:[#allocation5 + $0x868] sm:$0xff] }
 0x35d   :  { %v21978_v31 = vadd.f32 %v21920_v18, %v1268_v8  ;;  %v8609_v0 = vmul.f32 %v21975_v43, %v21975_v43  ;;  %v19866_v18 = vld [vmem:[#allocation8 + $0x184] ss:$24 sps:$4 sm:$0xff]  }
 0x35e   :  { %7615 = vmatpush1.bf16.msra.mxu1 %v18402_v13  ;;  %8476 = vmatpush1.bf16.msra.mxu0 %v18416_v14  ;;  %v280_v13 = vld [vmem:[#allocation5 + $0x5c8] sm:$0xff] }
 0x35f   :  { %7748 = vmatprep.subr.bf16.mxu1 %v17279_v16  ;;  %15769 = vmatprep.subr.bf16.mxu0 %v19842_v20  ;;  %v8633_v47 = vmul.f32 0.035677407, %v8609_v0  ;;  %v436_v0 = vld [vmem:[#allocation5 + $0xaa8] sm:$0xff] }
 0x361   :  { %7617 = vmatmul.mubr.bf16.vlgmr.msra.gmra.mrb[12].mxu1 %v21880_v38  ;;  %8478 = vmatmul.mubr.bf16.vlgmr.msra.gmra.mrb[12].mxu0 %v21880_v38 }
 0x362   :  { %7749 = vmatpush1.bf16.msra.mxu1 %v17278_v27  ;;  %15770 = vmatpush1.bf16.msra.mxu0 %v19840_v28  ;;  %v19858_v28 = vld [vmem:[#allocation8 + $0x120] ss:$24 sps:$4 sm:$0xff]  }
 0x363   :  { %15801 = vmatprep.mubr.bf16.mxu0 %v21951_v33  ;;  %7750 = vmatprep.subr.bf16.mxu1 %v17303_v29  ;;  %v17447_v29 = vcombine.high %v268_v11, %v280_v13 }
 0x364   :  { %15771 = vmatprep.subr.bf16.mxu0 %v19845_v30  ;;  %7780 = vmatprep.mubr.bf16.mxu1 %v21860_v57 }
 0x366   :  { %7751 = vmatpush1.bf16.msra.mxu1 %v17302_v35  ;;  %15772 = vmatpush1.bf16.msra.mxu0 %v19843_v36  ;;  %v292_v35 = vld [vmem:[#allocation5 + $0x628] sm:$0xff] }
 0x367   :  { %7752 = vmatprep.subr.bf16.mxu1 %v17327_v37  ;;  %15773 = vmatprep.subr.bf16.mxu0 %v19848_v39  ;;  %v304_v36 = vld [vmem:[#allocation5 + $0x688] sm:$0xff]  ;;  %v17446_v39 = vcombine.low %v268_v11, %v280_v13 }
 0x368   :  { %v17471_v41 = vcombine.high %v292_v35, %v304_v36  ;;  %v19875_v11 = vld [vmem:[#allocation8 + $0x214] ss:$24 sps:$4 sm:$0xff]  }
 0x369   :  { %v388_v13 = vld [vmem:[#allocation5 + $0x928] sm:$0xff] }
 0x36a   :  { %7753 = vmatpush1.bf16.msra.mxu1 %v17326_v42  ;;  %15774 = vmatpush1.bf16.msra.mxu0 %v19846_v44  ;;  %v8612_v42 = vmul.f32 %v21978_v31, %v21978_v31  ;;  %v316_v44 = vld [vmem:[#allocation5 + $0x6e8] sm:$0xff] }
 0x36b   :  { %7754 = vmatprep.subr.bf16.mxu1 %v17351_v45  ;;  %15775 = vmatprep.subr.bf16.mxu0 %v19851_v46  ;;  %v328_v45 = vld [vmem:[#allocation5 + $0x748] sm:$0xff]  ;;  %v17470_v46 = vcombine.low %v292_v35, %v304_v36  ;;  %v19876_v36 = vld [vmem:[#allocation8 + $0x240] ss:$24 sps:$4 sm:$0xff]  }
 0x36c   :  { %v17494_v54 = vcombine.low %v316_v44, %v328_v45 }
 0x36e   :  { %7755 = vmatpush1.bf16.msra.mxu1 %v17350_v49  ;;  %15776 = vmatpush1.bf16.msra.mxu0 %v19849_v50  ;;  %v17495_v49 = vcombine.high %v316_v44, %v328_v45  ;;  %v8636_v50 = vmul.f32 0.035677407, %v8612_v42  ;;  %v19879_v42 = vld [vmem:[#allocation8 + $0x270] ss:$24 sps:$4 sm:$0xff]   ;;  %v19884_v44 = vld [vmem:[#allocation8 + $0x2a4] ss:$24 sps:$4 sm:$0xff]  }
 0x36f   :  { %7756 = vmatprep.subr.bf16.mxu1 %v17375_v51  ;;  %15777 = vmatprep.subr.bf16.mxu0 %v19854_v52  ;;  %v19869_v51 = vld [vmem:[#allocation8 + $0x1b4] ss:$24 sps:$4 sm:$0xff]  }
 0x370   :  { %v340_v52 = vld [vmem:[#allocation5 + $0x7a8] sm:$0xff] }
 0x371   :  { %v17518_v1 = vcombine.low %v340_v52, %v352_v53  ;;  %v460_v45 = vld [vmem:[#allocation5 + $0xb68] sm:$0xff] }
 0x372   :  { %7757 = vmatpush1.bf16.msra.mxu1 %v17374_v3  ;;  %15778 = vmatpush1.bf16.msra.mxu0 %v19852_v56  ;;  %v8657_v3 = vadd.f32 0.7978846, %v8633_v47  ;;  %v19867_v56 = vld [vmem:[#allocation8 + $0x1b0] ss:$24 sps:$4 sm:$0xff]  }
 0x373   :  { %7758 = vmatprep.subr.bf16.mxu1 %v17399_v58  ;;  %15779 = vmatprep.subr.bf16.mxu0 %v19857_v60  ;;  %v17519_v58 = vcombine.high %v340_v52, %v352_v53  ;;  %v8660_v60 = vadd.f32 0.7978846, %v8636_v50  ;;  %v19882_v52 = vld [vmem:[#allocation8 + $0x2a0] ss:$24 sps:$4 sm:$0xff]  }
 0x374   :  { %v21966_v9 = vpop.f32.mrb[8].mxu1  ;;  %v21970_v16 = vpop.f32.mrb[8].mxu0 }
 0x375   :  { %v21968_v14 = vpop.f32.mrb[9].mxu1  ;;  %v21972_v24 = vpop.f32.mrb[9].mxu0 }
 0x376   :  { %v7499_v20 = vpop.f32.mrb[10].mxu1  ;;  %7759 = vmatpush1.bf16.msra.mxu1 %v17398_v63  ;;  %15780 = vmatpush1.bf16.msra.mxu0 %v19855_v2  ;;  %v8237_v30 = vpop.f32.mrb[10].mxu0  ;;  %v376_v63 = vld [vmem:[#allocation5 + $0x8c8] sm:$0xff]  ;;  %v8681_v2 = vmul.f32 %v21975_v43, %v8657_v3 }
 0x377   :  { %v7500_v27 = vpop.f32.mrb[11].mxu1  ;;  %7760 = vmatprep.subr.bf16.mxu1 %v17423_v6  ;;  %15781 = vmatprep.subr.bf16.mxu0 %v19860_v10  ;;  %v8238_v37 = vpop.f32.mrb[11].mxu0  ;;  %v19870_v6 = vld [vmem:[#allocation8 + $0x1e0] ss:$24 sps:$4 sm:$0xff]   ;;  %v17543_v8 = vcombine.high %v364_v62, %v376_v63  ;;  %v8684_v10 = vmul.f32 %v21978_v31, %v8660_v60  ;;  %v400_v20 = vld [vmem:[#allocation5 + $0x988] sm:$0xff] }
 0x378   :  { %21570 = vtanh.f32 %v8681_v2  ;;  %v19873_v27 = vld [vmem:[#allocation8 + $0x210] ss:$24 sps:$4 sm:$0xff]   ;;  %v17566_v35 = vcombine.low %v388_v13, %v400_v20  ;;  %v19887_v3 = vld [vmem:[#allocation8 + $0x2d4] ss:$24 sps:$4 sm:$0xff]  }
 0x379   :  { %21572 = vtanh.f32 %v8684_v10  ;;  %v412_v30 = vld [vmem:[#allocation5 + $0x9e8] sm:$0xff]  ;;  %v19888_v10 = vld [vmem:[#allocation8 + $0x300] ss:$24 sps:$4 sm:$0xff]  }
 0x37a   :  { %7761 = vmatpush1.bf16.msra.mxu1 %v17422_v21  ;;  %15782 = vmatpush1.bf16.msra.mxu0 %v19858_v28  ;;  %v17542_v21 = vcombine.low %v364_v62, %v376_v63  ;;  %v17567_v28 = vcombine.high %v388_v13, %v400_v20  ;;  %v19885_v62 = vld [vmem:[#allocation8 + $0x2d0] ss:$24 sps:$4 sm:$0xff]   ;;  %v19893_v20 = vld [vmem:[#allocation8 + $0x334] ss:$24 sps:$4 sm:$0xff]  }
 0x37b   :  { %7762 = vmatprep.subr.bf16.mxu1 %v17447_v29  ;;  %15783 = vmatprep.subr.bf16.mxu0 %v19863_v32  ;;  %v19878_v29 = vld [vmem:[#allocation8 + $0x244] ss:$24 sps:$4 sm:$0xff]   ;;  %v424_v32 = vld [vmem:[#allocation5 + $0xa48] sm:$0xff] }
 0x37c   :  { %v17591_v37 = vcombine.high %v412_v30, %v424_v32  ;;  %v508_v2 = vld [vmem:[#allocation5 + $0xce8] sm:$0xff] }
 0x37e   :  { %7763 = vmatpush1.bf16.msra.mxu1 %v17446_v39  ;;  %15784 = vmatpush1.bf16.msra.mxu0 %v19861_v40  ;;  %v19881_v39 = vld [vmem:[#allocation8 + $0x274] ss:$24 sps:$4 sm:$0xff]  }
 0x37f   :  { %7764 = vmatprep.subr.bf16.mxu1 %v17471_v41  ;;  %15785 = vmatprep.subr.bf16.mxu0 %v19866_v18  ;;  %v448_v40 = vld [vmem:[#allocation5 + $0xb08] sm:$0xff]  ;;  %v17590_v41 = vcombine.low %v412_v30, %v424_v32 }
 0x380   :  { %v17615_v18 = vcombine.high %v436_v0, %v448_v40  ;;  %v17614_v50 = vcombine.low %v436_v0, %v448_v40  ;;  %v19891_v30 = vld [vmem:[#allocation8 + $0x330] ss:$24 sps:$4 sm:$0xff]   ;;  %v19894_v0 = vld [vmem:[#allocation8 + $0x360] ss:$24 sps:$4 sm:$0xff]  }
 0x382   :  { %7765 = vmatpush1.bf16.msra.mxu1 %v17470_v46  ;;  %15786 = vmatpush1.bf16.msra.mxu0 %v19864_v48  ;;  %v472_v46 = vld [vmem:[#allocation5 + $0xbc8] sm:$0xff]  ;;  %v21571_v47 = vpop.eup %21570 }
 0x383   :  { %7766 = vmatprep.subr.bf16.mxu1 %v17495_v49  ;;  %15787 = vmatprep.subr.bf16.mxu0 %v19869_v51  ;;  %v21573_v48 = vpop.eup %21572  ;;  %v8729_v49 = vmul.f32 0.5, %v21975_v43  ;;  %v8732_v51 = vmul.f32 0.5, %v21978_v31  ;;  %v17639_v53 = vcombine.high %v460_v45, %v472_v46 }
 0x385   :  { %v8756_v60 = vmul.f32 %v21573_v48, %v8732_v51  ;;  %v604_v48 = vld [vmem:[#allocation5 + $0xfe8] sm:$0xff] }
 0x386   :  { %7767 = vmatpush1.bf16.msra.mxu1 %v17494_v54  ;;  %15788 = vmatpush1.bf16.msra.mxu0 %v19867_v56  ;;  %v8753_v54 = vmul.f32 %v21571_v47, %v8729_v49  ;;  %v484_v56 = vld [vmem:[#allocation5 + $0xc28] sm:$0xff]  ;;  %v19902_v47 = vld [vmem:[#allocation8 + $0x3c4] ss:$24 sps:$4 sm:$0xff]  }
 0x387   :  { %7768 = vmatprep.subr.bf16.mxu1 %v17519_v58  ;;  %15789 = vmatprep.subr.bf16.mxu0 %v19872_v61  ;;  %v496_v58 = vld [vmem:[#allocation5 + $0xc88] sm:$0xff]  ;;  %v17638_v61 = vcombine.low %v460_v45, %v472_v46  ;;  %v8780_v31 = vadd.f32 %v8756_v60, %v8732_v51  ;;  %v21997_v51 = vsub.s32 2, %v21934_v5 }
 0x388   :  { %v17663_v43 = vcombine.high %v484_v56, %v496_v58  ;;  %v8777_v63 = vadd.f32 %v8753_v54, %v8729_v49  ;;  %v19897_v45 = vld [vmem:[#allocation8 + $0x390] ss:$24 sps:$4 sm:$0xff]   ;;  %v19905_v54 = vld [vmem:[#allocation8 + $0x3f4] ss:$24 sps:$4 sm:$0xff]  }
 0x389   :  { %v616_v49 = vld [vmem:[#allocation5 + $0x1048] sm:$0xff] }
 0x38a   :  { %7769 = vmatpush1.bf16.msra.mxu1 %v17518_v1  ;;  %15790 = vmatpush1.bf16.msra.mxu0 %v19870_v6  ;;  %v19890_v1 = vld [vmem:[#allocation8 + $0x304] ss:$24 sps:$4 sm:$0xff]   ;;  %v520_v6 = vld [vmem:[#allocation5 + $0xd48] sm:$0xff]  ;;  %v17782_v60 = vcombine.low %v604_v48, %v616_v49 }
 0x38b   :  { %7770 = vmatprep.subr.bf16.mxu1 %v17543_v8  ;;  %15791 = vmatprep.subr.bf16.mxu0 %v19875_v11  ;;  %v17662_v8 = vcombine.low %v484_v56, %v496_v58  ;;  %v21988_v11 = vpack.c.bf16 %v8777_v63, %v8777_v63  ;;  %v17687_v13 = vcombine.high %v508_v2, %v520_v6  ;;  %v640_v56 = vld [vmem:[#allocation5 + $0x1108] sm:$0xff]  ;;  %v22000_v58 = vsub.s32 5, %v21934_v5 }
 0x38d   :  { %v1276_v63 = vrot.slane %v21939_v26, %v22000_v58 }
 0x38e   :  { %7771 = vmatpush1.bf16.msra.mxu1 %v17542_v21  ;;  %15792 = vmatpush1.bf16.msra.mxu0 %v19873_v27  ;;  %v532_v21 = vld [vmem:[#allocation5 + $0xda8] sm:$0xff] }
 0x38f   :  { %7772 = vmatprep.subr.bf16.mxu1 %v17567_v28  ;;  %15793 = vmatprep.subr.bf16.mxu0 %v19878_v29  ;;  %v544_v27 = vld [vmem:[#allocation5 + $0xe08] sm:$0xff]  ;;  %v21991_v28 = vpack.c.bf16 %v8780_v31, %v8780_v31  ;;  %v17686_v29 = vcombine.low %v508_v2, %v520_v6 }
 0x390   :  { %v17711_v32 = vcombine.high %v532_v21, %v544_v27  ;;  %v652_v31 = vld [vmem:[#allocation5 + $0x1168] sm:$0xff] }
 0x391   :  { %v664_v2 = vld [vmem:[#allocation5 + $0x11c8] sm:$0xff] }
 0x392   :  { %7773 = vmatpush1.bf16.msra.mxu1 %v17566_v35  ;;  %15794 = vmatpush1.bf16.msra.mxu0 %v19876_v36  ;;  %v19896_v35 = vld [vmem:[#allocation8 + $0x364] ss:$24 sps:$4 sm:$0xff]   ;;  %v556_v36 = vld [vmem:[#allocation5 + $0xe68] sm:$0xff] }
 0x393   :  { %7774 = vmatprep.subr.bf16.mxu1 %v17591_v37  ;;  %15795 = vmatprep.subr.bf16.mxu0 %v19881_v39  ;;  %v568_v37 = vld [vmem:[#allocation5 + $0xec8] sm:$0xff]  ;;  %v17710_v39 = vcombine.low %v532_v21, %v544_v27 }
 0x394   :  { %v17735_v40 = vcombine.high %v556_v36, %v568_v37  ;;  %v19911_v21 = vld [vmem:[#allocation8 + $0x454] ss:$24 sps:$4 sm:$0xff]  }
 0x395   :  { %v676_v27 = vld [vmem:[#allocation5 + $0x1228] sm:$0xff] }
 0x396   :  { %7775 = vmatpush1.bf16.msra.mxu1 %v17590_v41  ;;  %15796 = vmatpush1.bf16.msra.mxu0 %v19879_v42  ;;  %v19899_v41 = vld [vmem:[#allocation8 + $0x394] ss:$24 sps:$4 sm:$0xff]  }
 0x397   :  { %7776 = vmatprep.subr.bf16.mxu1 %v17615_v18  ;;  %15797 = vmatprep.subr.bf16.mxu0 %v19884_v44  ;;  %v580_v42 = vld [vmem:[#allocation5 + $0xf28] sm:$0xff]  ;;  %v17734_v44 = vcombine.low %v556_v36, %v568_v37  ;;  %v19914_v36 = vld [vmem:[#allocation8 + $0x484] ss:$24 sps:$4 sm:$0xff]  }
 0x398   :  { %v592_v18 = vld [vmem:[#allocation5 + $0xf88] sm:$0xff] }
 0x399   :  { %v17759_v46 = vcombine.high %v580_v42, %v592_v18  ;;  %v712_v37 = vld [vmem:[#allocation5 + $0x1348] sm:$0xff] }
 0x39a   :  { %7777 = vmatpush1.bf16.msra.mxu1 %v17614_v50  ;;  %15798 = vmatpush1.bf16.msra.mxu0 %v19882_v52  ;;  %v17758_v50 = vcombine.low %v580_v42, %v592_v18  ;;  %v19900_v52 = vld [vmem:[#allocation8 + $0x3c0] ss:$24 sps:$4 sm:$0xff]   ;;  %v19917_v18 = vld [vmem:[#allocation8 + $0x4b4] ss:$24 sps:$4 sm:$0xff]  }
 0x39b   :  { %7778 = vmatprep.subr.bf16.mxu1 %v17639_v53  ;;  %15799 = vmatprep.subr.bf16.mxu0 %v19887_v3  ;;  %v17783_v53 = vcombine.high %v604_v48, %v616_v49  ;;  %v628_v3 = vld [vmem:[#allocation5 + $0x10a8] sm:$0xff] }
 0x39c   :  { %v17806_v6 = vcombine.low %v628_v3, %v640_v56  ;;  %v19915_v48 = vld [vmem:[#allocation8 + $0x4b0] ss:$24 sps:$4 sm:$0xff]  }
 0x39e   :  { %7779 = vmatpush1.bf16.msra.mxu1 %v17638_v61  ;;  %15800 = vmatpush1.bf16.msra.mxu0 %v19885_v62  ;;  %v1264_v61 = vrot.slane %v21939_v26, %v21997_v51  ;;  %v19903_v62 = vld [vmem:[#allocation8 + $0x3f0] ss:$24 sps:$4 sm:$0xff]  }
 0x39f   :  { %7789 = vmatprep.subr.bf16.mxu1 %v17663_v43  ;;  %15810 = vmatprep.subr.bf16.mxu0 %v19890_v1  ;;  %v17807_v43 = vcombine.high %v628_v3, %v640_v56  ;;  %v19908_v1 = vld [vmem:[#allocation8 + $0x424] ss:$24 sps:$4 sm:$0xff]   ;;  %v688_v26 = vld [vmem:[#allocation5 + $0x1288] sm:$0xff] }
 0x3a1   :  { %7781 = vmatmul.mubr.bf16.vlgmr.msra.gmra.mrb[16].mxu1 %v21864_v12  ;;  %15802 = vmatmul.mubr.bf16.vlgmr.msra.gmra.mrb[16].mxu0 %v21988_v11 }
 0x3a2   :  { %7790 = vmatpush1.bf16.msra.mxu1 %v17662_v8  ;;  %15811 = vmatpush1.bf16.msra.mxu0 %v19888_v10  ;;  %v22007_v8 = vadd.f32 %v21918_v15, %v1264_v61  ;;  %v19906_v10 = vld [vmem:[#allocation8 + $0x420] ss:$24 sps:$4 sm:$0xff]   ;;  %v19909_v15 = vld [vmem:[#allocation8 + $0x450] ss:$24 sps:$4 sm:$0xff]  }
 0x3a3   :  { %15842 = vmatprep.mubr.bf16.mxu0 %v21991_v28  ;;  %7791 = vmatprep.subr.bf16.mxu1 %v17687_v13  ;;  %v17831_v13 = vcombine.high %v652_v31, %v664_v2 }
 0x3a4   :  { %15812 = vmatprep.subr.bf16.mxu0 %v19893_v20  ;;  %7821 = vmatprep.mubr.bf16.mxu1 %v21866_v23  ;;  %v22010_v20 = vadd.f32 %v21968_v14, %v1276_v63  ;;  %v700_v14 = vld [vmem:[#allocation5 + $0x12e8] sm:$0xff] }
 0x3a5   :  { %v772_v63 = vld [vmem:[#allocation5 + $0x1528] sm:$0xff] }
 0x3a6   :  { %7792 = vmatpush1.bf16.msra.mxu1 %v17686_v29  ;;  %15813 = vmatpush1.bf16.msra.mxu0 %v19891_v30  ;;  %v17830_v29 = vcombine.low %v652_v31, %v664_v2  ;;  %v8611_v30 = vmul.f32 %v22007_v8, %v22007_v8  ;;  %v19921_v2 = vld [vmem:[#allocation8 + $0x510] ss:$24 sps:$4 sm:$0xff]  }
 0x3a7   :  { %7793 = vmatprep.subr.bf16.mxu1 %v17711_v32  ;;  %15814 = vmatprep.subr.bf16.mxu0 %v19896_v35  ;;  %v17855_v32 = vcombine.high %v676_v27, %v688_v26  ;;  %v8614_v35 = vmul.f32 %v22010_v20, %v22010_v20 }
 0x3a9   :  { %v8638_v42 = vmul.f32 0.035677407, %v8614_v35 }
 0x3aa   :  { %7794 = vmatpush1.bf16.msra.mxu1 %v17710_v39  ;;  %15815 = vmatpush1.bf16.msra.mxu0 %v19894_v0  ;;  %v17854_v39 = vcombine.low %v676_v27, %v688_v26  ;;  %v8635_v0 = vmul.f32 0.035677407, %v8611_v30  ;;  %v19924_v26 = vld [vmem:[#allocation8 + $0x540] ss:$24 sps:$4 sm:$0xff]   ;;  %v19929_v30 = vld [vmem:[#allocation8 + $0x574] ss:$24 sps:$4 sm:$0xff]  }
 0x3ab   :  { %7795 = vmatprep.subr.bf16.mxu1 %v17735_v40  ;;  %15816 = vmatprep.subr.bf16.mxu0 %v19899_v41  ;;  %v19912_v40 = vld [vmem:[#allocation8 + $0x480] ss:$24 sps:$4 sm:$0xff]   ;;  %v17879_v41 = vcombine.high %v700_v14, %v712_v37 }
 0x3ae   :  { %7796 = vmatpush1.bf16.msra.mxu1 %v17734_v44  ;;  %15817 = vmatpush1.bf16.msra.mxu0 %v19897_v45  ;;  %v724_v44 = vld [vmem:[#allocation5 + $0x13a8] sm:$0xff] }
 0x3af   :  { %7797 = vmatprep.subr.bf16.mxu1 %v17759_v46  ;;  %15818 = vmatprep.subr.bf16.mxu0 %v19902_v47  ;;  %v736_v45 = vld [vmem:[#allocation5 + $0x1408] sm:$0xff]  ;;  %v17878_v46 = vcombine.low %v700_v14, %v712_v37  ;;  %v8659_v47 = vadd.f32 0.7978846, %v8635_v0  ;;  %v19932_v37 = vld [vmem:[#allocation8 + $0x5a4] ss:$24 sps:$4 sm:$0xff]  }
 0x3b0   :  { %v17903_v49 = vcombine.high %v724_v44, %v736_v45  ;;  %v17902_v3 = vcombine.low %v724_v44, %v736_v45  ;;  %v856_v0 = vld [vmem:[#allocation5 + $0x17c8] sm:$0xff]  ;;  %v8734_v44 = vmul.f32 0.5, %v22010_v20  ;;  %v19930_v45 = vld [vmem:[#allocation8 + $0x5a0] ss:$24 sps:$4 sm:$0xff]  }
 0x3b1   :  { %v8683_v56 = vmul.f32 %v22007_v8, %v8659_v47 }
 0x3b2   :  { %7798 = vmatpush1.bf16.msra.mxu1 %v17758_v50  ;;  %15819 = vmatpush1.bf16.msra.mxu0 %v19900_v52  ;;  %v8662_v50 = vadd.f32 0.7978846, %v8638_v42  ;;  %v19920_v52 = vld [vmem:[#allocation8 + $0x4e4] ss:$24 sps:$4 sm:$0xff]   ;;  %v8731_v42 = vmul.f32 0.5, %v22007_v8 }
 0x3b3   :  { %7799 = vmatprep.subr.bf16.mxu1 %v17783_v53  ;;  %15820 = vmatprep.subr.bf16.mxu0 %v19905_v54  ;;  %v748_v53 = vld [vmem:[#allocation5 + $0x1468] sm:$0xff]  ;;  %21574 = vtanh.f32 %v8683_v56  ;;  %v19938_v56 = vld [vmem:[#allocation8 + $0x604] ss:$24 sps:$4 sm:$0xff]  }
 0x3b4   :  { %v760_v54 = vld [vmem:[#allocation5 + $0x14c8] sm:$0xff] }
 0x3b5   :  { %v17927_v61 = vcombine.high %v748_v53, %v760_v54  ;;  %v17926_v31 = vcombine.low %v748_v53, %v760_v54  ;;  %v19933_v54 = vld [vmem:[#allocation8 + $0x5d0] ss:$24 sps:$4 sm:$0xff]  }
 0x3b6   :  { %7800 = vmatpush1.bf16.msra.mxu1 %v17782_v60  ;;  %15821 = vmatpush1.bf16.msra.mxu0 %v19903_v62  ;;  %v19918_v60 = vld [vmem:[#allocation8 + $0x4e0] ss:$24 sps:$4 sm:$0xff]   ;;  %v8686_v62 = vmul.f32 %v22010_v20, %v8662_v50  ;;  %v880_v50 = vld [vmem:[#allocation5 + $0x1888] sm:$0xff] }
 0x3b7   :  { %7801 = vmatprep.subr.bf16.mxu1 %v17807_v43  ;;  %15822 = vmatprep.subr.bf16.mxu0 %v19908_v1  ;;  %v19923_v43 = vld [vmem:[#allocation8 + $0x514] ss:$24 sps:$4 sm:$0xff]  }
 0x3b8   :  { %v784_v1 = vld [vmem:[#allocation5 + $0x1588] sm:$0xff]  ;;  %21576 = vtanh.f32 %v8686_v62 }
 0x3b9   :  { %v17950_v27 = vcombine.low %v772_v63, %v784_v1 }
 0x3ba   :  { %7802 = vmatpush1.bf16.msra.mxu1 %v17806_v6  ;;  %15823 = vmatpush1.bf16.msra.mxu0 %v19906_v10  ;;  %v17951_v6 = vcombine.high %v772_v63, %v784_v1  ;;  %v19926_v10 = vld [vmem:[#allocation8 + $0x544] ss:$24 sps:$4 sm:$0xff]  }
 0x3bb   :  { %7803 = vmatprep.subr.bf16.mxu1 %v17831_v13  ;;  %15824 = vmatprep.subr.bf16.mxu0 %v19911_v21  ;;  %v796_v13 = vld [vmem:[#allocation5 + $0x15e8] sm:$0xff] }
 0x3bc   :  { %v808_v21 = vld [vmem:[#allocation5 + $0x1648] sm:$0xff] }
 0x3bd   :  { %v17974_v35 = vcombine.low %v796_v13, %v808_v21 }
 0x3be   :  { %7804 = vmatpush1.bf16.msra.mxu1 %v17830_v29  ;;  %15825 = vmatpush1.bf16.msra.mxu0 %v19909_v15  ;;  %v17975_v29 = vcombine.high %v796_v13, %v808_v21  ;;  %v820_v15 = vld [vmem:[#allocation5 + $0x16a8] sm:$0xff] }
 0x3bf   :  { %7805 = vmatprep.subr.bf16.mxu1 %v17855_v32  ;;  %15826 = vmatprep.subr.bf16.mxu0 %v19914_v36  ;;  %v832_v32 = vld [vmem:[#allocation5 + $0x1708] sm:$0xff] }
 0x3c0   :  { %v19927_v36 = vld [vmem:[#allocation8 + $0x570] ss:$24 sps:$4 sm:$0xff]   ;;  %v17999_v14 = vcombine.high %v820_v15, %v832_v32 }
 0x3c1   :  { %v19939_v21 = vld [vmem:[#allocation8 + $0x630] ss:$24 sps:$4 sm:$0xff]  }
 0x3c2   :  { %7806 = vmatpush1.bf16.msra.mxu1 %v17854_v39  ;;  %15827 = vmatpush1.bf16.msra.mxu0 %v19912_v40  ;;  %v844_v39 = vld [vmem:[#allocation5 + $0x1768] sm:$0xff]  ;;  %v21575_v40 = vpop.eup %21574 }
 0x3c3   :  { %7807 = vmatprep.subr.bf16.mxu1 %v17879_v41  ;;  %15828 = vmatprep.subr.bf16.mxu0 %v19917_v18  ;;  %v21577_v41 = vpop.eup %21576  ;;  %v17998_v18 = vcombine.low %v820_v15, %v832_v32  ;;  %v8755_v47 = vmul.f32 %v21575_v40, %v8731_v42  ;;  %v18022_v53 = vcombine.low %v844_v39, %v856_v0  ;;  %v19942_v32 = vld [vmem:[#allocation8 + $0x660] ss:$24 sps:$4 sm:$0xff]  }
 0x3c6   :  { %7808 = vmatpush1.bf16.msra.mxu1 %v17878_v46  ;;  %15829 = vmatpush1.bf16.msra.mxu0 %v19915_v48  ;;  %v18023_v46 = vcombine.high %v844_v39, %v856_v0  ;;  %v19935_v48 = vld [vmem:[#allocation8 + $0x5d4] ss:$24 sps:$4 sm:$0xff]   ;;  %v19945_v0 = vld [vmem:[#allocation8 + $0x690] ss:$24 sps:$4 sm:$0xff]  }
 0x3c7   :  { %7809 = vmatprep.subr.bf16.mxu1 %v17903_v49  ;;  %15830 = vmatprep.subr.bf16.mxu0 %v19920_v52  ;;  %v868_v49 = vld [vmem:[#allocation5 + $0x1828] sm:$0xff]  ;;  %v8758_v52 = vmul.f32 %v21577_v41, %v8734_v44  ;;  %v19950_v41 = vld [vmem:[#allocation8 + $0x6c4] ss:$24 sps:$4 sm:$0xff]  }
 0x3c8   :  { %v18047_v8 = vcombine.high %v868_v49, %v880_v50  ;;  %v18046_v62 = vcombine.low %v868_v49, %v880_v50  ;;  %v1024_v49 = vld [vmem:[#allocation5 + $0x1d08] sm:$0xff]  ;;  %v22029_v50 = vsub.s32 4, %v21934_v5 }
 0x3c9   :  { %v8782_v20 = vadd.f32 %v8758_v52, %v8734_v44 }
 0x3ca   :  { %7810 = vmatpush1.bf16.msra.mxu1 %v17902_v3  ;;  %15831 = vmatpush1.bf16.msra.mxu0 %v19918_v60  ;;  %v8779_v3 = vadd.f32 %v8755_v47, %v8731_v42  ;;  %v892_v60 = vld [vmem:[#allocation5 + $0x18e8] sm:$0xff] }
 0x3cb   :  { %7811 = vmatprep.subr.bf16.mxu1 %v17927_v61  ;;  %15832 = vmatprep.subr.bf16.mxu0 %v19923_v43  ;;  %v904_v61 = vld [vmem:[#allocation5 + $0x1948] sm:$0xff]  ;;  %v19936_v43 = vld [vmem:[#allocation8 + $0x600] ss:$24 sps:$4 sm:$0xff]  }
 0x3cc   :  { %v22020_v63 = vpack.c.bf16 %v8779_v3, %v8779_v3  ;;  %v18071_v1 = vcombine.high %v892_v60, %v904_v61  ;;  %v18070_v13 = vcombine.low %v892_v60, %v904_v61  ;;  %v988_v42 = vld [vmem:[#allocation5 + $0x1be8] sm:$0xff] }
 0x3cd   :  { %v19953_v47 = vld [vmem:[#allocation8 + $0x6f4] ss:$24 sps:$4 sm:$0xff]  }
 0x3ce   :  { %7812 = vmatpush1.bf16.msra.mxu1 %v17926_v31  ;;  %15833 = vmatpush1.bf16.msra.mxu0 %v19921_v2  ;;  %v19941_v31 = vld [vmem:[#allocation8 + $0x634] ss:$24 sps:$4 sm:$0xff]  }
 0x3cf   :  { %7813 = vmatprep.subr.bf16.mxu1 %v17951_v6  ;;  %15834 = vmatprep.subr.bf16.mxu0 %v19926_v10  ;;  %v916_v2 = vld [vmem:[#allocation5 + $0x19a8] sm:$0xff]  ;;  %v22023_v10 = vpack.c.bf16 %v8782_v20, %v8782_v20 }
 0x3d0   :  { %v928_v6 = vld [vmem:[#allocation5 + $0x1a08] sm:$0xff] }
 0x3d1   :  { %v18094_v15 = vcombine.low %v916_v2, %v928_v6  ;;  %v1036_v20 = vld [vmem:[#allocation5 + $0x1d68] sm:$0xff] }
 0x3d2   :  { %7814 = vmatpush1.bf16.msra.mxu1 %v17950_v27  ;;  %15835 = vmatpush1.bf16.msra.mxu0 %v19924_v26  ;;  %v18095_v27 = vcombine.high %v916_v2, %v928_v6  ;;  %v19944_v26 = vld [vmem:[#allocation8 + $0x664] ss:$24 sps:$4 sm:$0xff]   ;;  %v1048_v60 = vld [vmem:[#allocation5 + $0x1dc8] sm:$0xff] }
 0x3d3   :  { %7815 = vmatprep.subr.bf16.mxu1 %v17975_v29  ;;  %15836 = vmatprep.subr.bf16.mxu0 %v19929_v30  ;;  %v940_v29 = vld [vmem:[#allocation5 + $0x1a68] sm:$0xff] }
 0x3d4   :  { %v952_v30 = vld [vmem:[#allocation5 + $0x1ac8] sm:$0xff] }
 0x3d5   :  { %v18118_v39 = vcombine.low %v940_v29, %v952_v30  ;;  %v1060_v2 = vld [vmem:[#allocation5 + $0x1e28] sm:$0xff] }
 0x3d6   :  { %7816 = vmatpush1.bf16.msra.mxu1 %v17974_v35  ;;  %15837 = vmatpush1.bf16.msra.mxu0 %v19927_v36  ;;  %v18119_v35 = vcombine.high %v940_v29, %v952_v30  ;;  %v19947_v36 = vld [vmem:[#allocation8 + $0x694] ss:$24 sps:$4 sm:$0xff]  }
 0x3d7   :  { %7817 = vmatprep.subr.bf16.mxu1 %v17999_v14  ;;  %15838 = vmatprep.subr.bf16.mxu0 %v19932_v37  ;;  %v964_v14 = vld [vmem:[#allocation5 + $0x1b28] sm:$0xff] }
 0x3d8   :  { %v976_v37 = vld [vmem:[#allocation5 + $0x1b88] sm:$0xff] }
 0x3d9   :  { %v18143_v40 = vcombine.high %v964_v14, %v976_v37  ;;  %v18142_v44 = vcombine.low %v964_v14, %v976_v37  ;;  %v1072_v6 = vld [vmem:[#allocation5 + $0x1e88] sm:$0xff] }
 0x3da   :  { %7818 = vmatpush1.bf16.msra.mxu1 %v17998_v18  ;;  %15839 = vmatpush1.bf16.msra.mxu0 %v19930_v45  ;;  %v1000_v18 = vld [vmem:[#allocation5 + $0x1c48] sm:$0xff]  ;;  %v19948_v45 = vld [vmem:[#allocation8 + $0x6c0] ss:$24 sps:$4 sm:$0xff]  }
 0x3db   :  { %7819 = vmatprep.subr.bf16.mxu1 %v18023_v46  ;;  %15840 = vmatprep.subr.bf16.mxu0 %v19935_v48  ;;  %v18167_v46 = vcombine.high %v988_v42, %v1000_v18  ;;  %v1012_v48 = vld [vmem:[#allocation5 + $0x1ca8] sm:$0xff]  ;;  %v18166_v52 = vcombine.low %v988_v42, %v1000_v18  ;;  %v19968_v18 = vld [vmem:[#allocation8 + $0x7e4] ss:$24 sps:$4 sm:$0xff]  }
 0x3dc   :  { %v18191_v3 = vcombine.high %v1012_v48, %v1024_v49  ;;  %v18190_v61 = vcombine.low %v1012_v48, %v1024_v49  ;;  %v1084_v29 = vld [vmem:[#allocation5 + $0x1ee8] sm:$0xff]  ;;  %v19966_v48 = vld [vmem:[#allocation8 + $0x7e0] ss:$24 sps:$4 sm:$0xff]  }
 0x3dd   :  { %v1096_v30 = vld [vmem:[#allocation5 + $0x1f48] sm:$0xff] }
 0x3de   :  { %7820 = vmatpush1.bf16.msra.mxu1 %v18022_v53  ;;  %15841 = vmatpush1.bf16.msra.mxu0 %v19933_v54  ;;  %v22031_v53 = vld [vmem:[#allocation7] sm:$0xff]  ;;  %v1108_v37 = vld [vmem:[#allocation5 + $0x1fa8] sm:$0xff] }
 0x3df   :  { %7830 = vmatprep.subr.bf16.mxu1 %v18047_v8  ;;  %15851 = vmatprep.subr.bf16.mxu0 %v19938_v56  ;;  %v1272_v54 = vrot.slane %v22031_v53, %v22029_v50  ;;  %v19951_v8 = vld [vmem:[#allocation8 + $0x6f0] ss:$24 sps:$4 sm:$0xff]   ;;  %v19956_v56 = vld [vmem:[#allocation8 + $0x724] ss:$24 sps:$4 sm:$0xff]   ;;  %v19965_v14 = vld [vmem:[#allocation8 + $0x7b4] ss:$24 sps:$4 sm:$0xff]  }
 0x3e1   :  { %7822 = vmatmul.mubr.bf16.vlgmr.msra.gmra.mrb[16].mxu1 %v21872_v25  ;;  %15843 = vmatmul.mubr.bf16.vlgmr.msra.gmra.mrb[16].mxu0 %v22020_v63 }
 0x3e2   :  { %7831 = vmatpush1.bf16.msra.mxu1 %v18046_v62  ;;  %15852 = vmatpush1.bf16.msra.mxu0 %v19936_v43  ;;  %v22036_v62 = vadd.f32 %v21966_v9, %v1272_v54  ;;  %v19954_v43 = vld [vmem:[#allocation8 + $0x720] ss:$24 sps:$4 sm:$0xff]   ;;  %v19962_v9 = vld [vmem:[#allocation8 + $0x784] ss:$24 sps:$4 sm:$0xff]   ;;  %v1156_v54 = vld [vmem:[#allocation5 + $0x2128] sm:$0xff] }
 0x3e3   :  { %15883 = vmatprep.mubr.bf16.mxu0 %v22023_v10  ;;  %7832 = vmatprep.subr.bf16.mxu1 %v18071_v1  ;;  %v18215_v1 = vcombine.high %v1036_v20, %v1048_v60 }
 0x3e4   :  { %15853 = vmatprep.subr.bf16.mxu0 %v19941_v31  ;;  %7862 = vmatprep.mubr.bf16.mxu1 %v21874_v34  ;;  %v19959_v31 = vld [vmem:[#allocation8 + $0x754] ss:$24 sps:$4 sm:$0xff]  }
 0x3e6   :  { %7833 = vmatpush1.bf16.msra.mxu1 %v18070_v13  ;;  %15854 = vmatpush1.bf16.msra.mxu0 %v19939_v21  ;;  %v18214_v13 = vcombine.low %v1036_v20, %v1048_v60  ;;  %v8613_v21 = vmul.f32 %v22036_v62, %v22036_v62  ;;  %v19974_v60 = vld [vmem:[#allocation8 + $0x844] ss:$24 sps:$4 sm:$0xff]  }
 0x3e7   :  { %7834 = vmatprep.subr.bf16.mxu1 %v18095_v27  ;;  %15855 = vmatprep.subr.bf16.mxu0 %v19944_v26  ;;  %v19957_v27 = vld [vmem:[#allocation8 + $0x750] ss:$24 sps:$4 sm:$0xff]   ;;  %v18239_v26 = vcombine.high %v1060_v2, %v1072_v6 }
 0x3ea   :  { %7835 = vmatpush1.bf16.msra.mxu1 %v18094_v15  ;;  %15856 = vmatpush1.bf16.msra.mxu0 %v19942_v32  ;;  %v18238_v15 = vcombine.low %v1060_v2, %v1072_v6  ;;  %v8637_v32 = vmul.f32 0.035677407, %v8613_v21  ;;  %v19977_v6 = vld [vmem:[#allocation8 + $0x874] ss:$24 sps:$4 sm:$0xff]  }
 0x3eb   :  { %7836 = vmatprep.subr.bf16.mxu1 %v18119_v35  ;;  %15857 = vmatprep.subr.bf16.mxu0 %v19947_v36  ;;  %v19960_v35 = vld [vmem:[#allocation8 + $0x780] ss:$24 sps:$4 sm:$0xff]   ;;  %v18263_v36 = vcombine.high %v1084_v29, %v1096_v30  ;;  %v1216_v21 = vld [vmem:[#allocation5 + $0x2308] sm:$0xff] }
 0x3ee   :  { %7837 = vmatpush1.bf16.msra.mxu1 %v18118_v39  ;;  %15858 = vmatpush1.bf16.msra.mxu0 %v19945_v0  ;;  %v1120_v39 = vld [vmem:[#allocation5 + $0x2008] sm:$0xff]  ;;  %v18262_v0 = vcombine.low %v1084_v29, %v1096_v30  ;;  %v19980_v29 = vld [vmem:[#allocation8 + $0x8a4] ss:$24 sps:$4 sm:$0xff]  }
 0x3ef   :  { %7838 = vmatprep.subr.bf16.mxu1 %v18143_v40  ;;  %15859 = vmatprep.subr.bf16.mxu0 %v19950_v41  ;;  %v8661_v40 = vadd.f32 0.7978846, %v8637_v32  ;;  %v19963_v41 = vld [vmem:[#allocation8 + $0x7b0] ss:$24 sps:$4 sm:$0xff]   ;;  %v18287_v42 = vcombine.high %v1108_v37, %v1120_v39 }
 0x3f0   :  { %v1228_v30 = vld [vmem:[#allocation5 + $0x2368] sm:$0xff] }
 0x3f2   :  { %7839 = vmatpush1.bf16.msra.mxu1 %v18142_v44  ;;  %15860 = vmatpush1.bf16.msra.mxu0 %v19948_v45  ;;  %v1132_v44 = vld [vmem:[#allocation5 + $0x2068] sm:$0xff] }
 0x3f3   :  { %7840 = vmatprep.subr.bf16.mxu1 %v18167_v46  ;;  %15861 = vmatprep.subr.bf16.mxu0 %v19953_v47  ;;  %v1144_v45 = vld [vmem:[#allocation5 + $0x20c8] sm:$0xff]  ;;  %v18286_v46 = vcombine.low %v1108_v37, %v1120_v39  ;;  %v8685_v47 = vmul.f32 %v22036_v62, %v8661_v40  ;;  %v102_v40 = vld [vmem:[#allocation5 + $0x38] sm:$0xff] }
 0x3f4   :  { %v18311_v49 = vcombine.high %v1132_v44, %v1144_v45 }
 0x3f5   :  { %21578 = vtanh.f32 %v8685_v47  ;;  %v138_v47 = vld [vmem:[#allocation5 + $0x158] sm:$0xff] }
 0x3f6   :  { %7841 = vmatpush1.bf16.msra.mxu1 %v18166_v52  ;;  %15862 = vmatpush1.bf16.msra.mxu0 %v19951_v8  ;;  %v19971_v52 = vld [vmem:[#allocation8 + $0x814] ss:$24 sps:$4 sm:$0xff]  }
 0x3f7   :  { %7842 = vmatprep.subr.bf16.mxu1 %v18191_v3  ;;  %15863 = vmatprep.subr.bf16.mxu0 %v19956_v56  ;;  %v1168_v8 = vld [vmem:[#allocation5 + $0x2188] sm:$0xff]  ;;  %v18310_v3 = vcombine.low %v1132_v44, %v1144_v45 }
 0x3f8   :  { %v19969_v56 = vld [vmem:[#allocation8 + $0x810] ss:$24 sps:$4 sm:$0xff]   ;;  %v18335_v20 = vcombine.high %v1156_v54, %v1168_v8 }
 0x3fa   :  { %7843 = vmatpush1.bf16.msra.mxu1 %v18190_v61  ;;  %15864 = vmatpush1.bf16.msra.mxu0 %v19954_v43  ;;  %v1180_v61 = vld [vmem:[#allocation5 + $0x21e8] sm:$0xff] }
 0x3fb   :  { %7844 = vmatprep.subr.bf16.mxu1 %v18215_v1  ;;  %15865 = vmatprep.subr.bf16.mxu0 %v19959_v31  ;;  %v1192_v43 = vld [vmem:[#allocation5 + $0x2248] sm:$0xff]  ;;  %v18334_v1 = vcombine.low %v1156_v54, %v1168_v8  ;;  %v19972_v31 = vld [vmem:[#allocation8 + $0x840] ss:$24 sps:$4 sm:$0xff]  }
 0x3fc   :  { %v18359_v2 = vcombine.high %v1180_v61, %v1192_v43  ;;  %v19989_v8 = vld [vmem:[#allocation8 + $0x934] ss:$24 sps:$4 sm:$0xff]  }
 0x3fe   :  { %7845 = vmatpush1.bf16.msra.mxu1 %v18214_v13  ;;  %15866 = vmatpush1.bf16.msra.mxu0 %v19957_v27  ;;  %v1204_v13 = vld [vmem:[#allocation5 + $0x22a8] sm:$0xff]  ;;  %v18358_v27 = vcombine.low %v1180_v61, %v1192_v43  ;;  %v19992_v43 = vld [vmem:[#allocation8 + $0x964] ss:$24 sps:$4 sm:$0xff]  }
 0x3ff   :  { %7846 = vmatprep.subr.bf16.mxu1 %v18239_v26  ;;  %15867 = vmatprep.subr.bf16.mxu0 %v19962_v9  ;;  %v19975_v26 = vld [vmem:[#allocation8 + $0x870] ss:$24 sps:$4 sm:$0xff]   ;;  %v18383_v9 = vcombine.high %v1204_v13, %v1216_v21  ;;  %v21579_v32 = vpop.eup %21578 }
 0x402   :  { %7847 = vmatpush1.bf16.msra.mxu1 %v18238_v15  ;;  %15868 = vmatpush1.bf16.msra.mxu0 %v19960_v35  ;;  %v1240_v15 = vld [vmem:[#allocation5 + $0x23c8] sm:$0xff]  ;;  %v8733_v35 = vmul.f32 0.5, %v22036_v62  ;;  %v19986_v62 = vld [vmem:[#allocation8 + $0x904] ss:$24 sps:$4 sm:$0xff]  }
 0x403   :  { %7848 = vmatprep.subr.bf16.mxu1 %v18263_v36  ;;  %15869 = vmatprep.subr.bf16.mxu0 %v19965_v14  ;;  %v18382_v36 = vcombine.low %v1204_v13, %v1216_v21  ;;  %v19978_v14 = vld [vmem:[#allocation8 + $0x8a0] ss:$24 sps:$4 sm:$0xff]   ;;  %v18407_v37 = vcombine.high %v1228_v30, %v1240_v15  ;;  %v19995_v21 = vld [vmem:[#allocation8 + $0x994] ss:$24 sps:$4 sm:$0xff]  }
 0x404   :  { %v8757_v39 = vmul.f32 %v21579_v32, %v8733_v35  ;;  %v222_v32 = vld [vmem:[#allocation5 + $0x3f8] sm:$0xff] }
 0x406   :  { %7849 = vmatpush1.bf16.msra.mxu1 %v18262_v0  ;;  %15870 = vmatpush1.bf16.msra.mxu0 %v19963_v41  ;;  %v19983_v0 = vld [vmem:[#allocation8 + $0x8d4] ss:$24 sps:$4 sm:$0xff]   ;;  %v114_v41 = vld [vmem:[#allocation5 + $0x98] sm:$0xff]  ;;  %v8781_v45 = vadd.f32 %v8757_v39, %v8733_v35  ;;  %v22051_v39 = vsub.s32 6, %v21934_v5 }
 0x407   :  { %7850 = vmatprep.subr.bf16.mxu1 %v18287_v42  ;;  %15871 = vmatprep.subr.bf16.mxu0 %v19968_v18  ;;  %v18406_v42 = vcombine.low %v1228_v30, %v1240_v15  ;;  %v19981_v18 = vld [vmem:[#allocation8 + $0x8d0] ss:$24 sps:$4 sm:$0xff]   ;;  %v17283_v44 = vcombine.high %v102_v40, %v114_v41  ;;  %v19998_v15 = vld [vmem:[#allocation8 + $0x9c4] ss:$24 sps:$4 sm:$0xff]  }
 0x408   :  { %v22042_v54 = vpack.c.bf16 %v8781_v45, %v8781_v45  ;;  %v234_v35 = vld [vmem:[#allocation5 + $0x458] sm:$0xff] }
 0x409   :  { %v17402_v45 = vcombine.low %v222_v32, %v234_v35 }
 0x40a   :  { %7851 = vmatpush1.bf16.msra.mxu1 %v18286_v46  ;;  %15872 = vmatpush1.bf16.msra.mxu0 %v19966_v48  ;;  %v126_v46 = vld [vmem:[#allocation5 + $0xf8] sm:$0xff]  ;;  %v17282_v48 = vcombine.low %v102_v40, %v114_v41  ;;  %v20001_v40 = vld [vmem:[#allocation8 + $0x9f4] ss:$24 sps:$4 sm:$0xff]  }
 0x40b   :  { %7852 = vmatprep.subr.bf16.mxu1 %v18311_v49  ;;  %15873 = vmatprep.subr.bf16.mxu0 %v19971_v52  ;;  %v19984_v49 = vld [vmem:[#allocation8 + $0x900] ss:$24 sps:$4 sm:$0xff]   ;;  %v17307_v52 = vcombine.high %v126_v46, %v138_v47 }
 0x40c   :  { %v246_v41 = vld [vmem:[#allocation5 + $0x4b8] sm:$0xff] }
 0x40e   :  { %7853 = vmatpush1.bf16.msra.mxu1 %v18310_v3  ;;  %15874 = vmatpush1.bf16.msra.mxu0 %v19969_v56  ;;  %v150_v3 = vld [vmem:[#allocation5 + $0x1b8] sm:$0xff] }
 0x40f   :  { %7854 = vmatprep.subr.bf16.mxu1 %v18335_v20  ;;  %15875 = vmatprep.subr.bf16.mxu0 %v19974_v60  ;;  %v162_v56 = vld [vmem:[#allocation5 + $0x218] sm:$0xff]  ;;  %v17306_v20 = vcombine.low %v126_v46, %v138_v47  ;;  %v19987_v60 = vld [vmem:[#allocation8 + $0x930] ss:$24 sps:$4 sm:$0xff]  }
 0x410   :  { %v17331_v61 = vcombine.high %v150_v3, %v162_v56  ;;  %v19999_v46 = vld [vmem:[#allocation8 + $0x9f0] ss:$24 sps:$4 sm:$0xff]  }
 0x412   :  { %7855 = vmatpush1.bf16.msra.mxu1 %v18334_v1  ;;  %15876 = vmatpush1.bf16.msra.mxu0 %v19972_v31  ;;  %v174_v1 = vld [vmem:[#allocation5 + $0x278] sm:$0xff] }
 0x413   :  { %7856 = vmatprep.subr.bf16.mxu1 %v18359_v2  ;;  %15877 = vmatprep.subr.bf16.mxu0 %v19977_v6  ;;  %v186_v31 = vld [vmem:[#allocation5 + $0x2d8] sm:$0xff]  ;;  %v17330_v2 = vcombine.low %v150_v3, %v162_v56 }
 0x414   :  { %v19990_v6 = vld [vmem:[#allocation8 + $0x960] ss:$24 sps:$4 sm:$0xff]   ;;  %v17355_v13 = vcombine.high %v174_v1, %v186_v31 }
 0x416   :  { %7857 = vmatpush1.bf16.msra.mxu1 %v18358_v27  ;;  %15878 = vmatpush1.bf16.msra.mxu0 %v19975_v26  ;;  %v198_v27 = vld [vmem:[#allocation5 + $0x338] sm:$0xff] }
 0x417   :  { %7858 = vmatprep.subr.bf16.mxu1 %v18383_v9  ;;  %15879 = vmatprep.subr.bf16.mxu0 %v19980_v29  ;;  %v210_v26 = vld [vmem:[#allocation5 + $0x398] sm:$0xff]  ;;  %v17354_v9 = vcombine.low %v174_v1, %v186_v31  ;;  %v19993_v29 = vld [vmem:[#allocation8 + $0x990] ss:$24 sps:$4 sm:$0xff]  }
 0x418   :  { %v17379_v30 = vcombine.high %v198_v27, %v210_v26  ;;  %v20002_v31 = vld [vmem:[#allocation8 + $0xa20] ss:$24 sps:$4 sm:$0xff]  }
 0x41a   :  { %7859 = vmatpush1.bf16.msra.mxu1 %v18382_v36  ;;  %15880 = vmatpush1.bf16.msra.mxu0 %v19978_v14  ;;  %v17378_v36 = vcombine.low %v198_v27, %v210_v26  ;;  %v22048_v14 = vsub.s32 7, %v21934_v5  ;;  %v20007_v27 = vld [vmem:[#allocation8 + $0xa54] ss:$24 sps:$4 sm:$0xff]   ;;  %v294_v26 = vld [vmem:[#allocation5 + $0x638] sm:$0xff] }
 0x41b   :  { %7860 = vmatprep.subr.bf16.mxu1 %v18407_v37  ;;  %15881 = vmatprep.subr.bf16.mxu0 %v19983_v0  ;;  %v19996_v37 = vld [vmem:[#allocation8 + $0x9c0] ss:$24 sps:$4 sm:$0xff]   ;;  %v17403_v0 = vcombine.high %v222_v32, %v234_v35  ;;  %v20005_v35 = vld [vmem:[#allocation8 + $0xa50] ss:$24 sps:$4 sm:$0xff]  }
 0x41e   :  { %7861 = vmatpush1.bf16.msra.mxu1 %v18406_v42  ;;  %15882 = vmatpush1.bf16.msra.mxu0 %v19981_v18  ;;  %v258_v42 = vld [vmem:[#allocation5 + $0x518] sm:$0xff]  ;;  %v22053_v18 = vld [vmem:[#allocation7 + $0x8] sm:$0xff] }
 0x41f   :  { %7994 = vmatprep.subr.bf16.mxu1 %v17283_v44  ;;  %15892 = vmatprep.subr.bf16.mxu0 %v19986_v62  ;;  %v1284_v44 = vrot.slane %v22031_v53, %v22048_v14  ;;  %v1280_v62 = vrot.slane %v22031_v53, %v22051_v39  ;;  %v17427_v5 = vcombine.high %v246_v41, %v258_v42 }
 0x420   :  { %v1292_v47 = vrot.slane %v22053_v18, %v21937_v17 }
 0x421   :  { %7863 = vmatmul.mubr.bf16.vlgmr.msra.gmra.mrb[16].mxu1 %v21880_v38  ;;  %15884 = vmatmul.mubr.bf16.vlgmr.msra.gmra.mrb[16].mxu0 %v22042_v54 }
 0x422   :  { %7995 = vmatpush1.bf16.msra.mxu1 %v17282_v48  ;;  %15893 = vmatpush1.bf16.msra.mxu0 %v19984_v49  ;;  %v20004_v49 = vld [vmem:[#allocation8 + $0xa24] ss:$24 sps:$4 sm:$0xff]  }
 0x423   :  { %7996 = vmatprep.subr.bf16.mxu1 %v17307_v52  ;;  %15894 = vmatprep.subr.bf16.mxu0 %v19989_v8  ;;  %v270_v52 = vld [vmem:[#allocation5 + $0x578] sm:$0xff] }
 0x424   :  { %8026 = vmatprep.mubr.bf16.mxu1 %v21860_v57  ;;  %v282_v8 = vld [vmem:[#allocation5 + $0x5d8] sm:$0xff] }
 0x426   :  { %7997 = vmatpush1.bf16.msra.mxu1 %v17306_v20  ;;  %15895 = vmatpush1.bf16.msra.mxu0 %v19987_v60 }
 0x427   :  { %7998 = vmatprep.subr.bf16.mxu1 %v17331_v61  ;;  %15896 = vmatprep.subr.bf16.mxu0 %v19992_v43  ;;  %v17426_v61 = vcombine.low %v246_v41, %v258_v42  ;;  %v330_v41 = vld [vmem:[#allocation5 + $0x758] sm:$0xff] }
 0x42a   :  { %7999 = vmatpush1.bf16.msra.mxu1 %v17330_v2  ;;  %15897 = vmatpush1.bf16.msra.mxu0 %v19990_v6  ;;  %v17451_v2 = vcombine.high %v270_v52, %v282_v8 }
 0x42b   :  { %8000 = vmatprep.subr.bf16.mxu1 %v17355_v13  ;;  %15898 = vmatprep.subr.bf16.mxu0 %v19995_v21  ;;  %v22070_v13 = vadd.f32 %v21904_v7, %v1292_v47  ;;  %v20013_v47 = vld [vmem:[#allocation8 + $0xab4] ss:$24 sps:$4 sm:$0xff]  }
 0x42d   :  { %v8618_v7 = vmul.f32 %v22070_v13, %v22070_v13 }
 0x42e   :  { %8001 = vmatpush1.bf16.msra.mxu1 %v17354_v9  ;;  %15899 = vmatpush1.bf16.msra.mxu0 %v19993_v29  ;;  %v306_v9 = vld [vmem:[#allocation5 + $0x698] sm:$0xff] }
 0x42f   :  { %8002 = vmatprep.subr.bf16.mxu1 %v17379_v30  ;;  %15900 = vmatprep.subr.bf16.mxu0 %v19998_v15  ;;  %v17450_v15 = vcombine.low %v270_v52, %v282_v8 }
 0x432   :  { %8003 = vmatpush1.bf16.msra.mxu1 %v17378_v36  ;;  %15901 = vmatpush1.bf16.msra.mxu0 %v19996_v37  ;;  %v17475_v36 = vcombine.high %v294_v26, %v306_v9 }
 0x433   :  { %8004 = vmatprep.subr.bf16.mxu1 %v17403_v0  ;;  %15902 = vmatprep.subr.bf16.mxu0 %v20001_v40  ;;  %v20010_v0 = vld [vmem:[#allocation8 + $0xa84] ss:$24 sps:$4 sm:$0xff]  }
 0x434   :  { %v7618_v48 = vpop.f32.mrb[12].mxu1  ;;  %v22061_v56 = vpop.f32.mrb[12].mxu0  ;;  %v318_v40 = vld [vmem:[#allocation5 + $0x6f8] sm:$0xff] }
 0x435   :  { %v7620_v3 = vpop.f32.mrb[13].mxu1  ;;  %v22065_v53 = vpop.f32.mrb[13].mxu0  ;;  %v22067_v43 = vadd.f32 %v7618_v48, %v1280_v62  ;;  %v20008_v62 = vld [vmem:[#allocation8 + $0xa80] ss:$24 sps:$4 sm:$0xff]   ;;  %v17498_v52 = vcombine.low %v318_v40, %v330_v41 }
 0x436   :  { %v22063_v20 = vadd.f32 %v7620_v3, %v1284_v44  ;;  %v7622_v60 = vpop.f32.mrb[14].mxu1  ;;  %8005 = vmatpush1.bf16.msra.mxu1 %v17402_v45  ;;  %15903 = vmatpush1.bf16.msra.mxu0 %v19999_v46  ;;  %v8483_v6 = vpop.f32.mrb[14].mxu0  ;;  %v17474_v44 = vcombine.low %v294_v26, %v306_v9  ;;  %v17499_v46 = vcombine.high %v318_v40, %v330_v41  ;;  %v342_v48 = vld [vmem:[#allocation5 + $0x7b8] sm:$0xff]  ;;  %v20011_v3 = vld [vmem:[#allocation8 + $0xab0] ss:$24 sps:$4 sm:$0xff]  }
 0x437   :  { %v7623_v1 = vpop.f32.mrb[15].mxu1  ;;  %8006 = vmatprep.subr.bf16.mxu1 %v17427_v5  ;;  %15904 = vmatprep.subr.bf16.mxu0 %v20004_v49  ;;  %v8484_v29 = vpop.f32.mrb[15].mxu0  ;;  %v8615_v32 = vmul.f32 %v22067_v43, %v22067_v43  ;;  %v8642_v5 = vmul.f32 0.035677407, %v8618_v7  ;;  %v354_v49 = vld [vmem:[#allocation5 + $0x818] sm:$0xff] }
 0x438   :  { %v8616_v21 = vmul.f32 %v22063_v20, %v22063_v20  ;;  %v17523_v60 = vcombine.high %v342_v48, %v354_v49  ;;  %v20016_v1 = vld [vmem:[#allocation8 + $0xae4] ss:$24 sps:$4 sm:$0xff]   ;;  %v17522_v6 = vcombine.low %v342_v48, %v354_v49  ;;  %v20019_v29 = vld [vmem:[#allocation8 + $0xb14] ss:$24 sps:$4 sm:$0xff]   ;;  %v20017_v7 = vld [vmem:[#allocation8 + $0xb10] ss:$24 sps:$4 sm:$0xff]  }
 0x439   :  { %v8639_v45 = vmul.f32 0.035677407, %v8615_v32  ;;  %v8736_v32 = vmul.f32 0.5, %v22063_v20  ;;  %v20022_v40 = vld [vmem:[#allocation8 + $0xb44] ss:$24 sps:$4 sm:$0xff]  }
 0x43a   :  { %v8640_v30 = vmul.f32 0.035677407, %v8616_v21  ;;  %8007 = vmatpush1.bf16.msra.mxu1 %v17426_v61  ;;  %15905 = vmatpush1.bf16.msra.mxu0 %v20002_v31  ;;  %v8666_v61 = vadd.f32 0.7978846, %v8642_v5  ;;  %v366_v31 = vld [vmem:[#allocation5 + $0x878] sm:$0xff] }
 0x43b   :  { %8008 = vmatprep.subr.bf16.mxu1 %v17451_v2  ;;  %15906 = vmatprep.subr.bf16.mxu0 %v20007_v27  ;;  %v8663_v8 = vadd.f32 0.7978846, %v8639_v45  ;;  %v378_v2 = vld [vmem:[#allocation5 + $0x8d8] sm:$0xff]  ;;  %v20025_v5 = vld [vmem:[#allocation8 + $0xb74] ss:$24 sps:$4 sm:$0xff]  }
 0x43c   :  { %v8664_v37 = vadd.f32 0.7978846, %v8640_v30  ;;  %v20014_v27 = vld [vmem:[#allocation8 + $0xae0] ss:$24 sps:$4 sm:$0xff]   ;;  %v17547_v26 = vcombine.high %v366_v31, %v378_v2  ;;  %v8690_v9 = vmul.f32 %v22070_v13, %v8666_v61 }
 0x43d   :  { %v8687_v21 = vmul.f32 %v22067_v43, %v8663_v8  ;;  %v390_v30 = vld [vmem:[#allocation5 + $0x938] sm:$0xff] }
 0x43e   :  { %v8688_v42 = vmul.f32 %v22063_v20, %v8664_v37  ;;  %8009 = vmatpush1.bf16.msra.mxu1 %v17450_v15  ;;  %15907 = vmatpush1.bf16.msra.mxu0 %v20005_v35  ;;  %v402_v15 = vld [vmem:[#allocation5 + $0x998] sm:$0xff] }
 0x43f   :  { %8010 = vmatprep.subr.bf16.mxu1 %v17475_v36  ;;  %15908 = vmatprep.subr.bf16.mxu0 %v20010_v0  ;;  %v17546_v36 = vcombine.low %v366_v31, %v378_v2  ;;  %v17571_v37 = vcombine.high %v390_v30, %v402_v15  ;;  %v414_v41 = vld [vmem:[#allocation5 + $0x9f8] sm:$0xff]  ;;  %v17570_v45 = vcombine.low %v390_v30, %v402_v15  ;;  %v8738_v31 = vmul.f32 0.5, %v22070_v13  ;;  %v20029_v13 = vld [vmem:[#allocation8 + $0xbd0] ss:$24 sps:$4 sm:$0xff]  }
 0x440   :  { %21580 = vtanh.f32 %v8688_v42  ;;  %v426_v42 = vld [vmem:[#allocation5 + $0xa58] sm:$0xff] }
 0x441   :  { %21582 = vtanh.f32 %v8687_v21  ;;  %v20020_v20 = vld [vmem:[#allocation8 + $0xb40] ss:$24 sps:$4 sm:$0xff]   ;;  %v17594_v49 = vcombine.low %v414_v41, %v426_v42 }
 0x442   :  { %8011 = vmatpush1.bf16.msra.mxu1 %v17474_v44  ;;  %15909 = vmatpush1.bf16.msra.mxu0 %v20008_v62  ;;  %21584 = vtanh.f32 %v8690_v9  ;;  %v450_v48 = vld [vmem:[#allocation5 + $0xb18] sm:$0xff] }
 0x443   :  { %8012 = vmatprep.subr.bf16.mxu1 %v17499_v46  ;;  %15910 = vmatprep.subr.bf16.mxu0 %v20013_v47  ;;  %v17595_v46 = vcombine.high %v414_v41, %v426_v42  ;;  %v438_v47 = vld [vmem:[#allocation5 + $0xab8] sm:$0xff] }
 0x444   :  { %v17619_v8 = vcombine.high %v438_v47, %v450_v48  ;;  %v474_v61 = vld [vmem:[#allocation5 + $0xbd8] sm:$0xff]  ;;  %v17618_v21 = vcombine.low %v438_v47, %v450_v48 }
 0x445   :  { %v486_v30 = vld [vmem:[#allocation5 + $0xc38] sm:$0xff] }
 0x446   :  { %8013 = vmatpush1.bf16.msra.mxu1 %v17498_v52  ;;  %15911 = vmatpush1.bf16.msra.mxu0 %v20011_v3  ;;  %v20023_v52 = vld [vmem:[#allocation8 + $0xb70] ss:$24 sps:$4 sm:$0xff]   ;;  %v20028_v3 = vld [vmem:[#allocation8 + $0xba4] ss:$24 sps:$4 sm:$0xff]   ;;  %v20032_v42 = vld [vmem:[#allocation8 + $0xc00] ss:$24 sps:$4 sm:$0xff]  }
 0x447   :  { %8014 = vmatprep.subr.bf16.mxu1 %v17523_v60  ;;  %15912 = vmatprep.subr.bf16.mxu0 %v20016_v1  ;;  %v462_v60 = vld [vmem:[#allocation5 + $0xb78] sm:$0xff] }
 0x448   :  { %v498_v15 = vld [vmem:[#allocation5 + $0xc98] sm:$0xff] }
 0x449   :  { %v17666_v41 = vcombine.low %v486_v30, %v498_v15 }
 0x44a   :  { %v21581_v35 = vpop.eup %21580  ;;  %8015 = vmatpush1.bf16.msra.mxu1 %v17522_v6  ;;  %15913 = vmatpush1.bf16.msra.mxu0 %v20014_v27  ;;  %v8735_v6 = vmul.f32 0.5, %v22067_v43  ;;  %v20026_v27 = vld [vmem:[#allocation8 + $0xba0] ss:$24 sps:$4 sm:$0xff]   ;;  %v20034_v43 = vld [vmem:[#allocation8 + $0xc04] ss:$24 sps:$4 sm:$0xff]  }
 0x44b   :  { %8016 = vmatprep.subr.bf16.mxu1 %v17547_v26  ;;  %v8760_v0 = vmul.f32 %v21581_v35, %v8736_v32  ;;  %15914 = vmatprep.subr.bf16.mxu0 %v20019_v29  ;;  %v21583_v1 = vpop.eup %21582  ;;  %v17643_v26 = vcombine.high %v462_v60, %v474_v61  ;;  %v20031_v29 = vld [vmem:[#allocation8 + $0xbd4] ss:$24 sps:$4 sm:$0xff]   ;;  %v17642_v35 = vcombine.low %v462_v60, %v474_v61  ;;  %v570_v60 = vld [vmem:[#allocation5 + $0xed8] sm:$0xff] }
 0x44c   :  { %v21585_v2 = vpop.eup %21584  ;;  %v8759_v9 = vmul.f32 %v21583_v1, %v8735_v6  ;;  %v20038_v1 = vld [vmem:[#allocation8 + $0xc60] ss:$24 sps:$4 sm:$0xff]  }
 0x44d   :  { %v8784_v44 = vadd.f32 %v8760_v0, %v8736_v32  ;;  %v8762_v32 = vmul.f32 %v21585_v2, %v8738_v31  ;;  %v510_v0 = vld [vmem:[#allocation5 + $0xcf8] sm:$0xff]  ;;  %v20043_v2 = vld [vmem:[#allocation8 + $0xc94] ss:$24 sps:$4 sm:$0xff]  }
 0x44e   :  { %8017 = vmatpush1.bf16.msra.mxu1 %v17546_v36  ;;  %15915 = vmatpush1.bf16.msra.mxu0 %v20017_v7  ;;  %v17667_v36 = vcombine.high %v486_v30, %v498_v15  ;;  %v8783_v7 = vadd.f32 %v8759_v9, %v8735_v6  ;;  %v582_v6 = vld [vmem:[#allocation5 + $0xf38] sm:$0xff] }
 0x44f   :  { %8018 = vmatprep.subr.bf16.mxu1 %v17571_v37  ;;  %v22082_v62 = vpack.c.bf16 %v8784_v44, %v8784_v44  ;;  %15916 = vmatprep.subr.bf16.mxu0 %v20022_v40  ;;  %v8786_v37 = vadd.f32 %v8762_v32, %v8738_v31  ;;  %v522_v40 = vld [vmem:[#allocation5 + $0xd58] sm:$0xff] }
 0x450   :  { %v22087_v44 = vpack.c.bf16 %v8783_v7, %v8783_v7  ;;  %v17690_v48 = vcombine.low %v510_v0, %v522_v40  ;;  %v606_v30 = vld [vmem:[#allocation5 + $0xff8] sm:$0xff] }
 0x451   :  { %15924 = vmatprep.mubr.bf16.mxu0 %v22082_v62  ;;  %v22090_v47 = vpack.c.bf16 %v8786_v37, %v8786_v37  ;;  %v618_v15 = vld [vmem:[#allocation5 + $0x1058] sm:$0xff] }
 0x452   :  { %8019 = vmatpush1.bf16.msra.mxu1 %v17570_v45  ;;  %15917 = vmatpush1.bf16.msra.mxu0 %v20020_v20  ;;  %v17691_v45 = vcombine.high %v510_v0, %v522_v40  ;;  %v20037_v20 = vld [vmem:[#allocation8 + $0xc34] ss:$24 sps:$4 sm:$0xff]   ;;  %v630_v7 = vld [vmem:[#allocation5 + $0x10b8] sm:$0xff]  ;;  %v17786_v37 = vcombine.low %v606_v30, %v618_v15  ;;  %v1288_v0 = vrot.slane %v22053_v18, %v21957_v55  ;;  %v20047_v40 = vld [vmem:[#allocation8 + $0xcf0] ss:$24 sps:$4 sm:$0xff]  }
 0x453   :  { %8020 = vmatprep.subr.bf16.mxu1 %v17595_v46  ;;  %15918 = vmatprep.subr.bf16.mxu0 %v20025_v5  ;;  %v534_v46 = vld [vmem:[#allocation5 + $0xdb8] sm:$0xff] }
 0x454   :  { %v546_v5 = vld [vmem:[#allocation5 + $0xe18] sm:$0xff] }
 0x455   :  { %v17714_v61 = vcombine.low %v534_v46, %v546_v5 }
 0x456   :  { %8021 = vmatpush1.bf16.msra.mxu1 %v17594_v49  ;;  %15919 = vmatpush1.bf16.msra.mxu0 %v20023_v52  ;;  %v20035_v49 = vld [vmem:[#allocation8 + $0xc30] ss:$24 sps:$4 sm:$0xff]   ;;  %v17715_v52 = vcombine.high %v534_v46, %v546_v5  ;;  %v22098_v5 = vadd.f32 %v21902_v4, %v1288_v0  ;;  %v20058_v4 = vld [vmem:[#allocation8 + $0xd84] ss:$24 sps:$4 sm:$0xff]  }
 0x457   :  { %8022 = vmatprep.subr.bf16.mxu1 %v17619_v8  ;;  %15920 = vmatprep.subr.bf16.mxu0 %v20028_v3  ;;  %v20040_v8 = vld [vmem:[#allocation8 + $0xc64] ss:$24 sps:$4 sm:$0xff]  }
 0x458   :  { %v558_v3 = vld [vmem:[#allocation5 + $0xe78] sm:$0xff] }
 0x459   :  { %v17739_v31 = vcombine.high %v558_v3, %v570_v60 }
 0x45a   :  { %8023 = vmatpush1.bf16.msra.mxu1 %v17618_v21  ;;  %15921 = vmatpush1.bf16.msra.mxu0 %v20026_v27  ;;  %v594_v21 = vld [vmem:[#allocation5 + $0xf98] sm:$0xff]  ;;  %v17738_v27 = vcombine.low %v558_v3, %v570_v60 }
 0x45b   :  { %8024 = vmatprep.subr.bf16.mxu1 %v17643_v26  ;;  %15922 = vmatprep.subr.bf16.mxu0 %v20031_v29  ;;  %v20041_v26 = vld [vmem:[#allocation8 + $0xc90] ss:$24 sps:$4 sm:$0xff]   ;;  %v17763_v9 = vcombine.high %v582_v6, %v594_v21  ;;  %v20046_v29 = vld [vmem:[#allocation8 + $0xcc4] ss:$24 sps:$4 sm:$0xff]   ;;  %v17762_v32 = vcombine.low %v582_v6, %v594_v21 }
 0x45c   :  { %v690_v3 = vld [vmem:[#allocation5 + $0x1298] sm:$0xff] }
 0x45d   :  { %v714_v6 = vld [vmem:[#allocation5 + $0x1358] sm:$0xff] }
 0x45e   :  { %8025 = vmatpush1.bf16.msra.mxu1 %v17642_v35  ;;  %15923 = vmatpush1.bf16.msra.mxu0 %v20029_v13  ;;  %v20044_v35 = vld [vmem:[#allocation8 + $0xcc0] ss:$24 sps:$4 sm:$0xff]   ;;  %v17787_v13 = vcombine.high %v606_v30, %v618_v15 }
 0x45f   :  { %8035 = vmatprep.subr.bf16.mxu1 %v17667_v36  ;;  %15933 = vmatprep.subr.bf16.mxu0 %v20034_v43  ;;  %v20049_v36 = vld [vmem:[#allocation8 + $0xcf4] ss:$24 sps:$4 sm:$0xff]   ;;  %v642_v43 = vld [vmem:[#allocation5 + $0x1118] sm:$0xff] }
 0x460   :  { %v17810_v46 = vcombine.low %v630_v7, %v642_v43  ;;  %v726_v30 = vld [vmem:[#allocation5 + $0x13b8] sm:$0xff] }
 0x461   :  { %8027 = vmatmul.mubr.bf16.vlgmr.msra.gmra.mrb[20].mxu1 %v21864_v12  ;;  %15925 = vmatmul.mubr.bf16.vlgmr.msra.gmra.mrb[16].mxu0 %v22087_v44  ;;  %v738_v15 = vld [vmem:[#allocation5 + $0x1418] sm:$0xff] }
 0x462   :  { %8036 = vmatpush1.bf16.msra.mxu1 %v17666_v41  ;;  %15934 = vmatpush1.bf16.msra.mxu0 %v20032_v42  ;;  %v17811_v41 = vcombine.high %v630_v7, %v642_v43  ;;  %v20052_v42 = vld [vmem:[#allocation8 + $0xd24] ss:$24 sps:$4 sm:$0xff]   ;;  %v17906_v0 = vcombine.low %v726_v30, %v738_v15 }
 0x463   :  { %15965 = vmatprep.mubr.bf16.mxu0 %v22090_v47  ;;  %8037 = vmatprep.subr.bf16.mxu1 %v17691_v45  ;;  %v654_v45 = vld [vmem:[#allocation5 + $0x1178] sm:$0xff] }
 0x464   :  { %15935 = vmatprep.subr.bf16.mxu0 %v20037_v20  ;;  %8067 = vmatprep.mubr.bf16.mxu1 %v21866_v23  ;;  %v666_v20 = vld [vmem:[#allocation5 + $0x11d8] sm:$0xff] }
 0x465   :  { %v17834_v60 = vcombine.low %v654_v45, %v666_v20  ;;  %v20064_v7 = vld [vmem:[#allocation8 + $0xde4] ss:$24 sps:$4 sm:$0xff]  }
 0x466   :  { %8038 = vmatpush1.bf16.msra.mxu1 %v17690_v48  ;;  %15936 = vmatpush1.bf16.msra.mxu0 %v20035_v49  ;;  %v20050_v48 = vld [vmem:[#allocation8 + $0xd20] ss:$24 sps:$4 sm:$0xff]   ;;  %v17835_v49 = vcombine.high %v654_v45, %v666_v20  ;;  %v20067_v45 = vld [vmem:[#allocation8 + $0xe14] ss:$24 sps:$4 sm:$0xff]  }
 0x467   :  { %8039 = vmatprep.subr.bf16.mxu1 %v17715_v52  ;;  %15937 = vmatprep.subr.bf16.mxu0 %v20040_v8  ;;  %v20055_v52 = vld [vmem:[#allocation8 + $0xd54] ss:$24 sps:$4 sm:$0xff]   ;;  %v678_v8 = vld [vmem:[#allocation5 + $0x1238] sm:$0xff] }
 0x468   :  { %v17858_v21 = vcombine.low %v678_v8, %v690_v3  ;;  %v750_v43 = vld [vmem:[#allocation5 + $0x1478] sm:$0xff] }
 0x469   :  { %v774_v20 = vld [vmem:[#allocation5 + $0x1538] sm:$0xff] }
 0x46a   :  { %8040 = vmatpush1.bf16.msra.mxu1 %v17714_v61  ;;  %15938 = vmatpush1.bf16.msra.mxu0 %v20038_v1  ;;  %v8617_v61 = vmul.f32 %v22098_v5, %v22098_v5  ;;  %v20053_v1 = vld [vmem:[#allocation8 + $0xd50] ss:$24 sps:$4 sm:$0xff]  }
 0x46b   :  { %8041 = vmatprep.subr.bf16.mxu1 %v17739_v31  ;;  %15939 = vmatprep.subr.bf16.mxu0 %v20043_v2  ;;  %v17859_v31 = vcombine.high %v678_v8, %v690_v3  ;;  %v702_v2 = vld [vmem:[#allocation5 + $0x12f8] sm:$0xff] }
 0x46c   :  { %v20070_v8 = vld [vmem:[#allocation8 + $0xe44] ss:$24 sps:$4 sm:$0xff]  }
 0x46d   :  { %v798_v3 = vld [vmem:[#allocation5 + $0x15f8] sm:$0xff] }
 0x46e   :  { %8042 = vmatpush1.bf16.msra.mxu1 %v17738_v27  ;;  %15940 = vmatpush1.bf16.msra.mxu0 %v20041_v26  ;;  %v8641_v27 = vmul.f32 0.035677407, %v8617_v61  ;;  %v20056_v26 = vld [vmem:[#allocation8 + $0xd80] ss:$24 sps:$4 sm:$0xff]  }
 0x46f   :  { %8043 = vmatprep.subr.bf16.mxu1 %v17763_v9  ;;  %15941 = vmatprep.subr.bf16.mxu0 %v20046_v29  ;;  %v17883_v9 = vcombine.high %v702_v2, %v714_v6  ;;  %v20061_v29 = vld [vmem:[#allocation8 + $0xdb4] ss:$24 sps:$4 sm:$0xff]  }
 0x472   :  { %8044 = vmatpush1.bf16.msra.mxu1 %v17762_v32  ;;  %15942 = vmatpush1.bf16.msra.mxu0 %v20044_v35  ;;  %v17882_v32 = vcombine.low %v702_v2, %v714_v6  ;;  %v8665_v35 = vadd.f32 0.7978846, %v8641_v27  ;;  %v822_v2 = vld [vmem:[#allocation5 + $0x16b8] sm:$0xff]  ;;  %v20071_v27 = vld [vmem:[#allocation8 + $0xe70] ss:$24 sps:$4 sm:$0xff]  }
 0x473   :  { %8045 = vmatprep.subr.bf16.mxu1 %v17787_v13  ;;  %15943 = vmatprep.subr.bf16.mxu0 %v20049_v36  ;;  %v20059_v13 = vld [vmem:[#allocation8 + $0xdb0] ss:$24 sps:$4 sm:$0xff]   ;;  %v17907_v36 = vcombine.high %v726_v30, %v738_v15  ;;  %v834_v6 = vld [vmem:[#allocation5 + $0x1718] sm:$0xff] }
 0x474   :  { %v846_v30 = vld [vmem:[#allocation5 + $0x1778] sm:$0xff] }
 0x475   :  { %v858_v15 = vld [vmem:[#allocation5 + $0x17d8] sm:$0xff] }
 0x476   :  { %8046 = vmatpush1.bf16.msra.mxu1 %v17786_v37  ;;  %15944 = vmatpush1.bf16.msra.mxu0 %v20047_v40  ;;  %v762_v37 = vld [vmem:[#allocation5 + $0x14d8] sm:$0xff]  ;;  %v8689_v40 = vmul.f32 %v22098_v5, %v8665_v35  ;;  %v18002_v35 = vcombine.low %v822_v2, %v834_v6 }
 0x477   :  { %8047 = vmatprep.subr.bf16.mxu1 %v17811_v41  ;;  %15945 = vmatprep.subr.bf16.mxu0 %v20052_v42  ;;  %v20062_v41 = vld [vmem:[#allocation8 + $0xde0] ss:$24 sps:$4 sm:$0xff]   ;;  %v17931_v42 = vcombine.high %v750_v43, %v762_v37 }
 0x478   :  { %21586 = vtanh.f32 %v8689_v40  ;;  %v18026_v40 = vcombine.low %v846_v30, %v858_v15 }
 0x47a   :  { %8048 = vmatpush1.bf16.msra.mxu1 %v17810_v46  ;;  %15946 = vmatpush1.bf16.msra.mxu0 %v20050_v48  ;;  %v786_v46 = vld [vmem:[#allocation5 + $0x1598] sm:$0xff]  ;;  %v17930_v48 = vcombine.low %v750_v43, %v762_v37  ;;  %v20079_v43 = vld [vmem:[#allocation8 + $0xed4] ss:$24 sps:$4 sm:$0xff]  }
 0x47b   :  { %8049 = vmatprep.subr.bf16.mxu1 %v17835_v49  ;;  %15947 = vmatprep.subr.bf16.mxu0 %v20055_v52  ;;  %v20065_v49 = vld [vmem:[#allocation8 + $0xe10] ss:$24 sps:$4 sm:$0xff]   ;;  %v17955_v52 = vcombine.high %v774_v20, %v786_v46  ;;  %v17954_v61 = vcombine.low %v774_v20, %v786_v46  ;;  %v870_v37 = vld [vmem:[#allocation5 + $0x1838] sm:$0xff] }
 0x47c   :  { %v906_v20 = vld [vmem:[#allocation5 + $0x1958] sm:$0xff] }
 0x47d   :  { %v20082_v46 = vld [vmem:[#allocation8 + $0xf04] ss:$24 sps:$4 sm:$0xff]  }
 0x47e   :  { %8050 = vmatpush1.bf16.msra.mxu1 %v17834_v60  ;;  %15948 = vmatpush1.bf16.msra.mxu0 %v20053_v1  ;;  %v810_v60 = vld [vmem:[#allocation5 + $0x1658] sm:$0xff] }
 0x47f   :  { %8051 = vmatprep.subr.bf16.mxu1 %v17859_v31  ;;  %15949 = vmatprep.subr.bf16.mxu0 %v20058_v4  ;;  %v20068_v1 = vld [vmem:[#allocation8 + $0xe40] ss:$24 sps:$4 sm:$0xff]   ;;  %v17979_v31 = vcombine.high %v798_v3, %v810_v60  ;;  %v20073_v4 = vld [vmem:[#allocation8 + $0xe74] ss:$24 sps:$4 sm:$0xff]  }
 0x482   :  { %8052 = vmatpush1.bf16.msra.mxu1 %v17858_v21  ;;  %15950 = vmatpush1.bf16.msra.mxu0 %v20056_v26  ;;  %v17978_v21 = vcombine.low %v798_v3, %v810_v60  ;;  %v18003_v26 = vcombine.high %v822_v2, %v834_v6  ;;  %v918_v3 = vld [vmem:[#allocation5 + $0x19b8] sm:$0xff] }
 0x483   :  { %8053 = vmatprep.subr.bf16.mxu1 %v17883_v9  ;;  %15951 = vmatprep.subr.bf16.mxu0 %v20061_v29  ;;  %v8737_v9 = vmul.f32 0.5, %v22098_v5  ;;  %v20076_v29 = vld [vmem:[#allocation8 + $0xea4] ss:$24 sps:$4 sm:$0xff]   ;;  %v20077_v5 = vld [vmem:[#allocation8 + $0xed0] ss:$24 sps:$4 sm:$0xff]  }
 0x484   :  { %v930_v60 = vld [vmem:[#allocation5 + $0x1a18] sm:$0xff] }
 0x485   :  { %v942_v2 = vld [vmem:[#allocation5 + $0x1a78] sm:$0xff] }
 0x486   :  { %8054 = vmatpush1.bf16.msra.mxu1 %v17882_v32  ;;  %15952 = vmatpush1.bf16.msra.mxu0 %v20059_v13  ;;  %v21587_v32 = vpop.eup %21586  ;;  %v20074_v13 = vld [vmem:[#allocation8 + $0xea0] ss:$24 sps:$4 sm:$0xff]  }
 0x487   :  { %8055 = vmatprep.subr.bf16.mxu1 %v17907_v36  ;;  %15953 = vmatprep.subr.bf16.mxu0 %v20064_v7  ;;  %v18027_v36 = vcombine.high %v846_v30, %v858_v15  ;;  %v8761_v7 = vmul.f32 %v21587_v32, %v8737_v9  ;;  %v954_v6 = vld [vmem:[#allocation5 + $0x1ad8] sm:$0xff]  ;;  %v20091_v15 = vld [vmem:[#allocation8 + $0xf94] ss:$24 sps:$4 sm:$0xff]  }
 0x488   :  { %v978_v30 = vld [vmem:[#allocation5 + $0x1b98] sm:$0xff]  ;;  %v18122_v32 = vcombine.low %v942_v2, %v954_v6 }
 0x48a   :  { %8056 = vmatpush1.bf16.msra.mxu1 %v17906_v0  ;;  %15954 = vmatpush1.bf16.msra.mxu0 %v20062_v41  ;;  %v882_v0 = vld [vmem:[#allocation5 + $0x1898] sm:$0xff] }
 0x48b   :  { %8057 = vmatprep.subr.bf16.mxu1 %v17931_v42  ;;  %15955 = vmatprep.subr.bf16.mxu0 %v20067_v45  ;;  %v18051_v41 = vcombine.high %v870_v37, %v882_v0  ;;  %v8785_v42 = vadd.f32 %v8761_v7, %v8737_v9  ;;  %v894_v45 = vld [vmem:[#allocation5 + $0x18f8] sm:$0xff] }
 0x48c   :  { %v20086_v9 = vld [vmem:[#allocation8 + $0xf60] ss:$24 sps:$4 sm:$0xff]  }
 0x48d   :  { %v1002_v7 = vld [vmem:[#allocation5 + $0x1c58] sm:$0xff] }
 0x48e   :  { %8058 = vmatpush1.bf16.msra.mxu1 %v17930_v48  ;;  %15956 = vmatpush1.bf16.msra.mxu0 %v20065_v49  ;;  %v18050_v48 = vcombine.low %v870_v37, %v882_v0  ;;  %v18075_v49 = vcombine.high %v894_v45, %v906_v20 }
 0x48f   :  { %8059 = vmatprep.subr.bf16.mxu1 %v17955_v52  ;;  %15957 = vmatprep.subr.bf16.mxu0 %v20070_v8  ;;  %v20080_v52 = vld [vmem:[#allocation8 + $0xf00] ss:$24 sps:$4 sm:$0xff]   ;;  %v22104_v8 = vpack.c.bf16 %v8785_v42, %v8785_v42  ;;  %v20097_v42 = vld [vmem:[#allocation8 + $0xff4] ss:$24 sps:$4 sm:$0xff]  }
 0x492   :  { %8060 = vmatpush1.bf16.msra.mxu1 %v17954_v61  ;;  %15958 = vmatpush1.bf16.msra.mxu0 %v20068_v1  ;;  %v20085_v61 = vld [vmem:[#allocation8 + $0xf34] ss:$24 sps:$4 sm:$0xff]   ;;  %v18074_v1 = vcombine.low %v894_v45, %v906_v20 }
 0x493   :  { %8061 = vmatprep.subr.bf16.mxu1 %v17979_v31  ;;  %15959 = vmatprep.subr.bf16.mxu0 %v20073_v4  ;;  %v18099_v31 = vcombine.high %v918_v3, %v930_v60  ;;  %v20083_v4 = vld [vmem:[#allocation8 + $0xf30] ss:$24 sps:$4 sm:$0xff]  }
 0x496   :  { %8062 = vmatpush1.bf16.msra.mxu1 %v17978_v21  ;;  %15960 = vmatpush1.bf16.msra.mxu0 %v20071_v27  ;;  %v20088_v21 = vld [vmem:[#allocation8 + $0xf64] ss:$24 sps:$4 sm:$0xff]   ;;  %v18098_v27 = vcombine.low %v918_v3, %v930_v60 }
 0x497   :  { %8063 = vmatprep.subr.bf16.mxu1 %v18003_v26  ;;  %15961 = vmatprep.subr.bf16.mxu0 %v20076_v29  ;;  %v18123_v26 = vcombine.high %v942_v2, %v954_v6  ;;  %v966_v29 = vld [vmem:[#allocation5 + $0x1b38] sm:$0xff] }
 0x498   :  { %v18146_v37 = vcombine.low %v966_v29, %v978_v30 }
 0x49a   :  { %8064 = vmatpush1.bf16.msra.mxu1 %v18002_v35  ;;  %15962 = vmatpush1.bf16.msra.mxu0 %v20074_v13  ;;  %v18147_v35 = vcombine.high %v966_v29, %v978_v30  ;;  %v20089_v13 = vld [vmem:[#allocation8 + $0xf90] ss:$24 sps:$4 sm:$0xff]  }
 0x49b   :  { %8065 = vmatprep.subr.bf16.mxu1 %v18027_v36  ;;  %15963 = vmatprep.subr.bf16.mxu0 %v20079_v43  ;;  %v990_v36 = vld [vmem:[#allocation5 + $0x1bf8] sm:$0xff] }
 0x49c   :  { %v20094_v43 = vld [vmem:[#allocation8 + $0xfc4] ss:$24 sps:$4 sm:$0xff]   ;;  %v18171_v0 = vcombine.high %v990_v36, %v1002_v7  ;;  %v18170_v45 = vcombine.low %v990_v36, %v1002_v7 }
 0x49e   :  { %8066 = vmatpush1.bf16.msra.mxu1 %v18026_v40  ;;  %15964 = vmatpush1.bf16.msra.mxu0 %v20077_v5  ;;  %v20092_v40 = vld [vmem:[#allocation8 + $0xfc0] ss:$24 sps:$4 sm:$0xff]  }
 0x49f   :  { %8076 = vmatprep.subr.bf16.mxu1 %v18051_v41  ;;  %15974 = vmatprep.subr.bf16.mxu0 %v20082_v46  ;;  %v1014_v5 = vld [vmem:[#allocation5 + $0x1cb8] sm:$0xff]  ;;  %v20095_v46 = vld [vmem:[#allocation8 + $0xff0] ss:$24 sps:$4 sm:$0xff]  }
 0x4a0   :  { %v1026_v41 = vld [vmem:[#allocation5 + $0x1d18] sm:$0xff] }
 0x4a1   :  { %8068 = vmatmul.mubr.bf16.vlgmr.msra.gmra.mrb[20].mxu1 %v21872_v25  ;;  %15966 = vmatmul.mubr.bf16.vlgmr.msra.gmra.mrb[16].mxu0 %v22104_v8  ;;  %v18195_v20 = vcombine.high %v1014_v5, %v1026_v41  ;;  %v18194_v3 = vcombine.low %v1014_v5, %v1026_v41 }
 0x4a2   :  { %8077 = vmatpush1.bf16.msra.mxu1 %v18050_v48  ;;  %15975 = vmatpush1.bf16.msra.mxu0 %v20080_v52  ;;  %v1038_v48 = vld [vmem:[#allocation5 + $0x1d78] sm:$0xff] }
 0x4a3   :  { %8078 = vmatprep.subr.bf16.mxu1 %v18075_v49  ;;  %15976 = vmatprep.subr.bf16.mxu0 %v20085_v61  ;;  %v1050_v49 = vld [vmem:[#allocation5 + $0x1dd8] sm:$0xff] }
 0x4a4   :  { %8108 = vmatprep.mubr.bf16.mxu1 %v21874_v34  ;;  %v20100_v52 = vld [vmem:[#allocation8 + $0x1024] ss:$24 sps:$4 sm:$0xff]   ;;  %v18219_v60 = vcombine.high %v1038_v48, %v1050_v49  ;;  %v20098_v61 = vld [vmem:[#allocation8 + $0x1020] ss:$24 sps:$4 sm:$0xff]   ;;  %v18218_v2 = vcombine.low %v1038_v48, %v1050_v49 }
 0x4a6   :  { %8079 = vmatpush1.bf16.msra.mxu1 %v18074_v1  ;;  %15977 = vmatpush1.bf16.msra.mxu0 %v20083_v4  ;;  %v1062_v1 = vld [vmem:[#allocation5 + $0x1e38] sm:$0xff]  ;;  %v20103_v4 = vld [vmem:[#allocation8 + $0x1054] ss:$24 sps:$4 sm:$0xff]  }
 0x4a7   :  { %8080 = vmatprep.subr.bf16.mxu1 %v18099_v31  ;;  %15978 = vmatprep.subr.bf16.mxu0 %v20088_v21  ;;  %v1074_v31 = vld [vmem:[#allocation5 + $0x1e98] sm:$0xff]  ;;  %v20101_v21 = vld [vmem:[#allocation8 + $0x1050] ss:$24 sps:$4 sm:$0xff]  }
 0x4a8   :  { %v18243_v6 = vcombine.high %v1062_v1, %v1074_v31  ;;  %v18242_v29 = vcombine.low %v1062_v1, %v1074_v31 }
 0x4aa   :  { %8081 = vmatpush1.bf16.msra.mxu1 %v18098_v27  ;;  %15979 = vmatpush1.bf16.msra.mxu0 %v20086_v9  ;;  %v1086_v27 = vld [vmem:[#allocation5 + $0x1ef8] sm:$0xff] }
 0x4ab   :  { %8082 = vmatprep.subr.bf16.mxu1 %v18123_v26  ;;  %15980 = vmatprep.subr.bf16.mxu0 %v20091_v15  ;;  %v1098_v26 = vld [vmem:[#allocation5 + $0x1f58] sm:$0xff] }
 0x4ac   :  { %v20106_v9 = vld [vmem:[#allocation8 + $0x1084] ss:$24 sps:$4 sm:$0xff]   ;;  %v18267_v30 = vcombine.high %v1086_v27, %v1098_v26  ;;  %v20104_v15 = vld [vmem:[#allocation8 + $0x1080] ss:$24 sps:$4 sm:$0xff]   ;;  %v18266_v36 = vcombine.low %v1086_v27, %v1098_v26 }
 0x4ae   :  { %8083 = vmatpush1.bf16.msra.mxu1 %v18122_v32  ;;  %15981 = vmatpush1.bf16.msra.mxu0 %v20089_v13  ;;  %v1110_v32 = vld [vmem:[#allocation5 + $0x1fb8] sm:$0xff]  ;;  %v20109_v13 = vld [vmem:[#allocation8 + $0x10b4] ss:$24 sps:$4 sm:$0xff]  }
 0x4af   :  { %8084 = vmatprep.subr.bf16.mxu1 %v18147_v35  ;;  %15982 = vmatprep.subr.bf16.mxu0 %v20094_v43  ;;  %v1122_v35 = vld [vmem:[#allocation5 + $0x2018] sm:$0xff]  ;;  %v20107_v43 = vld [vmem:[#allocation8 + $0x10b0] ss:$24 sps:$4 sm:$0xff]  }
 0x4b0   :  { %v18291_v7 = vcombine.high %v1110_v32, %v1122_v35  ;;  %v18290_v5 = vcombine.low %v1110_v32, %v1122_v35 }
 0x4b2   :  { %8085 = vmatpush1.bf16.msra.mxu1 %v18146_v37  ;;  %15983 = vmatpush1.bf16.msra.mxu0 %v20092_v40  ;;  %v1134_v37 = vld [vmem:[#allocation5 + $0x2078] sm:$0xff] }
 0x4b3   :  { %8086 = vmatprep.subr.bf16.mxu1 %v18171_v0  ;;  %15984 = vmatprep.subr.bf16.mxu0 %v20097_v42  ;;  %v1146_v0 = vld [vmem:[#allocation5 + $0x20d8] sm:$0xff] }
 0x4b4   :  { %v20112_v40 = vld [vmem:[#allocation8 + $0x10e4] ss:$24 sps:$4 sm:$0xff]   ;;  %v18315_v41 = vcombine.high %v1134_v37, %v1146_v0  ;;  %v20110_v42 = vld [vmem:[#allocation8 + $0x10e0] ss:$24 sps:$4 sm:$0xff]   ;;  %v18314_v48 = vcombine.low %v1134_v37, %v1146_v0 }
 0x4b6   :  { %8087 = vmatpush1.bf16.msra.mxu1 %v18170_v45  ;;  %15985 = vmatpush1.bf16.msra.mxu0 %v20095_v46  ;;  %v1158_v45 = vld [vmem:[#allocation5 + $0x2138] sm:$0xff]  ;;  %v20115_v46 = vld [vmem:[#allocation8 + $0x1114] ss:$24 sps:$4 sm:$0xff]  }
 0x4b7   :  { %8088 = vmatprep.subr.bf16.mxu1 %v18195_v20  ;;  %15986 = vmatprep.subr.bf16.mxu0 %v20100_v52  ;;  %v1170_v20 = vld [vmem:[#allocation5 + $0x2198] sm:$0xff]  ;;  %v20113_v52 = vld [vmem:[#allocation8 + $0x1110] ss:$24 sps:$4 sm:$0xff]  }
 0x4b8   :  { %v18339_v49 = vcombine.high %v1158_v45, %v1170_v20  ;;  %v18338_v1 = vcombine.low %v1158_v45, %v1170_v20 }
 0x4ba   :  { %8089 = vmatpush1.bf16.msra.mxu1 %v18194_v3  ;;  %15987 = vmatpush1.bf16.msra.mxu0 %v20098_v61  ;;  %v1182_v3 = vld [vmem:[#allocation5 + $0x21f8] sm:$0xff] }
 0x4bb   :  { %8090 = vmatprep.subr.bf16.mxu1 %v18219_v60  ;;  %15988 = vmatprep.subr.bf16.mxu0 %v20103_v4  ;;  %v1194_v60 = vld [vmem:[#allocation5 + $0x2258] sm:$0xff] }
 0x4bc   :  { %v20118_v61 = vld [vmem:[#allocation8 + $0x1144] ss:$24 sps:$4 sm:$0xff]   ;;  %v18363_v31 = vcombine.high %v1182_v3, %v1194_v60  ;;  %v20116_v4 = vld [vmem:[#allocation8 + $0x1140] ss:$24 sps:$4 sm:$0xff]   ;;  %v18362_v27 = vcombine.low %v1182_v3, %v1194_v60  ;;  %v1308_v3 = vrot.slane %v22053_v18, %v22000_v58  ;;  %v176_v60 = vld [vmem:[#allocation5 + $0x288] sm:$0xff] }
 0x4bd   :  { %v236_v18 = vld [vmem:[#allocation5 + $0x468] sm:$0xff] }
 0x4be   :  { %8091 = vmatpush1.bf16.msra.mxu1 %v18218_v2  ;;  %15989 = vmatpush1.bf16.msra.mxu0 %v20101_v21  ;;  %v1206_v2 = vld [vmem:[#allocation5 + $0x22b8] sm:$0xff]  ;;  %v20121_v21 = vld [vmem:[#allocation8 + $0x1174] ss:$24 sps:$4 sm:$0xff]  }
 0x4bf   :  { %8092 = vmatprep.subr.bf16.mxu1 %v18243_v6  ;;  %15990 = vmatprep.subr.bf16.mxu0 %v20106_v9  ;;  %v1218_v6 = vld [vmem:[#allocation5 + $0x2318] sm:$0xff]  ;;  %v20119_v9 = vld [vmem:[#allocation8 + $0x1170] ss:$24 sps:$4 sm:$0xff]  }
 0x4c0   :  { %v18387_v26 = vcombine.high %v1206_v2, %v1218_v6  ;;  %v18386_v32 = vcombine.low %v1206_v2, %v1218_v6  ;;  %v200_v2 = vld [vmem:[#allocation5 + $0x348] sm:$0xff] }
 0x4c1   :  { %v212_v6 = vld [vmem:[#allocation5 + $0x3a8] sm:$0xff] }
 0x4c2   :  { %8093 = vmatpush1.bf16.msra.mxu1 %v18242_v29  ;;  %15991 = vmatpush1.bf16.msra.mxu0 %v20104_v15  ;;  %v1230_v29 = vld [vmem:[#allocation5 + $0x2378] sm:$0xff] }
 0x4c3   :  { %8094 = vmatprep.subr.bf16.mxu1 %v18267_v30  ;;  %15992 = vmatprep.subr.bf16.mxu0 %v20109_v13  ;;  %v1242_v30 = vld [vmem:[#allocation5 + $0x23d8] sm:$0xff] }
 0x4c4   :  { %v20124_v15 = vld [vmem:[#allocation8 + $0x11a4] ss:$24 sps:$4 sm:$0xff]   ;;  %v18411_v35 = vcombine.high %v1230_v29, %v1242_v30  ;;  %v20122_v13 = vld [vmem:[#allocation8 + $0x11a0] ss:$24 sps:$4 sm:$0xff]   ;;  %v18410_v37 = vcombine.low %v1230_v29, %v1242_v30  ;;  %v17382_v29 = vcombine.low %v200_v2, %v212_v6 }
 0x4c6   :  { %8095 = vmatpush1.bf16.msra.mxu1 %v18266_v36  ;;  %15993 = vmatpush1.bf16.msra.mxu0 %v20107_v43  ;;  %v104_v36 = vld [vmem:[#allocation5 + $0x48] sm:$0xff] }
 0x4c7   :  { %8096 = vmatprep.subr.bf16.mxu1 %v18291_v7  ;;  %15994 = vmatprep.subr.bf16.mxu0 %v20112_v40  ;;  %v116_v7 = vld [vmem:[#allocation5 + $0xa8] sm:$0xff] }
 0x4c8   :  { %v20127_v43 = vld [vmem:[#allocation8 + $0x11d4] ss:$24 sps:$4 sm:$0xff]   ;;  %v17287_v0 = vcombine.high %v104_v36, %v116_v7  ;;  %v20125_v40 = vld [vmem:[#allocation8 + $0x11d0] ss:$24 sps:$4 sm:$0xff]   ;;  %v17286_v45 = vcombine.low %v104_v36, %v116_v7 }
 0x4ca   :  { %8097 = vmatpush1.bf16.msra.mxu1 %v18290_v5  ;;  %15995 = vmatpush1.bf16.msra.mxu0 %v20110_v42  ;;  %v128_v5 = vld [vmem:[#allocation5 + $0x108] sm:$0xff]  ;;  %v20130_v42 = vld [vmem:[#allocation8 + $0x1204] ss:$24 sps:$4 sm:$0xff]  }
 0x4cb   :  { %8098 = vmatprep.subr.bf16.mxu1 %v18315_v41  ;;  %15996 = vmatprep.subr.bf16.mxu0 %v20115_v46  ;;  %v140_v41 = vld [vmem:[#allocation5 + $0x168] sm:$0xff] }
 0x4cc   :  { %v17311_v20 = vcombine.high %v128_v5, %v140_v41  ;;  %v152_v46 = vld [vmem:[#allocation5 + $0x1c8] sm:$0xff] }
 0x4ce   :  { %8099 = vmatpush1.bf16.msra.mxu1 %v18314_v48  ;;  %15997 = vmatpush1.bf16.msra.mxu0 %v20113_v52  ;;  %v164_v48 = vld [vmem:[#allocation5 + $0x228] sm:$0xff] }
 0x4cf   :  { %8100 = vmatprep.subr.bf16.mxu1 %v18339_v49  ;;  %15998 = vmatprep.subr.bf16.mxu0 %v20118_v61  ;;  %v17310_v49 = vcombine.low %v128_v5, %v140_v41  ;;  %v17335_v52 = vcombine.high %v152_v46, %v164_v48  ;;  %v188_v61 = vld [vmem:[#allocation5 + $0x2e8] sm:$0xff] }
 0x4d0   :  { %v284_v5 = vld [vmem:[#allocation5 + $0x5e8] sm:$0xff] }
 0x4d2   :  { %8101 = vmatpush1.bf16.msra.mxu1 %v18338_v1  ;;  %15999 = vmatpush1.bf16.msra.mxu0 %v20116_v4  ;;  %v17334_v1 = vcombine.low %v152_v46, %v164_v48  ;;  %v22114_v4 = vadd.f32 %v21924_v22, %v1308_v3  ;;  %v22118_v22 = vld [vmem:[#allocation7 + $0x8] sm:$0xff] }
 0x4d3   :  { %8102 = vmatprep.subr.bf16.mxu1 %v18363_v31  ;;  %16000 = vmatprep.subr.bf16.mxu0 %v20121_v21  ;;  %v17359_v31 = vcombine.high %v176_v60, %v188_v61  ;;  %v17358_v21 = vcombine.low %v176_v60, %v188_v61  ;;  %v1300_v36 = vrot.slane %v22118_v22, %v21960_v59  ;;  %v296_v61 = vld [vmem:[#allocation5 + $0x648] sm:$0xff] }
 0x4d6   :  { %8103 = vmatpush1.bf16.msra.mxu1 %v18362_v27  ;;  %16001 = vmatpush1.bf16.msra.mxu0 %v20119_v9  ;;  %v17383_v27 = vcombine.high %v200_v2, %v212_v6  ;;  %v224_v9 = vld [vmem:[#allocation5 + $0x408] sm:$0xff] }
 0x4d7   :  { %8104 = vmatprep.subr.bf16.mxu1 %v18387_v26  ;;  %16002 = vmatprep.subr.bf16.mxu0 %v20124_v15  ;;  %v8622_v26 = vmul.f32 %v22114_v4, %v22114_v4  ;;  %v17407_v30 = vcombine.high %v224_v9, %v236_v18  ;;  %v17406_v7 = vcombine.low %v224_v9, %v236_v18  ;;  %v320_v9 = vld [vmem:[#allocation5 + $0x708] sm:$0xff] }
 0x4d8   :  { %v332_v18 = vld [vmem:[#allocation5 + $0x768] sm:$0xff] }
 0x4d9   :  { %v8646_v15 = vmul.f32 0.035677407, %v8622_v26 }
 0x4da   :  { %8105 = vmatpush1.bf16.msra.mxu1 %v18386_v32  ;;  %16003 = vmatpush1.bf16.msra.mxu0 %v20122_v13  ;;  %v248_v32 = vld [vmem:[#allocation5 + $0x4c8] sm:$0xff]  ;;  %v1296_v13 = vrot.slane %v22118_v22, %v21997_v51 }
 0x4db   :  { %8106 = vmatprep.subr.bf16.mxu1 %v18411_v35  ;;  %16004 = vmatprep.subr.bf16.mxu0 %v20127_v43  ;;  %v260_v35 = vld [vmem:[#allocation5 + $0x528] sm:$0xff] }
 0x4dc   :  { %v17431_v43 = vcombine.high %v248_v32, %v260_v35  ;;  %v17430_v46 = vcombine.low %v248_v32, %v260_v35  ;;  %v17503_v32 = vcombine.high %v320_v9, %v332_v18  ;;  %v344_v35 = vld [vmem:[#allocation5 + $0x7c8] sm:$0xff] }
 0x4de   :  { %8107 = vmatpush1.bf16.msra.mxu1 %v18410_v37  ;;  %16005 = vmatpush1.bf16.msra.mxu0 %v20125_v40  ;;  %v8670_v37 = vadd.f32 0.7978846, %v8646_v15  ;;  %v272_v40 = vld [vmem:[#allocation5 + $0x588] sm:$0xff] }
 0x4df   :  { %8240 = vmatprep.subr.bf16.mxu1 %v17287_v0  ;;  %16015 = vmatprep.subr.bf16.mxu0 %v20130_v42  ;;  %v17454_v6 = vcombine.low %v272_v40, %v284_v5 }
 0x4e0   :  { %v8694_v3 = vmul.f32 %v22114_v4, %v8670_v37  ;;  %v380_v37 = vld [vmem:[#allocation5 + $0x8e8] sm:$0xff] }
 0x4e1   :  { %8109 = vmatmul.mubr.bf16.vlgmr.msra.gmra.mrb[20].mxu1 %v21880_v38 }
 0x4e2   :  { %8241 = vmatpush1.bf16.msra.mxu1 %v17286_v45  ;;  %8272 = vmatprep.mubr.bf16.mxu1 %v21860_v57  ;;  %21588 = vtanh.f32 %v8694_v3 }
 0x4e3   :  { %8242 = vmatprep.subr.bf16.mxu1 %v17311_v20 }
 0x4e6   :  { %8243 = vmatpush1.bf16.msra.mxu1 %v17310_v49 }
 0x4e7   :  { %8244 = vmatprep.subr.bf16.mxu1 %v17335_v52  ;;  %v17455_v52 = vcombine.high %v272_v40, %v284_v5 }
 0x4ea   :  { %8245 = vmatpush1.bf16.msra.mxu1 %v17334_v1  ;;  %v308_v1 = vld [vmem:[#allocation5 + $0x6a8] sm:$0xff] }
 0x4eb   :  { %8246 = vmatprep.subr.bf16.mxu1 %v17359_v31  ;;  %v17478_v15 = vcombine.low %v296_v61, %v308_v1 }
 0x4ec   :  { %v21589_v40 = vpop.eup %21588 }
 0x4ee   :  { %8247 = vmatpush1.bf16.msra.mxu1 %v17358_v21 }
 0x4ef   :  { %8248 = vmatprep.subr.bf16.mxu1 %v17383_v27  ;;  %v17479_v27 = vcombine.high %v296_v61, %v308_v1 }
 0x4f2   :  { %8249 = vmatpush1.bf16.msra.mxu1 %v17382_v29 }
 0x4f3   :  { %8250 = vmatprep.subr.bf16.mxu1 %v17407_v30 }
 0x4f4   :  { %v7864_v0 = vpop.f32.mrb[16].mxu1 }
 0x4f5   :  { %v19582_v41 = vadd.f32 %v7864_v0, %v1296_v13  ;;  %v7866_v42 = vpop.f32.mrb[17].mxu1  ;;  %v356_v13 = vld [vmem:[#allocation5 + $0x828] sm:$0xff]  ;;  %v8742_v0 = vmul.f32 0.5, %v22114_v4 }
 0x4f6   :  { %v19583_v45 = vadd.f32 %v7866_v42, %v1300_v36  ;;  %v7868_v20 = vpop.f32.mrb[18].mxu1  ;;  %8251 = vmatpush1.bf16.msra.mxu1 %v17406_v7  ;;  %v17502_v36 = vcombine.low %v320_v9, %v332_v18  ;;  %v17527_v7 = vcombine.high %v344_v35, %v356_v13  ;;  %v17526_v5 = vcombine.low %v344_v35, %v356_v13  ;;  %v20128_v18 = vld [vmem:[#allocation8 + $0x1200] ss:$24 sps:$4 sm:$0xff]  }
 0x4f7   :  { %v8619_v48 = vmul.f32 %v19582_v41, %v19582_v41  ;;  %v7869_v49 = vpop.f32.mrb[19].mxu1  ;;  %8252 = vmatprep.subr.bf16.mxu1 %v17431_v43  ;;  %v368_v43 = vld [vmem:[#allocation5 + $0x888] sm:$0xff]  ;;  %v8739_v20 = vmul.f32 0.5, %v19582_v41  ;;  %v8766_v3 = vmul.f32 %v21589_v40, %v8742_v0 }
 0x4f8   :  { %v8620_v60 = vmul.f32 %v19583_v45, %v19583_v45  ;;  %v17551_v42 = vcombine.high %v368_v43, %v380_v37  ;;  %v17550_v1 = vcombine.low %v368_v43, %v380_v37  ;;  %v20136_v43 = vld [vmem:[#allocation8 + $0x1264] ss:$24 sps:$4 sm:$0xff]   ;;  %v464_v37 = vld [vmem:[#allocation5 + $0xb88] sm:$0xff] }
 0x4f9   :  { %v8643_v31 = vmul.f32 0.035677407, %v8619_v48  ;;  %v404_v48 = vld [vmem:[#allocation5 + $0x9a8] sm:$0xff] }
 0x4fa   :  { %v8644_v2 = vmul.f32 0.035677407, %v8620_v60  ;;  %8253 = vmatpush1.bf16.msra.mxu1 %v17430_v46  ;;  %v392_v46 = vld [vmem:[#allocation5 + $0x948] sm:$0xff] }
 0x4fb   :  { %v8667_v21 = vadd.f32 0.7978846, %v8643_v31  ;;  %8254 = vmatprep.subr.bf16.mxu1 %v17455_v52  ;;  %v8740_v52 = vmul.f32 0.5, %v19583_v45  ;;  %v17575_v31 = vcombine.high %v392_v46, %v404_v48  ;;  %v17574_v9 = vcombine.low %v392_v46, %v404_v48  ;;  %v488_v46 = vld [vmem:[#allocation5 + $0xc48] sm:$0xff] }
 0x4fc   :  { %v8668_v26 = vadd.f32 0.7978846, %v8644_v2  ;;  %v500_v48 = vld [vmem:[#allocation5 + $0xca8] sm:$0xff] }
 0x4fd   :  { %v8691_v29 = vmul.f32 %v19582_v41, %v8667_v21  ;;  %v8790_v21 = vadd.f32 %v8766_v3, %v8742_v0  ;;  %v476_v0 = vld [vmem:[#allocation5 + $0xbe8] sm:$0xff]  ;;  %v17671_v3 = vcombine.high %v488_v46, %v500_v48 }
 0x4fe   :  { %v8692_v30 = vmul.f32 %v19583_v45, %v8668_v26  ;;  %8255 = vmatpush1.bf16.msra.mxu1 %v17454_v6  ;;  %v428_v26 = vld [vmem:[#allocation5 + $0xa68] sm:$0xff] }
 0x4ff   :  { %21590 = vtanh.f32 %v8691_v29  ;;  %8256 = vmatprep.subr.bf16.mxu1 %v17479_v27  ;;  %v416_v27 = vld [vmem:[#allocation5 + $0xa08] sm:$0xff]  ;;  %v22131_v35 = vpack.c.bf16 %v8790_v21, %v8790_v21 }
 0x500   :  { %21592 = vtanh.f32 %v8692_v30  ;;  %v17599_v29 = vcombine.high %v416_v27, %v428_v26  ;;  %v20133_v30 = vld [vmem:[#allocation8 + $0x1234] ss:$24 sps:$4 sm:$0xff]   ;;  %v17598_v13 = vcombine.low %v416_v27, %v428_v26 }
 0x501   :  { %v536_v21 = vld [vmem:[#allocation5 + $0xdc8] sm:$0xff] }
 0x502   :  { %8257 = vmatpush1.bf16.msra.mxu1 %v17478_v15  ;;  %v440_v15 = vld [vmem:[#allocation5 + $0xac8] sm:$0xff] }
 0x503   :  { %8258 = vmatprep.subr.bf16.mxu1 %v17503_v32  ;;  %v452_v32 = vld [vmem:[#allocation5 + $0xb28] sm:$0xff] }
 0x504   :  { %v17622_v40 = vcombine.low %v440_v15, %v452_v32  ;;  %v548_v27 = vld [vmem:[#allocation5 + $0xe28] sm:$0xff] }
 0x506   :  { %8259 = vmatpush1.bf16.msra.mxu1 %v17502_v36  ;;  %v20131_v36 = vld [vmem:[#allocation8 + $0x1230] ss:$24 sps:$4 sm:$0xff]  }
 0x507   :  { %8260 = vmatprep.subr.bf16.mxu1 %v17527_v7  ;;  %v17623_v7 = vcombine.high %v440_v15, %v452_v32  ;;  %v560_v15 = vld [vmem:[#allocation5 + $0xe88] sm:$0xff] }
 0x508   :  { %v572_v32 = vld [vmem:[#allocation5 + $0xee8] sm:$0xff] }
 0x509   :  { %v21591_v49 = vpop.eup %21590 }
 0x50a   :  { %v21593_v60 = vpop.eup %21592  ;;  %v8763_v61 = vmul.f32 %v21591_v49, %v8739_v20  ;;  %8261 = vmatpush1.bf16.msra.mxu1 %v17526_v5  ;;  %v20134_v5 = vld [vmem:[#allocation8 + $0x1260] ss:$24 sps:$4 sm:$0xff]   ;;  %v17646_v49 = vcombine.low %v464_v37, %v476_v0 }
 0x50b   :  { %8262 = vmatprep.subr.bf16.mxu1 %v17551_v42  ;;  %v8764_v2 = vmul.f32 %v21593_v60, %v8740_v52  ;;  %v17647_v42 = vcombine.high %v464_v37, %v476_v0  ;;  %v20142_v60 = vld [vmem:[#allocation8 + $0x12c4] ss:$24 sps:$4 sm:$0xff]   ;;  %v20151_v37 = vld [vmem:[#allocation8 + $0x1354] ss:$24 sps:$4 sm:$0xff]  }
 0x50c   :  { %v8787_v6 = vadd.f32 %v8763_v61, %v8739_v20  ;;  %v20139_v20 = vld [vmem:[#allocation8 + $0x1294] ss:$24 sps:$4 sm:$0xff]  }
 0x50d   :  { %v8788_v4 = vadd.f32 %v8764_v2, %v8740_v52  ;;  %v20137_v52 = vld [vmem:[#allocation8 + $0x1290] ss:$24 sps:$4 sm:$0xff]   ;;  %v20140_v2 = vld [vmem:[#allocation8 + $0x12c0] ss:$24 sps:$4 sm:$0xff]  }
 0x50e   :  { %8263 = vmatpush1.bf16.msra.mxu1 %v17550_v1  ;;  %v22128_v45 = vpack.c.bf16 %v8787_v6, %v8787_v6  ;;  %v512_v61 = vld [vmem:[#allocation5 + $0xd08] sm:$0xff] }
 0x50f   :  { %8264 = vmatprep.subr.bf16.mxu1 %v17575_v31  ;;  %v22126_v41 = vpack.c.bf16 %v8788_v4, %v8788_v4  ;;  %v524_v1 = vld [vmem:[#allocation5 + $0xd68] sm:$0xff]  ;;  %v17670_v31 = vcombine.low %v488_v46, %v500_v48 }
 0x510   :  { %v17695_v6 = vcombine.high %v512_v61, %v524_v1  ;;  %v20145_v4 = vld [vmem:[#allocation8 + $0x12f4] ss:$24 sps:$4 sm:$0xff]   ;;  %v17694_v26 = vcombine.low %v512_v61, %v524_v1 }
 0x511   :  { %16006 = vmatprep.mubr.bf16.mxu0 %v22126_v41  ;;  %v584_v0 = vld [vmem:[#allocation5 + $0xf48] sm:$0xff] }
 0x512   :  { %8265 = vmatpush1.bf16.msra.mxu1 %v17574_v9  ;;  %16007 = vmatmul.mubr.bf16.vlgmr.msra.gmra.mrb[16].mxu0 %v22128_v45  ;;  %v1304_v9 = vrot.slane %v22118_v22, %v22029_v50  ;;  %v608_v48 = vld [vmem:[#allocation5 + $0x1008] sm:$0xff] }
 0x513   :  { %16016 = vmatpush1.bf16.msra.mxu0 %v20128_v18  ;;  %16047 = vmatprep.mubr.bf16.mxu0 %v22131_v35  ;;  %v20143_v18 = vld [vmem:[#allocation8 + $0x12f0] ss:$24 sps:$4 sm:$0xff]   ;;  %v20157_v1 = vld [vmem:[#allocation8 + $0x13b4] ss:$24 sps:$4 sm:$0xff]  }
 0x514   :  { %8266 = vmatprep.subr.bf16.mxu1 %v17599_v29  ;;  %16017 = vmatprep.subr.bf16.mxu0 %v20133_v30  ;;  %v17719_v29 = vcombine.high %v536_v21, %v548_v27  ;;  %v20148_v30 = vld [vmem:[#allocation8 + $0x1324] ss:$24 sps:$4 sm:$0xff]  }
 0x516   :  { %8267 = vmatpush1.bf16.msra.mxu1 %v17598_v13  ;;  %v17718_v13 = vcombine.low %v536_v21, %v548_v27  ;;  %v20155_v21 = vld [vmem:[#allocation8 + $0x13b0] ss:$24 sps:$4 sm:$0xff]  }
 0x517   :  { %16018 = vmatpush1.bf16.msra.mxu0 %v20131_v36  ;;  %8268 = vmatprep.subr.bf16.mxu1 %v17623_v7  ;;  %v22140_v36 = vadd.f32 %v21922_v19, %v1304_v9  ;;  %v20146_v7 = vld [vmem:[#allocation8 + $0x1320] ss:$24 sps:$4 sm:$0xff]   ;;  %v20154_v19 = vld [vmem:[#allocation8 + $0x1384] ss:$24 sps:$4 sm:$0xff]   ;;  %v656_v9 = vld [vmem:[#allocation5 + $0x1188] sm:$0xff] }
 0x518   :  { %16019 = vmatprep.subr.bf16.mxu0 %v20136_v43  ;;  %v17743_v43 = vcombine.high %v560_v15, %v572_v32 }
 0x51a   :  { %8269 = vmatpush1.bf16.msra.mxu1 %v17622_v40  ;;  %v596_v40 = vld [vmem:[#allocation5 + $0xfa8] sm:$0xff] }
 0x51b   :  { %16020 = vmatpush1.bf16.msra.mxu0 %v20134_v5  ;;  %8270 = vmatprep.subr.bf16.mxu1 %v17647_v42  ;;  %v17742_v5 = vcombine.low %v560_v15, %v572_v32  ;;  %v8621_v42 = vmul.f32 %v22140_v36, %v22140_v36  ;;  %v17767_v46 = vcombine.high %v584_v0, %v596_v40  ;;  %v20158_v15 = vld [vmem:[#allocation8 + $0x13e0] ss:$24 sps:$4 sm:$0xff]  }
 0x51c   :  { %16021 = vmatprep.subr.bf16.mxu0 %v20139_v20  ;;  %v20149_v20 = vld [vmem:[#allocation8 + $0x1350] ss:$24 sps:$4 sm:$0xff]  }
 0x51e   :  { %8271 = vmatpush1.bf16.msra.mxu1 %v17646_v49  ;;  %v620_v49 = vld [vmem:[#allocation5 + $0x1068] sm:$0xff] }
 0x51f   :  { %16022 = vmatpush1.bf16.msra.mxu0 %v20137_v52  ;;  %8281 = vmatprep.subr.bf16.mxu1 %v17671_v3  ;;  %v17766_v52 = vcombine.low %v584_v0, %v596_v40  ;;  %v8645_v3 = vmul.f32 0.035677407, %v8621_v42  ;;  %v17791_v61 = vcombine.high %v608_v48, %v620_v49  ;;  %v20161_v0 = vld [vmem:[#allocation8 + $0x1410] ss:$24 sps:$4 sm:$0xff]  }
 0x520   :  { %16023 = vmatprep.subr.bf16.mxu0 %v20142_v60  ;;  %v20152_v60 = vld [vmem:[#allocation8 + $0x1380] ss:$24 sps:$4 sm:$0xff]   ;;  %v704_v42 = vld [vmem:[#allocation5 + $0x1308] sm:$0xff] }
 0x521   :  { %8273 = vmatmul.mubr.bf16.vlgmr.msra.gmra.mrb[24].mxu1 %v21864_v12 }
 0x522   :  { %8282 = vmatpush1.bf16.msra.mxu1 %v17670_v31  ;;  %8313 = vmatprep.mubr.bf16.mxu1 %v21866_v23  ;;  %v632_v31 = vld [vmem:[#allocation5 + $0x10c8] sm:$0xff] }
 0x523   :  { %16024 = vmatpush1.bf16.msra.mxu0 %v20140_v2  ;;  %8283 = vmatprep.subr.bf16.mxu1 %v17695_v6  ;;  %v644_v2 = vld [vmem:[#allocation5 + $0x1128] sm:$0xff]  ;;  %v17790_v6 = vcombine.low %v608_v48, %v620_v49 }
 0x524   :  { %16025 = vmatprep.subr.bf16.mxu0 %v20145_v4  ;;  %v8669_v4 = vadd.f32 0.7978846, %v8645_v3  ;;  %v17815_v27 = vcombine.high %v632_v31, %v644_v2  ;;  %v20169_v49 = vld [vmem:[#allocation8 + $0x1474] ss:$24 sps:$4 sm:$0xff]  }
 0x525   :  { %v740_v3 = vld [vmem:[#allocation5 + $0x1428] sm:$0xff] }
 0x526   :  { %8284 = vmatpush1.bf16.msra.mxu1 %v17694_v26  ;;  %v20160_v26 = vld [vmem:[#allocation8 + $0x13e4] ss:$24 sps:$4 sm:$0xff]  }
 0x527   :  { %16026 = vmatpush1.bf16.msra.mxu0 %v20143_v18  ;;  %8285 = vmatprep.subr.bf16.mxu1 %v17719_v29  ;;  %v668_v18 = vld [vmem:[#allocation5 + $0x11e8] sm:$0xff]  ;;  %v17814_v29 = vcombine.low %v632_v31, %v644_v2  ;;  %v8741_v31 = vmul.f32 0.5, %v22140_v36  ;;  %v20172_v2 = vld [vmem:[#allocation8 + $0x14a4] ss:$24 sps:$4 sm:$0xff]  }
 0x528   :  { %16027 = vmatprep.subr.bf16.mxu0 %v20148_v30  ;;  %v8693_v30 = vmul.f32 %v22140_v36, %v8669_v4  ;;  %v17839_v32 = vcombine.high %v656_v9, %v668_v18  ;;  %v764_v4 = vld [vmem:[#allocation5 + $0x14e8] sm:$0xff] }
 0x529   :  { %v20173_v36 = vld [vmem:[#allocation8 + $0x14d0] ss:$24 sps:$4 sm:$0xff]  }
 0x52a   :  { %8286 = vmatpush1.bf16.msra.mxu1 %v17718_v13  ;;  %v20163_v13 = vld [vmem:[#allocation8 + $0x1414] ss:$24 sps:$4 sm:$0xff]   ;;  %21594 = vtanh.f32 %v8693_v30 }
 0x52b   :  { %16028 = vmatpush1.bf16.msra.mxu0 %v20146_v7  ;;  %8287 = vmatprep.subr.bf16.mxu1 %v17743_v43  ;;  %v680_v7 = vld [vmem:[#allocation5 + $0x1248] sm:$0xff] }
 0x52c   :  { %16029 = vmatprep.subr.bf16.mxu0 %v20151_v37  ;;  %v692_v43 = vld [vmem:[#allocation5 + $0x12a8] sm:$0xff]  ;;  %v17838_v37 = vcombine.low %v656_v9, %v668_v18 }
 0x52d   :  { %v17863_v40 = vcombine.high %v680_v7, %v692_v43  ;;  %v776_v30 = vld [vmem:[#allocation5 + $0x1548] sm:$0xff] }
 0x52e   :  { %8288 = vmatpush1.bf16.msra.mxu1 %v17742_v5  ;;  %v20166_v5 = vld [vmem:[#allocation8 + $0x1444] ss:$24 sps:$4 sm:$0xff]  }
 0x52f   :  { %16030 = vmatpush1.bf16.msra.mxu0 %v20149_v20  ;;  %8289 = vmatprep.subr.bf16.mxu1 %v17767_v46  ;;  %v716_v20 = vld [vmem:[#allocation5 + $0x1368] sm:$0xff]  ;;  %v17862_v46 = vcombine.low %v680_v7, %v692_v43 }
 0x530   :  { %16031 = vmatprep.subr.bf16.mxu0 %v20154_v19  ;;  %v20164_v19 = vld [vmem:[#allocation8 + $0x1440] ss:$24 sps:$4 sm:$0xff]   ;;  %v17887_v48 = vcombine.high %v704_v42, %v716_v20  ;;  %v800_v43 = vld [vmem:[#allocation5 + $0x1608] sm:$0xff] }
 0x532   :  { %8290 = vmatpush1.bf16.msra.mxu1 %v17766_v52  ;;  %v728_v52 = vld [vmem:[#allocation5 + $0x13c8] sm:$0xff] }
 0x533   :  { %16032 = vmatpush1.bf16.msra.mxu0 %v20152_v60  ;;  %8291 = vmatprep.subr.bf16.mxu1 %v17791_v61  ;;  %v17886_v60 = vcombine.low %v704_v42, %v716_v20  ;;  %v20167_v61 = vld [vmem:[#allocation8 + $0x1470] ss:$24 sps:$4 sm:$0xff]   ;;  %v20176_v42 = vld [vmem:[#allocation8 + $0x1500] ss:$24 sps:$4 sm:$0xff]  }
 0x534   :  { %16033 = vmatprep.subr.bf16.mxu0 %v20157_v1  ;;  %v17911_v1 = vcombine.high %v728_v52, %v740_v3 }
 0x536   :  { %8292 = vmatpush1.bf16.msra.mxu1 %v17790_v6  ;;  %v752_v6 = vld [vmem:[#allocation5 + $0x1488] sm:$0xff] }
 0x537   :  { %16034 = vmatpush1.bf16.msra.mxu0 %v20155_v21  ;;  %8293 = vmatprep.subr.bf16.mxu1 %v17815_v27  ;;  %v21595_v21 = vpop.eup %21594  ;;  %v17910_v27 = vcombine.low %v728_v52, %v740_v3  ;;  %v17935_v9 = vcombine.high %v752_v6, %v764_v4  ;;  %v20179_v3 = vld [vmem:[#allocation8 + $0x1530] ss:$24 sps:$4 sm:$0xff]  }
 0x538   :  { %16035 = vmatprep.subr.bf16.mxu0 %v20160_v26  ;;  %v20170_v26 = vld [vmem:[#allocation8 + $0x14a0] ss:$24 sps:$4 sm:$0xff]   ;;  %v8765_v18 = vmul.f32 %v21595_v21, %v8741_v31  ;;  %v884_v21 = vld [vmem:[#allocation5 + $0x18a8] sm:$0xff] }
 0x53a   :  { %8294 = vmatpush1.bf16.msra.mxu1 %v17814_v29  ;;  %v20175_v29 = vld [vmem:[#allocation8 + $0x14d4] ss:$24 sps:$4 sm:$0xff]   ;;  %v8789_v7 = vadd.f32 %v8765_v18, %v8741_v31  ;;  %v20185_v18 = vld [vmem:[#allocation8 + $0x1590] ss:$24 sps:$4 sm:$0xff]  }
 0x53b   :  { %16036 = vmatpush1.bf16.msra.mxu0 %v20158_v15  ;;  %8295 = vmatprep.subr.bf16.mxu1 %v17839_v32  ;;  %v788_v15 = vld [vmem:[#allocation5 + $0x15a8] sm:$0xff]  ;;  %v17934_v32 = vcombine.low %v752_v6, %v764_v4  ;;  %v20182_v6 = vld [vmem:[#allocation8 + $0x1560] ss:$24 sps:$4 sm:$0xff]  }
 0x53c   :  { %16037 = vmatprep.subr.bf16.mxu0 %v20163_v13  ;;  %v17959_v13 = vcombine.high %v776_v30, %v788_v15  ;;  %v22146_v20 = vpack.c.bf16 %v8789_v7, %v8789_v7  ;;  %v872_v4 = vld [vmem:[#allocation5 + $0x1848] sm:$0xff] }
 0x53d   :  { %v920_v7 = vld [vmem:[#allocation5 + $0x19c8] sm:$0xff] }
 0x53e   :  { %8296 = vmatpush1.bf16.msra.mxu1 %v17838_v37  ;;  %v812_v37 = vld [vmem:[#allocation5 + $0x1668] sm:$0xff] }
 0x53f   :  { %16038 = vmatpush1.bf16.msra.mxu0 %v20161_v0  ;;  %8297 = vmatprep.subr.bf16.mxu1 %v17863_v40  ;;  %v20178_v0 = vld [vmem:[#allocation8 + $0x1504] ss:$24 sps:$4 sm:$0xff]   ;;  %v17958_v40 = vcombine.low %v776_v30, %v788_v15  ;;  %v908_v30 = vld [vmem:[#allocation5 + $0x1968] sm:$0xff] }
 0x540   :  { %16039 = vmatprep.subr.bf16.mxu0 %v20166_v5  ;;  %v17983_v5 = vcombine.high %v800_v43, %v812_v37  ;;  %v20190_v15 = vld [vmem:[#allocation8 + $0x15c4] ss:$24 sps:$4 sm:$0xff]  }
 0x542   :  { %8298 = vmatpush1.bf16.msra.mxu1 %v17862_v46  ;;  %v824_v46 = vld [vmem:[#allocation5 + $0x16c8] sm:$0xff] }
 0x543   :  { %16040 = vmatpush1.bf16.msra.mxu0 %v20164_v19  ;;  %8299 = vmatprep.subr.bf16.mxu1 %v17887_v48  ;;  %v836_v19 = vld [vmem:[#allocation5 + $0x1728] sm:$0xff] }
 0x544   :  { %16041 = vmatprep.subr.bf16.mxu0 %v20169_v49  ;;  %v20181_v48 = vld [vmem:[#allocation8 + $0x1534] ss:$24 sps:$4 sm:$0xff]   ;;  %v17982_v49 = vcombine.low %v800_v43, %v812_v37  ;;  %v18007_v52 = vcombine.high %v824_v46, %v836_v19  ;;  %v18006_v31 = vcombine.low %v824_v46, %v836_v19  ;;  %v20196_v19 = vld [vmem:[#allocation8 + $0x1624] ss:$24 sps:$4 sm:$0xff]  }
 0x545   :  { %v932_v43 = vld [vmem:[#allocation5 + $0x1a28] sm:$0xff] }
 0x546   :  { %8300 = vmatpush1.bf16.msra.mxu1 %v17886_v60  ;;  %v848_v60 = vld [vmem:[#allocation5 + $0x1788] sm:$0xff] }
 0x547   :  { %16042 = vmatpush1.bf16.msra.mxu0 %v20167_v61  ;;  %8301 = vmatprep.subr.bf16.mxu1 %v17911_v1  ;;  %v860_v61 = vld [vmem:[#allocation5 + $0x17e8] sm:$0xff]  ;;  %v20184_v1 = vld [vmem:[#allocation8 + $0x1564] ss:$24 sps:$4 sm:$0xff]  }
 0x548   :  { %16043 = vmatprep.subr.bf16.mxu0 %v20172_v2  ;;  %v18031_v2 = vcombine.high %v848_v60, %v860_v61  ;;  %v20193_v37 = vld [vmem:[#allocation8 + $0x15f4] ss:$24 sps:$4 sm:$0xff]  }
 0x549   :  { %v956_v46 = vld [vmem:[#allocation5 + $0x1ae8] sm:$0xff] }
 0x54a   :  { %8302 = vmatpush1.bf16.msra.mxu1 %v17910_v27  ;;  %v20187_v27 = vld [vmem:[#allocation8 + $0x1594] ss:$24 sps:$4 sm:$0xff]  }
 0x54b   :  { %16044 = vmatpush1.bf16.msra.mxu0 %v20170_v26  ;;  %8303 = vmatprep.subr.bf16.mxu1 %v17935_v9  ;;  %v18030_v26 = vcombine.low %v848_v60, %v860_v61  ;;  %v18055_v9 = vcombine.high %v872_v4, %v884_v21  ;;  %v980_v60 = vld [vmem:[#allocation5 + $0x1ba8] sm:$0xff] }
 0x54c   :  { %16045 = vmatprep.subr.bf16.mxu0 %v20175_v29  ;;  %v896_v29 = vld [vmem:[#allocation5 + $0x1908] sm:$0xff] }
 0x54d   :  { %v20199_v61 = vld [vmem:[#allocation8 + $0x1654] ss:$24 sps:$4 sm:$0xff]  }
 0x54e   :  { %8304 = vmatpush1.bf16.msra.mxu1 %v17934_v32  ;;  %v18054_v32 = vcombine.low %v872_v4, %v884_v21  ;;  %v1004_v4 = vld [vmem:[#allocation5 + $0x1c68] sm:$0xff]  ;;  %v20202_v21 = vld [vmem:[#allocation8 + $0x1684] ss:$24 sps:$4 sm:$0xff]  }
 0x54f   :  { %16046 = vmatpush1.bf16.msra.mxu0 %v20173_v36  ;;  %8305 = vmatprep.subr.bf16.mxu1 %v17959_v13  ;;  %v18079_v36 = vcombine.high %v896_v29, %v908_v30  ;;  %v20188_v13 = vld [vmem:[#allocation8 + $0x15c0] ss:$24 sps:$4 sm:$0xff]  }
 0x550   :  { %16056 = vmatprep.subr.bf16.mxu0 %v20178_v0  ;;  %v18078_v0 = vcombine.low %v896_v29, %v908_v30  ;;  %v1028_v29 = vld [vmem:[#allocation5 + $0x1d28] sm:$0xff] }
 0x551   :  { %v20205_v30 = vld [vmem:[#allocation8 + $0x16b4] ss:$24 sps:$4 sm:$0xff]  }
 0x552   :  { %16048 = vmatmul.mubr.bf16.vlgmr.msra.gmra.mrb[16].mxu0 %v22146_v20  ;;  %8306 = vmatpush1.bf16.msra.mxu1 %v17958_v40  ;;  %v18103_v40 = vcombine.high %v920_v7, %v932_v43 }
 0x553   :  { %8307 = vmatprep.subr.bf16.mxu1 %v17983_v5  ;;  %16057 = vmatpush1.bf16.msra.mxu0 %v20176_v42  ;;  %v20191_v5 = vld [vmem:[#allocation8 + $0x15f0] ss:$24 sps:$4 sm:$0xff]  }
 0x554   :  { %16058 = vmatprep.subr.bf16.mxu0 %v20181_v48  ;;  %v944_v42 = vld [vmem:[#allocation5 + $0x1a88] sm:$0xff]  ;;  %v18102_v48 = vcombine.low %v920_v7, %v932_v43  ;;  %v20208_v43 = vld [vmem:[#allocation8 + $0x16e4] ss:$24 sps:$4 sm:$0xff]  }
 0x555   :  { %v1052_v7 = vld [vmem:[#allocation5 + $0x1de8] sm:$0xff] }
 0x556   :  { %8308 = vmatpush1.bf16.msra.mxu1 %v17982_v49  ;;  %v18127_v49 = vcombine.high %v944_v42, %v956_v46 }
 0x557   :  { %8309 = vmatprep.subr.bf16.mxu1 %v18007_v52  ;;  %16059 = vmatpush1.bf16.msra.mxu0 %v20179_v3  ;;  %v20194_v52 = vld [vmem:[#allocation8 + $0x1620] ss:$24 sps:$4 sm:$0xff]   ;;  %v968_v3 = vld [vmem:[#allocation5 + $0x1b48] sm:$0xff] }
 0x558   :  { %16060 = vmatprep.subr.bf16.mxu0 %v20184_v1  ;;  %v18126_v1 = vcombine.low %v944_v42, %v956_v46  ;;  %v1076_v42 = vld [vmem:[#allocation5 + $0x1ea8] sm:$0xff] }
 0x559   :  { %v20211_v46 = vld [vmem:[#allocation8 + $0x1714] ss:$24 sps:$4 sm:$0xff]  }
 0x55a   :  { %8310 = vmatpush1.bf16.msra.mxu1 %v18006_v31  ;;  %v18151_v31 = vcombine.high %v968_v3, %v980_v60 }
 0x55b   :  { %8311 = vmatprep.subr.bf16.mxu1 %v18031_v2  ;;  %16061 = vmatpush1.bf16.msra.mxu0 %v20182_v6  ;;  %v20197_v2 = vld [vmem:[#allocation8 + $0x1650] ss:$24 sps:$4 sm:$0xff]  }
 0x55c   :  { %16062 = vmatprep.subr.bf16.mxu0 %v20187_v27  ;;  %v992_v6 = vld [vmem:[#allocation5 + $0x1c08] sm:$0xff]  ;;  %v18150_v27 = vcombine.low %v968_v3, %v980_v60  ;;  %v20214_v60 = vld [vmem:[#allocation8 + $0x1744] ss:$24 sps:$4 sm:$0xff]  }
 0x55d   :  { %v1100_v3 = vld [vmem:[#allocation5 + $0x1f68] sm:$0xff] }
 0x55e   :  { %8312 = vmatpush1.bf16.msra.mxu1 %v18030_v26  ;;  %v18175_v26 = vcombine.high %v992_v6, %v1004_v4 }
 0x55f   :  { %8322 = vmatprep.subr.bf16.mxu1 %v18055_v9  ;;  %16063 = vmatpush1.bf16.msra.mxu0 %v20185_v18  ;;  %v20200_v9 = vld [vmem:[#allocation8 + $0x1680] ss:$24 sps:$4 sm:$0xff]   ;;  %v1016_v18 = vld [vmem:[#allocation5 + $0x1cc8] sm:$0xff] }
 0x560   :  { %16064 = vmatprep.subr.bf16.mxu0 %v20190_v15  ;;  %v18174_v15 = vcombine.low %v992_v6, %v1004_v4  ;;  %v1124_v6 = vld [vmem:[#allocation5 + $0x2028] sm:$0xff] }
 0x561   :  { %8314 = vmatmul.mubr.bf16.vlgmr.msra.gmra.mrb[24].mxu1 %v21872_v25  ;;  %v20217_v4 = vld [vmem:[#allocation8 + $0x1774] ss:$24 sps:$4 sm:$0xff]  }
 0x562   :  { %8323 = vmatpush1.bf16.msra.mxu1 %v18054_v32  ;;  %8354 = vmatprep.mubr.bf16.mxu1 %v21874_v34  ;;  %v18199_v32 = vcombine.high %v1016_v18, %v1028_v29 }
 0x563   :  { %8324 = vmatprep.subr.bf16.mxu1 %v18079_v36  ;;  %16065 = vmatpush1.bf16.msra.mxu0 %v20188_v13  ;;  %v20203_v36 = vld [vmem:[#allocation8 + $0x16b0] ss:$24 sps:$4 sm:$0xff]  }
 0x564   :  { %16066 = vmatprep.subr.bf16.mxu0 %v20193_v37  ;;  %v1040_v13 = vld [vmem:[#allocation5 + $0x1d88] sm:$0xff]  ;;  %v18198_v37 = vcombine.low %v1016_v18, %v1028_v29  ;;  %v20220_v29 = vld [vmem:[#allocation8 + $0x17a4] ss:$24 sps:$4 sm:$0xff]  }
 0x565   :  { %v1148_v18 = vld [vmem:[#allocation5 + $0x20e8] sm:$0xff] }
 0x566   :  { %8325 = vmatpush1.bf16.msra.mxu1 %v18078_v0  ;;  %v18223_v0 = vcombine.high %v1040_v13, %v1052_v7 }
 0x567   :  { %8326 = vmatprep.subr.bf16.mxu1 %v18103_v40  ;;  %16067 = vmatpush1.bf16.msra.mxu0 %v20191_v5  ;;  %v20206_v40 = vld [vmem:[#allocation8 + $0x16e0] ss:$24 sps:$4 sm:$0xff]   ;;  %v1064_v5 = vld [vmem:[#allocation5 + $0x1e48] sm:$0xff] }
 0x568   :  { %16068 = vmatprep.subr.bf16.mxu0 %v20196_v19  ;;  %v18222_v19 = vcombine.low %v1040_v13, %v1052_v7  ;;  %v1172_v13 = vld [vmem:[#allocation5 + $0x21a8] sm:$0xff] }
 0x569   :  { %v20223_v7 = vld [vmem:[#allocation8 + $0x17d4] ss:$24 sps:$4 sm:$0xff]  }
 0x56a   :  { %8327 = vmatpush1.bf16.msra.mxu1 %v18102_v48  ;;  %v18247_v48 = vcombine.high %v1064_v5, %v1076_v42 }
 0x56b   :  { %8328 = vmatprep.subr.bf16.mxu1 %v18127_v49  ;;  %16069 = vmatpush1.bf16.msra.mxu0 %v20194_v52  ;;  %v20209_v49 = vld [vmem:[#allocation8 + $0x1710] ss:$24 sps:$4 sm:$0xff]  }
 0x56c   :  { %16070 = vmatprep.subr.bf16.mxu0 %v20199_v61  ;;  %v1088_v52 = vld [vmem:[#allocation5 + $0x1f08] sm:$0xff]  ;;  %v18246_v61 = vcombine.low %v1064_v5, %v1076_v42  ;;  %v20226_v42 = vld [vmem:[#allocation8 + $0x1804] ss:$24 sps:$4 sm:$0xff]  }
 0x56d   :  { %v1196_v5 = vld [vmem:[#allocation5 + $0x2268] sm:$0xff] }
 0x56e   :  { %8329 = vmatpush1.bf16.msra.mxu1 %v18126_v1  ;;  %v18271_v1 = vcombine.high %v1088_v52, %v1100_v3 }
 0x56f   :  { %8330 = vmatprep.subr.bf16.mxu1 %v18151_v31  ;;  %16071 = vmatpush1.bf16.msra.mxu0 %v20197_v2  ;;  %v20212_v31 = vld [vmem:[#allocation8 + $0x1740] ss:$24 sps:$4 sm:$0xff]   ;;  %v1112_v2 = vld [vmem:[#allocation5 + $0x1fc8] sm:$0xff] }
 0x570   :  { %16072 = vmatprep.subr.bf16.mxu0 %v20202_v21  ;;  %v18270_v21 = vcombine.low %v1088_v52, %v1100_v3 }
 0x572   :  { %8331 = vmatpush1.bf16.msra.mxu1 %v18150_v27  ;;  %v18295_v27 = vcombine.high %v1112_v2, %v1124_v6 }
 0x573   :  { %8332 = vmatprep.subr.bf16.mxu1 %v18175_v26  ;;  %16073 = vmatpush1.bf16.msra.mxu0 %v20200_v9  ;;  %v20215_v26 = vld [vmem:[#allocation8 + $0x1770] ss:$24 sps:$4 sm:$0xff]  }
 0x574   :  { %16074 = vmatprep.subr.bf16.mxu0 %v20205_v30  ;;  %v1136_v9 = vld [vmem:[#allocation5 + $0x2088] sm:$0xff]  ;;  %v18294_v30 = vcombine.low %v1112_v2, %v1124_v6  ;;  %v106_v2 = vld [vmem:[#allocation5 + $0x58] sm:$0xff] }
 0x575   :  { %v118_v6 = vld [vmem:[#allocation5 + $0xb8] sm:$0xff] }
 0x576   :  { %8333 = vmatpush1.bf16.msra.mxu1 %v18174_v15  ;;  %v18319_v15 = vcombine.high %v1136_v9, %v1148_v18 }
 0x577   :  { %8334 = vmatprep.subr.bf16.mxu1 %v18199_v32  ;;  %16075 = vmatpush1.bf16.msra.mxu0 %v20203_v36  ;;  %v20218_v32 = vld [vmem:[#allocation8 + $0x17a0] ss:$24 sps:$4 sm:$0xff]   ;;  %v1160_v36 = vld [vmem:[#allocation5 + $0x2148] sm:$0xff] }
 0x578   :  { %16076 = vmatprep.subr.bf16.mxu0 %v20208_v43  ;;  %v18318_v43 = vcombine.low %v1136_v9, %v1148_v18  ;;  %v17290_v9 = vcombine.low %v106_v2, %v118_v6 }
 0x57a   :  { %8335 = vmatpush1.bf16.msra.mxu1 %v18198_v37  ;;  %v18343_v37 = vcombine.high %v1160_v36, %v1172_v13 }
 0x57b   :  { %8336 = vmatprep.subr.bf16.mxu1 %v18223_v0  ;;  %16077 = vmatpush1.bf16.msra.mxu0 %v20206_v40  ;;  %v20221_v0 = vld [vmem:[#allocation8 + $0x17d0] ss:$24 sps:$4 sm:$0xff]  }
 0x57c   :  { %16078 = vmatprep.subr.bf16.mxu0 %v20211_v46  ;;  %v1184_v40 = vld [vmem:[#allocation5 + $0x2208] sm:$0xff]  ;;  %v18342_v46 = vcombine.low %v1160_v36, %v1172_v13 }
 0x57d   :  { %v18366_v52 = vcombine.low %v1184_v40, %v1196_v5 }
 0x57e   :  { %8337 = vmatpush1.bf16.msra.mxu1 %v18222_v19  ;;  %v18367_v19 = vcombine.high %v1184_v40, %v1196_v5  ;;  %v202_v5 = vld [vmem:[#allocation5 + $0x358] sm:$0xff] }
 0x57f   :  { %8338 = vmatprep.subr.bf16.mxu1 %v18247_v48  ;;  %16079 = vmatpush1.bf16.msra.mxu0 %v20209_v49  ;;  %v1208_v48 = vld [vmem:[#allocation5 + $0x22c8] sm:$0xff] }
 0x580   :  { %16080 = vmatprep.subr.bf16.mxu0 %v20214_v60  ;;  %v1220_v49 = vld [vmem:[#allocation5 + $0x2328] sm:$0xff] }
 0x581   :  { %v18391_v3 = vcombine.high %v1208_v48, %v1220_v49  ;;  %v1232_v60 = vld [vmem:[#allocation5 + $0x2388] sm:$0xff] }
 0x582   :  { %8339 = vmatpush1.bf16.msra.mxu1 %v18246_v61  ;;  %v1244_v61 = vld [vmem:[#allocation5 + $0x23e8] sm:$0xff] }
 0x583   :  { %8340 = vmatprep.subr.bf16.mxu1 %v18271_v1  ;;  %16081 = vmatpush1.bf16.msra.mxu0 %v20212_v31  ;;  %v18390_v1 = vcombine.low %v1208_v48, %v1220_v49  ;;  %v18415_v31 = vcombine.high %v1232_v60, %v1244_v61  ;;  %v226_v48 = vld [vmem:[#allocation5 + $0x418] sm:$0xff] }
 0x584   :  { %16082 = vmatprep.subr.bf16.mxu0 %v20217_v4  ;;  %v18414_v4 = vcombine.low %v1232_v60, %v1244_v61  ;;  %v238_v49 = vld [vmem:[#allocation5 + $0x478] sm:$0xff] }
 0x585   :  { %v250_v61 = vld [vmem:[#allocation5 + $0x4d8] sm:$0xff] }
 0x586   :  { %8341 = vmatpush1.bf16.msra.mxu1 %v18270_v21  ;;  %v17291_v21 = vcombine.high %v106_v2, %v118_v6  ;;  %v17410_v2 = vcombine.low %v226_v48, %v238_v49 }
 0x587   :  { %8342 = vmatprep.subr.bf16.mxu1 %v18295_v27  ;;  %16083 = vmatpush1.bf16.msra.mxu0 %v20215_v26  ;;  %v130_v27 = vld [vmem:[#allocation5 + $0x118] sm:$0xff] }
 0x588   :  { %16084 = vmatprep.subr.bf16.mxu0 %v20220_v29  ;;  %v142_v26 = vld [vmem:[#allocation5 + $0x178] sm:$0xff] }
 0x589   :  { %v17315_v18 = vcombine.high %v130_v27, %v142_v26  ;;  %v154_v29 = vld [vmem:[#allocation5 + $0x1d8] sm:$0xff] }
 0x58a   :  { %8343 = vmatpush1.bf16.msra.mxu1 %v18294_v30  ;;  %v166_v30 = vld [vmem:[#allocation5 + $0x238] sm:$0xff] }
 0x58b   :  { %8344 = vmatprep.subr.bf16.mxu1 %v18319_v15  ;;  %16085 = vmatpush1.bf16.msra.mxu0 %v20218_v32  ;;  %v22151_v15 = vld [vmem:[#allocation7 + $0x10] sm:$0xff]  ;;  %v17314_v32 = vcombine.low %v130_v27, %v142_v26  ;;  %v17339_v36 = vcombine.high %v154_v29, %v166_v30  ;;  %v274_v27 = vld [vmem:[#allocation5 + $0x598] sm:$0xff] }
 0x58c   :  { %16086 = vmatprep.subr.bf16.mxu0 %v20223_v7  ;;  %v1324_v13 = vrot.slane %v22151_v15, %v21937_v17  ;;  %v178_v7 = vld [vmem:[#allocation5 + $0x298] sm:$0xff] }
 0x58d   :  { %v286_v26 = vld [vmem:[#allocation5 + $0x5f8] sm:$0xff] }
 0x58e   :  { %8345 = vmatpush1.bf16.msra.mxu1 %v18318_v43  ;;  %v190_v43 = vld [vmem:[#allocation5 + $0x2f8] sm:$0xff]  ;;  %v22158_v40 = vadd.f32 %v21972_v24, %v1324_v13  ;;  %v1312_v24 = vrot.slane %v22118_v22, %v22051_v39 }
 0x58f   :  { %8346 = vmatprep.subr.bf16.mxu1 %v18343_v37  ;;  %16087 = vmatpush1.bf16.msra.mxu0 %v20221_v0  ;;  %v17338_v37 = vcombine.low %v154_v29, %v166_v30  ;;  %v17363_v0 = vcombine.high %v178_v7, %v190_v43 }
 0x590   :  { %16097 = vmatprep.subr.bf16.mxu0 %v20226_v42  ;;  %v214_v42 = vld [vmem:[#allocation5 + $0x3b8] sm:$0xff] }
 0x592   :  { %8347 = vmatpush1.bf16.msra.mxu1 %v18342_v46  ;;  %v17362_v46 = vcombine.low %v178_v7, %v190_v43  ;;  %v17459_v7 = vcombine.high %v274_v27, %v286_v26 }
 0x593   :  { %8348 = vmatprep.subr.bf16.mxu1 %v18367_v19  ;;  %v8626_v19 = vmul.f32 %v22158_v40, %v22158_v40 }
 0x595   :  { %v8650_v60 = vmul.f32 0.035677407, %v8626_v19 }
 0x596   :  { %8349 = vmatpush1.bf16.msra.mxu1 %v18366_v52  ;;  %v17386_v52 = vcombine.low %v202_v5, %v214_v42 }
 0x597   :  { %8350 = vmatprep.subr.bf16.mxu1 %v18391_v3  ;;  %v17411_v3 = vcombine.high %v226_v48, %v238_v49  ;;  %v322_v49 = vld [vmem:[#allocation5 + $0x718] sm:$0xff] }
 0x59a   :  { %8351 = vmatpush1.bf16.msra.mxu1 %v18390_v1  ;;  %v262_v1 = vld [vmem:[#allocation5 + $0x538] sm:$0xff] }
 0x59b   :  { %8352 = vmatprep.subr.bf16.mxu1 %v18415_v31  ;;  %v1316_v31 = vrot.slane %v22118_v22, %v22048_v14  ;;  %v17435_v6 = vcombine.high %v250_v61, %v262_v1 }
 0x59e   :  { %8353 = vmatpush1.bf16.msra.mxu1 %v18414_v4  ;;  %v8674_v4 = vadd.f32 0.7978846, %v8650_v60 }
 0x59f   :  { %8486 = vmatprep.subr.bf16.mxu1 %v17291_v21 }
 0x5a0   :  { %v8698_v43 = vmul.f32 %v22158_v40, %v8674_v4  ;;  %v370_v4 = vld [vmem:[#allocation5 + $0x898] sm:$0xff] }
 0x5a1   :  { %8355 = vmatmul.mubr.bf16.vlgmr.msra.gmra.mrb[24].mxu1 %v21880_v38 }
 0x5a2   :  { %8487 = vmatpush1.bf16.msra.mxu1 %v17290_v9  ;;  %8518 = vmatprep.mubr.bf16.mxu1 %v21860_v57  ;;  %v17387_v57 = vcombine.high %v202_v5, %v214_v42  ;;  %21596 = vtanh.f32 %v8698_v43 }
 0x5a3   :  { %8488 = vmatprep.subr.bf16.mxu1 %v17315_v18 }
 0x5a6   :  { %8489 = vmatpush1.bf16.msra.mxu1 %v17314_v32  ;;  %v17434_v32 = vcombine.low %v250_v61, %v262_v1 }
 0x5a7   :  { %8490 = vmatprep.subr.bf16.mxu1 %v17339_v36 }
 0x5aa   :  { %8491 = vmatpush1.bf16.msra.mxu1 %v17338_v37  ;;  %v298_v37 = vld [vmem:[#allocation5 + $0x658] sm:$0xff] }
 0x5ab   :  { %8492 = vmatprep.subr.bf16.mxu1 %v17363_v0  ;;  %v310_v0 = vld [vmem:[#allocation5 + $0x6b8] sm:$0xff] }
 0x5ac   :  { %v17483_v19 = vcombine.high %v298_v37, %v310_v0  ;;  %v17482_v61 = vcombine.low %v298_v37, %v310_v0 }
 0x5ae   :  { %8493 = vmatpush1.bf16.msra.mxu1 %v17362_v46  ;;  %v17458_v46 = vcombine.low %v274_v27, %v286_v26  ;;  %v8746_v27 = vmul.f32 0.5, %v22158_v40  ;;  %v21597_v26 = vpop.eup %21596 }
 0x5af   :  { %8494 = vmatprep.subr.bf16.mxu1 %v17387_v57 }
 0x5b2   :  { %8495 = vmatpush1.bf16.msra.mxu1 %v17386_v52  ;;  %v334_v52 = vld [vmem:[#allocation5 + $0x778] sm:$0xff] }
 0x5b3   :  { %8496 = vmatprep.subr.bf16.mxu1 %v17411_v3  ;;  %v17507_v1 = vcombine.high %v322_v49, %v334_v52 }
 0x5b4   :  { %v8110_v21 = vpop.f32.mrb[20].mxu1 }
 0x5b5   :  { %v19586_v9 = vadd.f32 %v8110_v21, %v1312_v24  ;;  %v8112_v18 = vpop.f32.mrb[21].mxu1  ;;  %v346_v24 = vld [vmem:[#allocation5 + $0x7d8] sm:$0xff] }
 0x5b6   :  { %v19587_v29 = vadd.f32 %v8112_v18, %v1316_v31  ;;  %v8114_v30 = vpop.f32.mrb[22].mxu1  ;;  %8497 = vmatpush1.bf16.msra.mxu1 %v17410_v2  ;;  %v358_v31 = vld [vmem:[#allocation5 + $0x838] sm:$0xff]  ;;  %v17506_v2 = vcombine.low %v322_v49, %v334_v52 }
 0x5b7   :  { %v8623_v36 = vmul.f32 %v19586_v9, %v19586_v9  ;;  %v8115_v13 = vpop.f32.mrb[23].mxu1  ;;  %8498 = vmatprep.subr.bf16.mxu1 %v17435_v6  ;;  %v17531_v6 = vcombine.high %v346_v24, %v358_v31  ;;  %v382_v21 = vld [vmem:[#allocation5 + $0x8f8] sm:$0xff]  ;;  %v17530_v18 = vcombine.low %v346_v24, %v358_v31 }
 0x5b8   :  { %v8624_v22 = vmul.f32 %v19587_v29, %v19587_v29  ;;  %v17555_v30 = vcombine.high %v370_v4, %v382_v21  ;;  %v406_v13 = vld [vmem:[#allocation5 + $0x9b8] sm:$0xff]  ;;  %v8744_v43 = vmul.f32 0.5, %v19587_v29 }
 0x5b9   :  { %v8647_v5 = vmul.f32 0.035677407, %v8623_v36  ;;  %v394_v36 = vld [vmem:[#allocation5 + $0x958] sm:$0xff] }
 0x5ba   :  { %v8648_v42 = vmul.f32 0.035677407, %v8624_v22  ;;  %8499 = vmatpush1.bf16.msra.mxu1 %v17434_v32  ;;  %v8743_v32 = vmul.f32 0.5, %v19586_v9  ;;  %v8770_v22 = vmul.f32 %v21597_v26, %v8746_v27  ;;  %v430_v49 = vld [vmem:[#allocation5 + $0xa78] sm:$0xff]  ;;  %v17578_v52 = vcombine.low %v394_v36, %v406_v13 }
 0x5bb   :  { %v8671_v57 = vadd.f32 0.7978846, %v8647_v5  ;;  %8500 = vmatprep.subr.bf16.mxu1 %v17459_v7  ;;  %v17554_v5 = vcombine.low %v370_v4, %v382_v21  ;;  %v454_v24 = vld [vmem:[#allocation5 + $0xb38] sm:$0xff] }
 0x5bc   :  { %v8672_v48 = vadd.f32 0.7978846, %v8648_v42  ;;  %v17579_v42 = vcombine.high %v394_v36, %v406_v13  ;;  %v20232_v21 = vld [vmem:[#allocation8 + $0x1864] ss:$24 sps:$4 sm:$0xff]   ;;  %v20235_v36 = vld [vmem:[#allocation8 + $0x1894] ss:$24 sps:$4 sm:$0xff]  }
 0x5bd   :  { %v8695_v3 = vmul.f32 %v19586_v9, %v8671_v57  ;;  %v478_v26 = vld [vmem:[#allocation5 + $0xbf8] sm:$0xff] }
 0x5be   :  { %v8696_v60 = vmul.f32 %v19587_v29, %v8672_v48  ;;  %8501 = vmatpush1.bf16.msra.mxu1 %v17458_v46  ;;  %v418_v48 = vld [vmem:[#allocation5 + $0xa18] sm:$0xff] }
 0x5bf   :  { %21598 = vtanh.f32 %v8695_v3  ;;  %8502 = vmatprep.subr.bf16.mxu1 %v17483_v19  ;;  %v8794_v19 = vadd.f32 %v8770_v22, %v8746_v27  ;;  %v20224_v3 = vld [vmem:[#allocation8 + $0x1800] ss:$24 sps:$4 sm:$0xff]   ;;  %v20233_v22 = vld [vmem:[#allocation8 + $0x1890] ss:$24 sps:$4 sm:$0xff]  }
 0x5c0   :  { %21600 = vtanh.f32 %v8696_v60  ;;  %v17603_v60 = vcombine.high %v418_v48, %v430_v49  ;;  %v466_v27 = vld [vmem:[#allocation5 + $0xb98] sm:$0xff] }
 0x5c1   :  { %v22173_v31 = vpack.c.bf16 %v8794_v19, %v8794_v19  ;;  %v490_v13 = vld [vmem:[#allocation5 + $0xc58] sm:$0xff]  ;;  %v20241_v19 = vld [vmem:[#allocation8 + $0x18f4] ss:$24 sps:$4 sm:$0xff]  }
 0x5c2   :  { %8503 = vmatpush1.bf16.msra.mxu1 %v17482_v61  ;;  %v20229_v61 = vld [vmem:[#allocation8 + $0x1834] ss:$24 sps:$4 sm:$0xff]  }
 0x5c3   :  { %8504 = vmatprep.subr.bf16.mxu1 %v17507_v1  ;;  %v442_v1 = vld [vmem:[#allocation5 + $0xad8] sm:$0xff] }
 0x5c4   :  { %v17627_v4 = vcombine.high %v442_v1, %v454_v24 }
 0x5c6   :  { %8505 = vmatpush1.bf16.msra.mxu1 %v17506_v2  ;;  %v17602_v2 = vcombine.low %v418_v48, %v430_v49  ;;  %v538_v48 = vld [vmem:[#allocation5 + $0xdd8] sm:$0xff] }
 0x5c7   :  { %8506 = vmatprep.subr.bf16.mxu1 %v17531_v6  ;;  %v20227_v6 = vld [vmem:[#allocation8 + $0x1830] ss:$24 sps:$4 sm:$0xff]   ;;  %v550_v49 = vld [vmem:[#allocation5 + $0xe38] sm:$0xff] }
 0x5c9   :  { %v21599_v7 = vpop.eup %21598 }
 0x5ca   :  { %v21601_v37 = vpop.eup %21600  ;;  %v8767_v0 = vmul.f32 %v21599_v7, %v8743_v32  ;;  %8507 = vmatpush1.bf16.msra.mxu1 %v17530_v18  ;;  %v17626_v18 = vcombine.low %v442_v1, %v454_v24  ;;  %v502_v7 = vld [vmem:[#allocation5 + $0xcb8] sm:$0xff] }
 0x5cb   :  { %8508 = vmatprep.subr.bf16.mxu1 %v17555_v30  ;;  %v8768_v46 = vmul.f32 %v21601_v37, %v8744_v43  ;;  %v20230_v30 = vld [vmem:[#allocation8 + $0x1860] ss:$24 sps:$4 sm:$0xff]   ;;  %v17675_v37 = vcombine.high %v490_v13, %v502_v7  ;;  %v20244_v1 = vld [vmem:[#allocation8 + $0x1924] ss:$24 sps:$4 sm:$0xff]  }
 0x5cc   :  { %v8791_v57 = vadd.f32 %v8767_v0, %v8743_v32  ;;  %v17651_v32 = vcombine.high %v466_v27, %v478_v26  ;;  %v20238_v0 = vld [vmem:[#allocation8 + $0x18c4] ss:$24 sps:$4 sm:$0xff]  }
 0x5cd   :  { %v8792_v40 = vadd.f32 %v8768_v46, %v8744_v43  ;;  %v17650_v43 = vcombine.low %v466_v27, %v478_v26  ;;  %v17674_v46 = vcombine.low %v490_v13, %v502_v7  ;;  %v562_v24 = vld [vmem:[#allocation5 + $0xe98] sm:$0xff] }
 0x5ce   :  { %8509 = vmatpush1.bf16.msra.mxu1 %v17554_v5  ;;  %v22170_v29 = vpack.c.bf16 %v8791_v57, %v8791_v57  ;;  %v514_v5 = vld [vmem:[#allocation5 + $0xd18] sm:$0xff] }
 0x5cf   :  { %8510 = vmatprep.subr.bf16.mxu1 %v17579_v42  ;;  %v22168_v9 = vpack.c.bf16 %v8792_v40, %v8792_v40  ;;  %v526_v42 = vld [vmem:[#allocation5 + $0xd78] sm:$0xff] }
 0x5d0   :  { %v20236_v57 = vld [vmem:[#allocation8 + $0x18c0] ss:$24 sps:$4 sm:$0xff]   ;;  %v17699_v40 = vcombine.high %v514_v5, %v526_v42 }
 0x5d1   :  { %16088 = vmatprep.mubr.bf16.mxu0 %v22168_v9  ;;  %v586_v27 = vld [vmem:[#allocation5 + $0xf58] sm:$0xff] }
 0x5d2   :  { %8511 = vmatpush1.bf16.msra.mxu1 %v17578_v52  ;;  %16089 = vmatmul.mubr.bf16.vlgmr.msra.gmra.mrb[16].mxu0 %v22170_v29  ;;  %v17698_v52 = vcombine.low %v514_v5, %v526_v42  ;;  %v598_v26 = vld [vmem:[#allocation5 + $0xfb8] sm:$0xff]  ;;  %v20253_v5 = vld [vmem:[#allocation8 + $0x19b4] ss:$24 sps:$4 sm:$0xff]  }
 0x5d3   :  { %16098 = vmatpush1.bf16.msra.mxu0 %v20224_v3  ;;  %16129 = vmatprep.mubr.bf16.mxu0 %v22173_v31  ;;  %v1320_v3 = vrot.slane %v22151_v15, %v21957_v55  ;;  %v610_v13 = vld [vmem:[#allocation5 + $0x1018] sm:$0xff] }
 0x5d4   :  { %8512 = vmatprep.subr.bf16.mxu1 %v17603_v60  ;;  %16099 = vmatprep.subr.bf16.mxu0 %v20229_v61  ;;  %v20239_v60 = vld [vmem:[#allocation8 + $0x18f0] ss:$24 sps:$4 sm:$0xff]   ;;  %v17723_v61 = vcombine.high %v538_v48, %v550_v49  ;;  %v622_v7 = vld [vmem:[#allocation5 + $0x1078] sm:$0xff] }
 0x5d5   :  { %v634_v42 = vld [vmem:[#allocation5 + $0x10d8] sm:$0xff] }
 0x5d6   :  { %8513 = vmatpush1.bf16.msra.mxu1 %v17602_v2  ;;  %v574_v2 = vld [vmem:[#allocation5 + $0xef8] sm:$0xff] }
 0x5d7   :  { %16100 = vmatpush1.bf16.msra.mxu0 %v20227_v6  ;;  %8514 = vmatprep.subr.bf16.mxu1 %v17627_v4  ;;  %v17722_v6 = vcombine.low %v538_v48, %v550_v49  ;;  %v22182_v4 = vadd.f32 %v21970_v16, %v1320_v3  ;;  %v20250_v16 = vld [vmem:[#allocation8 + $0x1984] ss:$24 sps:$4 sm:$0xff]  }
 0x5d8   :  { %16101 = vmatprep.subr.bf16.mxu0 %v20232_v21  ;;  %v20247_v21 = vld [vmem:[#allocation8 + $0x1954] ss:$24 sps:$4 sm:$0xff]   ;;  %v20256_v49 = vld [vmem:[#allocation8 + $0x19e4] ss:$24 sps:$4 sm:$0xff]  }
 0x5d9   :  { %v670_v3 = vld [vmem:[#allocation5 + $0x11f8] sm:$0xff] }
 0x5da   :  { %8515 = vmatpush1.bf16.msra.mxu1 %v17626_v18  ;;  %v17746_v18 = vcombine.low %v562_v24, %v574_v2 }
 0x5db   :  { %16102 = vmatpush1.bf16.msra.mxu0 %v20230_v30  ;;  %8516 = vmatprep.subr.bf16.mxu1 %v17651_v32  ;;  %v8625_v30 = vmul.f32 %v22182_v4, %v22182_v4  ;;  %v20245_v32 = vld [vmem:[#allocation8 + $0x1950] ss:$24 sps:$4 sm:$0xff]  }
 0x5dc   :  { %16103 = vmatprep.subr.bf16.mxu0 %v20235_v36  ;;  %v17771_v36 = vcombine.high %v586_v27, %v598_v26 }
 0x5de   :  { %8517 = vmatpush1.bf16.msra.mxu1 %v17650_v43  ;;  %v17770_v43 = vcombine.low %v586_v27, %v598_v26  ;;  %v20262_v26 = vld [vmem:[#allocation8 + $0x1a44] ss:$24 sps:$4 sm:$0xff]  }
 0x5df   :  { %16104 = vmatpush1.bf16.msra.mxu0 %v20233_v22  ;;  %8527 = vmatprep.subr.bf16.mxu1 %v17675_v37  ;;  %v8649_v22 = vmul.f32 0.035677407, %v8625_v30  ;;  %v20248_v37 = vld [vmem:[#allocation8 + $0x1980] ss:$24 sps:$4 sm:$0xff]  }
 0x5e0   :  { %16105 = vmatprep.subr.bf16.mxu0 %v20238_v0  ;;  %v17795_v0 = vcombine.high %v610_v13, %v622_v7  ;;  %v718_v30 = vld [vmem:[#allocation5 + $0x1378] sm:$0xff] }
 0x5e1   :  { %8519 = vmatmul.mubr.bf16.vlgmr.msra.gmra.mrb[28].mxu1 %v21864_v12  ;;  %v20242_v12 = vld [vmem:[#allocation8 + $0x1920] ss:$24 sps:$4 sm:$0xff]  }
 0x5e2   :  { %8528 = vmatpush1.bf16.msra.mxu1 %v17674_v46  ;;  %8559 = vmatprep.mubr.bf16.mxu1 %v21866_v23  ;;  %v17747_v23 = vcombine.high %v562_v24, %v574_v2  ;;  %v646_v46 = vld [vmem:[#allocation5 + $0x1138] sm:$0xff]  ;;  %v20259_v2 = vld [vmem:[#allocation8 + $0x1a14] ss:$24 sps:$4 sm:$0xff]  }
 0x5e3   :  { %16106 = vmatpush1.bf16.msra.mxu0 %v20236_v57  ;;  %8529 = vmatprep.subr.bf16.mxu1 %v17699_v40  ;;  %v17794_v57 = vcombine.low %v610_v13, %v622_v7  ;;  %v8673_v40 = vadd.f32 0.7978846, %v8649_v22  ;;  %v17819_v48 = vcombine.high %v634_v42, %v646_v46  ;;  %v20265_v13 = vld [vmem:[#allocation8 + $0x1a74] ss:$24 sps:$4 sm:$0xff]   ;;  %v730_v7 = vld [vmem:[#allocation5 + $0x13d8] sm:$0xff] }
 0x5e4   :  { %16107 = vmatprep.subr.bf16.mxu0 %v20241_v19  ;;  %v20251_v19 = vld [vmem:[#allocation8 + $0x19b0] ss:$24 sps:$4 sm:$0xff]  }
 0x5e6   :  { %8530 = vmatpush1.bf16.msra.mxu1 %v17698_v52  ;;  %v658_v52 = vld [vmem:[#allocation5 + $0x1198] sm:$0xff] }
 0x5e7   :  { %16108 = vmatpush1.bf16.msra.mxu0 %v20239_v60  ;;  %8531 = vmatprep.subr.bf16.mxu1 %v17723_v61  ;;  %v17818_v60 = vcombine.low %v634_v42, %v646_v46  ;;  %v8697_v61 = vmul.f32 %v22182_v4, %v8673_v40  ;;  %v17843_v24 = vcombine.high %v658_v52, %v670_v3  ;;  %v20268_v42 = vld [vmem:[#allocation8 + $0x1aa4] ss:$24 sps:$4 sm:$0xff]  }
 0x5e8   :  { %16109 = vmatprep.subr.bf16.mxu0 %v20244_v1  ;;  %v20254_v1 = vld [vmem:[#allocation8 + $0x19e0] ss:$24 sps:$4 sm:$0xff]  }
 0x5e9   :  { %21602 = vtanh.f32 %v8697_v61  ;;  %v754_v46 = vld [vmem:[#allocation5 + $0x1498] sm:$0xff] }
 0x5ea   :  { %8532 = vmatpush1.bf16.msra.mxu1 %v17722_v6  ;;  %v682_v6 = vld [vmem:[#allocation5 + $0x1258] sm:$0xff] }
 0x5eb   :  { %16110 = vmatpush1.bf16.msra.mxu0 %v20242_v12  ;;  %8533 = vmatprep.subr.bf16.mxu1 %v17747_v23  ;;  %v694_v12 = vld [vmem:[#allocation5 + $0x12b8] sm:$0xff]  ;;  %v17842_v23 = vcombine.low %v658_v52, %v670_v3  ;;  %v20271_v3 = vld [vmem:[#allocation8 + $0x1ad4] ss:$24 sps:$4 sm:$0xff]  }
 0x5ec   :  { %16111 = vmatprep.subr.bf16.mxu0 %v20247_v21  ;;  %v20257_v21 = vld [vmem:[#allocation8 + $0x1a10] ss:$24 sps:$4 sm:$0xff]   ;;  %v17867_v27 = vcombine.high %v682_v6, %v694_v12  ;;  %v790_v61 = vld [vmem:[#allocation5 + $0x15b8] sm:$0xff] }
 0x5ee   :  { %8534 = vmatpush1.bf16.msra.mxu1 %v17746_v18  ;;  %v706_v18 = vld [vmem:[#allocation5 + $0x1318] sm:$0xff] }
 0x5ef   :  { %16112 = vmatpush1.bf16.msra.mxu0 %v20245_v32  ;;  %8535 = vmatprep.subr.bf16.mxu1 %v17771_v36  ;;  %v17866_v32 = vcombine.low %v682_v6, %v694_v12  ;;  %v20260_v36 = vld [vmem:[#allocation8 + $0x1a40] ss:$24 sps:$4 sm:$0xff]   ;;  %v17890_v22 = vcombine.low %v706_v18, %v718_v30 }
 0x5f0   :  { %16113 = vmatprep.subr.bf16.mxu0 %v20250_v16  ;;  %v17891_v16 = vcombine.high %v706_v18, %v718_v30  ;;  %v802_v6 = vld [vmem:[#allocation5 + $0x1618] sm:$0xff] }
 0x5f1   :  { %v814_v12 = vld [vmem:[#allocation5 + $0x1678] sm:$0xff] }
 0x5f2   :  { %8536 = vmatpush1.bf16.msra.mxu1 %v17770_v43  ;;  %v742_v43 = vld [vmem:[#allocation5 + $0x1438] sm:$0xff] }
 0x5f3   :  { %16114 = vmatpush1.bf16.msra.mxu0 %v20248_v37  ;;  %8537 = vmatprep.subr.bf16.mxu1 %v17795_v0  ;;  %v20263_v37 = vld [vmem:[#allocation8 + $0x1a70] ss:$24 sps:$4 sm:$0xff]   ;;  %v17915_v0 = vcombine.high %v730_v7, %v742_v43  ;;  %v21603_v40 = vpop.eup %21602  ;;  %v826_v30 = vld [vmem:[#allocation5 + $0x16d8] sm:$0xff] }
 0x5f4   :  { %16115 = vmatprep.subr.bf16.mxu0 %v20253_v5  ;;  %v8745_v5 = vmul.f32 0.5, %v22182_v4  ;;  %v20269_v4 = vld [vmem:[#allocation8 + $0x1ad0] ss:$24 sps:$4 sm:$0xff]  }
 0x5f6   :  { %8538 = vmatpush1.bf16.msra.mxu1 %v17794_v57  ;;  %v766_v57 = vld [vmem:[#allocation5 + $0x14f8] sm:$0xff]  ;;  %v8769_v52 = vmul.f32 %v21603_v40, %v8745_v5  ;;  %v20283_v40 = vld [vmem:[#allocation8 + $0x1b94] ss:$24 sps:$4 sm:$0xff]  }
 0x5f7   :  { %16116 = vmatpush1.bf16.msra.mxu0 %v20251_v19  ;;  %8539 = vmatprep.subr.bf16.mxu1 %v17819_v48  ;;  %v17914_v19 = vcombine.low %v730_v7, %v742_v43  ;;  %v20266_v48 = vld [vmem:[#allocation8 + $0x1aa0] ss:$24 sps:$4 sm:$0xff]   ;;  %v20275_v7 = vld [vmem:[#allocation8 + $0x1b30] ss:$24 sps:$4 sm:$0xff]  }
 0x5f8   :  { %16117 = vmatprep.subr.bf16.mxu0 %v20256_v49  ;;  %v17939_v49 = vcombine.high %v754_v46, %v766_v57  ;;  %v850_v43 = vld [vmem:[#allocation5 + $0x1798] sm:$0xff] }
 0x5fa   :  { %8540 = vmatpush1.bf16.msra.mxu1 %v17818_v60  ;;  %v778_v60 = vld [vmem:[#allocation5 + $0x1558] sm:$0xff] }
 0x5fb   :  { %16118 = vmatpush1.bf16.msra.mxu0 %v20254_v1  ;;  %8541 = vmatprep.subr.bf16.mxu1 %v17843_v24  ;;  %v17938_v1 = vcombine.low %v754_v46, %v766_v57  ;;  %v17963_v24 = vcombine.high %v778_v60, %v790_v61  ;;  %v874_v46 = vld [vmem:[#allocation5 + $0x1858] sm:$0xff] }
 0x5fc   :  { %16119 = vmatprep.subr.bf16.mxu0 %v20259_v2  ;;  %v8793_v2 = vadd.f32 %v8769_v52, %v8745_v5  ;;  %v886_v57 = vld [vmem:[#allocation5 + $0x18b8] sm:$0xff] }
 0x5fd   :  { %v898_v52 = vld [vmem:[#allocation5 + $0x1918] sm:$0xff] }
 0x5fe   :  { %8542 = vmatpush1.bf16.msra.mxu1 %v17842_v23  ;;  %v20274_v23 = vld [vmem:[#allocation8 + $0x1b04] ss:$24 sps:$4 sm:$0xff]   ;;  %v22188_v18 = vpack.c.bf16 %v8793_v2, %v8793_v2 }
 0x5ff   :  { %16120 = vmatpush1.bf16.msra.mxu0 %v20257_v21  ;;  %8543 = vmatprep.subr.bf16.mxu1 %v17867_v27  ;;  %v17962_v21 = vcombine.low %v778_v60, %v790_v61  ;;  %v17987_v27 = vcombine.high %v802_v6, %v814_v12  ;;  %v20286_v60 = vld [vmem:[#allocation8 + $0x1bc4] ss:$24 sps:$4 sm:$0xff]   ;;  %v18058_v61 = vcombine.low %v874_v46, %v886_v57 }
 0x600   :  { %16121 = vmatprep.subr.bf16.mxu0 %v20262_v26  ;;  %v20272_v26 = vld [vmem:[#allocation8 + $0x1b00] ss:$24 sps:$4 sm:$0xff]  }
 0x601   :  { %v934_v2 = vld [vmem:[#allocation5 + $0x1a38] sm:$0xff] }
 0x602   :  { %8544 = vmatpush1.bf16.msra.mxu1 %v17866_v32  ;;  %v838_v32 = vld [vmem:[#allocation5 + $0x1738] sm:$0xff] }
 0x603   :  { %16122 = vmatpush1.bf16.msra.mxu0 %v20260_v36  ;;  %8545 = vmatprep.subr.bf16.mxu1 %v17891_v16  ;;  %v20277_v36 = vld [vmem:[#allocation8 + $0x1b34] ss:$24 sps:$4 sm:$0xff]   ;;  %v17986_v16 = vcombine.low %v802_v6, %v814_v12 }
 0x604   :  { %16123 = vmatprep.subr.bf16.mxu0 %v20265_v13  ;;  %v18011_v13 = vcombine.high %v826_v30, %v838_v32  ;;  %v20292_v6 = vld [vmem:[#allocation8 + $0x1bf4] ss:$24 sps:$4 sm:$0xff]  }
 0x606   :  { %8546 = vmatpush1.bf16.msra.mxu1 %v17890_v22  ;;  %v862_v22 = vld [vmem:[#allocation5 + $0x17f8] sm:$0xff] }
 0x607   :  { %16124 = vmatpush1.bf16.msra.mxu0 %v20263_v37  ;;  %8547 = vmatprep.subr.bf16.mxu1 %v17915_v0  ;;  %v20280_v37 = vld [vmem:[#allocation8 + $0x1b64] ss:$24 sps:$4 sm:$0xff]   ;;  %v18010_v0 = vcombine.low %v826_v30, %v838_v32  ;;  %v18035_v5 = vcombine.high %v850_v43, %v862_v22 }
 0x608   :  { %16125 = vmatprep.subr.bf16.mxu0 %v20268_v42  ;;  %v20278_v42 = vld [vmem:[#allocation8 + $0x1b60] ss:$24 sps:$4 sm:$0xff]   ;;  %v20298_v30 = vld [vmem:[#allocation8 + $0x1c24] ss:$24 sps:$4 sm:$0xff]  }
 0x60a   :  { %8548 = vmatpush1.bf16.msra.mxu1 %v17914_v19  ;;  %v18034_v19 = vcombine.low %v850_v43, %v862_v22  ;;  %v20302_v22 = vld [vmem:[#allocation8 + $0x1c50] ss:$24 sps:$4 sm:$0xff]  }
 0x60b   :  { %16126 = vmatpush1.bf16.msra.mxu0 %v20266_v48  ;;  %8549 = vmatprep.subr.bf16.mxu1 %v17939_v49  ;;  %v18059_v48 = vcombine.high %v874_v46, %v886_v57  ;;  %v20281_v49 = vld [vmem:[#allocation8 + $0x1b90] ss:$24 sps:$4 sm:$0xff]   ;;  %v20308_v57 = vld [vmem:[#allocation8 + $0x1c80] ss:$24 sps:$4 sm:$0xff]  }
 0x60c   :  { %16127 = vmatprep.subr.bf16.mxu0 %v20271_v3  ;;  %v910_v3 = vld [vmem:[#allocation5 + $0x1978] sm:$0xff] }
 0x60d   :  { %v18082_v12 = vcombine.low %v898_v52, %v910_v3 }
 0x60e   :  { %8550 = vmatpush1.bf16.msra.mxu1 %v17938_v1  ;;  %v18083_v1 = vcombine.high %v898_v52, %v910_v3  ;;  %v20314_v3 = vld [vmem:[#allocation8 + $0x1cb0] ss:$24 sps:$4 sm:$0xff]  }
 0x60f   :  { %16128 = vmatpush1.bf16.msra.mxu0 %v20269_v4  ;;  %8551 = vmatprep.subr.bf16.mxu1 %v17963_v24  ;;  %v20284_v4 = vld [vmem:[#allocation8 + $0x1bc0] ss:$24 sps:$4 sm:$0xff]  }
 0x610   :  { %16138 = vmatprep.subr.bf16.mxu0 %v20274_v23  ;;  %v922_v24 = vld [vmem:[#allocation5 + $0x19d8] sm:$0xff] }
 0x611   :  { %v18107_v23 = vcombine.high %v922_v24, %v934_v2  ;;  %v18106_v32 = vcombine.low %v922_v24, %v934_v2  ;;  %v20320_v2 = vld [vmem:[#allocation8 + $0x1ce0] ss:$24 sps:$4 sm:$0xff]  }
 0x612   :  { %16130 = vmatmul.mubr.bf16.vlgmr.msra.gmra.mrb[16].mxu0 %v22188_v18  ;;  %8552 = vmatpush1.bf16.msra.mxu1 %v17962_v21  ;;  %v20290_v21 = vld [vmem:[#allocation8 + $0x1bf0] ss:$24 sps:$4 sm:$0xff]  }
 0x613   :  { %8553 = vmatprep.subr.bf16.mxu1 %v17987_v27  ;;  %16139 = vmatpush1.bf16.msra.mxu0 %v20272_v26  ;;  %v946_v27 = vld [vmem:[#allocation5 + $0x1a98] sm:$0xff] }
 0x614   :  { %16140 = vmatprep.subr.bf16.mxu0 %v20277_v36  ;;  %v958_v26 = vld [vmem:[#allocation5 + $0x1af8] sm:$0xff] }
 0x615   :  { %v18131_v36 = vcombine.high %v946_v27, %v958_v26 }
 0x616   :  { %8554 = vmatpush1.bf16.msra.mxu1 %v17986_v16  ;;  %v20296_v16 = vld [vmem:[#allocation8 + $0x1c20] ss:$24 sps:$4 sm:$0xff]  }
 0x617   :  { %8555 = vmatprep.subr.bf16.mxu1 %v18011_v13  ;;  %16141 = vmatpush1.bf16.msra.mxu0 %v20275_v7  ;;  %v970_v13 = vld [vmem:[#allocation5 + $0x1b58] sm:$0xff]  ;;  %v20304_v7 = vld [vmem:[#allocation8 + $0x1c54] ss:$24 sps:$4 sm:$0xff]  }
 0x618   :  { %16142 = vmatprep.subr.bf16.mxu0 %v20280_v37  ;;  %v994_v37 = vld [vmem:[#allocation5 + $0x1c18] sm:$0xff] }
 0x61a   :  { %8556 = vmatpush1.bf16.msra.mxu1 %v18010_v0  ;;  %v1006_v0 = vld [vmem:[#allocation5 + $0x1c78] sm:$0xff] }
 0x61b   :  { %8557 = vmatprep.subr.bf16.mxu1 %v18035_v5  ;;  %16143 = vmatpush1.bf16.msra.mxu0 %v20278_v42  ;;  %v20310_v5 = vld [vmem:[#allocation8 + $0x1c84] ss:$24 sps:$4 sm:$0xff]   ;;  %v18179_v46 = vcombine.high %v994_v37, %v1006_v0 }
 0x61c   :  { %16144 = vmatprep.subr.bf16.mxu0 %v20283_v40  ;;  %v1018_v40 = vld [vmem:[#allocation5 + $0x1cd8] sm:$0xff] }
 0x61e   :  { %8558 = vmatpush1.bf16.msra.mxu1 %v18034_v19  ;;  %v1030_v19 = vld [vmem:[#allocation5 + $0x1d38] sm:$0xff] }
 0x61f   :  { %8568 = vmatprep.subr.bf16.mxu1 %v18059_v48  ;;  %16145 = vmatpush1.bf16.msra.mxu0 %v20281_v49  ;;  %v20316_v48 = vld [vmem:[#allocation8 + $0x1cb4] ss:$24 sps:$4 sm:$0xff]   ;;  %v18178_v49 = vcombine.low %v994_v37, %v1006_v0  ;;  %v18203_v52 = vcombine.high %v1018_v40, %v1030_v19  ;;  %v20338_v0 = vld [vmem:[#allocation8 + $0x1d70] ss:$24 sps:$4 sm:$0xff]  }
 0x620   :  { %16146 = vmatprep.subr.bf16.mxu0 %v20286_v60  ;;  %v1042_v60 = vld [vmem:[#allocation5 + $0x1d98] sm:$0xff] }
 0x621   :  { %8560 = vmatmul.mubr.bf16.vlgmr.msra.gmra.mrb[28].mxu1 %v21872_v25  ;;  %v982_v25 = vld [vmem:[#allocation5 + $0x1bb8] sm:$0xff] }
 0x622   :  { %8569 = vmatpush1.bf16.msra.mxu1 %v18058_v61  ;;  %8600 = vmatprep.mubr.bf16.mxu1 %v21874_v34  ;;  %v18130_v34 = vcombine.low %v946_v27, %v958_v26  ;;  %v18155_v43 = vcombine.high %v970_v13, %v982_v25  ;;  %v18154_v42 = vcombine.low %v970_v13, %v982_v25  ;;  %v1054_v61 = vld [vmem:[#allocation5 + $0x1df8] sm:$0xff]  ;;  %v20326_v26 = vld [vmem:[#allocation8 + $0x1d10] ss:$24 sps:$4 sm:$0xff]  }
 0x623   :  { %8570 = vmatprep.subr.bf16.mxu1 %v18083_v1  ;;  %16147 = vmatpush1.bf16.msra.mxu0 %v20284_v4  ;;  %v20322_v1 = vld [vmem:[#allocation8 + $0x1ce4] ss:$24 sps:$4 sm:$0xff]   ;;  %v18202_v4 = vcombine.low %v1018_v40, %v1030_v19  ;;  %v18227_v24 = vcombine.high %v1042_v60, %v1054_v61  ;;  %v20332_v25 = vld [vmem:[#allocation8 + $0x1d40] ss:$24 sps:$4 sm:$0xff]  }
 0x624   :  { %16148 = vmatprep.subr.bf16.mxu0 %v20292_v6  ;;  %v1066_v6 = vld [vmem:[#allocation5 + $0x1e58] sm:$0xff] }
 0x625   :  { %v20344_v19 = vld [vmem:[#allocation8 + $0x1da0] ss:$24 sps:$4 sm:$0xff]  }
 0x626   :  { %8571 = vmatpush1.bf16.msra.mxu1 %v18082_v12  ;;  %v1078_v12 = vld [vmem:[#allocation5 + $0x1eb8] sm:$0xff] }
 0x627   :  { %8572 = vmatprep.subr.bf16.mxu1 %v18107_v23  ;;  %16149 = vmatpush1.bf16.msra.mxu0 %v20290_v21  ;;  %v20328_v23 = vld [vmem:[#allocation8 + $0x1d14] ss:$24 sps:$4 sm:$0xff]   ;;  %v18226_v21 = vcombine.low %v1042_v60, %v1054_v61  ;;  %v18251_v27 = vcombine.high %v1066_v6, %v1078_v12  ;;  %v20350_v61 = vld [vmem:[#allocation8 + $0x1dd0] ss:$24 sps:$4 sm:$0xff]  }
 0x628   :  { %16150 = vmatprep.subr.bf16.mxu0 %v20298_v30  ;;  %v1090_v30 = vld [vmem:[#allocation5 + $0x1f18] sm:$0xff] }
 0x62a   :  { %8573 = vmatpush1.bf16.msra.mxu1 %v18106_v32  ;;  %v1102_v32 = vld [vmem:[#allocation5 + $0x1f78] sm:$0xff] }
 0x62b   :  { %8574 = vmatprep.subr.bf16.mxu1 %v18131_v36  ;;  %16151 = vmatpush1.bf16.msra.mxu0 %v20296_v16  ;;  %v20334_v36 = vld [vmem:[#allocation8 + $0x1d44] ss:$24 sps:$4 sm:$0xff]   ;;  %v18250_v16 = vcombine.low %v1066_v6, %v1078_v12  ;;  %v18275_v13 = vcombine.high %v1090_v30, %v1102_v32 }
 0x62c   :  { %16152 = vmatprep.subr.bf16.mxu0 %v20304_v7  ;;  %v1114_v7 = vld [vmem:[#allocation5 + $0x1fd8] sm:$0xff] }
 0x62d   :  { %v1210_v12 = vld [vmem:[#allocation5 + $0x22d8] sm:$0xff] }
 0x62e   :  { %8575 = vmatpush1.bf16.msra.mxu1 %v18130_v34  ;;  %v1126_v34 = vld [vmem:[#allocation5 + $0x2038] sm:$0xff] }
 0x62f   :  { %8576 = vmatprep.subr.bf16.mxu1 %v18155_v43  ;;  %16153 = vmatpush1.bf16.msra.mxu0 %v20302_v22  ;;  %v20340_v43 = vld [vmem:[#allocation8 + $0x1d74] ss:$24 sps:$4 sm:$0xff]   ;;  %v18274_v22 = vcombine.low %v1090_v30, %v1102_v32  ;;  %v18299_v37 = vcombine.high %v1114_v7, %v1126_v34  ;;  %v1246_v30 = vld [vmem:[#allocation5 + $0x23f8] sm:$0xff] }
 0x630   :  { %16154 = vmatprep.subr.bf16.mxu0 %v20310_v5  ;;  %v1138_v5 = vld [vmem:[#allocation5 + $0x2098] sm:$0xff] }
 0x632   :  { %8577 = vmatpush1.bf16.msra.mxu1 %v18154_v42  ;;  %v1150_v42 = vld [vmem:[#allocation5 + $0x20f8] sm:$0xff] }
 0x633   :  { %8578 = vmatprep.subr.bf16.mxu1 %v18179_v46  ;;  %16155 = vmatpush1.bf16.msra.mxu0 %v20308_v57  ;;  %v20346_v46 = vld [vmem:[#allocation8 + $0x1da4] ss:$24 sps:$4 sm:$0xff]   ;;  %v18298_v57 = vcombine.low %v1114_v7, %v1126_v34  ;;  %v18323_v40 = vcombine.high %v1138_v5, %v1150_v42  ;;  %v20293_v34 = vld [vmem:[#allocation8 + $0x38] ss:$24 sps:$4 sm:$0xff]  }
 0x634   :  { %16156 = vmatprep.subr.bf16.mxu0 %v20316_v48  ;;  %v1162_v48 = vld [vmem:[#allocation5 + $0x2158] sm:$0xff]  ;;  %v20295_v7 = vld [vmem:[#allocation8 + $0x3c] ss:$24 sps:$4 sm:$0xff]  }
 0x636   :  { %8579 = vmatpush1.bf16.msra.mxu1 %v18178_v49  ;;  %v1174_v49 = vld [vmem:[#allocation5 + $0x21b8] sm:$0xff] }
 0x637   :  { %8580 = vmatprep.subr.bf16.mxu1 %v18203_v52  ;;  %16157 = vmatpush1.bf16.msra.mxu0 %v20314_v3  ;;  %v20352_v52 = vld [vmem:[#allocation8 + $0x1dd4] ss:$24 sps:$4 sm:$0xff]   ;;  %v18322_v3 = vcombine.low %v1138_v5, %v1150_v42  ;;  %v18347_v60 = vcombine.high %v1162_v48, %v1174_v49  ;;  %v20305_v42 = vld [vmem:[#allocation8 + $0x98] ss:$24 sps:$4 sm:$0xff]  }
 0x638   :  { %16158 = vmatprep.subr.bf16.mxu0 %v20322_v1  ;;  %v1186_v1 = vld [vmem:[#allocation5 + $0x2218] sm:$0xff] }
 0x63a   :  { %8581 = vmatpush1.bf16.msra.mxu1 %v18202_v4  ;;  %v1198_v4 = vld [vmem:[#allocation5 + $0x2278] sm:$0xff] }
 0x63b   :  { %8582 = vmatprep.subr.bf16.mxu1 %v18227_v24  ;;  %16159 = vmatpush1.bf16.msra.mxu0 %v20320_v2  ;;  %v20358_v24 = vld [vmem:[#allocation8 + $0x1e04] ss:$24 sps:$4 sm:$0xff]   ;;  %v18346_v2 = vcombine.low %v1162_v48, %v1174_v49  ;;  %v18371_v6 = vcombine.high %v1186_v1, %v1198_v4  ;;  %v1328_v48 = vrot.slane %v22151_v15, %v21997_v51 }
 0x63c   :  { %16160 = vmatprep.subr.bf16.mxu0 %v20328_v23  ;;  %v1222_v23 = vld [vmem:[#allocation5 + $0x2338] sm:$0xff]  ;;  %v1332_v49 = vrot.slane %v22151_v15, %v21960_v59 }
 0x63d   :  { %v18394_v32 = vcombine.low %v1210_v12, %v1222_v23 }
 0x63e   :  { %8583 = vmatpush1.bf16.msra.mxu1 %v18226_v21  ;;  %v18370_v21 = vcombine.low %v1186_v1, %v1198_v4 }
 0x63f   :  { %8584 = vmatprep.subr.bf16.mxu1 %v18251_v27  ;;  %16161 = vmatpush1.bf16.msra.mxu0 %v20326_v26  ;;  %v18395_v27 = vcombine.high %v1210_v12, %v1222_v23  ;;  %v1234_v26 = vld [vmem:[#allocation5 + $0x2398] sm:$0xff]  ;;  %v20331_v23 = vld [vmem:[#allocation8 + $0x15c] ss:$24 sps:$4 sm:$0xff]  }
 0x640   :  { %16162 = vmatprep.subr.bf16.mxu0 %v20334_v36  ;;  %v18419_v36 = vcombine.high %v1234_v26, %v1246_v30 }
 0x642   :  { %8585 = vmatpush1.bf16.msra.mxu1 %v18250_v16  ;;  %v18418_v16 = vcombine.low %v1234_v26, %v1246_v30 }
 0x643   :  { %8586 = vmatprep.subr.bf16.mxu1 %v18275_v13  ;;  %16163 = vmatpush1.bf16.msra.mxu0 %v20332_v25  ;;  %v20289_v13 = vld [vmem:[#allocation8 + $0xc] ss:$24 sps:$4 sm:$0xff]   ;;  %v20287_v25 = vld [vmem:[#allocation8 + $0x8] ss:$24 sps:$4 sm:$0xff]  }
 0x644   :  { %16164 = vmatprep.subr.bf16.mxu0 %v20340_v43  ;;  %v20301_v43 = vld [vmem:[#allocation8 + $0x6c] ss:$24 sps:$4 sm:$0xff]  }
 0x646   :  { %8587 = vmatpush1.bf16.msra.mxu1 %v18274_v22  ;;  %v1340_v22 = vrot.slane %v22151_v15, %v22000_v58  ;;  %v20329_v15 = vld [vmem:[#allocation8 + $0x158] ss:$24 sps:$4 sm:$0xff]  }
 0x647   :  { %8588 = vmatprep.subr.bf16.mxu1 %v18299_v37  ;;  %16165 = vmatpush1.bf16.msra.mxu0 %v20338_v0  ;;  %v20299_v37 = vld [vmem:[#allocation8 + $0x68] ss:$24 sps:$4 sm:$0xff]   ;;  %v20307_v0 = vld [vmem:[#allocation8 + $0x9c] ss:$24 sps:$4 sm:$0xff]  }
 0x648   :  { %16166 = vmatprep.subr.bf16.mxu0 %v20346_v46  ;;  %v19593_v5 = vadd.f32 %v22065_v53, %v1340_v22  ;;  %v20313_v46 = vld [vmem:[#allocation8 + $0xcc] ss:$24 sps:$4 sm:$0xff]  }
 0x649   :  { %v20325_v53 = vld [vmem:[#allocation8 + $0x12c] ss:$24 sps:$4 sm:$0xff]  }
 0x64a   :  { %8589 = vmatpush1.bf16.msra.mxu1 %v18298_v57  ;;  %v20311_v57 = vld [vmem:[#allocation8 + $0xc8] ss:$24 sps:$4 sm:$0xff]   ;;  %v20349_v22 = vld [vmem:[#allocation8 + $0x1ec] ss:$24 sps:$4 sm:$0xff]  }
 0x64b   :  { %8590 = vmatprep.subr.bf16.mxu1 %v18323_v40  ;;  %16167 = vmatpush1.bf16.msra.mxu0 %v20344_v19  ;;  %v20319_v40 = vld [vmem:[#allocation8 + $0xfc] ss:$24 sps:$4 sm:$0xff]  }
 0x64c   :  { %16168 = vmatprep.subr.bf16.mxu0 %v20352_v52  ;;  %v20317_v52 = vld [vmem:[#allocation8 + $0xf8] ss:$24 sps:$4 sm:$0xff]  }
 0x64e   :  { %8591 = vmatpush1.bf16.msra.mxu1 %v18322_v3 }
 0x64f   :  { %8592 = vmatprep.subr.bf16.mxu1 %v18347_v60  ;;  %16169 = vmatpush1.bf16.msra.mxu0 %v20350_v61 }
 0x650   :  { %16179 = vmatprep.subr.bf16.mxu0 %v20358_v24 }
 0x652   :  { %8593 = vmatpush1.bf16.msra.mxu1 %v18346_v2  ;;  %v20323_v2 = vld [vmem:[#allocation8 + $0x128] ss:$24 sps:$4 sm:$0xff]  }
 0x653   :  { %8594 = vmatprep.subr.bf16.mxu1 %v18371_v6 }
 0x656   :  { %8595 = vmatpush1.bf16.msra.mxu1 %v18370_v21 }
 0x657   :  { %8596 = vmatprep.subr.bf16.mxu1 %v18395_v27 }
 0x65a   :  { %8597 = vmatpush1.bf16.msra.mxu1 %v18394_v32 }
 0x65b   :  { %8598 = vmatprep.subr.bf16.mxu1 %v18419_v36  ;;  %v20337_v36 = vld [vmem:[#allocation8 + $0x18c] ss:$24 sps:$4 sm:$0xff]  }
 0x65e   :  { %8599 = vmatpush1.bf16.msra.mxu1 %v18418_v16 }
 0x65f   :  { %16261 = vmatprep.subr.bf16.mxu1 %v20289_v13 }
 0x661   :  { %8601 = vmatmul.mubr.bf16.vlgmr.msra.gmra.mrb[28].mxu1 %v21880_v38  ;;  %v8630_v38 = vmul.f32 %v19593_v5, %v19593_v5 }
 0x662   :  { %16262 = vmatpush1.bf16.msra.mxu1 %v20287_v25  ;;  %16293 = vmatprep.mubr.bf16.mxu1 %v21951_v33 }
 0x663   :  { %16263 = vmatprep.subr.bf16.mxu1 %v20295_v7  ;;  %v8654_v19 = vmul.f32 0.035677407, %v8630_v38  ;;  %v20335_v7 = vld [vmem:[#allocation8 + $0x188] ss:$24 sps:$4 sm:$0xff]  }
 0x665   :  { %v8678_v3 = vadd.f32 0.7978846, %v8654_v19 }
 0x666   :  { %16264 = vmatpush1.bf16.msra.mxu1 %v20293_v34  ;;  %v20343_v34 = vld [vmem:[#allocation8 + $0x1bc] ss:$24 sps:$4 sm:$0xff]  }
 0x667   :  { %16265 = vmatprep.subr.bf16.mxu1 %v20301_v43  ;;  %v8702_v21 = vmul.f32 %v19593_v5, %v8678_v3  ;;  %v20341_v43 = vld [vmem:[#allocation8 + $0x1b8] ss:$24 sps:$4 sm:$0xff]   ;;  %v20361_v3 = vld [vmem:[#allocation8 + $0x24c] ss:$24 sps:$4 sm:$0xff]  }
 0x669   :  { %21604 = vtanh.f32 %v8702_v21  ;;  %v20365_v21 = vld [vmem:[#allocation8 + $0x278] ss:$24 sps:$4 sm:$0xff]  }
 0x66a   :  { %16266 = vmatpush1.bf16.msra.mxu1 %v20299_v37  ;;  %v8750_v37 = vmul.f32 0.5, %v19593_v5  ;;  %v20359_v5 = vld [vmem:[#allocation8 + $0x248] ss:$24 sps:$4 sm:$0xff]  }
 0x66b   :  { %16267 = vmatprep.subr.bf16.mxu1 %v20307_v0 }
 0x66e   :  { %16268 = vmatpush1.bf16.msra.mxu1 %v20305_v42  ;;  %v20347_v42 = vld [vmem:[#allocation8 + $0x1e8] ss:$24 sps:$4 sm:$0xff]  }
 0x66f   :  { %16269 = vmatprep.subr.bf16.mxu1 %v20313_v46  ;;  %v20355_v46 = vld [vmem:[#allocation8 + $0x21c] ss:$24 sps:$4 sm:$0xff]  }
 0x672   :  { %16270 = vmatpush1.bf16.msra.mxu1 %v20311_v57 }
 0x673   :  { %16271 = vmatprep.subr.bf16.mxu1 %v20319_v40  ;;  %v21605_v0 = vpop.eup %21604 }
 0x674   :  { %v8356_v60 = vpop.f32.mrb[24].mxu1  ;;  %v8774_v19 = vmul.f32 %v21605_v0, %v8750_v37  ;;  %v20388_v0 = vld [vmem:[#allocation8 + $0x1ef4] ss:$24 sps:$4 sm:$0xff]  }
 0x675   :  { %v19590_v61 = vadd.f32 %v8356_v60, %v1328_v48  ;;  %v8358_v1 = vpop.f32.mrb[25].mxu1 }
 0x676   :  { %v19591_v4 = vadd.f32 %v8358_v1, %v1332_v49  ;;  %v8360_v24 = vpop.f32.mrb[26].mxu1  ;;  %16272 = vmatpush1.bf16.msra.mxu1 %v20317_v52  ;;  %v20353_v52 = vld [vmem:[#allocation8 + $0x218] ss:$24 sps:$4 sm:$0xff]  }
 0x677   :  { %v8627_v6 = vmul.f32 %v19590_v61, %v19590_v61  ;;  %v8361_v12 = vpop.f32.mrb[27].mxu1  ;;  %16273 = vmatprep.subr.bf16.mxu1 %v20325_v53  ;;  %v8747_v38 = vmul.f32 0.5, %v19590_v61  ;;  %v8798_v24 = vadd.f32 %v8774_v19, %v8750_v37  ;;  %v20391_v37 = vld [vmem:[#allocation8 + $0x33c] ss:$24 sps:$4 sm:$0xff]  }
 0x678   :  { %v8628_v27 = vmul.f32 %v19591_v4, %v19591_v4  ;;  %v8748_v40 = vmul.f32 0.5, %v19591_v4  ;;  %v20367_v12 = vld [vmem:[#allocation8 + $0x27c] ss:$24 sps:$4 sm:$0xff]  }
 0x679   :  { %v8651_v26 = vmul.f32 0.035677407, %v8627_v6  ;;  %v20356_v6 = vld [vmem:[#allocation8 + $0x1e00] ss:$24 sps:$4 sm:$0xff]   ;;  %v20394_v19 = vld [vmem:[#allocation8 + $0x1f24] ss:$24 sps:$4 sm:$0xff]  }
 0x67a   :  { %v8652_v30 = vmul.f32 0.035677407, %v8628_v27  ;;  %16274 = vmatpush1.bf16.msra.mxu1 %v20323_v2  ;;  %v20362_v27 = vld [vmem:[#allocation8 + $0x1e30] ss:$24 sps:$4 sm:$0xff]  }
 0x67b   :  { %v8675_v32 = vadd.f32 0.7978846, %v8651_v26  ;;  %16275 = vmatprep.subr.bf16.mxu1 %v20331_v23  ;;  %v22207_v23 = vpack.c.bf16 %v8798_v24, %v8798_v24  ;;  %v20373_v26 = vld [vmem:[#allocation8 + $0x2ac] ss:$24 sps:$4 sm:$0xff]   ;;  %v20398_v24 = vld [vmem:[#allocation8 + $0x1f50] ss:$24 sps:$4 sm:$0xff]  }
 0x67c   :  { %v8676_v16 = vadd.f32 0.7978846, %v8652_v30  ;;  %v20370_v30 = vld [vmem:[#allocation8 + $0x1e64] ss:$24 sps:$4 sm:$0xff]  }
 0x67d   :  { %v8699_v13 = vmul.f32 %v19590_v61, %v8675_v32  ;;  %v20368_v32 = vld [vmem:[#allocation8 + $0x1e60] ss:$24 sps:$4 sm:$0xff]  }
 0x67e   :  { %v8700_v25 = vmul.f32 %v19591_v4, %v8676_v16  ;;  %16276 = vmatpush1.bf16.msra.mxu1 %v20329_v15  ;;  %v20364_v4 = vld [vmem:[#allocation8 + $0x1e34] ss:$24 sps:$4 sm:$0xff]   ;;  %v20371_v15 = vld [vmem:[#allocation8 + $0x2a8] ss:$24 sps:$4 sm:$0xff]  }
 0x67f   :  { %21606 = vtanh.f32 %v8699_v13  ;;  %16277 = vmatprep.subr.bf16.mxu1 %v20337_v36  ;;  %v20379_v36 = vld [vmem:[#allocation8 + $0x2dc] ss:$24 sps:$4 sm:$0xff]   ;;  %v20377_v13 = vld [vmem:[#allocation8 + $0x2d8] ss:$24 sps:$4 sm:$0xff]  }
 0x680   :  { %21608 = vtanh.f32 %v8700_v25  ;;  %v20376_v16 = vld [vmem:[#allocation8 + $0x1e94] ss:$24 sps:$4 sm:$0xff]   ;;  %v20374_v25 = vld [vmem:[#allocation8 + $0x1e90] ss:$24 sps:$4 sm:$0xff]  }
 0x682   :  { %16278 = vmatpush1.bf16.msra.mxu1 %v20335_v7  ;;  %v20385_v7 = vld [vmem:[#allocation8 + $0x30c] ss:$24 sps:$4 sm:$0xff]  }
 0x683   :  { %16279 = vmatprep.subr.bf16.mxu1 %v20343_v34  ;;  %v20382_v34 = vld [vmem:[#allocation8 + $0x1ec4] ss:$24 sps:$4 sm:$0xff]  }
 0x686   :  { %16280 = vmatpush1.bf16.msra.mxu1 %v20341_v43  ;;  %v20383_v43 = vld [vmem:[#allocation8 + $0x308] ss:$24 sps:$4 sm:$0xff]  }
 0x687   :  { %16281 = vmatprep.subr.bf16.mxu1 %v20349_v22  ;;  %v20380_v22 = vld [vmem:[#allocation8 + $0x1ec0] ss:$24 sps:$4 sm:$0xff]  }
 0x689   :  { %v21607_v57 = vpop.eup %21606 }
 0x68a   :  { %v21609_v48 = vpop.eup %21608  ;;  %v8771_v49 = vmul.f32 %v21607_v57, %v8747_v38  ;;  %16282 = vmatpush1.bf16.msra.mxu1 %v20347_v42  ;;  %v20389_v42 = vld [vmem:[#allocation8 + $0x338] ss:$24 sps:$4 sm:$0xff]  }
 0x68b   :  { %16283 = vmatprep.subr.bf16.mxu1 %v20355_v46  ;;  %v8772_v53 = vmul.f32 %v21609_v48, %v8748_v40  ;;  %v22213_v46 = vld [vmem:[#allocation7 + $0x10] sm:$0xff]  ;;  %v20386_v57 = vld [vmem:[#allocation8 + $0x1ef0] ss:$24 sps:$4 sm:$0xff]  }
 0x68c   :  { %v8795_v60 = vadd.f32 %v8771_v49, %v8747_v38  ;;  %v1336_v38 = vrot.slane %v22213_v46, %v22029_v50  ;;  %v20395_v48 = vld [vmem:[#allocation8 + $0x368] ss:$24 sps:$4 sm:$0xff]  }
 0x68d   :  { %v8796_v1 = vadd.f32 %v8772_v53, %v8748_v40  ;;  %v20397_v40 = vld [vmem:[#allocation8 + $0x36c] ss:$24 sps:$4 sm:$0xff]   ;;  %v20403_v53 = vld [vmem:[#allocation8 + $0x39c] ss:$24 sps:$4 sm:$0xff]  }
 0x68e   :  { %16284 = vmatpush1.bf16.msra.mxu1 %v20353_v52  ;;  %v22204_v61 = vpack.c.bf16 %v8795_v60, %v8795_v60  ;;  %v22218_v49 = vadd.f32 %v22061_v56, %v1336_v38  ;;  %v20392_v52 = vld [vmem:[#allocation8 + $0x1f20] ss:$24 sps:$4 sm:$0xff]  }
 0x68f   :  { %v22202_v2 = vpack.c.bf16 %v8796_v1, %v8796_v1  ;;  %16285 = vmatprep.subr.bf16.mxu1 %v20361_v3  ;;  %v20400_v3 = vld [vmem:[#allocation8 + $0x1f54] ss:$24 sps:$4 sm:$0xff]   ;;  %v20401_v60 = vld [vmem:[#allocation8 + $0x398] ss:$24 sps:$4 sm:$0xff]   ;;  %v20407_v56 = vld [vmem:[#allocation8 + $0x3c8] ss:$24 sps:$4 sm:$0xff]  }
 0x690   :  { %v8629_v1 = vmul.f32 %v22218_v49, %v22218_v49  ;;  %v20428_v38 = vld [vmem:[#allocation8 + $0x2040] ss:$24 sps:$4 sm:$0xff]  }
 0x691   :  { %16170 = vmatprep.mubr.bf16.mxu0 %v22202_v2 }
 0x692   :  { %16171 = vmatmul.mubr.bf16.vlgmr.msra.gmra.mrb[16].mxu0 %v22204_v61  ;;  %16286 = vmatpush1.bf16.msra.mxu1 %v20359_v5  ;;  %v20409_v5 = vld [vmem:[#allocation8 + $0x3cc] ss:$24 sps:$4 sm:$0xff]  }
 0x693   :  { %16180 = vmatpush1.bf16.msra.mxu0 %v20356_v6  ;;  %16211 = vmatprep.mubr.bf16.mxu0 %v22207_v23  ;;  %v20406_v6 = vld [vmem:[#allocation8 + $0x1f84] ss:$24 sps:$4 sm:$0xff]  }
 0x694   :  { %16181 = vmatprep.subr.bf16.mxu0 %v20364_v4  ;;  %16287 = vmatprep.subr.bf16.mxu1 %v20367_v12  ;;  %v8653_v4 = vmul.f32 0.035677407, %v8629_v1  ;;  %v20404_v12 = vld [vmem:[#allocation8 + $0x1f80] ss:$24 sps:$4 sm:$0xff]  }
 0x695   :  { %v20443_v1 = vld [vmem:[#allocation8 + $0x4e8] ss:$24 sps:$4 sm:$0xff]  }
 0x696   :  { %16288 = vmatpush1.bf16.msra.mxu1 %v20365_v21  ;;  %v20415_v21 = vld [vmem:[#allocation8 + $0x3fc] ss:$24 sps:$4 sm:$0xff]  }
 0x697   :  { %16182 = vmatpush1.bf16.msra.mxu0 %v20362_v27  ;;  %16289 = vmatprep.subr.bf16.mxu1 %v20373_v26  ;;  %v20412_v27 = vld [vmem:[#allocation8 + $0x1fb4] ss:$24 sps:$4 sm:$0xff]   ;;  %v20413_v26 = vld [vmem:[#allocation8 + $0x3f8] ss:$24 sps:$4 sm:$0xff]  }
 0x698   :  { %16183 = vmatprep.subr.bf16.mxu0 %v20370_v30  ;;  %v8677_v30 = vadd.f32 0.7978846, %v8653_v4  ;;  %v20449_v4 = vld [vmem:[#allocation8 + $0x518] ss:$24 sps:$4 sm:$0xff]  }
 0x69a   :  { %16290 = vmatpush1.bf16.msra.mxu1 %v20371_v15  ;;  %v20410_v15 = vld [vmem:[#allocation8 + $0x1fb0] ss:$24 sps:$4 sm:$0xff]  }
 0x69b   :  { %16184 = vmatpush1.bf16.msra.mxu0 %v20368_v32  ;;  %16291 = vmatprep.subr.bf16.mxu1 %v20379_v36  ;;  %v20421_v32 = vld [vmem:[#allocation8 + $0x42c] ss:$24 sps:$4 sm:$0xff]  }
 0x69c   :  { %16185 = vmatprep.subr.bf16.mxu0 %v20376_v16  ;;  %v20418_v36 = vld [vmem:[#allocation8 + $0x1fe4] ss:$24 sps:$4 sm:$0xff]   ;;  %v20419_v16 = vld [vmem:[#allocation8 + $0x428] ss:$24 sps:$4 sm:$0xff]  }
 0x69e   :  { %16292 = vmatpush1.bf16.msra.mxu1 %v20377_v13  ;;  %v8701_v13 = vmul.f32 %v22218_v49, %v8677_v30  ;;  %v20457_v30 = vld [vmem:[#allocation8 + $0x57c] ss:$24 sps:$4 sm:$0xff]  }
 0x69f   :  { %16186 = vmatpush1.bf16.msra.mxu0 %v20374_v25  ;;  %16302 = vmatprep.subr.bf16.mxu1 %v20385_v7  ;;  %v20416_v25 = vld [vmem:[#allocation8 + $0x1fe0] ss:$24 sps:$4 sm:$0xff]   ;;  %v20427_v7 = vld [vmem:[#allocation8 + $0x45c] ss:$24 sps:$4 sm:$0xff]  }
 0x6a0   :  { %16187 = vmatprep.subr.bf16.mxu0 %v20382_v34  ;;  %v20424_v34 = vld [vmem:[#allocation8 + $0x2014] ss:$24 sps:$4 sm:$0xff]   ;;  %21610 = vtanh.f32 %v8701_v13 }
 0x6a1   :  { %16294 = vmatmul.mubr.bf16.vlgmr.msra.gmra.mrb[32].mxu1 %v21988_v11  ;;  %v20460_v13 = vld [vmem:[#allocation8 + $0x5ac] ss:$24 sps:$4 sm:$0xff]  }
 0x6a2   :  { %16303 = vmatpush1.bf16.msra.mxu1 %v20383_v43  ;;  %16334 = vmatprep.mubr.bf16.mxu1 %v21991_v28  ;;  %v20425_v43 = vld [vmem:[#allocation8 + $0x458] ss:$24 sps:$4 sm:$0xff]  }
 0x6a3   :  { %16188 = vmatpush1.bf16.msra.mxu0 %v20380_v22  ;;  %16304 = vmatprep.subr.bf16.mxu1 %v20391_v37  ;;  %v20422_v22 = vld [vmem:[#allocation8 + $0x2010] ss:$24 sps:$4 sm:$0xff]   ;;  %v20433_v37 = vld [vmem:[#allocation8 + $0x48c] ss:$24 sps:$4 sm:$0xff]  }
 0x6a4   :  { %16189 = vmatprep.subr.bf16.mxu0 %v20388_v0  ;;  %v20430_v0 = vld [vmem:[#allocation8 + $0x2044] ss:$24 sps:$4 sm:$0xff]  }
 0x6a6   :  { %16305 = vmatpush1.bf16.msra.mxu1 %v20389_v42  ;;  %v20431_v42 = vld [vmem:[#allocation8 + $0x488] ss:$24 sps:$4 sm:$0xff]  }
 0x6a7   :  { %16190 = vmatpush1.bf16.msra.mxu0 %v20386_v57  ;;  %16306 = vmatprep.subr.bf16.mxu1 %v20397_v40  ;;  %v20439_v57 = vld [vmem:[#allocation8 + $0x4bc] ss:$24 sps:$4 sm:$0xff]  }
 0x6a8   :  { %16191 = vmatprep.subr.bf16.mxu0 %v20394_v19  ;;  %v20436_v40 = vld [vmem:[#allocation8 + $0x2074] ss:$24 sps:$4 sm:$0xff]   ;;  %v20437_v19 = vld [vmem:[#allocation8 + $0x4b8] ss:$24 sps:$4 sm:$0xff]  }
 0x6aa   :  { %16307 = vmatpush1.bf16.msra.mxu1 %v20395_v48  ;;  %v20434_v48 = vld [vmem:[#allocation8 + $0x2070] ss:$24 sps:$4 sm:$0xff]  }
 0x6ab   :  { %16192 = vmatpush1.bf16.msra.mxu0 %v20392_v52  ;;  %16308 = vmatprep.subr.bf16.mxu1 %v20403_v53  ;;  %v20445_v52 = vld [vmem:[#allocation8 + $0x4ec] ss:$24 sps:$4 sm:$0xff]   ;;  %v8749_v53 = vmul.f32 0.5, %v22218_v49 }
 0x6ac   :  { %16193 = vmatprep.subr.bf16.mxu0 %v20400_v3  ;;  %v20442_v3 = vld [vmem:[#allocation8 + $0x20a4] ss:$24 sps:$4 sm:$0xff]  }
 0x6ad   :  { %v20502_v49 = vld [vmem:[#allocation8 + $0x2104] ss:$24 sps:$4 sm:$0xff]  }
 0x6ae   :  { %16309 = vmatpush1.bf16.msra.mxu1 %v20401_v60  ;;  %v21611_v60 = vpop.eup %21610 }
 0x6af   :  { %16194 = vmatpush1.bf16.msra.mxu0 %v20398_v24  ;;  %16310 = vmatprep.subr.bf16.mxu1 %v20409_v5  ;;  %v20440_v24 = vld [vmem:[#allocation8 + $0x20a0] ss:$24 sps:$4 sm:$0xff]   ;;  %v20451_v5 = vld [vmem:[#allocation8 + $0x51c] ss:$24 sps:$4 sm:$0xff]  }
 0x6b0   :  { %16195 = vmatprep.subr.bf16.mxu0 %v20406_v6  ;;  %v8773_v6 = vmul.f32 %v21611_v60, %v8749_v53  ;;  %v20530_v60 = vld [vmem:[#allocation8 + $0x21f0] ss:$24 sps:$4 sm:$0xff]  }
 0x6b2   :  { %16311 = vmatpush1.bf16.msra.mxu1 %v20407_v56  ;;  %v20448_v56 = vld [vmem:[#allocation8 + $0x20d4] ss:$24 sps:$4 sm:$0xff]  }
 0x6b3   :  { %16196 = vmatpush1.bf16.msra.mxu0 %v20404_v12  ;;  %16312 = vmatprep.subr.bf16.mxu1 %v20415_v21  ;;  %v20446_v12 = vld [vmem:[#allocation8 + $0x20d0] ss:$24 sps:$4 sm:$0xff]   ;;  %v20454_v21 = vld [vmem:[#allocation8 + $0x54c] ss:$24 sps:$4 sm:$0xff]  }
 0x6b4   :  { %16197 = vmatprep.subr.bf16.mxu0 %v20412_v27  ;;  %v8797_v27 = vadd.f32 %v8773_v6, %v8749_v53  ;;  %v20467_v53 = vld [vmem:[#allocation8 + $0x638] ss:$24 sps:$4 sm:$0xff]  }
 0x6b5   :  { %v20536_v6 = vld [vmem:[#allocation8 + $0x2220] ss:$24 sps:$4 sm:$0xff]  }
 0x6b6   :  { %16313 = vmatpush1.bf16.msra.mxu1 %v20413_v26  ;;  %v20452_v26 = vld [vmem:[#allocation8 + $0x548] ss:$24 sps:$4 sm:$0xff]  }
 0x6b7   :  { %16198 = vmatpush1.bf16.msra.mxu0 %v20410_v15  ;;  %16314 = vmatprep.subr.bf16.mxu1 %v20421_v32  ;;  %v20500_v15 = vld [vmem:[#allocation8 + $0x2100] ss:$24 sps:$4 sm:$0xff]   ;;  %v22224_v32 = vpack.c.bf16 %v8797_v27, %v8797_v27  ;;  %v20550_v27 = vld [vmem:[#allocation8 + $0x2284] ss:$24 sps:$4 sm:$0xff]  }
 0x6b8   :  { %16199 = vmatprep.subr.bf16.mxu0 %v20418_v36  ;;  %v20508_v36 = vld [vmem:[#allocation8 + $0x2134] ss:$24 sps:$4 sm:$0xff]  }
 0x6ba   :  { %16315 = vmatpush1.bf16.msra.mxu1 %v20419_v16  ;;  %v20455_v16 = vld [vmem:[#allocation8 + $0x578] ss:$24 sps:$4 sm:$0xff]  }
 0x6bb   :  { %16200 = vmatpush1.bf16.msra.mxu0 %v20416_v25  ;;  %16316 = vmatprep.subr.bf16.mxu1 %v20427_v7  ;;  %v20506_v25 = vld [vmem:[#allocation8 + $0x2130] ss:$24 sps:$4 sm:$0xff]   ;;  %v20514_v7 = vld [vmem:[#allocation8 + $0x2164] ss:$24 sps:$4 sm:$0xff]  }
 0x6bc   :  { %16201 = vmatprep.subr.bf16.mxu0 %v20424_v34  ;;  %v20458_v34 = vld [vmem:[#allocation8 + $0x5a8] ss:$24 sps:$4 sm:$0xff]  }
 0x6be   :  { %16317 = vmatpush1.bf16.msra.mxu1 %v20425_v43  ;;  %v20463_v43 = vld [vmem:[#allocation8 + $0x5dc] ss:$24 sps:$4 sm:$0xff]  }
 0x6bf   :  { %16202 = vmatpush1.bf16.msra.mxu0 %v20422_v22  ;;  %16318 = vmatprep.subr.bf16.mxu1 %v20433_v37  ;;  %v20512_v22 = vld [vmem:[#allocation8 + $0x2160] ss:$24 sps:$4 sm:$0xff]   ;;  %v20520_v37 = vld [vmem:[#allocation8 + $0x2194] ss:$24 sps:$4 sm:$0xff]  }
 0x6c0   :  { %16203 = vmatprep.subr.bf16.mxu0 %v20430_v0  ;;  %v20461_v0 = vld [vmem:[#allocation8 + $0x5d8] ss:$24 sps:$4 sm:$0xff]  }
 0x6c2   :  { %16319 = vmatpush1.bf16.msra.mxu1 %v20431_v42  ;;  %v20466_v42 = vld [vmem:[#allocation8 + $0x60c] ss:$24 sps:$4 sm:$0xff]  }
 0x6c3   :  { %16204 = vmatpush1.bf16.msra.mxu0 %v20428_v38  ;;  %16320 = vmatprep.subr.bf16.mxu1 %v20439_v57  ;;  %v20518_v38 = vld [vmem:[#allocation8 + $0x2190] ss:$24 sps:$4 sm:$0xff]   ;;  %v20526_v57 = vld [vmem:[#allocation8 + $0x21c4] ss:$24 sps:$4 sm:$0xff]  }
 0x6c4   :  { %16205 = vmatprep.subr.bf16.mxu0 %v20436_v40  ;;  %v20464_v40 = vld [vmem:[#allocation8 + $0x608] ss:$24 sps:$4 sm:$0xff]  }
 0x6c6   :  { %16321 = vmatpush1.bf16.msra.mxu1 %v20437_v19  ;;  %v20469_v19 = vld [vmem:[#allocation8 + $0x63c] ss:$24 sps:$4 sm:$0xff]  }
 0x6c7   :  { %16206 = vmatpush1.bf16.msra.mxu0 %v20434_v48  ;;  %16322 = vmatprep.subr.bf16.mxu1 %v20445_v52  ;;  %v20524_v48 = vld [vmem:[#allocation8 + $0x21c0] ss:$24 sps:$4 sm:$0xff]   ;;  %v20532_v52 = vld [vmem:[#allocation8 + $0x21f4] ss:$24 sps:$4 sm:$0xff]  }
 0x6c8   :  { %16207 = vmatprep.subr.bf16.mxu0 %v20442_v3  ;;  %v20472_v3 = vld [vmem:[#allocation8 + $0x66c] ss:$24 sps:$4 sm:$0xff]  }
 0x6ca   :  { %16323 = vmatpush1.bf16.msra.mxu1 %v20443_v1  ;;  %v20538_v1 = vld [vmem:[#allocation8 + $0x2224] ss:$24 sps:$4 sm:$0xff]  }
 0x6cb   :  { %16208 = vmatpush1.bf16.msra.mxu0 %v20440_v24  ;;  %16324 = vmatprep.subr.bf16.mxu1 %v20451_v5  ;;  %v20470_v24 = vld [vmem:[#allocation8 + $0x668] ss:$24 sps:$4 sm:$0xff]   ;;  %v20475_v5 = vld [vmem:[#allocation8 + $0x69c] ss:$24 sps:$4 sm:$0xff]  }
 0x6cc   :  { %16209 = vmatprep.subr.bf16.mxu0 %v20448_v56  ;;  %v20544_v56 = vld [vmem:[#allocation8 + $0x2254] ss:$24 sps:$4 sm:$0xff]  }
 0x6ce   :  { %16325 = vmatpush1.bf16.msra.mxu1 %v20449_v4  ;;  %v20473_v4 = vld [vmem:[#allocation8 + $0x698] ss:$24 sps:$4 sm:$0xff]  }
 0x6cf   :  { %16210 = vmatpush1.bf16.msra.mxu0 %v20446_v12  ;;  %16326 = vmatprep.subr.bf16.mxu1 %v20454_v21  ;;  %v20478_v12 = vld [vmem:[#allocation8 + $0x6cc] ss:$24 sps:$4 sm:$0xff]   ;;  %v20542_v21 = vld [vmem:[#allocation8 + $0x2250] ss:$24 sps:$4 sm:$0xff]  }
 0x6d0   :  { %16220 = vmatprep.subr.bf16.mxu0 %v20502_v49  ;;  %v20476_v49 = vld [vmem:[#allocation8 + $0x6c8] ss:$24 sps:$4 sm:$0xff]  }
 0x6d2   :  { %16212 = vmatmul.mubr.bf16.vlgmr.msra.gmra.mrb[16].mxu0 %v22224_v32  ;;  %16327 = vmatpush1.bf16.msra.mxu1 %v20452_v26  ;;  %v20481_v26 = vld [vmem:[#allocation8 + $0x6fc] ss:$24 sps:$4 sm:$0xff]  }
 0x6d3   :  { %16328 = vmatprep.subr.bf16.mxu1 %v20457_v30  ;;  %16221 = vmatpush1.bf16.msra.mxu0 %v20500_v15  ;;  %v20548_v30 = vld [vmem:[#allocation8 + $0x2280] ss:$24 sps:$4 sm:$0xff]   ;;  %v20556_v15 = vld [vmem:[#allocation8 + $0x22b4] ss:$24 sps:$4 sm:$0xff]  }
 0x6d4   :  { %16222 = vmatprep.subr.bf16.mxu0 %v20508_v36  ;;  %v20479_v36 = vld [vmem:[#allocation8 + $0x6f8] ss:$24 sps:$4 sm:$0xff]  }
 0x6d6   :  { %16329 = vmatpush1.bf16.msra.mxu1 %v20455_v16  ;;  %v20484_v16 = vld [vmem:[#allocation8 + $0x72c] ss:$24 sps:$4 sm:$0xff]  }
 0x6d7   :  { %16330 = vmatprep.subr.bf16.mxu1 %v20460_v13  ;;  %16223 = vmatpush1.bf16.msra.mxu0 %v20506_v25  ;;  %v20554_v13 = vld [vmem:[#allocation8 + $0x22b0] ss:$24 sps:$4 sm:$0xff]   ;;  %v20562_v25 = vld [vmem:[#allocation8 + $0x22e4] ss:$24 sps:$4 sm:$0xff]  }
 0x6d8   :  { %16224 = vmatprep.subr.bf16.mxu0 %v20514_v7  ;;  %v20482_v7 = vld [vmem:[#allocation8 + $0x728] ss:$24 sps:$4 sm:$0xff]  }
 0x6da   :  { %16331 = vmatpush1.bf16.msra.mxu1 %v20458_v34  ;;  %v20487_v34 = vld [vmem:[#allocation8 + $0x75c] ss:$24 sps:$4 sm:$0xff]  }
 0x6db   :  { %16332 = vmatprep.subr.bf16.mxu1 %v20463_v43  ;;  %16225 = vmatpush1.bf16.msra.mxu0 %v20512_v22  ;;  %v20560_v43 = vld [vmem:[#allocation8 + $0x22e0] ss:$24 sps:$4 sm:$0xff]   ;;  %v20568_v22 = vld [vmem:[#allocation8 + $0x2314] ss:$24 sps:$4 sm:$0xff]  }
 0x6dc   :  { %16226 = vmatprep.subr.bf16.mxu0 %v20520_v37  ;;  %v20485_v37 = vld [vmem:[#allocation8 + $0x758] ss:$24 sps:$4 sm:$0xff]  }
 0x6de   :  { %16333 = vmatpush1.bf16.msra.mxu1 %v20461_v0  ;;  %v20490_v0 = vld [vmem:[#allocation8 + $0x78c] ss:$24 sps:$4 sm:$0xff]  }
 0x6df   :  { %16343 = vmatprep.subr.bf16.mxu1 %v20466_v42  ;;  %16227 = vmatpush1.bf16.msra.mxu0 %v20518_v38  ;;  %v20566_v42 = vld [vmem:[#allocation8 + $0x2310] ss:$24 sps:$4 sm:$0xff]   ;;  %v20574_v38 = vld [vmem:[#allocation8 + $0x2344] ss:$24 sps:$4 sm:$0xff]  }
 0x6e0   :  { %16228 = vmatprep.subr.bf16.mxu0 %v20526_v57  ;;  %v20488_v57 = vld [vmem:[#allocation8 + $0x788] ss:$24 sps:$4 sm:$0xff]  }
 0x6e1   :  { %16335 = vmatmul.mubr.bf16.vlgmr.msra.gmra.mrb[32].mxu1 %v22020_v63 }
 0x6e2   :  { %16344 = vmatpush1.bf16.msra.mxu1 %v20464_v40  ;;  %16375 = vmatprep.mubr.bf16.mxu1 %v22023_v10  ;;  %v20493_v40 = vld [vmem:[#allocation8 + $0x7bc] ss:$24 sps:$4 sm:$0xff]  }
 0x6e3   :  { %16345 = vmatprep.subr.bf16.mxu1 %v20469_v19  ;;  %16229 = vmatpush1.bf16.msra.mxu0 %v20524_v48  ;;  %v20572_v19 = vld [vmem:[#allocation8 + $0x2340] ss:$24 sps:$4 sm:$0xff]   ;;  %v20580_v48 = vld [vmem:[#allocation8 + $0x2374] ss:$24 sps:$4 sm:$0xff]  }
 0x6e4   :  { %16230 = vmatprep.subr.bf16.mxu0 %v20532_v52  ;;  %v20491_v52 = vld [vmem:[#allocation8 + $0x7b8] ss:$24 sps:$4 sm:$0xff]  }
 0x6e6   :  { %16346 = vmatpush1.bf16.msra.mxu1 %v20467_v53  ;;  %v20496_v53 = vld [vmem:[#allocation8 + $0x7ec] ss:$24 sps:$4 sm:$0xff]  }
 0x6e7   :  { %16347 = vmatprep.subr.bf16.mxu1 %v20472_v3  ;;  %16231 = vmatpush1.bf16.msra.mxu0 %v20530_v60  ;;  %v20578_v3 = vld [vmem:[#allocation8 + $0x2370] ss:$24 sps:$4 sm:$0xff]   ;;  %v20586_v60 = vld [vmem:[#allocation8 + $0x23a4] ss:$24 sps:$4 sm:$0xff]  }
 0x6e8   :  { %16232 = vmatprep.subr.bf16.mxu0 %v20538_v1  ;;  %v20494_v1 = vld [vmem:[#allocation8 + $0x7e8] ss:$24 sps:$4 sm:$0xff]  }
 0x6ea   :  { %16348 = vmatpush1.bf16.msra.mxu1 %v20470_v24  ;;  %v20499_v24 = vld [vmem:[#allocation8 + $0x81c] ss:$24 sps:$4 sm:$0xff]  }
 0x6eb   :  { %16349 = vmatprep.subr.bf16.mxu1 %v20475_v5  ;;  %16233 = vmatpush1.bf16.msra.mxu0 %v20536_v6  ;;  %v20584_v5 = vld [vmem:[#allocation8 + $0x23a0] ss:$24 sps:$4 sm:$0xff]   ;;  %v20592_v6 = vld [vmem:[#allocation8 + $0x23d4] ss:$24 sps:$4 sm:$0xff]  }
 0x6ec   :  { %16234 = vmatprep.subr.bf16.mxu0 %v20544_v56  ;;  %v20497_v56 = vld [vmem:[#allocation8 + $0x818] ss:$24 sps:$4 sm:$0xff]  }
 0x6ee   :  { %16350 = vmatpush1.bf16.msra.mxu1 %v20473_v4  ;;  %v20505_v4 = vld [vmem:[#allocation8 + $0x84c] ss:$24 sps:$4 sm:$0xff]  }
 0x6ef   :  { %16351 = vmatprep.subr.bf16.mxu1 %v20478_v12  ;;  %16235 = vmatpush1.bf16.msra.mxu0 %v20542_v21  ;;  %v20590_v12 = vld [vmem:[#allocation8 + $0x23d0] ss:$24 sps:$4 sm:$0xff]   ;;  %v20601_v21 = vld [vmem:[#allocation8 + $0x14] ss:$24 sps:$4 sm:$0xff]  }
 0x6f0   :  { %16236 = vmatprep.subr.bf16.mxu0 %v20550_v27  ;;  %v20503_v27 = vld [vmem:[#allocation8 + $0x848] ss:$24 sps:$4 sm:$0xff]  }
 0x6f2   :  { %16352 = vmatpush1.bf16.msra.mxu1 %v20476_v49  ;;  %v20511_v49 = vld [vmem:[#allocation8 + $0x87c] ss:$24 sps:$4 sm:$0xff]  }
 0x6f3   :  { %16353 = vmatprep.subr.bf16.mxu1 %v20481_v26  ;;  %16237 = vmatpush1.bf16.msra.mxu0 %v20548_v30  ;;  %v20509_v26 = vld [vmem:[#allocation8 + $0x878] ss:$24 sps:$4 sm:$0xff]   ;;  %v20517_v30 = vld [vmem:[#allocation8 + $0x8ac] ss:$24 sps:$4 sm:$0xff]  }
 0x6f4   :  { %16238 = vmatprep.subr.bf16.mxu0 %v20556_v15  ;;  %v20515_v15 = vld [vmem:[#allocation8 + $0x8a8] ss:$24 sps:$4 sm:$0xff]  }
 0x6f6   :  { %16354 = vmatpush1.bf16.msra.mxu1 %v20479_v36  ;;  %v20523_v36 = vld [vmem:[#allocation8 + $0x8dc] ss:$24 sps:$4 sm:$0xff]  }
 0x6f7   :  { %16355 = vmatprep.subr.bf16.mxu1 %v20484_v16  ;;  %16239 = vmatpush1.bf16.msra.mxu0 %v20554_v13  ;;  %v20521_v16 = vld [vmem:[#allocation8 + $0x8d8] ss:$24 sps:$4 sm:$0xff]   ;;  %v20529_v13 = vld [vmem:[#allocation8 + $0x90c] ss:$24 sps:$4 sm:$0xff]  }
 0x6f8   :  { %16240 = vmatprep.subr.bf16.mxu0 %v20562_v25  ;;  %v20527_v25 = vld [vmem:[#allocation8 + $0x908] ss:$24 sps:$4 sm:$0xff]  }
 0x6fa   :  { %16356 = vmatpush1.bf16.msra.mxu1 %v20482_v7  ;;  %v20535_v7 = vld [vmem:[#allocation8 + $0x93c] ss:$24 sps:$4 sm:$0xff]  }
 0x6fb   :  { %16357 = vmatprep.subr.bf16.mxu1 %v20487_v34  ;;  %16241 = vmatpush1.bf16.msra.mxu0 %v20560_v43  ;;  %v20533_v34 = vld [vmem:[#allocation8 + $0x938] ss:$24 sps:$4 sm:$0xff]   ;;  %v20541_v43 = vld [vmem:[#allocation8 + $0x96c] ss:$24 sps:$4 sm:$0xff]  }
 0x6fc   :  { %16242 = vmatprep.subr.bf16.mxu0 %v20568_v22  ;;  %v20539_v22 = vld [vmem:[#allocation8 + $0x968] ss:$24 sps:$4 sm:$0xff]  }
 0x6fe   :  { %16358 = vmatpush1.bf16.msra.mxu1 %v20485_v37  ;;  %v20547_v37 = vld [vmem:[#allocation8 + $0x99c] ss:$24 sps:$4 sm:$0xff]  }
 0x6ff   :  { %16359 = vmatprep.subr.bf16.mxu1 %v20490_v0  ;;  %16243 = vmatpush1.bf16.msra.mxu0 %v20566_v42  ;;  %v20545_v0 = vld [vmem:[#allocation8 + $0x998] ss:$24 sps:$4 sm:$0xff]   ;;  %v20553_v42 = vld [vmem:[#allocation8 + $0x9cc] ss:$24 sps:$4 sm:$0xff]  }
 0x700   :  { %16244 = vmatprep.subr.bf16.mxu0 %v20574_v38  ;;  %v20551_v38 = vld [vmem:[#allocation8 + $0x9c8] ss:$24 sps:$4 sm:$0xff]  }
 0x702   :  { %16360 = vmatpush1.bf16.msra.mxu1 %v20488_v57  ;;  %v20559_v57 = vld [vmem:[#allocation8 + $0x9fc] ss:$24 sps:$4 sm:$0xff]  }
 0x703   :  { %16361 = vmatprep.subr.bf16.mxu1 %v20493_v40  ;;  %16245 = vmatpush1.bf16.msra.mxu0 %v20572_v19  ;;  %v1344_v40 = vrot.slane %v22213_v46, %v22051_v39  ;;  %v1348_v19 = vrot.slane %v22213_v46, %v22048_v14  ;;  %v20577_v46 = vld [vmem:[#allocation8 + $0xa8c] ss:$24 sps:$4 sm:$0xff]  }
 0x704   :  { %16246 = vmatprep.subr.bf16.mxu0 %v20580_v48  ;;  %v20557_v48 = vld [vmem:[#allocation8 + $0x9f8] ss:$24 sps:$4 sm:$0xff]  }
 0x706   :  { %16362 = vmatpush1.bf16.msra.mxu1 %v20491_v52  ;;  %v20565_v52 = vld [vmem:[#allocation8 + $0xa2c] ss:$24 sps:$4 sm:$0xff]  }
 0x707   :  { %16363 = vmatprep.subr.bf16.mxu1 %v20496_v53  ;;  %16247 = vmatpush1.bf16.msra.mxu0 %v20578_v3 }
 0x708   :  { %16248 = vmatprep.subr.bf16.mxu0 %v20586_v60 }
 0x70a   :  { %16364 = vmatpush1.bf16.msra.mxu1 %v20494_v1 }
 0x70b   :  { %16365 = vmatprep.subr.bf16.mxu1 %v20499_v24  ;;  %16249 = vmatpush1.bf16.msra.mxu0 %v20584_v5  ;;  %v20563_v5 = vld [vmem:[#allocation8 + $0xa28] ss:$24 sps:$4 sm:$0xff]  }
 0x70c   :  { %16250 = vmatprep.subr.bf16.mxu0 %v20592_v6 }
 0x70e   :  { %16366 = vmatpush1.bf16.msra.mxu1 %v20497_v56 }
 0x70f   :  { %16367 = vmatprep.subr.bf16.mxu1 %v20505_v4  ;;  %16251 = vmatpush1.bf16.msra.mxu0 %v20590_v12  ;;  %v20571_v4 = vld [vmem:[#allocation8 + $0xa5c] ss:$24 sps:$4 sm:$0xff]  }
 0x710   :  { %16753 = vmatprep.subr.bf16.mxu0 %v20601_v21 }
 0x712   :  { %16368 = vmatpush1.bf16.msra.mxu1 %v20503_v27  ;;  %v20569_v27 = vld [vmem:[#allocation8 + $0xa58] ss:$24 sps:$4 sm:$0xff]  }
 0x713   :  { %16369 = vmatprep.subr.bf16.mxu1 %v20511_v49 }
 0x716   :  { %16370 = vmatpush1.bf16.msra.mxu1 %v20509_v26 }
 0x717   :  { %16371 = vmatprep.subr.bf16.mxu1 %v20517_v30 }
 0x71a   :  { %16372 = vmatpush1.bf16.msra.mxu1 %v20515_v15  ;;  %v20575_v15 = vld [vmem:[#allocation8 + $0xa88] ss:$24 sps:$4 sm:$0xff]  }
 0x71b   :  { %16373 = vmatprep.subr.bf16.mxu1 %v20523_v36  ;;  %v20583_v36 = vld [vmem:[#allocation8 + $0xabc] ss:$24 sps:$4 sm:$0xff]  }
 0x71e   :  { %16374 = vmatpush1.bf16.msra.mxu1 %v20521_v16  ;;  %v20581_v16 = vld [vmem:[#allocation8 + $0xab8] ss:$24 sps:$4 sm:$0xff]  }
 0x71f   :  { %16384 = vmatprep.subr.bf16.mxu1 %v20529_v13  ;;  %v20589_v13 = vld [vmem:[#allocation8 + $0xaec] ss:$24 sps:$4 sm:$0xff]  }
 0x721   :  { %16376 = vmatmul.mubr.bf16.vlgmr.msra.gmra.mrb[32].mxu1 %v22042_v54 }
 0x722   :  { %16385 = vmatpush1.bf16.msra.mxu1 %v20527_v25  ;;  %16416 = vmatprep.mubr.bf16.mxu1 %v22082_v62  ;;  %v20587_v25 = vld [vmem:[#allocation8 + $0xae8] ss:$24 sps:$4 sm:$0xff]  }
 0x723   :  { %16386 = vmatprep.subr.bf16.mxu1 %v20535_v7  ;;  %v20595_v7 = vld [vmem:[#allocation8 + $0xb1c] ss:$24 sps:$4 sm:$0xff]  }
 0x726   :  { %16387 = vmatpush1.bf16.msra.mxu1 %v20533_v34 }
 0x727   :  { %16388 = vmatprep.subr.bf16.mxu1 %v20541_v43 }
 0x72a   :  { %16389 = vmatpush1.bf16.msra.mxu1 %v20539_v22 }
 0x72b   :  { %16390 = vmatprep.subr.bf16.mxu1 %v20547_v37 }
 0x72e   :  { %16391 = vmatpush1.bf16.msra.mxu1 %v20545_v0 }
 0x72f   :  { %16392 = vmatprep.subr.bf16.mxu1 %v20553_v42  ;;  %v20593_v42 = vld [vmem:[#allocation8 + $0xb18] ss:$24 sps:$4 sm:$0xff]  }
 0x732   :  { %16393 = vmatpush1.bf16.msra.mxu1 %v20551_v38 }
 0x733   :  { %16394 = vmatprep.subr.bf16.mxu1 %v20559_v57  ;;  %v20598_v57 = vld [vmem:[#allocation8 + $0xb4c] ss:$24 sps:$4 sm:$0xff]  }
 0x734   :  { %v8602_v53 = vpop.f32.mrb[28].mxu1 }
 0x735   :  { %v19594_v3 = vadd.f32 %v8602_v53, %v1344_v40  ;;  %v8604_v60 = vpop.f32.mrb[29].mxu1  ;;  %v20599_v53 = vld [vmem:[#allocation8 + $0x10] ss:$24 sps:$4 sm:$0xff]  }
 0x736   :  { %v19595_v1 = vadd.f32 %v8604_v60, %v1348_v19  ;;  %v8606_v24 = vpop.f32.mrb[30].mxu1  ;;  %16395 = vmatpush1.bf16.msra.mxu1 %v20557_v48  ;;  %v20596_v48 = vld [vmem:[#allocation8 + $0xb48] ss:$24 sps:$4 sm:$0xff]  }
 0x737   :  { %v8631_v6 = vmul.f32 %v19594_v3, %v19594_v3  ;;  %v8607_v56 = vpop.f32.mrb[31].mxu1  ;;  %16396 = vmatprep.subr.bf16.mxu1 %v20565_v52  ;;  %v8751_v34 = vmul.f32 0.5, %v19594_v3  ;;  %v20607_v24 = vld [vmem:[#allocation8 + $0x44] ss:$24 sps:$4 sm:$0xff]  }
 0x738   :  { %v8632_v12 = vmul.f32 %v19595_v1, %v19595_v1  ;;  %v8752_v22 = vmul.f32 0.5, %v19595_v1  ;;  %v20613_v56 = vld [vmem:[#allocation8 + $0x74] ss:$24 sps:$4 sm:$0xff]  }
 0x739   :  { %v8655_v39 = vmul.f32 0.035677407, %v8631_v6  ;;  %v20610_v6 = vld [vmem:[#allocation8 + $0xbac] ss:$24 sps:$4 sm:$0xff]  }
 0x73a   :  { %v8656_v21 = vmul.f32 0.035677407, %v8632_v12  ;;  %16397 = vmatpush1.bf16.msra.mxu1 %v20563_v5  ;;  %v20605_v5 = vld [vmem:[#allocation8 + $0x40] ss:$24 sps:$4 sm:$0xff]   ;;  %v20611_v12 = vld [vmem:[#allocation8 + $0x70] ss:$24 sps:$4 sm:$0xff]  }
 0x73b   :  { %v8679_v14 = vadd.f32 0.7978846, %v8655_v39  ;;  %16398 = vmatprep.subr.bf16.mxu1 %v20571_v4  ;;  %v20608_v4 = vld [vmem:[#allocation8 + $0xba8] ss:$24 sps:$4 sm:$0xff]   ;;  %v20616_v39 = vld [vmem:[#allocation8 + $0xbdc] ss:$24 sps:$4 sm:$0xff]  }
 0x73c   :  { %v8680_v49 = vadd.f32 0.7978846, %v8656_v21  ;;  %v20619_v21 = vld [vmem:[#allocation8 + $0xa4] ss:$24 sps:$4 sm:$0xff]  }
 0x73d   :  { %v8703_v26 = vmul.f32 %v19594_v3, %v8679_v14  ;;  %v20604_v3 = vld [vmem:[#allocation8 + $0xb7c] ss:$24 sps:$4 sm:$0xff]   ;;  %v20617_v14 = vld [vmem:[#allocation8 + $0xa0] ss:$24 sps:$4 sm:$0xff]  }
 0x73e   :  { %v8704_v30 = vmul.f32 %v19595_v1, %v8680_v49  ;;  %16399 = vmatpush1.bf16.msra.mxu1 %v20569_v27  ;;  %v20602_v1 = vld [vmem:[#allocation8 + $0xb78] ss:$24 sps:$4 sm:$0xff]   ;;  %v20620_v49 = vld [vmem:[#allocation8 + $0xc08] ss:$24 sps:$4 sm:$0xff]  }
 0x73f   :  { %21612 = vtanh.f32 %v8703_v26  ;;  %16400 = vmatprep.subr.bf16.mxu1 %v20577_v46  ;;  %v20614_v27 = vld [vmem:[#allocation8 + $0xbd8] ss:$24 sps:$4 sm:$0xff]   ;;  %v20622_v46 = vld [vmem:[#allocation8 + $0xc0c] ss:$24 sps:$4 sm:$0xff]  }
 0x740   :  { %21614 = vtanh.f32 %v8704_v30  ;;  %v20623_v26 = vld [vmem:[#allocation8 + $0xd0] ss:$24 sps:$4 sm:$0xff]   ;;  %v20628_v30 = vld [vmem:[#allocation8 + $0xc3c] ss:$24 sps:$4 sm:$0xff]  }
 0x742   :  { %16401 = vmatpush1.bf16.msra.mxu1 %v20575_v15  ;;  %v20631_v15 = vld [vmem:[#allocation8 + $0x104] ss:$24 sps:$4 sm:$0xff]  }
 0x743   :  { %16402 = vmatprep.subr.bf16.mxu1 %v20583_v36  ;;  %v20626_v36 = vld [vmem:[#allocation8 + $0xc38] ss:$24 sps:$4 sm:$0xff]  }
 0x746   :  { %16403 = vmatpush1.bf16.msra.mxu1 %v20581_v16  ;;  %v20629_v16 = vld [vmem:[#allocation8 + $0x100] ss:$24 sps:$4 sm:$0xff]  }
 0x747   :  { %16404 = vmatprep.subr.bf16.mxu1 %v20589_v13  ;;  %v20634_v13 = vld [vmem:[#allocation8 + $0xc6c] ss:$24 sps:$4 sm:$0xff]  }
 0x749   :  { %v21613_v43 = vpop.eup %21612 }
 0x74a   :  { %v21615_v37 = vpop.eup %21614  ;;  %v8775_v0 = vmul.f32 %v21613_v43, %v8751_v34  ;;  %16405 = vmatpush1.bf16.msra.mxu1 %v20587_v25  ;;  %v20637_v25 = vld [vmem:[#allocation8 + $0x134] ss:$24 sps:$4 sm:$0xff]  }
 0x74b   :  { %16406 = vmatprep.subr.bf16.mxu1 %v20595_v7  ;;  %v8776_v38 = vmul.f32 %v21615_v37, %v8752_v22  ;;  %v20632_v7 = vld [vmem:[#allocation8 + $0xc68] ss:$24 sps:$4 sm:$0xff]   ;;  %v20640_v43 = vld [vmem:[#allocation8 + $0xc9c] ss:$24 sps:$4 sm:$0xff]   ;;  %v20638_v37 = vld [vmem:[#allocation8 + $0xc98] ss:$24 sps:$4 sm:$0xff]  }
 0x74c   :  { %v8799_v40 = vadd.f32 %v8775_v0, %v8751_v34  ;;  %v20635_v34 = vld [vmem:[#allocation8 + $0x130] ss:$24 sps:$4 sm:$0xff]   ;;  %v20641_v0 = vld [vmem:[#allocation8 + $0x160] ss:$24 sps:$4 sm:$0xff]  }
 0x74d   :  { %v8800_v19 = vadd.f32 %v8776_v38, %v8752_v22  ;;  %v20643_v22 = vld [vmem:[#allocation8 + $0x164] ss:$24 sps:$4 sm:$0xff]   ;;  %v20649_v38 = vld [vmem:[#allocation8 + $0x194] ss:$24 sps:$4 sm:$0xff]  }
 0x74e   :  { %16407 = vmatpush1.bf16.msra.mxu1 %v20593_v42  ;;  %v22237_v60 = vpack.c.bf16 %v8799_v40, %v8799_v40  ;;  %v20646_v42 = vld [vmem:[#allocation8 + $0xccc] ss:$24 sps:$4 sm:$0xff]   ;;  %v20647_v40 = vld [vmem:[#allocation8 + $0x190] ss:$24 sps:$4 sm:$0xff]  }
 0x74f   :  { %v22235_v52 = vpack.c.bf16 %v8800_v19, %v8800_v19  ;;  %16408 = vmatprep.subr.bf16.mxu1 %v20598_v57  ;;  %v20644_v57 = vld [vmem:[#allocation8 + $0xcc8] ss:$24 sps:$4 sm:$0xff]   ;;  %v20652_v19 = vld [vmem:[#allocation8 + $0xcfc] ss:$24 sps:$4 sm:$0xff]  }
 0x751   :  { %16252 = vmatprep.mubr.bf16.mxu0 %v22235_v52 }
 0x752   :  { %16253 = vmatmul.mubr.bf16.vlgmr.msra.gmra.mrb[16].mxu0 %v22237_v60  ;;  %16409 = vmatpush1.bf16.msra.mxu1 %v20596_v48  ;;  %v20655_v48 = vld [vmem:[#allocation8 + $0x1c4] ss:$24 sps:$4 sm:$0xff]  }
 0x753   :  { %16754 = vmatpush1.bf16.msra.mxu0 %v20599_v53  ;;  %16785 = vmatprep.mubr.bf16.mxu0 %v21951_v33  ;;  %v20625_v33 = vld [vmem:[#allocation8 + $0xd4] ss:$24 sps:$4 sm:$0xff]   ;;  %v20650_v53 = vld [vmem:[#allocation8 + $0xcf8] ss:$24 sps:$4 sm:$0xff]  }
 0x754   :  { %16410 = vmatprep.subr.bf16.mxu1 %v20604_v3  ;;  %16755 = vmatprep.subr.bf16.mxu0 %v20607_v24  ;;  %v20653_v3 = vld [vmem:[#allocation8 + $0x1c0] ss:$24 sps:$4 sm:$0xff]   ;;  %v20658_v24 = vld [vmem:[#allocation8 + $0xd2c] ss:$24 sps:$4 sm:$0xff]  }
 0x756   :  { %16411 = vmatpush1.bf16.msra.mxu1 %v20602_v1  ;;  %v20661_v1 = vld [vmem:[#allocation8 + $0x1f4] ss:$24 sps:$4 sm:$0xff]  }
 0x757   :  { %16756 = vmatpush1.bf16.msra.mxu0 %v20605_v5  ;;  %16412 = vmatprep.subr.bf16.mxu1 %v20610_v6  ;;  %v20656_v5 = vld [vmem:[#allocation8 + $0xd28] ss:$24 sps:$4 sm:$0xff]  }
 0x758   :  { %16757 = vmatprep.subr.bf16.mxu0 %v20613_v56  ;;  %v20659_v6 = vld [vmem:[#allocation8 + $0x1f0] ss:$24 sps:$4 sm:$0xff]   ;;  %v20664_v56 = vld [vmem:[#allocation8 + $0xd5c] ss:$24 sps:$4 sm:$0xff]  }
 0x75a   :  { %16413 = vmatpush1.bf16.msra.mxu1 %v20608_v4  ;;  %v20667_v4 = vld [vmem:[#allocation8 + $0x224] ss:$24 sps:$4 sm:$0xff]  }
 0x75b   :  { %16758 = vmatpush1.bf16.msra.mxu0 %v20611_v12  ;;  %16414 = vmatprep.subr.bf16.mxu1 %v20616_v39  ;;  %v20662_v12 = vld [vmem:[#allocation8 + $0xd58] ss:$24 sps:$4 sm:$0xff]  }
 0x75c   :  { %16759 = vmatprep.subr.bf16.mxu0 %v20619_v21  ;;  %v20665_v39 = vld [vmem:[#allocation8 + $0x220] ss:$24 sps:$4 sm:$0xff]   ;;  %v20670_v21 = vld [vmem:[#allocation8 + $0xd8c] ss:$24 sps:$4 sm:$0xff]  }
 0x75e   :  { %16415 = vmatpush1.bf16.msra.mxu1 %v20614_v27  ;;  %v20673_v27 = vld [vmem:[#allocation8 + $0x254] ss:$24 sps:$4 sm:$0xff]  }
 0x75f   :  { %16760 = vmatpush1.bf16.msra.mxu0 %v20617_v14  ;;  %16425 = vmatprep.subr.bf16.mxu1 %v20622_v46  ;;  %v20668_v14 = vld [vmem:[#allocation8 + $0xd88] ss:$24 sps:$4 sm:$0xff]  }
 0x760   :  { %16761 = vmatprep.subr.bf16.mxu0 %v20625_v33  ;;  %v20671_v46 = vld [vmem:[#allocation8 + $0x250] ss:$24 sps:$4 sm:$0xff]   ;;  %v20676_v33 = vld [vmem:[#allocation8 + $0xdbc] ss:$24 sps:$4 sm:$0xff]  }
 0x761   :  { %16417 = vmatmul.mubr.bf16.vlgmr.msra.gmra.mrb[32].mxu1 %v22087_v44 }
 0x762   :  { %16426 = vmatpush1.bf16.msra.mxu1 %v20620_v49  ;;  %16457 = vmatprep.mubr.bf16.mxu1 %v22090_v47  ;;  %v20679_v49 = vld [vmem:[#allocation8 + $0x284] ss:$24 sps:$4 sm:$0xff]  }
 0x763   :  { %16762 = vmatpush1.bf16.msra.mxu0 %v20623_v26  ;;  %16427 = vmatprep.subr.bf16.mxu1 %v20628_v30  ;;  %v20674_v26 = vld [vmem:[#allocation8 + $0xdb8] ss:$24 sps:$4 sm:$0xff]  }
 0x764   :  { %16763 = vmatprep.subr.bf16.mxu0 %v20631_v15  ;;  %v20677_v30 = vld [vmem:[#allocation8 + $0x280] ss:$24 sps:$4 sm:$0xff]   ;;  %v20682_v15 = vld [vmem:[#allocation8 + $0xdec] ss:$24 sps:$4 sm:$0xff]  }
 0x766   :  { %16428 = vmatpush1.bf16.msra.mxu1 %v20626_v36  ;;  %v20685_v36 = vld [vmem:[#allocation8 + $0x2b4] ss:$24 sps:$4 sm:$0xff]  }
 0x767   :  { %16764 = vmatpush1.bf16.msra.mxu0 %v20629_v16  ;;  %16429 = vmatprep.subr.bf16.mxu1 %v20634_v13  ;;  %v20680_v16 = vld [vmem:[#allocation8 + $0xde8] ss:$24 sps:$4 sm:$0xff]  }
 0x768   :  { %16765 = vmatprep.subr.bf16.mxu0 %v20637_v25  ;;  %v20683_v13 = vld [vmem:[#allocation8 + $0x2b0] ss:$24 sps:$4 sm:$0xff]   ;;  %v20688_v25 = vld [vmem:[#allocation8 + $0xe1c] ss:$24 sps:$4 sm:$0xff]  }
 0x76a   :  { %16430 = vmatpush1.bf16.msra.mxu1 %v20632_v7  ;;  %v20691_v7 = vld [vmem:[#allocation8 + $0x2e4] ss:$24 sps:$4 sm:$0xff]  }
 0x76b   :  { %16766 = vmatpush1.bf16.msra.mxu0 %v20635_v34  ;;  %16431 = vmatprep.subr.bf16.mxu1 %v20640_v43  ;;  %v20686_v34 = vld [vmem:[#allocation8 + $0xe18] ss:$24 sps:$4 sm:$0xff]  }
 0x76c   :  { %16767 = vmatprep.subr.bf16.mxu0 %v20643_v22  ;;  %v20689_v43 = vld [vmem:[#allocation8 + $0x2e0] ss:$24 sps:$4 sm:$0xff]   ;;  %v20694_v22 = vld [vmem:[#allocation8 + $0xe4c] ss:$24 sps:$4 sm:$0xff]  }
 0x76e   :  { %16432 = vmatpush1.bf16.msra.mxu1 %v20638_v37  ;;  %v20697_v37 = vld [vmem:[#allocation8 + $0x314] ss:$24 sps:$4 sm:$0xff]  }
 0x76f   :  { %16768 = vmatpush1.bf16.msra.mxu0 %v20641_v0  ;;  %16433 = vmatprep.subr.bf16.mxu1 %v20646_v42  ;;  %v20692_v0 = vld [vmem:[#allocation8 + $0xe48] ss:$24 sps:$4 sm:$0xff]  }
 0x770   :  { %16769 = vmatprep.subr.bf16.mxu0 %v20649_v38  ;;  %v20695_v42 = vld [vmem:[#allocation8 + $0x310] ss:$24 sps:$4 sm:$0xff]   ;;  %v20700_v38 = vld [vmem:[#allocation8 + $0xe7c] ss:$24 sps:$4 sm:$0xff]  }
 0x772   :  { %16434 = vmatpush1.bf16.msra.mxu1 %v20644_v57  ;;  %v20703_v57 = vld [vmem:[#allocation8 + $0x344] ss:$24 sps:$4 sm:$0xff]  }
 0x773   :  { %16770 = vmatpush1.bf16.msra.mxu0 %v20647_v40  ;;  %16435 = vmatprep.subr.bf16.mxu1 %v20652_v19  ;;  %v20698_v40 = vld [vmem:[#allocation8 + $0xe78] ss:$24 sps:$4 sm:$0xff]  }
 0x774   :  { %16771 = vmatprep.subr.bf16.mxu0 %v20655_v48  ;;  %v20701_v19 = vld [vmem:[#allocation8 + $0x340] ss:$24 sps:$4 sm:$0xff]   ;;  %v20706_v48 = vld [vmem:[#allocation8 + $0xeac] ss:$24 sps:$4 sm:$0xff]  }
 0x776   :  { %16436 = vmatpush1.bf16.msra.mxu1 %v20650_v53  ;;  %v20709_v53 = vld [vmem:[#allocation8 + $0x374] ss:$24 sps:$4 sm:$0xff]  }
 0x777   :  { %16772 = vmatpush1.bf16.msra.mxu0 %v20653_v3  ;;  %16437 = vmatprep.subr.bf16.mxu1 %v20658_v24  ;;  %v20704_v3 = vld [vmem:[#allocation8 + $0xea8] ss:$24 sps:$4 sm:$0xff]  }
 0x778   :  { %16773 = vmatprep.subr.bf16.mxu0 %v20661_v1  ;;  %v20707_v24 = vld [vmem:[#allocation8 + $0x370] ss:$24 sps:$4 sm:$0xff]   ;;  %v20712_v1 = vld [vmem:[#allocation8 + $0xedc] ss:$24 sps:$4 sm:$0xff]  }
 0x77a   :  { %16438 = vmatpush1.bf16.msra.mxu1 %v20656_v5  ;;  %v20715_v5 = vld [vmem:[#allocation8 + $0x3a4] ss:$24 sps:$4 sm:$0xff]  }
 0x77b   :  { %16774 = vmatpush1.bf16.msra.mxu0 %v20659_v6  ;;  %16439 = vmatprep.subr.bf16.mxu1 %v20664_v56  ;;  %v20713_v6 = vld [vmem:[#allocation8 + $0x3a0] ss:$24 sps:$4 sm:$0xff]   ;;  %v20718_v56 = vld [vmem:[#allocation8 + $0xf0c] ss:$24 sps:$4 sm:$0xff]  }
 0x77c   :  { %16775 = vmatprep.subr.bf16.mxu0 %v20667_v4  ;;  %v20716_v4 = vld [vmem:[#allocation8 + $0xf08] ss:$24 sps:$4 sm:$0xff]  }
 0x77e   :  { %16440 = vmatpush1.bf16.msra.mxu1 %v20662_v12  ;;  %v20719_v12 = vld [vmem:[#allocation8 + $0x3d0] ss:$24 sps:$4 sm:$0xff]  }
 0x77f   :  { %16776 = vmatpush1.bf16.msra.mxu0 %v20665_v39  ;;  %16441 = vmatprep.subr.bf16.mxu1 %v20670_v21  ;;  %v20724_v39 = vld [vmem:[#allocation8 + $0xf3c] ss:$24 sps:$4 sm:$0xff]  }
 0x780   :  { %16777 = vmatprep.subr.bf16.mxu0 %v20673_v27  ;;  %v20727_v21 = vld [vmem:[#allocation8 + $0x404] ss:$24 sps:$4 sm:$0xff]   ;;  %v20722_v27 = vld [vmem:[#allocation8 + $0xf38] ss:$24 sps:$4 sm:$0xff]  }
 0x782   :  { %16442 = vmatpush1.bf16.msra.mxu1 %v20668_v14  ;;  %v20725_v14 = vld [vmem:[#allocation8 + $0x400] ss:$24 sps:$4 sm:$0xff]  }
 0x783   :  { %16778 = vmatpush1.bf16.msra.mxu0 %v20671_v46  ;;  %16443 = vmatprep.subr.bf16.mxu1 %v20676_v33  ;;  %v20730_v46 = vld [vmem:[#allocation8 + $0xf6c] ss:$24 sps:$4 sm:$0xff]  }
 0x784   :  { %16779 = vmatprep.subr.bf16.mxu0 %v20679_v49  ;;  %v20733_v33 = vld [vmem:[#allocation8 + $0x434] ss:$24 sps:$4 sm:$0xff]   ;;  %v20728_v49 = vld [vmem:[#allocation8 + $0xf68] ss:$24 sps:$4 sm:$0xff]  }
 0x786   :  { %16444 = vmatpush1.bf16.msra.mxu1 %v20674_v26  ;;  %v20731_v26 = vld [vmem:[#allocation8 + $0x430] ss:$24 sps:$4 sm:$0xff]  }
 0x787   :  { %16780 = vmatpush1.bf16.msra.mxu0 %v20677_v30  ;;  %16445 = vmatprep.subr.bf16.mxu1 %v20682_v15  ;;  %v20736_v30 = vld [vmem:[#allocation8 + $0xf9c] ss:$24 sps:$4 sm:$0xff]  }
 0x788   :  { %16781 = vmatprep.subr.bf16.mxu0 %v20685_v36  ;;  %v20739_v15 = vld [vmem:[#allocation8 + $0x464] ss:$24 sps:$4 sm:$0xff]   ;;  %v20734_v36 = vld [vmem:[#allocation8 + $0xf98] ss:$24 sps:$4 sm:$0xff]  }
 0x78a   :  { %16446 = vmatpush1.bf16.msra.mxu1 %v20680_v16  ;;  %v20737_v16 = vld [vmem:[#allocation8 + $0x460] ss:$24 sps:$4 sm:$0xff]  }
 0x78b   :  { %16782 = vmatpush1.bf16.msra.mxu0 %v20683_v13  ;;  %16447 = vmatprep.subr.bf16.mxu1 %v20688_v25  ;;  %v20742_v13 = vld [vmem:[#allocation8 + $0xfcc] ss:$24 sps:$4 sm:$0xff]  }
 0x78c   :  { %16783 = vmatprep.subr.bf16.mxu0 %v20691_v7  ;;  %v20745_v25 = vld [vmem:[#allocation8 + $0x494] ss:$24 sps:$4 sm:$0xff]   ;;  %v20740_v7 = vld [vmem:[#allocation8 + $0xfc8] ss:$24 sps:$4 sm:$0xff]  }
 0x78e   :  { %16448 = vmatpush1.bf16.msra.mxu1 %v20686_v34  ;;  %v20743_v34 = vld [vmem:[#allocation8 + $0x490] ss:$24 sps:$4 sm:$0xff]  }
 0x78f   :  { %16784 = vmatpush1.bf16.msra.mxu0 %v20689_v43  ;;  %16449 = vmatprep.subr.bf16.mxu1 %v20694_v22  ;;  %v20748_v43 = vld [vmem:[#allocation8 + $0xffc] ss:$24 sps:$4 sm:$0xff]  }
 0x790   :  { %16794 = vmatprep.subr.bf16.mxu0 %v20697_v37  ;;  %v20751_v22 = vld [vmem:[#allocation8 + $0x4c4] ss:$24 sps:$4 sm:$0xff]   ;;  %v20746_v37 = vld [vmem:[#allocation8 + $0xff8] ss:$24 sps:$4 sm:$0xff]  }
 0x792   :  { %16786 = vmatmul.mubr.bf16.vlgmr.msra.gmra.mrb[20].mxu0 %v21988_v11  ;;  %16450 = vmatpush1.bf16.msra.mxu1 %v20692_v0  ;;  %v20710_v11 = vld [vmem:[#allocation8 + $0xed8] ss:$24 sps:$4 sm:$0xff]  }
 0x793   :  { %16795 = vmatpush1.bf16.msra.mxu0 %v20695_v42  ;;  %16826 = vmatprep.mubr.bf16.mxu0 %v21991_v28  ;;  %v20721_v28 = vld [vmem:[#allocation8 + $0x3d4] ss:$24 sps:$4 sm:$0xff]   ;;  %v20749_v0 = vld [vmem:[#allocation8 + $0x4c0] ss:$24 sps:$4 sm:$0xff]  }
 0x794   :  { %16451 = vmatprep.subr.bf16.mxu1 %v20700_v38  ;;  %16796 = vmatprep.subr.bf16.mxu0 %v20703_v57  ;;  %v20754_v42 = vld [vmem:[#allocation8 + $0x102c] ss:$24 sps:$4 sm:$0xff]   ;;  %v20752_v57 = vld [vmem:[#allocation8 + $0x1028] ss:$24 sps:$4 sm:$0xff]  }
 0x795   :  { %v20757_v38 = vld [vmem:[#allocation8 + $0x4f4] ss:$24 sps:$4 sm:$0xff]  }
 0x796   :  { %16452 = vmatpush1.bf16.msra.mxu1 %v20698_v40  ;;  %v20755_v40 = vld [vmem:[#allocation8 + $0x4f0] ss:$24 sps:$4 sm:$0xff]  }
 0x797   :  { %16797 = vmatpush1.bf16.msra.mxu0 %v20701_v19  ;;  %16453 = vmatprep.subr.bf16.mxu1 %v20706_v48  ;;  %v20760_v19 = vld [vmem:[#allocation8 + $0x105c] ss:$24 sps:$4 sm:$0xff]  }
 0x798   :  { %16798 = vmatprep.subr.bf16.mxu0 %v20709_v53  ;;  %v20763_v48 = vld [vmem:[#allocation8 + $0x524] ss:$24 sps:$4 sm:$0xff]   ;;  %v20758_v53 = vld [vmem:[#allocation8 + $0x1058] ss:$24 sps:$4 sm:$0xff]  }
 0x79a   :  { %16454 = vmatpush1.bf16.msra.mxu1 %v20704_v3  ;;  %v20761_v3 = vld [vmem:[#allocation8 + $0x520] ss:$24 sps:$4 sm:$0xff]  }
 0x79b   :  { %16799 = vmatpush1.bf16.msra.mxu0 %v20707_v24  ;;  %16455 = vmatprep.subr.bf16.mxu1 %v20712_v1  ;;  %v20766_v24 = vld [vmem:[#allocation8 + $0x108c] ss:$24 sps:$4 sm:$0xff]  }
 0x79c   :  { %16800 = vmatprep.subr.bf16.mxu0 %v20715_v5  ;;  %v20769_v1 = vld [vmem:[#allocation8 + $0x554] ss:$24 sps:$4 sm:$0xff]   ;;  %v20764_v5 = vld [vmem:[#allocation8 + $0x1088] ss:$24 sps:$4 sm:$0xff]  }
 0x79e   :  { %16456 = vmatpush1.bf16.msra.mxu1 %v20710_v11  ;;  %v20767_v11 = vld [vmem:[#allocation8 + $0x550] ss:$24 sps:$4 sm:$0xff]  }
 0x79f   :  { %16801 = vmatpush1.bf16.msra.mxu0 %v20713_v6  ;;  %16466 = vmatprep.subr.bf16.mxu1 %v20718_v56  ;;  %v20772_v6 = vld [vmem:[#allocation8 + $0x10bc] ss:$24 sps:$4 sm:$0xff]  }
 0x7a0   :  { %16802 = vmatprep.subr.bf16.mxu0 %v20721_v28  ;;  %v20775_v56 = vld [vmem:[#allocation8 + $0x584] ss:$24 sps:$4 sm:$0xff]   ;;  %v20770_v28 = vld [vmem:[#allocation8 + $0x10b8] ss:$24 sps:$4 sm:$0xff]  }
 0x7a1   :  { %16458 = vmatmul.mubr.bf16.vlgmr.msra.gmra.mrb[32].mxu1 %v22104_v8 }
 0x7a2   :  { %16467 = vmatpush1.bf16.msra.mxu1 %v20716_v4  ;;  %16498 = vmatprep.mubr.bf16.mxu1 %v22126_v41  ;;  %v20773_v4 = vld [vmem:[#allocation8 + $0x580] ss:$24 sps:$4 sm:$0xff]  }
 0x7a3   :  { %16803 = vmatpush1.bf16.msra.mxu0 %v20719_v12  ;;  %16468 = vmatprep.subr.bf16.mxu1 %v20724_v39  ;;  %v20778_v12 = vld [vmem:[#allocation8 + $0x10ec] ss:$24 sps:$4 sm:$0xff]  }
 0x7a4   :  { %16804 = vmatprep.subr.bf16.mxu0 %v20727_v21  ;;  %v20781_v39 = vld [vmem:[#allocation8 + $0x5b4] ss:$24 sps:$4 sm:$0xff]   ;;  %v20776_v21 = vld [vmem:[#allocation8 + $0x10e8] ss:$24 sps:$4 sm:$0xff]  }
 0x7a6   :  { %16469 = vmatpush1.bf16.msra.mxu1 %v20722_v27  ;;  %v20779_v27 = vld [vmem:[#allocation8 + $0x5b0] ss:$24 sps:$4 sm:$0xff]  }
 0x7a7   :  { %16805 = vmatpush1.bf16.msra.mxu0 %v20725_v14  ;;  %16470 = vmatprep.subr.bf16.mxu1 %v20730_v46  ;;  %v20784_v14 = vld [vmem:[#allocation8 + $0x111c] ss:$24 sps:$4 sm:$0xff]  }
 0x7a8   :  { %16806 = vmatprep.subr.bf16.mxu0 %v20733_v33  ;;  %v20787_v46 = vld [vmem:[#allocation8 + $0x5e4] ss:$24 sps:$4 sm:$0xff]   ;;  %v20782_v33 = vld [vmem:[#allocation8 + $0x1118] ss:$24 sps:$4 sm:$0xff]  }
 0x7aa   :  { %16471 = vmatpush1.bf16.msra.mxu1 %v20728_v49  ;;  %v20785_v49 = vld [vmem:[#allocation8 + $0x5e0] ss:$24 sps:$4 sm:$0xff]  }
 0x7ab   :  { %16807 = vmatpush1.bf16.msra.mxu0 %v20731_v26  ;;  %16472 = vmatprep.subr.bf16.mxu1 %v20736_v30  ;;  %v20790_v26 = vld [vmem:[#allocation8 + $0x114c] ss:$24 sps:$4 sm:$0xff]  }
 0x7ac   :  { %16808 = vmatprep.subr.bf16.mxu0 %v20739_v15  ;;  %v20793_v30 = vld [vmem:[#allocation8 + $0x614] ss:$24 sps:$4 sm:$0xff]   ;;  %v20788_v15 = vld [vmem:[#allocation8 + $0x1148] ss:$24 sps:$4 sm:$0xff]  }
 0x7ae   :  { %16473 = vmatpush1.bf16.msra.mxu1 %v20734_v36  ;;  %v20791_v36 = vld [vmem:[#allocation8 + $0x610] ss:$24 sps:$4 sm:$0xff]  }
 0x7af   :  { %16809 = vmatpush1.bf16.msra.mxu0 %v20737_v16  ;;  %16474 = vmatprep.subr.bf16.mxu1 %v20742_v13  ;;  %v20796_v16 = vld [vmem:[#allocation8 + $0x117c] ss:$24 sps:$4 sm:$0xff]  }
 0x7b0   :  { %16810 = vmatprep.subr.bf16.mxu0 %v20745_v25  ;;  %v20799_v13 = vld [vmem:[#allocation8 + $0x644] ss:$24 sps:$4 sm:$0xff]   ;;  %v20794_v25 = vld [vmem:[#allocation8 + $0x1178] ss:$24 sps:$4 sm:$0xff]  }
 0x7b2   :  { %16475 = vmatpush1.bf16.msra.mxu1 %v20740_v7  ;;  %v20797_v7 = vld [vmem:[#allocation8 + $0x640] ss:$24 sps:$4 sm:$0xff]  }
 0x7b3   :  { %16811 = vmatpush1.bf16.msra.mxu0 %v20743_v34  ;;  %16476 = vmatprep.subr.bf16.mxu1 %v20748_v43  ;;  %v20802_v34 = vld [vmem:[#allocation8 + $0x11ac] ss:$24 sps:$4 sm:$0xff]  }
 0x7b4   :  { %16812 = vmatprep.subr.bf16.mxu0 %v20751_v22  ;;  %v20805_v43 = vld [vmem:[#allocation8 + $0x674] ss:$24 sps:$4 sm:$0xff]   ;;  %v20800_v22 = vld [vmem:[#allocation8 + $0x11a8] ss:$24 sps:$4 sm:$0xff]  }
 0x7b6   :  { %16477 = vmatpush1.bf16.msra.mxu1 %v20746_v37  ;;  %v20803_v37 = vld [vmem:[#allocation8 + $0x670] ss:$24 sps:$4 sm:$0xff]  }
 0x7b7   :  { %16813 = vmatpush1.bf16.msra.mxu0 %v20749_v0  ;;  %16478 = vmatprep.subr.bf16.mxu1 %v20754_v42  ;;  %v20808_v0 = vld [vmem:[#allocation8 + $0x11dc] ss:$24 sps:$4 sm:$0xff]  }
 0x7b8   :  { %16814 = vmatprep.subr.bf16.mxu0 %v20757_v38  ;;  %v20811_v42 = vld [vmem:[#allocation8 + $0x6a4] ss:$24 sps:$4 sm:$0xff]   ;;  %v20809_v38 = vld [vmem:[#allocation8 + $0x6a0] ss:$24 sps:$4 sm:$0xff]  }
 0x7ba   :  { %16479 = vmatpush1.bf16.msra.mxu1 %v20752_v57  ;;  %v20814_v57 = vld [vmem:[#allocation8 + $0x120c] ss:$24 sps:$4 sm:$0xff]  }
 0x7bb   :  { %16815 = vmatpush1.bf16.msra.mxu0 %v20755_v40  ;;  %16480 = vmatprep.subr.bf16.mxu1 %v20760_v19  ;;  %v20812_v40 = vld [vmem:[#allocation8 + $0x1208] ss:$24 sps:$4 sm:$0xff]  }
 0x7bc   :  { %16816 = vmatprep.subr.bf16.mxu0 %v20763_v48  ;;  %v20815_v19 = vld [vmem:[#allocation8 + $0x6d0] ss:$24 sps:$4 sm:$0xff]   ;;  %v20820_v48 = vld [vmem:[#allocation8 + $0x123c] ss:$24 sps:$4 sm:$0xff]  }
 0x7be   :  { %16481 = vmatpush1.bf16.msra.mxu1 %v20758_v53  ;;  %v20823_v53 = vld [vmem:[#allocation8 + $0x704] ss:$24 sps:$4 sm:$0xff]  }
 0x7bf   :  { %16817 = vmatpush1.bf16.msra.mxu0 %v20761_v3  ;;  %16482 = vmatprep.subr.bf16.mxu1 %v20766_v24  ;;  %v20818_v3 = vld [vmem:[#allocation8 + $0x1238] ss:$24 sps:$4 sm:$0xff]  }
 0x7c0   :  { %16818 = vmatprep.subr.bf16.mxu0 %v20769_v1  ;;  %v20821_v24 = vld [vmem:[#allocation8 + $0x700] ss:$24 sps:$4 sm:$0xff]   ;;  %v20826_v1 = vld [vmem:[#allocation8 + $0x126c] ss:$24 sps:$4 sm:$0xff]  }
 0x7c2   :  { %16483 = vmatpush1.bf16.msra.mxu1 %v20764_v5  ;;  %v20829_v5 = vld [vmem:[#allocation8 + $0x734] ss:$24 sps:$4 sm:$0xff]  }
 0x7c3   :  { %16819 = vmatpush1.bf16.msra.mxu0 %v20767_v11  ;;  %16484 = vmatprep.subr.bf16.mxu1 %v20772_v6  ;;  %v20824_v11 = vld [vmem:[#allocation8 + $0x1268] ss:$24 sps:$4 sm:$0xff]  }
 0x7c4   :  { %16820 = vmatprep.subr.bf16.mxu0 %v20775_v56  ;;  %v20827_v6 = vld [vmem:[#allocation8 + $0x730] ss:$24 sps:$4 sm:$0xff]   ;;  %v20832_v56 = vld [vmem:[#allocation8 + $0x129c] ss:$24 sps:$4 sm:$0xff]  }
 0x7c6   :  { %16485 = vmatpush1.bf16.msra.mxu1 %v20770_v28  ;;  %v20835_v28 = vld [vmem:[#allocation8 + $0x764] ss:$24 sps:$4 sm:$0xff]  }
 0x7c7   :  { %16821 = vmatpush1.bf16.msra.mxu0 %v20773_v4  ;;  %16486 = vmatprep.subr.bf16.mxu1 %v20778_v12  ;;  %v20830_v4 = vld [vmem:[#allocation8 + $0x1298] ss:$24 sps:$4 sm:$0xff]  }
 0x7c8   :  { %16822 = vmatprep.subr.bf16.mxu0 %v20781_v39  ;;  %v20833_v12 = vld [vmem:[#allocation8 + $0x760] ss:$24 sps:$4 sm:$0xff]   ;;  %v20838_v39 = vld [vmem:[#allocation8 + $0x12cc] ss:$24 sps:$4 sm:$0xff]  }
 0x7ca   :  { %16487 = vmatpush1.bf16.msra.mxu1 %v20776_v21  ;;  %v20841_v21 = vld [vmem:[#allocation8 + $0x794] ss:$24 sps:$4 sm:$0xff]  }
 0x7cb   :  { %16823 = vmatpush1.bf16.msra.mxu0 %v20779_v27  ;;  %16488 = vmatprep.subr.bf16.mxu1 %v20784_v14  ;;  %v20836_v27 = vld [vmem:[#allocation8 + $0x12c8] ss:$24 sps:$4 sm:$0xff]  }
 0x7cc   :  { %16824 = vmatprep.subr.bf16.mxu0 %v20787_v46  ;;  %v20839_v14 = vld [vmem:[#allocation8 + $0x790] ss:$24 sps:$4 sm:$0xff]   ;;  %v20844_v46 = vld [vmem:[#allocation8 + $0x12fc] ss:$24 sps:$4 sm:$0xff]  }
 0x7ce   :  { %16489 = vmatpush1.bf16.msra.mxu1 %v20782_v33  ;;  %v20847_v33 = vld [vmem:[#allocation8 + $0x7c4] ss:$24 sps:$4 sm:$0xff]  }
 0x7cf   :  { %16825 = vmatpush1.bf16.msra.mxu0 %v20785_v49  ;;  %16490 = vmatprep.subr.bf16.mxu1 %v20790_v26  ;;  %v20842_v49 = vld [vmem:[#allocation8 + $0x12f8] ss:$24 sps:$4 sm:$0xff]  }
 0x7d0   :  { %16835 = vmatprep.subr.bf16.mxu0 %v20793_v30  ;;  %v20845_v26 = vld [vmem:[#allocation8 + $0x7c0] ss:$24 sps:$4 sm:$0xff]   ;;  %v20850_v30 = vld [vmem:[#allocation8 + $0x132c] ss:$24 sps:$4 sm:$0xff]  }
 0x7d2   :  { %16827 = vmatmul.mubr.bf16.vlgmr.msra.gmra.mrb[20].mxu0 %v22020_v63  ;;  %16491 = vmatpush1.bf16.msra.mxu1 %v20788_v15  ;;  %v20806_v63 = vld [vmem:[#allocation8 + $0x11d8] ss:$24 sps:$4 sm:$0xff]   ;;  %v20853_v15 = vld [vmem:[#allocation8 + $0x7f4] ss:$24 sps:$4 sm:$0xff]  }
 0x7d3   :  { %16836 = vmatpush1.bf16.msra.mxu0 %v20791_v36  ;;  %16867 = vmatprep.mubr.bf16.mxu0 %v22023_v10  ;;  %v20817_v10 = vld [vmem:[#allocation8 + $0x6d4] ss:$24 sps:$4 sm:$0xff]   ;;  %v20848_v36 = vld [vmem:[#allocation8 + $0x1328] ss:$24 sps:$4 sm:$0xff]  }
 0x7d4   :  { %16492 = vmatprep.subr.bf16.mxu1 %v20796_v16  ;;  %16837 = vmatprep.subr.bf16.mxu0 %v20799_v13  ;;  %v20851_v16 = vld [vmem:[#allocation8 + $0x7f0] ss:$24 sps:$4 sm:$0xff]   ;;  %v20856_v13 = vld [vmem:[#allocation8 + $0x135c] ss:$24 sps:$4 sm:$0xff]  }
 0x7d6   :  { %16493 = vmatpush1.bf16.msra.mxu1 %v20794_v25  ;;  %v20859_v25 = vld [vmem:[#allocation8 + $0x824] ss:$24 sps:$4 sm:$0xff]  }
 0x7d7   :  { %16838 = vmatpush1.bf16.msra.mxu0 %v20797_v7  ;;  %16494 = vmatprep.subr.bf16.mxu1 %v20802_v34  ;;  %v20854_v7 = vld [vmem:[#allocation8 + $0x1358] ss:$24 sps:$4 sm:$0xff]  }
 0x7d8   :  { %16839 = vmatprep.subr.bf16.mxu0 %v20805_v43  ;;  %v20857_v34 = vld [vmem:[#allocation8 + $0x820] ss:$24 sps:$4 sm:$0xff]   ;;  %v20862_v43 = vld [vmem:[#allocation8 + $0x138c] ss:$24 sps:$4 sm:$0xff]  }
 0x7da   :  { %16495 = vmatpush1.bf16.msra.mxu1 %v20800_v22  ;;  %v20865_v22 = vld [vmem:[#allocation8 + $0x854] ss:$24 sps:$4 sm:$0xff]  }
 0x7db   :  { %16840 = vmatpush1.bf16.msra.mxu0 %v20803_v37  ;;  %16496 = vmatprep.subr.bf16.mxu1 %v20808_v0  ;;  %v20860_v37 = vld [vmem:[#allocation8 + $0x1388] ss:$24 sps:$4 sm:$0xff]  }
 0x7dc   :  { %16841 = vmatprep.subr.bf16.mxu0 %v20811_v42  ;;  %v20863_v0 = vld [vmem:[#allocation8 + $0x850] ss:$24 sps:$4 sm:$0xff]   ;;  %v20868_v42 = vld [vmem:[#allocation8 + $0x13bc] ss:$24 sps:$4 sm:$0xff]  }
 0x7de   :  { %16497 = vmatpush1.bf16.msra.mxu1 %v20806_v63  ;;  %v20871_v63 = vld [vmem:[#allocation8 + $0x884] ss:$24 sps:$4 sm:$0xff]  }
 0x7df   :  { %16842 = vmatpush1.bf16.msra.mxu0 %v20809_v38  ;;  %16507 = vmatprep.subr.bf16.mxu1 %v20814_v57  ;;  %v20866_v38 = vld [vmem:[#allocation8 + $0x13b8] ss:$24 sps:$4 sm:$0xff]  }
 0x7e0   :  { %16843 = vmatprep.subr.bf16.mxu0 %v20817_v10  ;;  %v20869_v57 = vld [vmem:[#allocation8 + $0x880] ss:$24 sps:$4 sm:$0xff]   ;;  %v20874_v10 = vld [vmem:[#allocation8 + $0x13ec] ss:$24 sps:$4 sm:$0xff]  }
 0x7e1   :  { %16499 = vmatmul.mubr.bf16.vlgmr.msra.gmra.mrb[32].mxu1 %v22128_v45 }
 0x7e2   :  { %16508 = vmatpush1.bf16.msra.mxu1 %v20812_v40  ;;  %16539 = vmatprep.mubr.bf16.mxu1 %v22131_v35  ;;  %v20877_v40 = vld [vmem:[#allocation8 + $0x8b4] ss:$24 sps:$4 sm:$0xff]  }
 0x7e3   :  { %16844 = vmatpush1.bf16.msra.mxu0 %v20815_v19  ;;  %16509 = vmatprep.subr.bf16.mxu1 %v20820_v48  ;;  %v20872_v19 = vld [vmem:[#allocation8 + $0x13e8] ss:$24 sps:$4 sm:$0xff]  }
 0x7e4   :  { %16845 = vmatprep.subr.bf16.mxu0 %v20823_v53  ;;  %v20875_v48 = vld [vmem:[#allocation8 + $0x8b0] ss:$24 sps:$4 sm:$0xff]   ;;  %v20880_v53 = vld [vmem:[#allocation8 + $0x141c] ss:$24 sps:$4 sm:$0xff]  }
 0x7e6   :  { %16510 = vmatpush1.bf16.msra.mxu1 %v20818_v3  ;;  %v20883_v3 = vld [vmem:[#allocation8 + $0x8e4] ss:$24 sps:$4 sm:$0xff]  }
 0x7e7   :  { %16846 = vmatpush1.bf16.msra.mxu0 %v20821_v24  ;;  %16511 = vmatprep.subr.bf16.mxu1 %v20826_v1  ;;  %v20878_v24 = vld [vmem:[#allocation8 + $0x1418] ss:$24 sps:$4 sm:$0xff]  }
 0x7e8   :  { %16847 = vmatprep.subr.bf16.mxu0 %v20829_v5  ;;  %v20881_v1 = vld [vmem:[#allocation8 + $0x8e0] ss:$24 sps:$4 sm:$0xff]   ;;  %v20886_v5 = vld [vmem:[#allocation8 + $0x144c] ss:$24 sps:$4 sm:$0xff]  }
 0x7ea   :  { %16512 = vmatpush1.bf16.msra.mxu1 %v20824_v11  ;;  %v20889_v11 = vld [vmem:[#allocation8 + $0x914] ss:$24 sps:$4 sm:$0xff]  }
 0x7eb   :  { %16848 = vmatpush1.bf16.msra.mxu0 %v20827_v6  ;;  %16513 = vmatprep.subr.bf16.mxu1 %v20832_v56  ;;  %v20884_v6 = vld [vmem:[#allocation8 + $0x1448] ss:$24 sps:$4 sm:$0xff]  }
 0x7ec   :  { %16849 = vmatprep.subr.bf16.mxu0 %v20835_v28  ;;  %v20887_v56 = vld [vmem:[#allocation8 + $0x910] ss:$24 sps:$4 sm:$0xff]   ;;  %v20892_v28 = vld [vmem:[#allocation8 + $0x147c] ss:$24 sps:$4 sm:$0xff]  }
 0x7ee   :  { %16514 = vmatpush1.bf16.msra.mxu1 %v20830_v4  ;;  %v20895_v4 = vld [vmem:[#allocation8 + $0x944] ss:$24 sps:$4 sm:$0xff]  }
 0x7ef   :  { %16850 = vmatpush1.bf16.msra.mxu0 %v20833_v12  ;;  %16515 = vmatprep.subr.bf16.mxu1 %v20838_v39  ;;  %v20890_v12 = vld [vmem:[#allocation8 + $0x1478] ss:$24 sps:$4 sm:$0xff]  }
 0x7f0   :  { %16851 = vmatprep.subr.bf16.mxu0 %v20841_v21  ;;  %v20893_v39 = vld [vmem:[#allocation8 + $0x940] ss:$24 sps:$4 sm:$0xff]   ;;  %v20898_v21 = vld [vmem:[#allocation8 + $0x14ac] ss:$24 sps:$4 sm:$0xff]  }
 0x7f2   :  { %16516 = vmatpush1.bf16.msra.mxu1 %v20836_v27  ;;  %v20901_v27 = vld [vmem:[#allocation8 + $0x974] ss:$24 sps:$4 sm:$0xff]  }
 0x7f3   :  { %16852 = vmatpush1.bf16.msra.mxu0 %v20839_v14  ;;  %16517 = vmatprep.subr.bf16.mxu1 %v20844_v46  ;;  %v20896_v14 = vld [vmem:[#allocation8 + $0x14a8] ss:$24 sps:$4 sm:$0xff]  }
 0x7f4   :  { %16853 = vmatprep.subr.bf16.mxu0 %v20847_v33  ;;  %v20899_v46 = vld [vmem:[#allocation8 + $0x970] ss:$24 sps:$4 sm:$0xff]   ;;  %v20904_v33 = vld [vmem:[#allocation8 + $0x14dc] ss:$24 sps:$4 sm:$0xff]  }
 0x7f6   :  { %16518 = vmatpush1.bf16.msra.mxu1 %v20842_v49  ;;  %v20907_v49 = vld [vmem:[#allocation8 + $0x9a4] ss:$24 sps:$4 sm:$0xff]  }
 0x7f7   :  { %16854 = vmatpush1.bf16.msra.mxu0 %v20845_v26  ;;  %16519 = vmatprep.subr.bf16.mxu1 %v20850_v30  ;;  %v20905_v26 = vld [vmem:[#allocation8 + $0x9a0] ss:$24 sps:$4 sm:$0xff]   ;;  %v20910_v30 = vld [vmem:[#allocation8 + $0x150c] ss:$24 sps:$4 sm:$0xff]  }
 0x7f8   :  { %16855 = vmatprep.subr.bf16.mxu0 %v20853_v15  ;;  %v20908_v15 = vld [vmem:[#allocation8 + $0x1508] ss:$24 sps:$4 sm:$0xff]  }
 0x7fa   :  { %16520 = vmatpush1.bf16.msra.mxu1 %v20848_v36  ;;  %v20911_v36 = vld [vmem:[#allocation8 + $0x9d0] ss:$24 sps:$4 sm:$0xff]  }
 0x7fb   :  { %16856 = vmatpush1.bf16.msra.mxu0 %v20851_v16  ;;  %16521 = vmatprep.subr.bf16.mxu1 %v20856_v13  ;;  %v9977_v16 = vld [vmem:[#allocation10] sm:$0x3f]  ;;  %v20916_v13 = vld [vmem:[#allocation8 + $0x153c] ss:$24 sps:$4 sm:$0xff]  }
 0x7fc   :  { %16857 = vmatprep.subr.bf16.mxu0 %v20859_v25  ;;  %v20919_v25 = vld [vmem:[#allocation8 + $0xa04] ss:$24 sps:$4 sm:$0xff]  }
 0x7fe   :  { %16522 = vmatpush1.bf16.msra.mxu1 %v20854_v7  ;;  %v9982_v7 = vrot.slane %v9977_v16, %v21957_v55  ;;  %v20928_v55 = vld [vmem:[#allocation8 + $0x159c] ss:$24 sps:$4 sm:$0xff]  }
 0x7ff   :  { %16858 = vmatpush1.bf16.msra.mxu0 %v20857_v34  ;;  %16523 = vmatprep.subr.bf16.mxu1 %v20862_v43  ;;  %v20914_v34 = vld [vmem:[#allocation8 + $0x1538] ss:$24 sps:$4 sm:$0xff]  }
 0x800   :  { %16859 = vmatprep.subr.bf16.mxu0 %v20865_v22  ;;  %v20917_v43 = vld [vmem:[#allocation8 + $0xa00] ss:$24 sps:$4 sm:$0xff]   ;;  %v9986_v22 = vrot.slane %v9977_v16, %v21937_v17 }
 0x801   :  { %v20926_v17 = vld [vmem:[#allocation8 + $0x1598] ss:$24 sps:$4 sm:$0xff]  }
 0x802   :  { %16524 = vmatpush1.bf16.msra.mxu1 %v20860_v37  ;;  %v20922_v37 = vld [vmem:[#allocation8 + $0x156c] ss:$24 sps:$4 sm:$0xff]   ;;  %v20962_v16 = vld [vmem:[#allocation8 + $0x16b8] ss:$24 sps:$4 sm:$0xff]  }
 0x803   :  { %16860 = vmatpush1.bf16.msra.mxu0 %v20863_v0  ;;  %16525 = vmatprep.subr.bf16.mxu1 %v20868_v42  ;;  %v20925_v0 = vld [vmem:[#allocation8 + $0xa34] ss:$24 sps:$4 sm:$0xff]  }
 0x804   :  { %16861 = vmatprep.subr.bf16.mxu0 %v20871_v63 }
 0x806   :  { %16526 = vmatpush1.bf16.msra.mxu1 %v20866_v38 }
 0x807   :  { %16862 = vmatpush1.bf16.msra.mxu0 %v20869_v57  ;;  %16527 = vmatprep.subr.bf16.mxu1 %v20874_v10  ;;  %v20920_v57 = vld [vmem:[#allocation8 + $0x1568] ss:$24 sps:$4 sm:$0xff]  }
 0x808   :  { %16863 = vmatprep.subr.bf16.mxu0 %v20877_v40 }
 0x80a   :  { %16528 = vmatpush1.bf16.msra.mxu1 %v20872_v19  ;;  %v20923_v19 = vld [vmem:[#allocation8 + $0xa30] ss:$24 sps:$4 sm:$0xff]  }
 0x80b   :  { %16864 = vmatpush1.bf16.msra.mxu0 %v20875_v48  ;;  %16529 = vmatprep.subr.bf16.mxu1 %v20880_v53  ;;  %v20931_v53 = vld [vmem:[#allocation8 + $0xa64] ss:$24 sps:$4 sm:$0xff]  }
 0x80c   :  { %16865 = vmatprep.subr.bf16.mxu0 %v20883_v3  ;;  %v20929_v3 = vld [vmem:[#allocation8 + $0xa60] ss:$24 sps:$4 sm:$0xff]  }
 0x80e   :  { %16530 = vmatpush1.bf16.msra.mxu1 %v20878_v24  ;;  %v20934_v24 = vld [vmem:[#allocation8 + $0x15cc] ss:$24 sps:$4 sm:$0xff]  }
 0x80f   :  { %16866 = vmatpush1.bf16.msra.mxu0 %v20881_v1  ;;  %16531 = vmatprep.subr.bf16.mxu1 %v20886_v5  ;;  %v20937_v1 = vld [vmem:[#allocation8 + $0xa94] ss:$24 sps:$4 sm:$0xff]   ;;  %v20932_v5 = vld [vmem:[#allocation8 + $0x15c8] ss:$24 sps:$4 sm:$0xff]  }
 0x810   :  { %16876 = vmatprep.subr.bf16.mxu0 %v20889_v11  ;;  %v20935_v11 = vld [vmem:[#allocation8 + $0xa90] ss:$24 sps:$4 sm:$0xff]  }
 0x812   :  { %16868 = vmatmul.mubr.bf16.vlgmr.msra.gmra.mrb[20].mxu0 %v22042_v54  ;;  %16532 = vmatpush1.bf16.msra.mxu1 %v20884_v6  ;;  %v20902_v54 = vld [vmem:[#allocation8 + $0x14d8] ss:$24 sps:$4 sm:$0xff]   ;;  %v20940_v6 = vld [vmem:[#allocation8 + $0x15fc] ss:$24 sps:$4 sm:$0xff]  }
 0x813   :  { %16877 = vmatpush1.bf16.msra.mxu0 %v20887_v56  ;;  %16908 = vmatprep.mubr.bf16.mxu0 %v22082_v62  ;;  %v20913_v62 = vld [vmem:[#allocation8 + $0x9d4] ss:$24 sps:$4 sm:$0xff]   ;;  %v20943_v56 = vld [vmem:[#allocation8 + $0xac4] ss:$24 sps:$4 sm:$0xff]  }
 0x814   :  { %16533 = vmatprep.subr.bf16.mxu1 %v20892_v28  ;;  %16878 = vmatprep.subr.bf16.mxu0 %v20895_v4  ;;  %v20938_v28 = vld [vmem:[#allocation8 + $0x15f8] ss:$24 sps:$4 sm:$0xff]  }
 0x815   :  { %v20941_v4 = vld [vmem:[#allocation8 + $0xac0] ss:$24 sps:$4 sm:$0xff]  }
 0x816   :  { %16534 = vmatpush1.bf16.msra.mxu1 %v20890_v12  ;;  %v20946_v12 = vld [vmem:[#allocation8 + $0x162c] ss:$24 sps:$4 sm:$0xff]  }
 0x817   :  { %16879 = vmatpush1.bf16.msra.mxu0 %v20893_v39  ;;  %16535 = vmatprep.subr.bf16.mxu1 %v20898_v21  ;;  %v20949_v39 = vld [vmem:[#allocation8 + $0xaf4] ss:$24 sps:$4 sm:$0xff]   ;;  %v20944_v21 = vld [vmem:[#allocation8 + $0x1628] ss:$24 sps:$4 sm:$0xff]  }
 0x818   :  { %16880 = vmatprep.subr.bf16.mxu0 %v20901_v27  ;;  %v20947_v27 = vld [vmem:[#allocation8 + $0xaf0] ss:$24 sps:$4 sm:$0xff]  }
 0x81a   :  { %16536 = vmatpush1.bf16.msra.mxu1 %v20896_v14  ;;  %v20952_v14 = vld [vmem:[#allocation8 + $0x165c] ss:$24 sps:$4 sm:$0xff]  }
 0x81b   :  { %16881 = vmatpush1.bf16.msra.mxu0 %v20899_v46  ;;  %16537 = vmatprep.subr.bf16.mxu1 %v20904_v33  ;;  %v20955_v46 = vld [vmem:[#allocation8 + $0xb24] ss:$24 sps:$4 sm:$0xff]   ;;  %v20950_v33 = vld [vmem:[#allocation8 + $0x1658] ss:$24 sps:$4 sm:$0xff]  }
 0x81c   :  { %16882 = vmatprep.subr.bf16.mxu0 %v20907_v49  ;;  %v20953_v49 = vld [vmem:[#allocation8 + $0xb20] ss:$24 sps:$4 sm:$0xff]  }
 0x81e   :  { %16538 = vmatpush1.bf16.msra.mxu1 %v20902_v54  ;;  %v20958_v54 = vld [vmem:[#allocation8 + $0x168c] ss:$24 sps:$4 sm:$0xff]  }
 0x81f   :  { %16883 = vmatpush1.bf16.msra.mxu0 %v20905_v26  ;;  %16548 = vmatprep.subr.bf16.mxu1 %v20910_v30  ;;  %v20961_v26 = vld [vmem:[#allocation8 + $0xb54] ss:$24 sps:$4 sm:$0xff]   ;;  %v20956_v30 = vld [vmem:[#allocation8 + $0x1688] ss:$24 sps:$4 sm:$0xff]  }
 0x820   :  { %16884 = vmatprep.subr.bf16.mxu0 %v20913_v62  ;;  %v20959_v62 = vld [vmem:[#allocation8 + $0xb50] ss:$24 sps:$4 sm:$0xff]  }
 0x821   :  { %16540 = vmatmul.mubr.bf16.vlgmr.msra.gmra.mrb[32].mxu1 %v22146_v20 }
 0x822   :  { %16549 = vmatpush1.bf16.msra.mxu1 %v20908_v15  ;;  %16580 = vmatprep.mubr.bf16.mxu1 %v22168_v9  ;;  %v20964_v15 = vld [vmem:[#allocation8 + $0x16bc] ss:$24 sps:$4 sm:$0xff]  }
 0x823   :  { %16885 = vmatpush1.bf16.msra.mxu0 %v20911_v36  ;;  %16550 = vmatprep.subr.bf16.mxu1 %v20916_v13  ;;  %v20967_v36 = vld [vmem:[#allocation8 + $0xb84] ss:$24 sps:$4 sm:$0xff]   ;;  %v20965_v13 = vld [vmem:[#allocation8 + $0xb80] ss:$24 sps:$4 sm:$0xff]  }
 0x824   :  { %16886 = vmatprep.subr.bf16.mxu0 %v20919_v25  ;;  %v20970_v25 = vld [vmem:[#allocation8 + $0x16ec] ss:$24 sps:$4 sm:$0xff]  }
 0x825   :  { %v16254_v42 = vpop.f32.mrb[16].mxu0 }
 0x826   :  { %v19596_v63 = vadd.f32 %v16254_v42, %v9982_v7  ;;  %v16256_v38 = vpop.f32.mrb[17].mxu0  ;;  %16551 = vmatpush1.bf16.msra.mxu1 %v20914_v34  ;;  %v20973_v7 = vld [vmem:[#allocation8 + $0xbb4] ss:$24 sps:$4 sm:$0xff]   ;;  %v20968_v34 = vld [vmem:[#allocation8 + $0x16e8] ss:$24 sps:$4 sm:$0xff]  }
 0x827   :  { %v19597_v10 = vadd.f32 %v16256_v38, %v9986_v22  ;;  %16887 = vmatpush1.bf16.msra.mxu0 %v20917_v43  ;;  %v16258_v40 = vpop.f32.mrb[18].mxu0  ;;  %16552 = vmatprep.subr.bf16.mxu1 %v20922_v37  ;;  %v20971_v43 = vld [vmem:[#allocation8 + $0xbb0] ss:$24 sps:$4 sm:$0xff]   ;;  %v20976_v22 = vld [vmem:[#allocation8 + $0x171c] ss:$24 sps:$4 sm:$0xff]  }
 0x828   :  { %17245 = vst [vmem:[#allocation11] sm:$0xff] %v19596_v63  ;;  %v16259_v48 = vpop.f32.mrb[19].mxu0  ;;  %16888 = vmatprep.subr.bf16.mxu0 %v20925_v0  ;;  %v20979_v37 = vld [vmem:[#allocation8 + $0xbe4] ss:$24 sps:$4 sm:$0xff]   ;;  %v20974_v0 = vld [vmem:[#allocation8 + $0x1718] ss:$24 sps:$4 sm:$0xff]  }
 0x829   :  { %17246 = vst [vmem:[#allocation11 + $0x8] sm:$0xff] %v19597_v10  ;;  %v20977_v42 = vld [vmem:[#allocation8 + $0xbe0] ss:$24 sps:$4 sm:$0xff]   ;;  %v20982_v63 = vld [vmem:[#allocation8 + $0x174c] ss:$24 sps:$4 sm:$0xff]  }
 0x82a   :  { %16553 = vmatpush1.bf16.msra.mxu1 %v20920_v57  ;;  %v20985_v38 = vld [vmem:[#allocation8 + $0xc14] ss:$24 sps:$4 sm:$0xff]   ;;  %v20980_v57 = vld [vmem:[#allocation8 + $0x1748] ss:$24 sps:$4 sm:$0xff]  }
 0x82b   :  { %16889 = vmatpush1.bf16.msra.mxu0 %v20923_v19  ;;  %16554 = vmatprep.subr.bf16.mxu1 %v20928_v55  ;;  %v20983_v10 = vld [vmem:[#allocation8 + $0xc10] ss:$24 sps:$4 sm:$0xff]   ;;  %v20988_v40 = vld [vmem:[#allocation8 + $0x177c] ss:$24 sps:$4 sm:$0xff]   ;;  %v20989_v48 = vld [vmem:[#allocation8 + $0xc40] ss:$24 sps:$4 sm:$0xff]  }
 0x82c   :  { %16890 = vmatprep.subr.bf16.mxu0 %v20931_v53  ;;  %v20991_v19 = vld [vmem:[#allocation8 + $0xc44] ss:$24 sps:$4 sm:$0xff]   ;;  %v20986_v55 = vld [vmem:[#allocation8 + $0x1778] ss:$24 sps:$4 sm:$0xff]  }
 0x82d   :  { %v20994_v53 = vld [vmem:[#allocation8 + $0x17ac] ss:$24 sps:$4 sm:$0xff]  }
 0x82e   :  { %16555 = vmatpush1.bf16.msra.mxu1 %v20926_v17  ;;  %v20997_v17 = vld [vmem:[#allocation8 + $0xc74] ss:$24 sps:$4 sm:$0xff]  }
 0x82f   :  { %16891 = vmatpush1.bf16.msra.mxu0 %v20929_v3  ;;  %16556 = vmatprep.subr.bf16.mxu1 %v20934_v24  ;;  %v20992_v3 = vld [vmem:[#allocation8 + $0x17a8] ss:$24 sps:$4 sm:$0xff]  }
 0x830   :  { %16892 = vmatprep.subr.bf16.mxu0 %v20937_v1  ;;  %v20995_v24 = vld [vmem:[#allocation8 + $0xc70] ss:$24 sps:$4 sm:$0xff]   ;;  %v21000_v1 = vld [vmem:[#allocation8 + $0x17dc] ss:$24 sps:$4 sm:$0xff]  }
 0x832   :  { %16557 = vmatpush1.bf16.msra.mxu1 %v20932_v5  ;;  %v21003_v5 = vld [vmem:[#allocation8 + $0xca4] ss:$24 sps:$4 sm:$0xff]  }
 0x833   :  { %16893 = vmatpush1.bf16.msra.mxu0 %v20935_v11  ;;  %16558 = vmatprep.subr.bf16.mxu1 %v20940_v6  ;;  %v21001_v11 = vld [vmem:[#allocation8 + $0xca0] ss:$24 sps:$4 sm:$0xff]   ;;  %v21006_v6 = vld [vmem:[#allocation8 + $0x180c] ss:$24 sps:$4 sm:$0xff]  }
 0x834   :  { %16894 = vmatprep.subr.bf16.mxu0 %v20943_v56  ;;  %v21004_v56 = vld [vmem:[#allocation8 + $0x1808] ss:$24 sps:$4 sm:$0xff]  }
 0x836   :  { %16559 = vmatpush1.bf16.msra.mxu1 %v20938_v28  ;;  %v21007_v28 = vld [vmem:[#allocation8 + $0xcd0] ss:$24 sps:$4 sm:$0xff]  }
 0x837   :  { %16895 = vmatpush1.bf16.msra.mxu0 %v20941_v4  ;;  %16560 = vmatprep.subr.bf16.mxu1 %v20946_v12  ;;  %v21012_v4 = vld [vmem:[#allocation8 + $0x183c] ss:$24 sps:$4 sm:$0xff]  }
 0x838   :  { %16896 = vmatprep.subr.bf16.mxu0 %v20949_v39  ;;  %v21015_v12 = vld [vmem:[#allocation8 + $0xd04] ss:$24 sps:$4 sm:$0xff]   ;;  %v21010_v39 = vld [vmem:[#allocation8 + $0x1838] ss:$24 sps:$4 sm:$0xff]  }
 0x83a   :  { %16561 = vmatpush1.bf16.msra.mxu1 %v20944_v21  ;;  %v21013_v21 = vld [vmem:[#allocation8 + $0xd00] ss:$24 sps:$4 sm:$0xff]  }
 0x83b   :  { %16897 = vmatpush1.bf16.msra.mxu0 %v20947_v27  ;;  %16562 = vmatprep.subr.bf16.mxu1 %v20952_v14  ;;  %v21018_v27 = vld [vmem:[#allocation8 + $0x186c] ss:$24 sps:$4 sm:$0xff]  }
 0x83c   :  { %16898 = vmatprep.subr.bf16.mxu0 %v20955_v46  ;;  %v21021_v14 = vld [vmem:[#allocation8 + $0xd34] ss:$24 sps:$4 sm:$0xff]   ;;  %v21016_v46 = vld [vmem:[#allocation8 + $0x1868] ss:$24 sps:$4 sm:$0xff]  }
 0x83e   :  { %16563 = vmatpush1.bf16.msra.mxu1 %v20950_v33  ;;  %v21019_v33 = vld [vmem:[#allocation8 + $0xd30] ss:$24 sps:$4 sm:$0xff]  }
 0x83f   :  { %16899 = vmatpush1.bf16.msra.mxu0 %v20953_v49  ;;  %16564 = vmatprep.subr.bf16.mxu1 %v20958_v54  ;;  %v21024_v49 = vld [vmem:[#allocation8 + $0x189c] ss:$24 sps:$4 sm:$0xff]  }
 0x840   :  { %16900 = vmatprep.subr.bf16.mxu0 %v20961_v26  ;;  %v21027_v54 = vld [vmem:[#allocation8 + $0xd64] ss:$24 sps:$4 sm:$0xff]   ;;  %v21022_v26 = vld [vmem:[#allocation8 + $0x1898] ss:$24 sps:$4 sm:$0xff]  }
 0x842   :  { %16565 = vmatpush1.bf16.msra.mxu1 %v20956_v30  ;;  %v21025_v30 = vld [vmem:[#allocation8 + $0xd60] ss:$24 sps:$4 sm:$0xff]  }
 0x843   :  { %16901 = vmatpush1.bf16.msra.mxu0 %v20959_v62  ;;  %16566 = vmatprep.subr.bf16.mxu1 %v20964_v15  ;;  %v21030_v62 = vld [vmem:[#allocation8 + $0x18cc] ss:$24 sps:$4 sm:$0xff]  }
 0x844   :  { %16902 = vmatprep.subr.bf16.mxu0 %v20967_v36  ;;  %v21033_v15 = vld [vmem:[#allocation8 + $0xd94] ss:$24 sps:$4 sm:$0xff]   ;;  %v21028_v36 = vld [vmem:[#allocation8 + $0x18c8] ss:$24 sps:$4 sm:$0xff]  }
 0x846   :  { %16567 = vmatpush1.bf16.msra.mxu1 %v20962_v16  ;;  %v21031_v16 = vld [vmem:[#allocation8 + $0xd90] ss:$24 sps:$4 sm:$0xff]  }
 0x847   :  { %16903 = vmatpush1.bf16.msra.mxu0 %v20965_v13  ;;  %16568 = vmatprep.subr.bf16.mxu1 %v20970_v25  ;;  %v21036_v13 = vld [vmem:[#allocation8 + $0x18fc] ss:$24 sps:$4 sm:$0xff]  }
 0x848   :  { %16904 = vmatprep.subr.bf16.mxu0 %v20973_v7  ;;  %v21039_v25 = vld [vmem:[#allocation8 + $0xdc4] ss:$24 sps:$4 sm:$0xff]   ;;  %v21034_v7 = vld [vmem:[#allocation8 + $0x18f8] ss:$24 sps:$4 sm:$0xff]  }
 0x84a   :  { %16569 = vmatpush1.bf16.msra.mxu1 %v20968_v34  ;;  %v21037_v34 = vld [vmem:[#allocation8 + $0xdc0] ss:$24 sps:$4 sm:$0xff]  }
 0x84b   :  { %16905 = vmatpush1.bf16.msra.mxu0 %v20971_v43  ;;  %16570 = vmatprep.subr.bf16.mxu1 %v20976_v22  ;;  %v21042_v43 = vld [vmem:[#allocation8 + $0x192c] ss:$24 sps:$4 sm:$0xff]  }
 0x84c   :  { %16906 = vmatprep.subr.bf16.mxu0 %v20979_v37  ;;  %v21045_v22 = vld [vmem:[#allocation8 + $0xdf4] ss:$24 sps:$4 sm:$0xff]   ;;  %v21040_v37 = vld [vmem:[#allocation8 + $0x1928] ss:$24 sps:$4 sm:$0xff]  }
 0x84e   :  { %16571 = vmatpush1.bf16.msra.mxu1 %v20974_v0  ;;  %v21043_v0 = vld [vmem:[#allocation8 + $0xdf0] ss:$24 sps:$4 sm:$0xff]  }
 0x84f   :  { %16907 = vmatpush1.bf16.msra.mxu0 %v20977_v42  ;;  %16572 = vmatprep.subr.bf16.mxu1 %v20982_v63  ;;  %v21048_v42 = vld [vmem:[#allocation8 + $0x195c] ss:$24 sps:$4 sm:$0xff]  }
 0x850   :  { %16917 = vmatprep.subr.bf16.mxu0 %v20985_v38  ;;  %v21051_v63 = vld [vmem:[#allocation8 + $0xe24] ss:$24 sps:$4 sm:$0xff]   ;;  %v21046_v38 = vld [vmem:[#allocation8 + $0x1958] ss:$24 sps:$4 sm:$0xff]  }
 0x852   :  { %16909 = vmatmul.mubr.bf16.vlgmr.msra.gmra.mrb[20].mxu0 %v22087_v44  ;;  %16573 = vmatpush1.bf16.msra.mxu1 %v20980_v57  ;;  %v20998_v44 = vld [vmem:[#allocation8 + $0x17d8] ss:$24 sps:$4 sm:$0xff]  }
 0x853   :  { %16918 = vmatpush1.bf16.msra.mxu0 %v20983_v10  ;;  %16949 = vmatprep.mubr.bf16.mxu0 %v22090_v47  ;;  %v21009_v47 = vld [vmem:[#allocation8 + $0xcd4] ss:$24 sps:$4 sm:$0xff]   ;;  %v21049_v57 = vld [vmem:[#allocation8 + $0xe20] ss:$24 sps:$4 sm:$0xff]  }
 0x854   :  { %16574 = vmatprep.subr.bf16.mxu1 %v20988_v40  ;;  %16919 = vmatprep.subr.bf16.mxu0 %v20991_v19  ;;  %v21054_v10 = vld [vmem:[#allocation8 + $0x198c] ss:$24 sps:$4 sm:$0xff]   ;;  %v21052_v19 = vld [vmem:[#allocation8 + $0x1988] ss:$24 sps:$4 sm:$0xff]  }
 0x855   :  { %v21057_v40 = vld [vmem:[#allocation8 + $0xe54] ss:$24 sps:$4 sm:$0xff]  }
 0x856   :  { %16575 = vmatpush1.bf16.msra.mxu1 %v20986_v55  ;;  %v21055_v55 = vld [vmem:[#allocation8 + $0xe50] ss:$24 sps:$4 sm:$0xff]  }
 0x857   :  { %16920 = vmatpush1.bf16.msra.mxu0 %v20989_v48  ;;  %16576 = vmatprep.subr.bf16.mxu1 %v20994_v53  ;;  %v21060_v48 = vld [vmem:[#allocation8 + $0x19bc] ss:$24 sps:$4 sm:$0xff]  }
 0x858   :  { %16921 = vmatprep.subr.bf16.mxu0 %v20997_v17  ;;  %v21063_v53 = vld [vmem:[#allocation8 + $0xe84] ss:$24 sps:$4 sm:$0xff]   ;;  %v21058_v17 = vld [vmem:[#allocation8 + $0x19b8] ss:$24 sps:$4 sm:$0xff]  }
 0x85a   :  { %16577 = vmatpush1.bf16.msra.mxu1 %v20992_v3  ;;  %v21061_v3 = vld [vmem:[#allocation8 + $0xe80] ss:$24 sps:$4 sm:$0xff]  }
 0x85b   :  { %16922 = vmatpush1.bf16.msra.mxu0 %v20995_v24  ;;  %16578 = vmatprep.subr.bf16.mxu1 %v21000_v1  ;;  %v21066_v24 = vld [vmem:[#allocation8 + $0x19ec] ss:$24 sps:$4 sm:$0xff]  }
 0x85c   :  { %16923 = vmatprep.subr.bf16.mxu0 %v21003_v5  ;;  %v21069_v1 = vld [vmem:[#allocation8 + $0xeb4] ss:$24 sps:$4 sm:$0xff]   ;;  %v21064_v5 = vld [vmem:[#allocation8 + $0x19e8] ss:$24 sps:$4 sm:$0xff]  }
 0x85e   :  { %16579 = vmatpush1.bf16.msra.mxu1 %v20998_v44  ;;  %v21067_v44 = vld [vmem:[#allocation8 + $0xeb0] ss:$24 sps:$4 sm:$0xff]  }
 0x85f   :  { %16924 = vmatpush1.bf16.msra.mxu0 %v21001_v11  ;;  %16589 = vmatprep.subr.bf16.mxu1 %v21006_v6  ;;  %v21072_v11 = vld [vmem:[#allocation8 + $0x1a1c] ss:$24 sps:$4 sm:$0xff]  }
 0x860   :  { %16925 = vmatprep.subr.bf16.mxu0 %v21009_v47  ;;  %v21075_v6 = vld [vmem:[#allocation8 + $0xee4] ss:$24 sps:$4 sm:$0xff]   ;;  %v21070_v47 = vld [vmem:[#allocation8 + $0x1a18] ss:$24 sps:$4 sm:$0xff]  }
 0x861   :  { %16581 = vmatmul.mubr.bf16.vlgmr.msra.gmra.mrb[32].mxu1 %v22170_v29 }
 0x862   :  { %16590 = vmatpush1.bf16.msra.mxu1 %v21004_v56  ;;  %16621 = vmatprep.mubr.bf16.mxu1 %v22173_v31  ;;  %v21073_v56 = vld [vmem:[#allocation8 + $0xee0] ss:$24 sps:$4 sm:$0xff]  }
 0x863   :  { %16926 = vmatpush1.bf16.msra.mxu0 %v21007_v28  ;;  %16591 = vmatprep.subr.bf16.mxu1 %v21012_v4  ;;  %v21078_v28 = vld [vmem:[#allocation8 + $0x1a4c] ss:$24 sps:$4 sm:$0xff]  }
 0x864   :  { %16927 = vmatprep.subr.bf16.mxu0 %v21015_v12  ;;  %v21081_v4 = vld [vmem:[#allocation8 + $0xf14] ss:$24 sps:$4 sm:$0xff]   ;;  %v21076_v12 = vld [vmem:[#allocation8 + $0x1a48] ss:$24 sps:$4 sm:$0xff]  }
 0x866   :  { %16592 = vmatpush1.bf16.msra.mxu1 %v21010_v39  ;;  %v21079_v39 = vld [vmem:[#allocation8 + $0xf10] ss:$24 sps:$4 sm:$0xff]  }
 0x867   :  { %16928 = vmatpush1.bf16.msra.mxu0 %v21013_v21  ;;  %16593 = vmatprep.subr.bf16.mxu1 %v21018_v27  ;;  %v21084_v21 = vld [vmem:[#allocation8 + $0x1a7c] ss:$24 sps:$4 sm:$0xff]  }
 0x868   :  { %16929 = vmatprep.subr.bf16.mxu0 %v21021_v14  ;;  %v21087_v27 = vld [vmem:[#allocation8 + $0xf44] ss:$24 sps:$4 sm:$0xff]   ;;  %v21082_v14 = vld [vmem:[#allocation8 + $0x1a78] ss:$24 sps:$4 sm:$0xff]  }
 0x86a   :  { %16594 = vmatpush1.bf16.msra.mxu1 %v21016_v46  ;;  %v21085_v46 = vld [vmem:[#allocation8 + $0xf40] ss:$24 sps:$4 sm:$0xff]  }
 0x86b   :  { %16930 = vmatpush1.bf16.msra.mxu0 %v21019_v33  ;;  %16595 = vmatprep.subr.bf16.mxu1 %v21024_v49  ;;  %v21090_v33 = vld [vmem:[#allocation8 + $0x1aac] ss:$24 sps:$4 sm:$0xff]  }
 0x86c   :  { %16931 = vmatprep.subr.bf16.mxu0 %v21027_v54  ;;  %v21093_v49 = vld [vmem:[#allocation8 + $0xf74] ss:$24 sps:$4 sm:$0xff]   ;;  %v21088_v54 = vld [vmem:[#allocation8 + $0x1aa8] ss:$24 sps:$4 sm:$0xff]  }
 0x86e   :  { %16596 = vmatpush1.bf16.msra.mxu1 %v21022_v26  ;;  %v21091_v26 = vld [vmem:[#allocation8 + $0xf70] ss:$24 sps:$4 sm:$0xff]  }
 0x86f   :  { %16932 = vmatpush1.bf16.msra.mxu0 %v21025_v30  ;;  %16597 = vmatprep.subr.bf16.mxu1 %v21030_v62  ;;  %v21096_v30 = vld [vmem:[#allocation8 + $0x1adc] ss:$24 sps:$4 sm:$0xff]  }
 0x870   :  { %16933 = vmatprep.subr.bf16.mxu0 %v21033_v15  ;;  %v21099_v62 = vld [vmem:[#allocation8 + $0xfa4] ss:$24 sps:$4 sm:$0xff]   ;;  %v21097_v15 = vld [vmem:[#allocation8 + $0xfa0] ss:$24 sps:$4 sm:$0xff]  }
 0x872   :  { %16598 = vmatpush1.bf16.msra.mxu1 %v21028_v36  ;;  %v21102_v36 = vld [vmem:[#allocation8 + $0x1b0c] ss:$24 sps:$4 sm:$0xff]  }
 0x873   :  { %16934 = vmatpush1.bf16.msra.mxu0 %v21031_v16  ;;  %16599 = vmatprep.subr.bf16.mxu1 %v21036_v13  ;;  %v21100_v16 = vld [vmem:[#allocation8 + $0x1b08] ss:$24 sps:$4 sm:$0xff]  }
 0x874   :  { %16935 = vmatprep.subr.bf16.mxu0 %v21039_v25  ;;  %v21103_v13 = vld [vmem:[#allocation8 + $0xfd0] ss:$24 sps:$4 sm:$0xff]   ;;  %v21108_v25 = vld [vmem:[#allocation8 + $0x1b3c] ss:$24 sps:$4 sm:$0xff]  }
 0x876   :  { %16600 = vmatpush1.bf16.msra.mxu1 %v21034_v7  ;;  %v21111_v7 = vld [vmem:[#allocation8 + $0x1004] ss:$24 sps:$4 sm:$0xff]  }
 0x877   :  { %16936 = vmatpush1.bf16.msra.mxu0 %v21037_v34  ;;  %16601 = vmatprep.subr.bf16.mxu1 %v21042_v43  ;;  %v21106_v34 = vld [vmem:[#allocation8 + $0x1b38] ss:$24 sps:$4 sm:$0xff]  }
 0x878   :  { %16937 = vmatprep.subr.bf16.mxu0 %v21045_v22  ;;  %v21109_v43 = vld [vmem:[#allocation8 + $0x1000] ss:$24 sps:$4 sm:$0xff]   ;;  %v21114_v22 = vld [vmem:[#allocation8 + $0x1b6c] ss:$24 sps:$4 sm:$0xff]  }
 0x87a   :  { %16602 = vmatpush1.bf16.msra.mxu1 %v21040_v37  ;;  %v21117_v37 = vld [vmem:[#allocation8 + $0x1034] ss:$24 sps:$4 sm:$0xff]  }
 0x87b   :  { %16938 = vmatpush1.bf16.msra.mxu0 %v21043_v0  ;;  %16603 = vmatprep.subr.bf16.mxu1 %v21048_v42  ;;  %v21112_v0 = vld [vmem:[#allocation8 + $0x1b68] ss:$24 sps:$4 sm:$0xff]  }
 0x87c   :  { %16939 = vmatprep.subr.bf16.mxu0 %v21051_v63  ;;  %v21115_v42 = vld [vmem:[#allocation8 + $0x1030] ss:$24 sps:$4 sm:$0xff]   ;;  %v21120_v63 = vld [vmem:[#allocation8 + $0x1b9c] ss:$24 sps:$4 sm:$0xff]  }
 0x87e   :  { %16604 = vmatpush1.bf16.msra.mxu1 %v21046_v38  ;;  %v21123_v38 = vld [vmem:[#allocation8 + $0x1064] ss:$24 sps:$4 sm:$0xff]  }
 0x87f   :  { %16940 = vmatpush1.bf16.msra.mxu0 %v21049_v57  ;;  %16605 = vmatprep.subr.bf16.mxu1 %v21054_v10  ;;  %v21118_v57 = vld [vmem:[#allocation8 + $0x1b98] ss:$24 sps:$4 sm:$0xff]  }
 0x880   :  { %16941 = vmatprep.subr.bf16.mxu0 %v21057_v40  ;;  %v21121_v10 = vld [vmem:[#allocation8 + $0x1060] ss:$24 sps:$4 sm:$0xff]   ;;  %v21126_v40 = vld [vmem:[#allocation8 + $0x1bcc] ss:$24 sps:$4 sm:$0xff]  }
 0x882   :  { %16606 = vmatpush1.bf16.msra.mxu1 %v21052_v19  ;;  %v21129_v19 = vld [vmem:[#allocation8 + $0x1094] ss:$24 sps:$4 sm:$0xff]  }
 0x883   :  { %16942 = vmatpush1.bf16.msra.mxu0 %v21055_v55  ;;  %16607 = vmatprep.subr.bf16.mxu1 %v21060_v48  ;;  %v21124_v55 = vld [vmem:[#allocation8 + $0x1bc8] ss:$24 sps:$4 sm:$0xff]  }
 0x884   :  { %16943 = vmatprep.subr.bf16.mxu0 %v21063_v53  ;;  %v21127_v48 = vld [vmem:[#allocation8 + $0x1090] ss:$24 sps:$4 sm:$0xff]   ;;  %v21132_v53 = vld [vmem:[#allocation8 + $0x1bfc] ss:$24 sps:$4 sm:$0xff]  }
 0x886   :  { %16608 = vmatpush1.bf16.msra.mxu1 %v21058_v17  ;;  %v21135_v17 = vld [vmem:[#allocation8 + $0x10c4] ss:$24 sps:$4 sm:$0xff]  }
 0x887   :  { %16944 = vmatpush1.bf16.msra.mxu0 %v21061_v3  ;;  %16609 = vmatprep.subr.bf16.mxu1 %v21066_v24  ;;  %v21130_v3 = vld [vmem:[#allocation8 + $0x1bf8] ss:$24 sps:$4 sm:$0xff]  }
 0x888   :  { %16945 = vmatprep.subr.bf16.mxu0 %v21069_v1  ;;  %v21133_v24 = vld [vmem:[#allocation8 + $0x10c0] ss:$24 sps:$4 sm:$0xff]   ;;  %v21138_v1 = vld [vmem:[#allocation8 + $0x1c2c] ss:$24 sps:$4 sm:$0xff]  }
 0x88a   :  { %16610 = vmatpush1.bf16.msra.mxu1 %v21064_v5  ;;  %v21141_v5 = vld [vmem:[#allocation8 + $0x10f4] ss:$24 sps:$4 sm:$0xff]  }
 0x88b   :  { %16946 = vmatpush1.bf16.msra.mxu0 %v21067_v44  ;;  %16611 = vmatprep.subr.bf16.mxu1 %v21072_v11  ;;  %v21136_v44 = vld [vmem:[#allocation8 + $0x1c28] ss:$24 sps:$4 sm:$0xff]  }
 0x88c   :  { %16947 = vmatprep.subr.bf16.mxu0 %v21075_v6  ;;  %v21139_v11 = vld [vmem:[#allocation8 + $0x10f0] ss:$24 sps:$4 sm:$0xff]   ;;  %v21144_v6 = vld [vmem:[#allocation8 + $0x1c5c] ss:$24 sps:$4 sm:$0xff]  }
 0x88e   :  { %16612 = vmatpush1.bf16.msra.mxu1 %v21070_v47  ;;  %v21147_v47 = vld [vmem:[#allocation8 + $0x1124] ss:$24 sps:$4 sm:$0xff]  }
 0x88f   :  { %16948 = vmatpush1.bf16.msra.mxu0 %v21073_v56  ;;  %16613 = vmatprep.subr.bf16.mxu1 %v21078_v28  ;;  %v21142_v56 = vld [vmem:[#allocation8 + $0x1c58] ss:$24 sps:$4 sm:$0xff]  }
 0x890   :  { %16958 = vmatprep.subr.bf16.mxu0 %v21081_v4  ;;  %v21145_v28 = vld [vmem:[#allocation8 + $0x1120] ss:$24 sps:$4 sm:$0xff]   ;;  %v21150_v4 = vld [vmem:[#allocation8 + $0x1c8c] ss:$24 sps:$4 sm:$0xff]  }
 0x892   :  { %16950 = vmatmul.mubr.bf16.vlgmr.msra.gmra.mrb[20].mxu0 %v22104_v8  ;;  %16614 = vmatpush1.bf16.msra.mxu1 %v21076_v12  ;;  %v21094_v8 = vld [vmem:[#allocation8 + $0x1ad8] ss:$24 sps:$4 sm:$0xff]   ;;  %v21153_v12 = vld [vmem:[#allocation8 + $0x1154] ss:$24 sps:$4 sm:$0xff]  }
 0x893   :  { %16959 = vmatpush1.bf16.msra.mxu0 %v21079_v39  ;;  %16990 = vmatprep.mubr.bf16.mxu0 %v22126_v41  ;;  %v21105_v41 = vld [vmem:[#allocation8 + $0xfd4] ss:$24 sps:$4 sm:$0xff]   ;;  %v21148_v39 = vld [vmem:[#allocation8 + $0x1c88] ss:$24 sps:$4 sm:$0xff]  }
 0x894   :  { %16615 = vmatprep.subr.bf16.mxu1 %v21084_v21  ;;  %16960 = vmatprep.subr.bf16.mxu0 %v21087_v27  ;;  %v21151_v21 = vld [vmem:[#allocation8 + $0x1150] ss:$24 sps:$4 sm:$0xff]   ;;  %v21156_v27 = vld [vmem:[#allocation8 + $0x1cbc] ss:$24 sps:$4 sm:$0xff]  }
 0x896   :  { %16616 = vmatpush1.bf16.msra.mxu1 %v21082_v14  ;;  %v21159_v14 = vld [vmem:[#allocation8 + $0x1184] ss:$24 sps:$4 sm:$0xff]  }
 0x897   :  { %16961 = vmatpush1.bf16.msra.mxu0 %v21085_v46  ;;  %16617 = vmatprep.subr.bf16.mxu1 %v21090_v33  ;;  %v21154_v46 = vld [vmem:[#allocation8 + $0x1cb8] ss:$24 sps:$4 sm:$0xff]  }
 0x898   :  { %16962 = vmatprep.subr.bf16.mxu0 %v21093_v49  ;;  %v21157_v33 = vld [vmem:[#allocation8 + $0x1180] ss:$24 sps:$4 sm:$0xff]   ;;  %v21162_v49 = vld [vmem:[#allocation8 + $0x1cec] ss:$24 sps:$4 sm:$0xff]  }
 0x89a   :  { %16618 = vmatpush1.bf16.msra.mxu1 %v21088_v54  ;;  %v21165_v54 = vld [vmem:[#allocation8 + $0x11b4] ss:$24 sps:$4 sm:$0xff]  }
 0x89b   :  { %16963 = vmatpush1.bf16.msra.mxu0 %v21091_v26  ;;  %16619 = vmatprep.subr.bf16.mxu1 %v21096_v30  ;;  %v21160_v26 = vld [vmem:[#allocation8 + $0x1ce8] ss:$24 sps:$4 sm:$0xff]  }
 0x89c   :  { %16964 = vmatprep.subr.bf16.mxu0 %v21099_v62  ;;  %v21163_v30 = vld [vmem:[#allocation8 + $0x11b0] ss:$24 sps:$4 sm:$0xff]   ;;  %v21168_v62 = vld [vmem:[#allocation8 + $0x1d1c] ss:$24 sps:$4 sm:$0xff]  }
 0x89e   :  { %16620 = vmatpush1.bf16.msra.mxu1 %v21094_v8  ;;  %v21171_v8 = vld [vmem:[#allocation8 + $0x11e4] ss:$24 sps:$4 sm:$0xff]  }
 0x89f   :  { %16965 = vmatpush1.bf16.msra.mxu0 %v21097_v15  ;;  %16630 = vmatprep.subr.bf16.mxu1 %v21102_v36  ;;  %v21166_v15 = vld [vmem:[#allocation8 + $0x1d18] ss:$24 sps:$4 sm:$0xff]  }
 0x8a0   :  { %16966 = vmatprep.subr.bf16.mxu0 %v21105_v41  ;;  %v21169_v36 = vld [vmem:[#allocation8 + $0x11e0] ss:$24 sps:$4 sm:$0xff]   ;;  %v21174_v41 = vld [vmem:[#allocation8 + $0x1d4c] ss:$24 sps:$4 sm:$0xff]  }
 0x8a1   :  { %16622 = vmatmul.mubr.bf16.vlgmr.msra.gmra.mrb[32].mxu1 %v22188_v18 }
 0x8a2   :  { %16631 = vmatpush1.bf16.msra.mxu1 %v21100_v16  ;;  %16662 = vmatprep.mubr.bf16.mxu1 %v22202_v2  ;;  %v21177_v16 = vld [vmem:[#allocation8 + $0x1214] ss:$24 sps:$4 sm:$0xff]  }
 0x8a3   :  { %16967 = vmatpush1.bf16.msra.mxu0 %v21103_v13  ;;  %16632 = vmatprep.subr.bf16.mxu1 %v21108_v25  ;;  %v21172_v13 = vld [vmem:[#allocation8 + $0x1d48] ss:$24 sps:$4 sm:$0xff]  }
 0x8a4   :  { %16968 = vmatprep.subr.bf16.mxu0 %v21111_v7  ;;  %v21175_v25 = vld [vmem:[#allocation8 + $0x1210] ss:$24 sps:$4 sm:$0xff]   ;;  %v21180_v7 = vld [vmem:[#allocation8 + $0x1d7c] ss:$24 sps:$4 sm:$0xff]  }
 0x8a6   :  { %16633 = vmatpush1.bf16.msra.mxu1 %v21106_v34  ;;  %v21183_v34 = vld [vmem:[#allocation8 + $0x1244] ss:$24 sps:$4 sm:$0xff]  }
 0x8a7   :  { %16969 = vmatpush1.bf16.msra.mxu0 %v21109_v43  ;;  %16634 = vmatprep.subr.bf16.mxu1 %v21114_v22  ;;  %v21178_v43 = vld [vmem:[#allocation8 + $0x1d78] ss:$24 sps:$4 sm:$0xff]  }
 0x8a8   :  { %16970 = vmatprep.subr.bf16.mxu0 %v21117_v37  ;;  %v21181_v22 = vld [vmem:[#allocation8 + $0x1240] ss:$24 sps:$4 sm:$0xff]   ;;  %v21186_v37 = vld [vmem:[#allocation8 + $0x1dac] ss:$24 sps:$4 sm:$0xff]  }
 0x8aa   :  { %16635 = vmatpush1.bf16.msra.mxu1 %v21112_v0  ;;  %v21189_v0 = vld [vmem:[#allocation8 + $0x1274] ss:$24 sps:$4 sm:$0xff]  }
 0x8ab   :  { %16971 = vmatpush1.bf16.msra.mxu0 %v21115_v42  ;;  %16636 = vmatprep.subr.bf16.mxu1 %v21120_v63  ;;  %v21184_v42 = vld [vmem:[#allocation8 + $0x1da8] ss:$24 sps:$4 sm:$0xff]  }
 0x8ac   :  { %16972 = vmatprep.subr.bf16.mxu0 %v21123_v38  ;;  %v21187_v63 = vld [vmem:[#allocation8 + $0x1270] ss:$24 sps:$4 sm:$0xff]   ;;  %v21192_v38 = vld [vmem:[#allocation8 + $0x1ddc] ss:$24 sps:$4 sm:$0xff]  }
 0x8ae   :  { %16637 = vmatpush1.bf16.msra.mxu1 %v21118_v57  ;;  %v21195_v57 = vld [vmem:[#allocation8 + $0x12a4] ss:$24 sps:$4 sm:$0xff]  }
 0x8af   :  { %16973 = vmatpush1.bf16.msra.mxu0 %v21121_v10  ;;  %16638 = vmatprep.subr.bf16.mxu1 %v21126_v40  ;;  %v21193_v10 = vld [vmem:[#allocation8 + $0x12a0] ss:$24 sps:$4 sm:$0xff]   ;;  %v21198_v40 = vld [vmem:[#allocation8 + $0x1e0c] ss:$24 sps:$4 sm:$0xff]  }
 0x8b0   :  { %16974 = vmatprep.subr.bf16.mxu0 %v21129_v19  ;;  %v21196_v19 = vld [vmem:[#allocation8 + $0x1e08] ss:$24 sps:$4 sm:$0xff]  }
 0x8b2   :  { %16639 = vmatpush1.bf16.msra.mxu1 %v21124_v55  ;;  %v21199_v55 = vld [vmem:[#allocation8 + $0x12d0] ss:$24 sps:$4 sm:$0xff]  }
 0x8b3   :  { %16975 = vmatpush1.bf16.msra.mxu0 %v21127_v48  ;;  %16640 = vmatprep.subr.bf16.mxu1 %v21132_v53  ;;  %v21204_v48 = vld [vmem:[#allocation8 + $0x1e3c] ss:$24 sps:$4 sm:$0xff]  }
 0x8b4   :  { %16976 = vmatprep.subr.bf16.mxu0 %v21135_v17  ;;  %v21207_v53 = vld [vmem:[#allocation8 + $0x1304] ss:$24 sps:$4 sm:$0xff]   ;;  %v21202_v17 = vld [vmem:[#allocation8 + $0x1e38] ss:$24 sps:$4 sm:$0xff]  }
 0x8b6   :  { %16641 = vmatpush1.bf16.msra.mxu1 %v21130_v3  ;;  %v21205_v3 = vld [vmem:[#allocation8 + $0x1300] ss:$24 sps:$4 sm:$0xff]  }
 0x8b7   :  { %16977 = vmatpush1.bf16.msra.mxu0 %v21133_v24  ;;  %16642 = vmatprep.subr.bf16.mxu1 %v21138_v1  ;;  %v21210_v24 = vld [vmem:[#allocation8 + $0x1e6c] ss:$24 sps:$4 sm:$0xff]  }
 0x8b8   :  { %16978 = vmatprep.subr.bf16.mxu0 %v21141_v5  ;;  %v21213_v1 = vld [vmem:[#allocation8 + $0x1334] ss:$24 sps:$4 sm:$0xff]   ;;  %v21208_v5 = vld [vmem:[#allocation8 + $0x1e68] ss:$24 sps:$4 sm:$0xff]  }
 0x8ba   :  { %16643 = vmatpush1.bf16.msra.mxu1 %v21136_v44  ;;  %v21211_v44 = vld [vmem:[#allocation8 + $0x1330] ss:$24 sps:$4 sm:$0xff]  }
 0x8bb   :  { %16979 = vmatpush1.bf16.msra.mxu0 %v21139_v11  ;;  %16644 = vmatprep.subr.bf16.mxu1 %v21144_v6  ;;  %v21216_v11 = vld [vmem:[#allocation8 + $0x1e9c] ss:$24 sps:$4 sm:$0xff]  }
 0x8bc   :  { %16980 = vmatprep.subr.bf16.mxu0 %v21147_v47  ;;  %v21219_v6 = vld [vmem:[#allocation8 + $0x1364] ss:$24 sps:$4 sm:$0xff]   ;;  %v21214_v47 = vld [vmem:[#allocation8 + $0x1e98] ss:$24 sps:$4 sm:$0xff]  }
 0x8be   :  { %16645 = vmatpush1.bf16.msra.mxu1 %v21142_v56  ;;  %v21217_v56 = vld [vmem:[#allocation8 + $0x1360] ss:$24 sps:$4 sm:$0xff]  }
 0x8bf   :  { %16981 = vmatpush1.bf16.msra.mxu0 %v21145_v28  ;;  %16646 = vmatprep.subr.bf16.mxu1 %v21150_v4  ;;  %v21222_v28 = vld [vmem:[#allocation8 + $0x1ecc] ss:$24 sps:$4 sm:$0xff]  }
 0x8c0   :  { %16982 = vmatprep.subr.bf16.mxu0 %v21153_v12  ;;  %v21225_v4 = vld [vmem:[#allocation8 + $0x1394] ss:$24 sps:$4 sm:$0xff]   ;;  %v21220_v12 = vld [vmem:[#allocation8 + $0x1ec8] ss:$24 sps:$4 sm:$0xff]  }
 0x8c2   :  { %16647 = vmatpush1.bf16.msra.mxu1 %v21148_v39  ;;  %v21223_v39 = vld [vmem:[#allocation8 + $0x1390] ss:$24 sps:$4 sm:$0xff]  }
 0x8c3   :  { %16983 = vmatpush1.bf16.msra.mxu0 %v21151_v21  ;;  %16648 = vmatprep.subr.bf16.mxu1 %v21156_v27  ;;  %v21228_v21 = vld [vmem:[#allocation8 + $0x1efc] ss:$24 sps:$4 sm:$0xff]  }
 0x8c4   :  { %16984 = vmatprep.subr.bf16.mxu0 %v21159_v14  ;;  %v21231_v27 = vld [vmem:[#allocation8 + $0x13c4] ss:$24 sps:$4 sm:$0xff]   ;;  %v21226_v14 = vld [vmem:[#allocation8 + $0x1ef8] ss:$24 sps:$4 sm:$0xff]  }
 0x8c6   :  { %16649 = vmatpush1.bf16.msra.mxu1 %v21154_v46  ;;  %v21229_v46 = vld [vmem:[#allocation8 + $0x13c0] ss:$24 sps:$4 sm:$0xff]  }
 0x8c7   :  { %16985 = vmatpush1.bf16.msra.mxu0 %v21157_v33  ;;  %16650 = vmatprep.subr.bf16.mxu1 %v21162_v49  ;;  %v21234_v33 = vld [vmem:[#allocation8 + $0x1f2c] ss:$24 sps:$4 sm:$0xff]  }
 0x8c8   :  { %16986 = vmatprep.subr.bf16.mxu0 %v21165_v54  ;;  %v21237_v49 = vld [vmem:[#allocation8 + $0x13f4] ss:$24 sps:$4 sm:$0xff]   ;;  %v21232_v54 = vld [vmem:[#allocation8 + $0x1f28] ss:$24 sps:$4 sm:$0xff]  }
 0x8ca   :  { %16651 = vmatpush1.bf16.msra.mxu1 %v21160_v26  ;;  %v21235_v26 = vld [vmem:[#allocation8 + $0x13f0] ss:$24 sps:$4 sm:$0xff]  }
 0x8cb   :  { %16987 = vmatpush1.bf16.msra.mxu0 %v21163_v30  ;;  %16652 = vmatprep.subr.bf16.mxu1 %v21168_v62  ;;  %v21240_v30 = vld [vmem:[#allocation8 + $0x1f5c] ss:$24 sps:$4 sm:$0xff]  }
 0x8cc   :  { %16988 = vmatprep.subr.bf16.mxu0 %v21171_v8  ;;  %v21243_v62 = vld [vmem:[#allocation8 + $0x1424] ss:$24 sps:$4 sm:$0xff]   ;;  %v21238_v8 = vld [vmem:[#allocation8 + $0x1f58] ss:$24 sps:$4 sm:$0xff]  }
 0x8ce   :  { %16653 = vmatpush1.bf16.msra.mxu1 %v21166_v15  ;;  %v21241_v15 = vld [vmem:[#allocation8 + $0x1420] ss:$24 sps:$4 sm:$0xff]  }
 0x8cf   :  { %16989 = vmatpush1.bf16.msra.mxu0 %v21169_v36  ;;  %16654 = vmatprep.subr.bf16.mxu1 %v21174_v41  ;;  %v21246_v36 = vld [vmem:[#allocation8 + $0x1f8c] ss:$24 sps:$4 sm:$0xff]  }
 0x8d0   :  { %16999 = vmatprep.subr.bf16.mxu0 %v21177_v16  ;;  %v21249_v41 = vld [vmem:[#allocation8 + $0x1454] ss:$24 sps:$4 sm:$0xff]   ;;  %v21244_v16 = vld [vmem:[#allocation8 + $0x1f88] ss:$24 sps:$4 sm:$0xff]  }
 0x8d2   :  { %16991 = vmatmul.mubr.bf16.vlgmr.msra.gmra.mrb[20].mxu0 %v22128_v45  ;;  %16655 = vmatpush1.bf16.msra.mxu1 %v21172_v13  ;;  %v21190_v45 = vld [vmem:[#allocation8 + $0x1dd8] ss:$24 sps:$4 sm:$0xff]  }
 0x8d3   :  { %17000 = vmatpush1.bf16.msra.mxu0 %v21175_v25  ;;  %17031 = vmatprep.mubr.bf16.mxu0 %v22131_v35  ;;  %v21201_v35 = vld [vmem:[#allocation8 + $0x12d4] ss:$24 sps:$4 sm:$0xff]   ;;  %v21247_v13 = vld [vmem:[#allocation8 + $0x1450] ss:$24 sps:$4 sm:$0xff]  }
 0x8d4   :  { %16656 = vmatprep.subr.bf16.mxu1 %v21180_v7  ;;  %17001 = vmatprep.subr.bf16.mxu0 %v21183_v34  ;;  %v21252_v25 = vld [vmem:[#allocation8 + $0x1fbc] ss:$24 sps:$4 sm:$0xff]   ;;  %v21250_v34 = vld [vmem:[#allocation8 + $0x1fb8] ss:$24 sps:$4 sm:$0xff]  }
 0x8d5   :  { %v21255_v7 = vld [vmem:[#allocation8 + $0x1484] ss:$24 sps:$4 sm:$0xff]  }
 0x8d6   :  { %16657 = vmatpush1.bf16.msra.mxu1 %v21178_v43  ;;  %v21253_v43 = vld [vmem:[#allocation8 + $0x1480] ss:$24 sps:$4 sm:$0xff]  }
 0x8d7   :  { %17002 = vmatpush1.bf16.msra.mxu0 %v21181_v22  ;;  %16658 = vmatprep.subr.bf16.mxu1 %v21186_v37  ;;  %v21258_v22 = vld [vmem:[#allocation8 + $0x1fec] ss:$24 sps:$4 sm:$0xff]  }
 0x8d8   :  { %17003 = vmatprep.subr.bf16.mxu0 %v21189_v0  ;;  %v21261_v37 = vld [vmem:[#allocation8 + $0x14b4] ss:$24 sps:$4 sm:$0xff]   ;;  %v21256_v0 = vld [vmem:[#allocation8 + $0x1fe8] ss:$24 sps:$4 sm:$0xff]  }
 0x8da   :  { %16659 = vmatpush1.bf16.msra.mxu1 %v21184_v42  ;;  %v21259_v42 = vld [vmem:[#allocation8 + $0x14b0] ss:$24 sps:$4 sm:$0xff]  }
 0x8db   :  { %17004 = vmatpush1.bf16.msra.mxu0 %v21187_v63  ;;  %16660 = vmatprep.subr.bf16.mxu1 %v21192_v38  ;;  %v21264_v63 = vld [vmem:[#allocation8 + $0x201c] ss:$24 sps:$4 sm:$0xff]  }
 0x8dc   :  { %17005 = vmatprep.subr.bf16.mxu0 %v21195_v57  ;;  %v21267_v38 = vld [vmem:[#allocation8 + $0x14e4] ss:$24 sps:$4 sm:$0xff]   ;;  %v21262_v57 = vld [vmem:[#allocation8 + $0x2018] ss:$24 sps:$4 sm:$0xff]  }
 0x8de   :  { %16661 = vmatpush1.bf16.msra.mxu1 %v21190_v45  ;;  %v21265_v45 = vld [vmem:[#allocation8 + $0x14e0] ss:$24 sps:$4 sm:$0xff]  }
 0x8df   :  { %17006 = vmatpush1.bf16.msra.mxu0 %v21193_v10  ;;  %16671 = vmatprep.subr.bf16.mxu1 %v21198_v40  ;;  %v21270_v10 = vld [vmem:[#allocation8 + $0x204c] ss:$24 sps:$4 sm:$0xff]  }
 0x8e0   :  { %17007 = vmatprep.subr.bf16.mxu0 %v21201_v35  ;;  %v21273_v40 = vld [vmem:[#allocation8 + $0x1514] ss:$24 sps:$4 sm:$0xff]   ;;  %v21268_v35 = vld [vmem:[#allocation8 + $0x2048] ss:$24 sps:$4 sm:$0xff]  }
 0x8e1   :  { %16663 = vmatmul.mubr.bf16.vlgmr.msra.gmra.mrb[32].mxu1 %v22204_v61 }
 0x8e2   :  { %16672 = vmatpush1.bf16.msra.mxu1 %v21196_v19  ;;  %16703 = vmatprep.mubr.bf16.mxu1 %v22207_v23  ;;  %v21271_v19 = vld [vmem:[#allocation8 + $0x1510] ss:$24 sps:$4 sm:$0xff]  }
 0x8e3   :  { %17008 = vmatpush1.bf16.msra.mxu0 %v21199_v55  ;;  %16673 = vmatprep.subr.bf16.mxu1 %v21204_v48  ;;  %v21276_v55 = vld [vmem:[#allocation8 + $0x207c] ss:$24 sps:$4 sm:$0xff]  }
 0x8e4   :  { %17009 = vmatprep.subr.bf16.mxu0 %v21207_v53  ;;  %v21279_v48 = vld [vmem:[#allocation8 + $0x1544] ss:$24 sps:$4 sm:$0xff]   ;;  %v21274_v53 = vld [vmem:[#allocation8 + $0x2078] ss:$24 sps:$4 sm:$0xff]  }
 0x8e6   :  { %16674 = vmatpush1.bf16.msra.mxu1 %v21202_v17  ;;  %v21277_v17 = vld [vmem:[#allocation8 + $0x1540] ss:$24 sps:$4 sm:$0xff]  }
 0x8e7   :  { %17010 = vmatpush1.bf16.msra.mxu0 %v21205_v3  ;;  %16675 = vmatprep.subr.bf16.mxu1 %v21210_v24  ;;  %v21282_v3 = vld [vmem:[#allocation8 + $0x20ac] ss:$24 sps:$4 sm:$0xff]  }
 0x8e8   :  { %17011 = vmatprep.subr.bf16.mxu0 %v21213_v1  ;;  %v21285_v24 = vld [vmem:[#allocation8 + $0x1574] ss:$24 sps:$4 sm:$0xff]   ;;  %v21280_v1 = vld [vmem:[#allocation8 + $0x20a8] ss:$24 sps:$4 sm:$0xff]  }
 0x8ea   :  { %16676 = vmatpush1.bf16.msra.mxu1 %v21208_v5  ;;  %v21283_v5 = vld [vmem:[#allocation8 + $0x1570] ss:$24 sps:$4 sm:$0xff]  }
 0x8eb   :  { %17012 = vmatpush1.bf16.msra.mxu0 %v21211_v44  ;;  %16677 = vmatprep.subr.bf16.mxu1 %v21216_v11  ;;  %v21288_v44 = vld [vmem:[#allocation8 + $0x20dc] ss:$24 sps:$4 sm:$0xff]  }
 0x8ec   :  { %17013 = vmatprep.subr.bf16.mxu0 %v21219_v6  ;;  %v21291_v11 = vld [vmem:[#allocation8 + $0x15a4] ss:$24 sps:$4 sm:$0xff]   ;;  %v21289_v6 = vld [vmem:[#allocation8 + $0x15a0] ss:$24 sps:$4 sm:$0xff]  }
 0x8ee   :  { %16678 = vmatpush1.bf16.msra.mxu1 %v21214_v47  ;;  %v21294_v47 = vld [vmem:[#allocation8 + $0x210c] ss:$24 sps:$4 sm:$0xff]  }
 0x8ef   :  { %17014 = vmatpush1.bf16.msra.mxu0 %v21217_v56  ;;  %16679 = vmatprep.subr.bf16.mxu1 %v21222_v28  ;;  %v21292_v56 = vld [vmem:[#allocation8 + $0x2108] ss:$24 sps:$4 sm:$0xff]  }
 0x8f0   :  { %17015 = vmatprep.subr.bf16.mxu0 %v21225_v4  ;;  %v21295_v28 = vld [vmem:[#allocation8 + $0x15d0] ss:$24 sps:$4 sm:$0xff]   ;;  %v21300_v4 = vld [vmem:[#allocation8 + $0x213c] ss:$24 sps:$4 sm:$0xff]  }
 0x8f2   :  { %16680 = vmatpush1.bf16.msra.mxu1 %v21220_v12  ;;  %v21303_v12 = vld [vmem:[#allocation8 + $0x1604] ss:$24 sps:$4 sm:$0xff]  }
 0x8f3   :  { %17016 = vmatpush1.bf16.msra.mxu0 %v21223_v39  ;;  %16681 = vmatprep.subr.bf16.mxu1 %v21228_v21  ;;  %v21298_v39 = vld [vmem:[#allocation8 + $0x2138] ss:$24 sps:$4 sm:$0xff]  }
 0x8f4   :  { %17017 = vmatprep.subr.bf16.mxu0 %v21231_v27  ;;  %v21301_v21 = vld [vmem:[#allocation8 + $0x1600] ss:$24 sps:$4 sm:$0xff]   ;;  %v21306_v27 = vld [vmem:[#allocation8 + $0x216c] ss:$24 sps:$4 sm:$0xff]  }
 0x8f6   :  { %16682 = vmatpush1.bf16.msra.mxu1 %v21226_v14  ;;  %v21309_v14 = vld [vmem:[#allocation8 + $0x1634] ss:$24 sps:$4 sm:$0xff]  }
 0x8f7   :  { %17018 = vmatpush1.bf16.msra.mxu0 %v21229_v46  ;;  %16683 = vmatprep.subr.bf16.mxu1 %v21234_v33  ;;  %v21304_v46 = vld [vmem:[#allocation8 + $0x2168] ss:$24 sps:$4 sm:$0xff]  }
 0x8f8   :  { %17019 = vmatprep.subr.bf16.mxu0 %v21237_v49  ;;  %v21307_v33 = vld [vmem:[#allocation8 + $0x1630] ss:$24 sps:$4 sm:$0xff]   ;;  %v21312_v49 = vld [vmem:[#allocation8 + $0x219c] ss:$24 sps:$4 sm:$0xff]  }
 0x8fa   :  { %16684 = vmatpush1.bf16.msra.mxu1 %v21232_v54  ;;  %v21315_v54 = vld [vmem:[#allocation8 + $0x1664] ss:$24 sps:$4 sm:$0xff]  }
 0x8fb   :  { %17020 = vmatpush1.bf16.msra.mxu0 %v21235_v26  ;;  %16685 = vmatprep.subr.bf16.mxu1 %v21240_v30  ;;  %v21310_v26 = vld [vmem:[#allocation8 + $0x2198] ss:$24 sps:$4 sm:$0xff]  }
 0x8fc   :  { %17021 = vmatprep.subr.bf16.mxu0 %v21243_v62  ;;  %v21313_v30 = vld [vmem:[#allocation8 + $0x1660] ss:$24 sps:$4 sm:$0xff]   ;;  %v21318_v62 = vld [vmem:[#allocation8 + $0x21cc] ss:$24 sps:$4 sm:$0xff]  }
 0x8fe   :  { %16686 = vmatpush1.bf16.msra.mxu1 %v21238_v8  ;;  %v21321_v8 = vld [vmem:[#allocation8 + $0x1694] ss:$24 sps:$4 sm:$0xff]  }
 0x8ff   :  { %17022 = vmatpush1.bf16.msra.mxu0 %v21241_v15  ;;  %16687 = vmatprep.subr.bf16.mxu1 %v21246_v36  ;;  %v21316_v15 = vld [vmem:[#allocation8 + $0x21c8] ss:$24 sps:$4 sm:$0xff]  }
 0x900   :  { %17023 = vmatprep.subr.bf16.mxu0 %v21249_v41  ;;  %v21319_v36 = vld [vmem:[#allocation8 + $0x1690] ss:$24 sps:$4 sm:$0xff]   ;;  %v21324_v41 = vld [vmem:[#allocation8 + $0x21fc] ss:$24 sps:$4 sm:$0xff]  }
 0x902   :  { %16688 = vmatpush1.bf16.msra.mxu1 %v21244_v16  ;;  %v21327_v16 = vld [vmem:[#allocation8 + $0x16c4] ss:$24 sps:$4 sm:$0xff]  }
 0x903   :  { %17024 = vmatpush1.bf16.msra.mxu0 %v21247_v13  ;;  %16689 = vmatprep.subr.bf16.mxu1 %v21252_v25  ;;  %v21322_v13 = vld [vmem:[#allocation8 + $0x21f8] ss:$24 sps:$4 sm:$0xff]  }
 0x904   :  { %17025 = vmatprep.subr.bf16.mxu0 %v21255_v7  ;;  %v21325_v25 = vld [vmem:[#allocation8 + $0x16c0] ss:$24 sps:$4 sm:$0xff]   ;;  %v21330_v7 = vld [vmem:[#allocation8 + $0x222c] ss:$24 sps:$4 sm:$0xff]  }
 0x906   :  { %16690 = vmatpush1.bf16.msra.mxu1 %v21250_v34  ;;  %v21333_v34 = vld [vmem:[#allocation8 + $0x16f4] ss:$24 sps:$4 sm:$0xff]  }
 0x907   :  { %17026 = vmatpush1.bf16.msra.mxu0 %v21253_v43  ;;  %16691 = vmatprep.subr.bf16.mxu1 %v21258_v22  ;;  %v21328_v43 = vld [vmem:[#allocation8 + $0x2228] ss:$24 sps:$4 sm:$0xff]  }
 0x908   :  { %17027 = vmatprep.subr.bf16.mxu0 %v21261_v37  ;;  %v21331_v22 = vld [vmem:[#allocation8 + $0x16f0] ss:$24 sps:$4 sm:$0xff]   ;;  %v21336_v37 = vld [vmem:[#allocation8 + $0x225c] ss:$24 sps:$4 sm:$0xff]  }
 0x90a   :  { %16692 = vmatpush1.bf16.msra.mxu1 %v21256_v0  ;;  %v21339_v0 = vld [vmem:[#allocation8 + $0x1724] ss:$24 sps:$4 sm:$0xff]  }
 0x90b   :  { %17028 = vmatpush1.bf16.msra.mxu0 %v21259_v42  ;;  %16693 = vmatprep.subr.bf16.mxu1 %v21264_v63  ;;  %v21334_v42 = vld [vmem:[#allocation8 + $0x2258] ss:$24 sps:$4 sm:$0xff]  }
 0x90c   :  { %17029 = vmatprep.subr.bf16.mxu0 %v21267_v38  ;;  %v21337_v63 = vld [vmem:[#allocation8 + $0x1720] ss:$24 sps:$4 sm:$0xff]   ;;  %v21342_v38 = vld [vmem:[#allocation8 + $0x228c] ss:$24 sps:$4 sm:$0xff]  }
 0x90e   :  { %16694 = vmatpush1.bf16.msra.mxu1 %v21262_v57  ;;  %v21345_v57 = vld [vmem:[#allocation8 + $0x1754] ss:$24 sps:$4 sm:$0xff]  }
 0x90f   :  { %17030 = vmatpush1.bf16.msra.mxu0 %v21265_v45  ;;  %16695 = vmatprep.subr.bf16.mxu1 %v21270_v10  ;;  %v21340_v45 = vld [vmem:[#allocation8 + $0x2288] ss:$24 sps:$4 sm:$0xff]  }
 0x910   :  { %17040 = vmatprep.subr.bf16.mxu0 %v21273_v40  ;;  %v21343_v10 = vld [vmem:[#allocation8 + $0x1750] ss:$24 sps:$4 sm:$0xff]   ;;  %v21348_v40 = vld [vmem:[#allocation8 + $0x22bc] ss:$24 sps:$4 sm:$0xff]  }
 0x912   :  { %17032 = vmatmul.mubr.bf16.vlgmr.msra.gmra.mrb[20].mxu0 %v22146_v20  ;;  %16696 = vmatpush1.bf16.msra.mxu1 %v21268_v35  ;;  %v21286_v20 = vld [vmem:[#allocation8 + $0x20d8] ss:$24 sps:$4 sm:$0xff]   ;;  %v21351_v35 = vld [vmem:[#allocation8 + $0x1784] ss:$24 sps:$4 sm:$0xff]  }
 0x913   :  { %17041 = vmatpush1.bf16.msra.mxu0 %v21271_v19  ;;  %17072 = vmatprep.mubr.bf16.mxu0 %v22168_v9  ;;  %v21297_v9 = vld [vmem:[#allocation8 + $0x15d4] ss:$24 sps:$4 sm:$0xff]   ;;  %v21346_v19 = vld [vmem:[#allocation8 + $0x22b8] ss:$24 sps:$4 sm:$0xff]  }
 0x914   :  { %16697 = vmatprep.subr.bf16.mxu1 %v21276_v55  ;;  %17042 = vmatprep.subr.bf16.mxu0 %v21279_v48  ;;  %v21349_v55 = vld [vmem:[#allocation8 + $0x1780] ss:$24 sps:$4 sm:$0xff]   ;;  %v21354_v48 = vld [vmem:[#allocation8 + $0x22ec] ss:$24 sps:$4 sm:$0xff]  }
 0x916   :  { %16698 = vmatpush1.bf16.msra.mxu1 %v21274_v53  ;;  %v21357_v53 = vld [vmem:[#allocation8 + $0x17b4] ss:$24 sps:$4 sm:$0xff]  }
 0x917   :  { %17043 = vmatpush1.bf16.msra.mxu0 %v21277_v17  ;;  %16699 = vmatprep.subr.bf16.mxu1 %v21282_v3  ;;  %v21352_v17 = vld [vmem:[#allocation8 + $0x22e8] ss:$24 sps:$4 sm:$0xff]  }
 0x918   :  { %17044 = vmatprep.subr.bf16.mxu0 %v21285_v24  ;;  %v21355_v3 = vld [vmem:[#allocation8 + $0x17b0] ss:$24 sps:$4 sm:$0xff]   ;;  %v21360_v24 = vld [vmem:[#allocation8 + $0x231c] ss:$24 sps:$4 sm:$0xff]  }
 0x91a   :  { %16700 = vmatpush1.bf16.msra.mxu1 %v21280_v1  ;;  %v21363_v1 = vld [vmem:[#allocation8 + $0x17e4] ss:$24 sps:$4 sm:$0xff]  }
 0x91b   :  { %17045 = vmatpush1.bf16.msra.mxu0 %v21283_v5  ;;  %16701 = vmatprep.subr.bf16.mxu1 %v21288_v44  ;;  %v21358_v5 = vld [vmem:[#allocation8 + $0x2318] ss:$24 sps:$4 sm:$0xff]  }
 0x91c   :  { %17046 = vmatprep.subr.bf16.mxu0 %v21291_v11  ;;  %v21361_v44 = vld [vmem:[#allocation8 + $0x17e0] ss:$24 sps:$4 sm:$0xff]   ;;  %v21366_v11 = vld [vmem:[#allocation8 + $0x234c] ss:$24 sps:$4 sm:$0xff]  }
 0x91e   :  { %16702 = vmatpush1.bf16.msra.mxu1 %v21286_v20  ;;  %v21369_v20 = vld [vmem:[#allocation8 + $0x1814] ss:$24 sps:$4 sm:$0xff]  }
 0x91f   :  { %17047 = vmatpush1.bf16.msra.mxu0 %v21289_v6  ;;  %16712 = vmatprep.subr.bf16.mxu1 %v21294_v47  ;;  %v21364_v6 = vld [vmem:[#allocation8 + $0x2348] ss:$24 sps:$4 sm:$0xff]  }
 0x920   :  { %17048 = vmatprep.subr.bf16.mxu0 %v21297_v9  ;;  %v21367_v47 = vld [vmem:[#allocation8 + $0x1810] ss:$24 sps:$4 sm:$0xff]   ;;  %v21372_v9 = vld [vmem:[#allocation8 + $0x237c] ss:$24 sps:$4 sm:$0xff]  }
 0x921   :  { %16704 = vmatmul.mubr.bf16.vlgmr.msra.gmra.mrb[32].mxu1 %v22224_v32 }
 0x922   :  { %16713 = vmatpush1.bf16.msra.mxu1 %v21292_v56  ;;  %16744 = vmatprep.mubr.bf16.mxu1 %v22235_v52  ;;  %v21375_v56 = vld [vmem:[#allocation8 + $0x1844] ss:$24 sps:$4 sm:$0xff]  }
 0x923   :  { %17049 = vmatpush1.bf16.msra.mxu0 %v21295_v28  ;;  %16714 = vmatprep.subr.bf16.mxu1 %v21300_v4  ;;  %v21370_v28 = vld [vmem:[#allocation8 + $0x2378] ss:$24 sps:$4 sm:$0xff]  }
 0x924   :  { %17050 = vmatprep.subr.bf16.mxu0 %v21303_v12  ;;  %v21373_v4 = vld [vmem:[#allocation8 + $0x1840] ss:$24 sps:$4 sm:$0xff]   ;;  %v21378_v12 = vld [vmem:[#allocation8 + $0x23ac] ss:$24 sps:$4 sm:$0xff]  }
 0x926   :  { %16715 = vmatpush1.bf16.msra.mxu1 %v21298_v39  ;;  %v21381_v39 = vld [vmem:[#allocation8 + $0x1874] ss:$24 sps:$4 sm:$0xff]  }
 0x927   :  { %17051 = vmatpush1.bf16.msra.mxu0 %v21301_v21  ;;  %16716 = vmatprep.subr.bf16.mxu1 %v21306_v27  ;;  %v21376_v21 = vld [vmem:[#allocation8 + $0x23a8] ss:$24 sps:$4 sm:$0xff]  }
 0x928   :  { %17052 = vmatprep.subr.bf16.mxu0 %v21309_v14  ;;  %v21379_v27 = vld [vmem:[#allocation8 + $0x1870] ss:$24 sps:$4 sm:$0xff]   ;;  %v21384_v14 = vld [vmem:[#allocation8 + $0x23dc] ss:$24 sps:$4 sm:$0xff]  }
 0x92a   :  { %16717 = vmatpush1.bf16.msra.mxu1 %v21304_v46  ;;  %v21387_v46 = vld [vmem:[#allocation8 + $0x18a4] ss:$24 sps:$4 sm:$0xff]  }
 0x92b   :  { %17053 = vmatpush1.bf16.msra.mxu0 %v21307_v33  ;;  %16718 = vmatprep.subr.bf16.mxu1 %v21312_v49  ;;  %v21385_v33 = vld [vmem:[#allocation8 + $0x18a0] ss:$24 sps:$4 sm:$0xff]   ;;  %v21388_v49 = vld [vmem:[#allocation8 + $0x18d0] ss:$24 sps:$4 sm:$0xff]  }
 0x92c   :  { %17054 = vmatprep.subr.bf16.mxu0 %v21315_v54  ;;  %v21393_v54 = vld [vmem:[#allocation8 + $0x1904] ss:$24 sps:$4 sm:$0xff]  }
 0x92e   :  { %16719 = vmatpush1.bf16.msra.mxu1 %v21310_v26  ;;  %v21391_v26 = vld [vmem:[#allocation8 + $0x1900] ss:$24 sps:$4 sm:$0xff]  }
 0x92f   :  { %17055 = vmatpush1.bf16.msra.mxu0 %v21313_v30  ;;  %16720 = vmatprep.subr.bf16.mxu1 %v21318_v62  ;;  %v21396_v30 = vld [vmem:[#allocation8 + $0x1934] ss:$24 sps:$4 sm:$0xff]   ;;  %v21394_v62 = vld [vmem:[#allocation8 + $0x1930] ss:$24 sps:$4 sm:$0xff]  }
 0x930   :  { %17056 = vmatprep.subr.bf16.mxu0 %v21321_v8  ;;  %v21399_v8 = vld [vmem:[#allocation8 + $0x1964] ss:$24 sps:$4 sm:$0xff]  }
 0x932   :  { %16721 = vmatpush1.bf16.msra.mxu1 %v21316_v15  ;;  %v21397_v15 = vld [vmem:[#allocation8 + $0x1960] ss:$24 sps:$4 sm:$0xff]  }
 0x933   :  { %17057 = vmatpush1.bf16.msra.mxu0 %v21319_v36  ;;  %16722 = vmatprep.subr.bf16.mxu1 %v21324_v41  ;;  %v21402_v36 = vld [vmem:[#allocation8 + $0x1994] ss:$24 sps:$4 sm:$0xff]   ;;  %v21400_v41 = vld [vmem:[#allocation8 + $0x1990] ss:$24 sps:$4 sm:$0xff]  }
 0x934   :  { %17058 = vmatprep.subr.bf16.mxu0 %v21327_v16  ;;  %v21405_v16 = vld [vmem:[#allocation8 + $0x19c4] ss:$24 sps:$4 sm:$0xff]  }
 0x936   :  { %16723 = vmatpush1.bf16.msra.mxu1 %v21322_v13  ;;  %v21403_v13 = vld [vmem:[#allocation8 + $0x19c0] ss:$24 sps:$4 sm:$0xff]  }
 0x937   :  { %17059 = vmatpush1.bf16.msra.mxu0 %v21325_v25  ;;  %16724 = vmatprep.subr.bf16.mxu1 %v21330_v7  ;;  %v21408_v25 = vld [vmem:[#allocation8 + $0x19f4] ss:$24 sps:$4 sm:$0xff]   ;;  %v21406_v7 = vld [vmem:[#allocation8 + $0x19f0] ss:$24 sps:$4 sm:$0xff]  }
 0x938   :  { %17060 = vmatprep.subr.bf16.mxu0 %v21333_v34  ;;  %v21411_v34 = vld [vmem:[#allocation8 + $0x1a24] ss:$24 sps:$4 sm:$0xff]  }
 0x93a   :  { %16725 = vmatpush1.bf16.msra.mxu1 %v21328_v43  ;;  %v21409_v43 = vld [vmem:[#allocation8 + $0x1a20] ss:$24 sps:$4 sm:$0xff]  }
 0x93b   :  { %17061 = vmatpush1.bf16.msra.mxu0 %v21331_v22  ;;  %16726 = vmatprep.subr.bf16.mxu1 %v21336_v37  ;;  %v21414_v22 = vld [vmem:[#allocation8 + $0x1a54] ss:$24 sps:$4 sm:$0xff]   ;;  %v21412_v37 = vld [vmem:[#allocation8 + $0x1a50] ss:$24 sps:$4 sm:$0xff]  }
 0x93c   :  { %17062 = vmatprep.subr.bf16.mxu0 %v21339_v0  ;;  %v21417_v0 = vld [vmem:[#allocation8 + $0x1a84] ss:$24 sps:$4 sm:$0xff]  }
 0x93e   :  { %16727 = vmatpush1.bf16.msra.mxu1 %v21334_v42  ;;  %v21415_v42 = vld [vmem:[#allocation8 + $0x1a80] ss:$24 sps:$4 sm:$0xff]  }
 0x93f   :  { %17063 = vmatpush1.bf16.msra.mxu0 %v21337_v63  ;;  %16728 = vmatprep.subr.bf16.mxu1 %v21342_v38  ;;  %v21420_v63 = vld [vmem:[#allocation8 + $0x1ab4] ss:$24 sps:$4 sm:$0xff]   ;;  %v21418_v38 = vld [vmem:[#allocation8 + $0x1ab0] ss:$24 sps:$4 sm:$0xff]  }
 0x940   :  { %17064 = vmatprep.subr.bf16.mxu0 %v21345_v57  ;;  %v21423_v57 = vld [vmem:[#allocation8 + $0x1ae4] ss:$24 sps:$4 sm:$0xff]  }
 0x942   :  { %16729 = vmatpush1.bf16.msra.mxu1 %v21340_v45  ;;  %v21421_v45 = vld [vmem:[#allocation8 + $0x1ae0] ss:$24 sps:$4 sm:$0xff]  }
 0x943   :  { %17065 = vmatpush1.bf16.msra.mxu0 %v21343_v10  ;;  %16730 = vmatprep.subr.bf16.mxu1 %v21348_v40  ;;  %v21426_v10 = vld [vmem:[#allocation8 + $0x1b14] ss:$24 sps:$4 sm:$0xff]   ;;  %v21424_v40 = vld [vmem:[#allocation8 + $0x1b10] ss:$24 sps:$4 sm:$0xff]  }
 0x944   :  { %17066 = vmatprep.subr.bf16.mxu0 %v21351_v35  ;;  %v21429_v35 = vld [vmem:[#allocation8 + $0x1b44] ss:$24 sps:$4 sm:$0xff]  }
 0x946   :  { %16731 = vmatpush1.bf16.msra.mxu1 %v21346_v19  ;;  %v21427_v19 = vld [vmem:[#allocation8 + $0x1b40] ss:$24 sps:$4 sm:$0xff]  }
 0x947   :  { %17067 = vmatpush1.bf16.msra.mxu0 %v21349_v55  ;;  %16732 = vmatprep.subr.bf16.mxu1 %v21354_v48  ;;  %v21432_v55 = vld [vmem:[#allocation8 + $0x1b74] ss:$24 sps:$4 sm:$0xff]   ;;  %v21430_v48 = vld [vmem:[#allocation8 + $0x1b70] ss:$24 sps:$4 sm:$0xff]  }
 0x948   :  { %17068 = vmatprep.subr.bf16.mxu0 %v21357_v53  ;;  %v21435_v53 = vld [vmem:[#allocation8 + $0x1ba4] ss:$24 sps:$4 sm:$0xff]  }
 0x94a   :  { %16733 = vmatpush1.bf16.msra.mxu1 %v21352_v17  ;;  %v21433_v17 = vld [vmem:[#allocation8 + $0x1ba0] ss:$24 sps:$4 sm:$0xff]  }
 0x94b   :  { %17069 = vmatpush1.bf16.msra.mxu0 %v21355_v3  ;;  %16734 = vmatprep.subr.bf16.mxu1 %v21360_v24  ;;  %v21438_v3 = vld [vmem:[#allocation8 + $0x1bd4] ss:$24 sps:$4 sm:$0xff]   ;;  %v21436_v24 = vld [vmem:[#allocation8 + $0x1bd0] ss:$24 sps:$4 sm:$0xff]  }
 0x94c   :  { %17070 = vmatprep.subr.bf16.mxu0 %v21363_v1  ;;  %v21441_v1 = vld [vmem:[#allocation8 + $0x1c04] ss:$24 sps:$4 sm:$0xff]  }
 0x94e   :  { %16735 = vmatpush1.bf16.msra.mxu1 %v21358_v5  ;;  %v21444_v5 = vld [vmem:[#allocation8 + $0x1c34] ss:$24 sps:$4 sm:$0xff]  }
 0x94f   :  { %17071 = vmatpush1.bf16.msra.mxu0 %v21361_v44  ;;  %16736 = vmatprep.subr.bf16.mxu1 %v21366_v11  ;;  %v21447_v44 = vld [vmem:[#allocation8 + $0x1c64] ss:$24 sps:$4 sm:$0xff]   ;;  %v21445_v11 = vld [vmem:[#allocation8 + $0x1c60] ss:$24 sps:$4 sm:$0xff]  }
 0x950   :  { %17081 = vmatprep.subr.bf16.mxu0 %v21369_v20  ;;  %v21450_v20 = vld [vmem:[#allocation8 + $0x1c94] ss:$24 sps:$4 sm:$0xff]  }
 0x952   :  { %17073 = vmatmul.mubr.bf16.vlgmr.msra.gmra.mrb[20].mxu0 %v22170_v29  ;;  %16737 = vmatpush1.bf16.msra.mxu1 %v21364_v6  ;;  %v21382_v29 = vld [vmem:[#allocation8 + $0x23d8] ss:$24 sps:$4 sm:$0xff]  }
 0x953   :  { %17082 = vmatpush1.bf16.msra.mxu0 %v21367_v47  ;;  %17113 = vmatprep.mubr.bf16.mxu0 %v22173_v31  ;;  %v21390_v31 = vld [vmem:[#allocation8 + $0x18d4] ss:$24 sps:$4 sm:$0xff]   ;;  %v21448_v6 = vld [vmem:[#allocation8 + $0x1c90] ss:$24 sps:$4 sm:$0xff]   ;;  %v21453_v47 = vld [vmem:[#allocation8 + $0x1cc4] ss:$24 sps:$4 sm:$0xff]  }
 0x954   :  { %16738 = vmatprep.subr.bf16.mxu1 %v21372_v9  ;;  %17083 = vmatprep.subr.bf16.mxu0 %v21375_v56  ;;  %v21451_v9 = vld [vmem:[#allocation8 + $0x1cc0] ss:$24 sps:$4 sm:$0xff]   ;;  %v21456_v56 = vld [vmem:[#allocation8 + $0x1cf4] ss:$24 sps:$4 sm:$0xff]  }
 0x956   :  { %16739 = vmatpush1.bf16.msra.mxu1 %v21370_v28  ;;  %v21454_v28 = vld [vmem:[#allocation8 + $0x1cf0] ss:$24 sps:$4 sm:$0xff]  }
 0x957   :  { %17084 = vmatpush1.bf16.msra.mxu0 %v21373_v4  ;;  %16740 = vmatprep.subr.bf16.mxu1 %v21378_v12  ;;  %v21459_v4 = vld [vmem:[#allocation8 + $0x1d24] ss:$24 sps:$4 sm:$0xff]   ;;  %v21457_v12 = vld [vmem:[#allocation8 + $0x1d20] ss:$24 sps:$4 sm:$0xff]  }
 0x958   :  { %17085 = vmatprep.subr.bf16.mxu0 %v21381_v39  ;;  %v21462_v39 = vld [vmem:[#allocation8 + $0x1d54] ss:$24 sps:$4 sm:$0xff]  }
 0x95a   :  { %16741 = vmatpush1.bf16.msra.mxu1 %v21376_v21  ;;  %v21460_v21 = vld [vmem:[#allocation8 + $0x1d50] ss:$24 sps:$4 sm:$0xff]  }
 0x95b   :  { %17086 = vmatpush1.bf16.msra.mxu0 %v21379_v27  ;;  %16742 = vmatprep.subr.bf16.mxu1 %v21384_v14  ;;  %v21465_v27 = vld [vmem:[#allocation8 + $0x1d84] ss:$24 sps:$4 sm:$0xff]   ;;  %v21463_v14 = vld [vmem:[#allocation8 + $0x1d80] ss:$24 sps:$4 sm:$0xff]  }
 0x95c   :  { %17087 = vmatprep.subr.bf16.mxu0 %v21387_v46  ;;  %v21468_v46 = vld [vmem:[#allocation8 + $0x1db4] ss:$24 sps:$4 sm:$0xff]  }
 0x95e   :  { %16743 = vmatpush1.bf16.msra.mxu1 %v21382_v29  ;;  %v21466_v29 = vld [vmem:[#allocation8 + $0x1db0] ss:$24 sps:$4 sm:$0xff]  }
 0x95f   :  { %17088 = vmatpush1.bf16.msra.mxu0 %v21385_v33  ;;  %v21471_v33 = vld [vmem:[#allocation8 + $0x1de4] ss:$24 sps:$4 sm:$0xff]  }
 0x960   :  { %17089 = vmatprep.subr.bf16.mxu0 %v21390_v31  ;;  %v21469_v31 = vld [vmem:[#allocation8 + $0x1de0] ss:$24 sps:$4 sm:$0xff]  }
 0x961   :  { %16745 = vmatmul.mubr.bf16.vlgmr.msra.gmra.mrb[32].mxu1 %v22237_v60 }
 0x963   :  { %17090 = vmatpush1.bf16.msra.mxu0 %v21388_v49  ;;  %v21474_v49 = vld [vmem:[#allocation8 + $0x1e14] ss:$24 sps:$4 sm:$0xff]  }
 0x964   :  { %17091 = vmatprep.subr.bf16.mxu0 %v21393_v54  ;;  %v21472_v54 = vld [vmem:[#allocation8 + $0x1e10] ss:$24 sps:$4 sm:$0xff]  }
 0x967   :  { %17092 = vmatpush1.bf16.msra.mxu0 %v21391_v26  ;;  %v21477_v26 = vld [vmem:[#allocation8 + $0x1e44] ss:$24 sps:$4 sm:$0xff]  }
 0x968   :  { %17093 = vmatprep.subr.bf16.mxu0 %v21396_v30  ;;  %v21475_v30 = vld [vmem:[#allocation8 + $0x1e40] ss:$24 sps:$4 sm:$0xff]  }
 0x96b   :  { %17094 = vmatpush1.bf16.msra.mxu0 %v21394_v62  ;;  %v21480_v62 = vld [vmem:[#allocation8 + $0x1e74] ss:$24 sps:$4 sm:$0xff]  }
 0x96c   :  { %17095 = vmatprep.subr.bf16.mxu0 %v21399_v8  ;;  %v21478_v8 = vld [vmem:[#allocation8 + $0x1e70] ss:$24 sps:$4 sm:$0xff]  }
 0x96f   :  { %17096 = vmatpush1.bf16.msra.mxu0 %v21397_v15  ;;  %v21483_v15 = vld [vmem:[#allocation8 + $0x1ea4] ss:$24 sps:$4 sm:$0xff]  }
 0x970   :  { %17097 = vmatprep.subr.bf16.mxu0 %v21402_v36  ;;  %v21481_v36 = vld [vmem:[#allocation8 + $0x1ea0] ss:$24 sps:$4 sm:$0xff]  }
 0x973   :  { %17098 = vmatpush1.bf16.msra.mxu0 %v21400_v41  ;;  %v21486_v41 = vld [vmem:[#allocation8 + $0x1ed4] ss:$24 sps:$4 sm:$0xff]  }
 0x974   :  { %17099 = vmatprep.subr.bf16.mxu0 %v21405_v16  ;;  %v21484_v16 = vld [vmem:[#allocation8 + $0x1ed0] ss:$24 sps:$4 sm:$0xff]  }
 0x977   :  { %17100 = vmatpush1.bf16.msra.mxu0 %v21403_v13  ;;  %v21489_v13 = vld [vmem:[#allocation8 + $0x1f04] ss:$24 sps:$4 sm:$0xff]  }
 0x978   :  { %17101 = vmatprep.subr.bf16.mxu0 %v21408_v25  ;;  %v21492_v25 = vld [vmem:[#allocation8 + $0x1f34] ss:$24 sps:$4 sm:$0xff]  }
 0x97b   :  { %17102 = vmatpush1.bf16.msra.mxu0 %v21406_v7  ;;  %v21495_v7 = vld [vmem:[#allocation8 + $0x1f64] ss:$24 sps:$4 sm:$0xff]  }
 0x97c   :  { %17103 = vmatprep.subr.bf16.mxu0 %v21411_v34  ;;  %v21493_v34 = vld [vmem:[#allocation8 + $0x1f60] ss:$24 sps:$4 sm:$0xff]  }
 0x97f   :  { %17104 = vmatpush1.bf16.msra.mxu0 %v21409_v43  ;;  %v21498_v43 = vld [vmem:[#allocation8 + $0x1f94] ss:$24 sps:$4 sm:$0xff]  }
 0x980   :  { %17105 = vmatprep.subr.bf16.mxu0 %v21414_v22  ;;  %v21496_v22 = vld [vmem:[#allocation8 + $0x1f90] ss:$24 sps:$4 sm:$0xff]  }
 0x983   :  { %17106 = vmatpush1.bf16.msra.mxu0 %v21412_v37  ;;  %v21501_v37 = vld [vmem:[#allocation8 + $0x1fc4] ss:$24 sps:$4 sm:$0xff]  }
 0x984   :  { %17107 = vmatprep.subr.bf16.mxu0 %v21417_v0  ;;  %v21499_v0 = vld [vmem:[#allocation8 + $0x1fc0] ss:$24 sps:$4 sm:$0xff]  }
 0x987   :  { %17108 = vmatpush1.bf16.msra.mxu0 %v21415_v42  ;;  %v21504_v42 = vld [vmem:[#allocation8 + $0x1ff4] ss:$24 sps:$4 sm:$0xff]  }
 0x988   :  { %17109 = vmatprep.subr.bf16.mxu0 %v21420_v63  ;;  %v21502_v63 = vld [vmem:[#allocation8 + $0x1ff0] ss:$24 sps:$4 sm:$0xff]  }
 0x98b   :  { %17110 = vmatpush1.bf16.msra.mxu0 %v21418_v38  ;;  %v21507_v38 = vld [vmem:[#allocation8 + $0x2024] ss:$24 sps:$4 sm:$0xff]  }
 0x98c   :  { %17111 = vmatprep.subr.bf16.mxu0 %v21423_v57  ;;  %v21505_v57 = vld [vmem:[#allocation8 + $0x2020] ss:$24 sps:$4 sm:$0xff]  }
 0x98f   :  { %17112 = vmatpush1.bf16.msra.mxu0 %v21421_v45  ;;  %v21510_v45 = vld [vmem:[#allocation8 + $0x2054] ss:$24 sps:$4 sm:$0xff]  }
 0x990   :  { %17122 = vmatprep.subr.bf16.mxu0 %v21426_v10  ;;  %v21508_v10 = vld [vmem:[#allocation8 + $0x2050] ss:$24 sps:$4 sm:$0xff]  }
 0x992   :  { %17114 = vmatmul.mubr.bf16.vlgmr.msra.gmra.mrb[20].mxu0 %v22188_v18  ;;  %v21439_v18 = vld [vmem:[#allocation8 + $0x1c00] ss:$24 sps:$4 sm:$0xff]  }
 0x993   :  { %17123 = vmatpush1.bf16.msra.mxu0 %v21424_v40  ;;  %17154 = vmatprep.mubr.bf16.mxu0 %v22202_v2  ;;  %v21442_v2 = vld [vmem:[#allocation8 + $0x1c30] ss:$24 sps:$4 sm:$0xff]   ;;  %v21513_v40 = vld [vmem:[#allocation8 + $0x2084] ss:$24 sps:$4 sm:$0xff]  }
 0x994   :  { %17124 = vmatprep.subr.bf16.mxu0 %v21429_v35  ;;  %v21511_v35 = vld [vmem:[#allocation8 + $0x2080] ss:$24 sps:$4 sm:$0xff]  }
 0x997   :  { %17125 = vmatpush1.bf16.msra.mxu0 %v21427_v19  ;;  %v21516_v19 = vld [vmem:[#allocation8 + $0x20b4] ss:$24 sps:$4 sm:$0xff]  }
 0x998   :  { %17126 = vmatprep.subr.bf16.mxu0 %v21432_v55  ;;  %v21514_v55 = vld [vmem:[#allocation8 + $0x20b0] ss:$24 sps:$4 sm:$0xff]  }
 0x99b   :  { %17127 = vmatpush1.bf16.msra.mxu0 %v21430_v48  ;;  %v21519_v48 = vld [vmem:[#allocation8 + $0x20e4] ss:$24 sps:$4 sm:$0xff]  }
 0x99c   :  { %17128 = vmatprep.subr.bf16.mxu0 %v21435_v53  ;;  %v21517_v53 = vld [vmem:[#allocation8 + $0x20e0] ss:$24 sps:$4 sm:$0xff]  }
 0x99f   :  { %17129 = vmatpush1.bf16.msra.mxu0 %v21433_v17  ;;  %v21522_v17 = vld [vmem:[#allocation8 + $0x2114] ss:$24 sps:$4 sm:$0xff]  }
 0x9a0   :  { %17130 = vmatprep.subr.bf16.mxu0 %v21438_v3  ;;  %v21520_v3 = vld [vmem:[#allocation8 + $0x2110] ss:$24 sps:$4 sm:$0xff]  }
 0x9a3   :  { %17131 = vmatpush1.bf16.msra.mxu0 %v21436_v24  ;;  %v21525_v24 = vld [vmem:[#allocation8 + $0x2144] ss:$24 sps:$4 sm:$0xff]  }
 0x9a4   :  { %17132 = vmatprep.subr.bf16.mxu0 %v21441_v1  ;;  %v21523_v1 = vld [vmem:[#allocation8 + $0x2140] ss:$24 sps:$4 sm:$0xff]  }
 0x9a7   :  { %17133 = vmatpush1.bf16.msra.mxu0 %v21439_v18  ;;  %v21528_v18 = vld [vmem:[#allocation8 + $0x2174] ss:$24 sps:$4 sm:$0xff]  }
 0x9a8   :  { %17134 = vmatprep.subr.bf16.mxu0 %v21444_v5  ;;  %v21526_v5 = vld [vmem:[#allocation8 + $0x2170] ss:$24 sps:$4 sm:$0xff]  }
 0x9ab   :  { %17135 = vmatpush1.bf16.msra.mxu0 %v21442_v2  ;;  %v21531_v2 = vld [vmem:[#allocation8 + $0x21a4] ss:$24 sps:$4 sm:$0xff]  }
 0x9ac   :  { %17136 = vmatprep.subr.bf16.mxu0 %v21447_v44  ;;  %v21529_v44 = vld [vmem:[#allocation8 + $0x21a0] ss:$24 sps:$4 sm:$0xff]  }
 0x9af   :  { %17137 = vmatpush1.bf16.msra.mxu0 %v21445_v11  ;;  %v21534_v11 = vld [vmem:[#allocation8 + $0x21d4] ss:$24 sps:$4 sm:$0xff]  }
 0x9b0   :  { %17138 = vmatprep.subr.bf16.mxu0 %v21450_v20  ;;  %v21532_v20 = vld [vmem:[#allocation8 + $0x21d0] ss:$24 sps:$4 sm:$0xff]  }
 0x9b3   :  { %17139 = vmatpush1.bf16.msra.mxu0 %v21448_v6  ;;  %v21537_v6 = vld [vmem:[#allocation8 + $0x2204] ss:$24 sps:$4 sm:$0xff]  }
 0x9b4   :  { %17140 = vmatprep.subr.bf16.mxu0 %v21453_v47  ;;  %v21540_v47 = vld [vmem:[#allocation8 + $0x2234] ss:$24 sps:$4 sm:$0xff]  }
 0x9b7   :  { %17141 = vmatpush1.bf16.msra.mxu0 %v21451_v9  ;;  %v21543_v9 = vld [vmem:[#allocation8 + $0x2264] ss:$24 sps:$4 sm:$0xff]  }
 0x9b8   :  { %17142 = vmatprep.subr.bf16.mxu0 %v21456_v56  ;;  %v21541_v56 = vld [vmem:[#allocation8 + $0x2260] ss:$24 sps:$4 sm:$0xff]  }
 0x9bb   :  { %17143 = vmatpush1.bf16.msra.mxu0 %v21454_v28  ;;  %v21546_v28 = vld [vmem:[#allocation8 + $0x2294] ss:$24 sps:$4 sm:$0xff]  }
 0x9bc   :  { %17144 = vmatprep.subr.bf16.mxu0 %v21459_v4  ;;  %v21544_v4 = vld [vmem:[#allocation8 + $0x2290] ss:$24 sps:$4 sm:$0xff]  }
 0x9bf   :  { %17145 = vmatpush1.bf16.msra.mxu0 %v21457_v12  ;;  %v21549_v12 = vld [vmem:[#allocation8 + $0x22c4] ss:$24 sps:$4 sm:$0xff]  }
 0x9c0   :  { %17146 = vmatprep.subr.bf16.mxu0 %v21462_v39  ;;  %v21619_v39 = vld [vmem:[#allocation10] sm:$0x3f] }
 0x9c3   :  { %17147 = vmatpush1.bf16.msra.mxu0 %v21460_v21  ;;  %v9990_v21 = vrot.slane %v21619_v39, %v21997_v51  ;;  %v21553_v51 = vld [vmem:[#allocation8 + $0x2320] ss:$24 sps:$4 sm:$0xff]  }
 0x9c4   :  { %17148 = vmatprep.subr.bf16.mxu0 %v21465_v27  ;;  %v9994_v27 = vrot.slane %v21619_v39, %v21960_v59  ;;  %v21558_v59 = vld [vmem:[#allocation8 + $0x2354] ss:$24 sps:$4 sm:$0xff]  }
 0x9c7   :  { %17149 = vmatpush1.bf16.msra.mxu0 %v21463_v14  ;;  %v21547_v14 = vld [vmem:[#allocation8 + $0x22c0] ss:$24 sps:$4 sm:$0xff]  }
 0x9c8   :  { %17150 = vmatprep.subr.bf16.mxu0 %v21468_v46 }
 0x9cb   :  { %17151 = vmatpush1.bf16.msra.mxu0 %v21466_v29  ;;  %v21552_v29 = vld [vmem:[#allocation8 + $0x22f4] ss:$24 sps:$4 sm:$0xff]  }
 0x9cc   :  { %17152 = vmatprep.subr.bf16.mxu0 %v21471_v33 }
 0x9cf   :  { %17153 = vmatpush1.bf16.msra.mxu0 %v21469_v31 }
 0x9d0   :  { %17163 = vmatprep.subr.bf16.mxu0 %v21474_v49 }
 0x9d2   :  { %17155 = vmatmul.mubr.bf16.vlgmr.msra.gmra.mrb[20].mxu0 %v22204_v61  ;;  %v21487_v61 = vld [vmem:[#allocation8 + $0x1f00] ss:$24 sps:$4 sm:$0xff]  }
 0x9d3   :  { %17164 = vmatpush1.bf16.msra.mxu0 %v21472_v54  ;;  %17195 = vmatprep.mubr.bf16.mxu0 %v22207_v23  ;;  %v21490_v23 = vld [vmem:[#allocation8 + $0x1f30] ss:$24 sps:$4 sm:$0xff]  }
 0x9d4   :  { %17165 = vmatprep.subr.bf16.mxu0 %v21477_v26 }
 0x9d7   :  { %17166 = vmatpush1.bf16.msra.mxu0 %v21475_v30  ;;  %v21550_v30 = vld [vmem:[#allocation8 + $0x22f0] ss:$24 sps:$4 sm:$0xff]  }
 0x9d8   :  { %17167 = vmatprep.subr.bf16.mxu0 %v21480_v62  ;;  %v21555_v62 = vld [vmem:[#allocation8 + $0x2324] ss:$24 sps:$4 sm:$0xff]  }
 0x9db   :  { %17168 = vmatpush1.bf16.msra.mxu0 %v21478_v8  ;;  %v21556_v8 = vld [vmem:[#allocation8 + $0x2350] ss:$24 sps:$4 sm:$0xff]  }
 0x9dc   :  { %17169 = vmatprep.subr.bf16.mxu0 %v21483_v15  ;;  %v21561_v15 = vld [vmem:[#allocation8 + $0x2384] ss:$24 sps:$4 sm:$0xff]  }
 0x9df   :  { %17170 = vmatpush1.bf16.msra.mxu0 %v21481_v36  ;;  %v21559_v36 = vld [vmem:[#allocation8 + $0x2380] ss:$24 sps:$4 sm:$0xff]  }
 0x9e0   :  { %17171 = vmatprep.subr.bf16.mxu0 %v21486_v41  ;;  %v21564_v41 = vld [vmem:[#allocation8 + $0x23b4] ss:$24 sps:$4 sm:$0xff]  }
 0x9e3   :  { %17172 = vmatpush1.bf16.msra.mxu0 %v21484_v16  ;;  %v21562_v16 = vld [vmem:[#allocation8 + $0x23b0] ss:$24 sps:$4 sm:$0xff]  }
 0x9e4   :  { %17173 = vmatprep.subr.bf16.mxu0 %v21489_v13  ;;  %v21567_v13 = vld [vmem:[#allocation8 + $0x23e4] ss:$24 sps:$4 sm:$0xff]  }
 0x9e7   :  { %17174 = vmatpush1.bf16.msra.mxu0 %v21487_v61  ;;  %v21565_v61 = vld [vmem:[#allocation8 + $0x23e0] ss:$24 sps:$4 sm:$0xff]  }
 0x9e8   :  { %17175 = vmatprep.subr.bf16.mxu0 %v21492_v25  ;;  %v9998_v25 = vrot.slane %v21619_v39, %v22029_v50 }
 0x9eb   :  { %17176 = vmatpush1.bf16.msra.mxu0 %v21490_v23  ;;  %v10002_v23 = vrot.slane %v21619_v39, %v22000_v58 }
 0x9ec   :  { %17177 = vmatprep.subr.bf16.mxu0 %v21495_v7 }
 0x9ef   :  { %17178 = vmatpush1.bf16.msra.mxu0 %v21493_v34 }
 0x9f0   :  { %17179 = vmatprep.subr.bf16.mxu0 %v21498_v43 }
 0x9f3   :  { %17180 = vmatpush1.bf16.msra.mxu0 %v21496_v22 }
 0x9f4   :  { %17181 = vmatprep.subr.bf16.mxu0 %v21501_v37 }
 0x9f7   :  { %17182 = vmatpush1.bf16.msra.mxu0 %v21499_v0 }
 0x9f8   :  { %17183 = vmatprep.subr.bf16.mxu0 %v21504_v42 }
 0x9fb   :  { %17184 = vmatpush1.bf16.msra.mxu0 %v21502_v63 }
 0x9fc   :  { %17185 = vmatprep.subr.bf16.mxu0 %v21507_v38 }
 0x9ff   :  { %17186 = vmatpush1.bf16.msra.mxu0 %v21505_v57 }
 0xa00   :  { %17187 = vmatprep.subr.bf16.mxu0 %v21510_v45 }
 0xa03   :  { %17188 = vmatpush1.bf16.msra.mxu0 %v21508_v10 }
 0xa04   :  { %17189 = vmatprep.subr.bf16.mxu0 %v21513_v40 }
 0xa07   :  { %17190 = vmatpush1.bf16.msra.mxu0 %v21511_v35 }
 0xa08   :  { %17191 = vmatprep.subr.bf16.mxu0 %v21516_v19 }
 0xa0b   :  { %17192 = vmatpush1.bf16.msra.mxu0 %v21514_v55 }
 0xa0c   :  { %17193 = vmatprep.subr.bf16.mxu0 %v21519_v48 }
 0xa0f   :  { %17194 = vmatpush1.bf16.msra.mxu0 %v21517_v53 }
 0xa10   :  { %17204 = vmatprep.subr.bf16.mxu0 %v21522_v17 }
 0xa12   :  { %17196 = vmatmul.mubr.bf16.vlgmr.msra.gmra.mrb[20].mxu0 %v22224_v32  ;;  %v21535_v32 = vld [vmem:[#allocation8 + $0x2200] ss:$24 sps:$4 sm:$0xff]  }
 0xa13   :  { %17205 = vmatpush1.bf16.msra.mxu0 %v21520_v3  ;;  %17236 = vmatprep.mubr.bf16.mxu0 %v22235_v52  ;;  %v21538_v52 = vld [vmem:[#allocation8 + $0x2230] ss:$24 sps:$4 sm:$0xff]  }
 0xa14   :  { %17206 = vmatprep.subr.bf16.mxu0 %v21525_v24 }
 0xa17   :  { %17207 = vmatpush1.bf16.msra.mxu0 %v21523_v1 }
 0xa18   :  { %17208 = vmatprep.subr.bf16.mxu0 %v21528_v18 }
 0xa1b   :  { %17209 = vmatpush1.bf16.msra.mxu0 %v21526_v5 }
 0xa1c   :  { %17210 = vmatprep.subr.bf16.mxu0 %v21531_v2 }
 0xa1f   :  { %17211 = vmatpush1.bf16.msra.mxu0 %v21529_v44 }
 0xa20   :  { %17212 = vmatprep.subr.bf16.mxu0 %v21534_v11 }
 0xa23   :  { %17213 = vmatpush1.bf16.msra.mxu0 %v21532_v20 }
 0xa24   :  { %17214 = vmatprep.subr.bf16.mxu0 %v21537_v6 }
 0xa27   :  { %17215 = vmatpush1.bf16.msra.mxu0 %v21535_v32 }
 0xa28   :  { %17216 = vmatprep.subr.bf16.mxu0 %v21540_v47 }
 0xa2b   :  { %17217 = vmatpush1.bf16.msra.mxu0 %v21538_v52 }
 0xa2c   :  { %17218 = vmatprep.subr.bf16.mxu0 %v21543_v9 }
 0xa2f   :  { %17219 = vmatpush1.bf16.msra.mxu0 %v21541_v56 }
 0xa30   :  { %17220 = vmatprep.subr.bf16.mxu0 %v21546_v28 }
 0xa33   :  { %17221 = vmatpush1.bf16.msra.mxu0 %v21544_v4 }
 0xa34   :  { %v16746_v46 = vpop.f32.mrb[32].mxu1  ;;  %17222 = vmatprep.subr.bf16.mxu0 %v21549_v12 }
 0xa35   :  { %v19598_v33 = vadd.f32 %v16746_v46, %v9990_v21  ;;  %v16748_v31 = vpop.f32.mrb[33].mxu1 }
 0xa36   :  { %v19599_v49 = vadd.f32 %v16748_v31, %v9994_v27  ;;  %v16750_v54 = vpop.f32.mrb[34].mxu1 }
 0xa37   :  { %17247 = vst [vmem:[#allocation11 + $0x10] sm:$0xff] %v19598_v33  ;;  %17223 = vmatpush1.bf16.msra.mxu0 %v21547_v14  ;;  %v16751_v26 = vpop.f32.mrb[35].mxu1 }
 0xa38   :  { %17248 = vst [vmem:[#allocation11 + $0x18] sm:$0xff] %v19599_v49  ;;  %17224 = vmatprep.subr.bf16.mxu0 %v21552_v29 }
 0xa3b   :  { %17225 = vmatpush1.bf16.msra.mxu0 %v21550_v30 }
 0xa3c   :  { %17226 = vmatprep.subr.bf16.mxu0 %v21555_v62 }
 0xa3f   :  { %17227 = vmatpush1.bf16.msra.mxu0 %v21553_v51 }
 0xa40   :  { %17228 = vmatprep.subr.bf16.mxu0 %v21558_v59 }
 0xa43   :  { %17229 = vmatpush1.bf16.msra.mxu0 %v21556_v8 }
 0xa44   :  { %17230 = vmatprep.subr.bf16.mxu0 %v21561_v15 }
 0xa47   :  { %17231 = vmatpush1.bf16.msra.mxu0 %v21559_v36 }
 0xa48   :  { %17232 = vmatprep.subr.bf16.mxu0 %v21564_v41 }
 0xa4b   :  { %17233 = vmatpush1.bf16.msra.mxu0 %v21562_v16 }
 0xa4c   :  { %17234 = vmatprep.subr.bf16.mxu0 %v21567_v13 }
 0xa4f   :  { %17235 = vmatpush1.bf16.msra.mxu0 %v21565_v61 }
 0xa52   :  { %17237 = vmatmul.mubr.bf16.vlgmr.msra.gmra.mrb[20].mxu0 %v22237_v60 }
 0xb25   :  { %v17238_v7 = vpop.f32.mrb[20].mxu0 }
 0xb26   :  { %v19600_v34 = vadd.f32 %v17238_v7, %v9998_v25  ;;  %v17240_v43 = vpop.f32.mrb[21].mxu0 }
 0xb27   :  { %v19601_v22 = vadd.f32 %v17240_v43, %v10002_v23  ;;  %v17242_v37 = vpop.f32.mrb[22].mxu0 }
 0xb28   :  { %17249 = vst [vmem:[#allocation11 + $0x20] sm:$0xff] %v19600_v34  ;;  %v17243_v0 = vpop.f32.mrb[23].mxu0 }
 0xb29   :  { %17250 = vst [vmem:[#allocation11 + $0x28] sm:$0xff] %v19601_v22 }
 0xb2a   :  { %21741 = shalt.err (!%p21738_p2)
}
 0xb2b   :  { %s21742_s3 = scalar_lea.hbm %s22305_s5, 768 }
 0xb2c   :  { %p21743_p3 = scmp.ne.s32.totalorder %s22305_s5, %s21742_s3  ;;  %p21746_p4 = scmp.lt.u32.totalorder %s21742_s3, %s22305_s5 }
 0xb2e   :  { %p21748_p5 = pnand %p21746_p4, %p21743_p3 }
 0xb30   :  { %21751 = shalt.err (!%p21748_p5)
}
 0xb31   :  { %17260 = dma.vmem_to_hbm [thread:$0]  %s17258_s27, 768, %s22305_s5, [#allocation4]  }
 0xb32   :  { %21758 = dma.done.wait [#allocation4], 768  }
 0xb33   :  { %21759 = vsyncadd [#allocation4], 4294966528 }
 0xb34   :  { %17264 = vsyncpa [#allocation3], 1 }
 0xb35   :  { %17265 = vsyncpa [#allocation6], 1 }
 0xb36   :  { %17266 = vsyncpa [#allocation9], 1 }
 0xb37   :  { %17267 = vsyncpa [#allocation4], 1 }

</bundles_post_ra>
